<compile_context>
chip_gen: v7x
topology: tpu7x:2x2x1
jax: 0.10.0
libtpu: 0.0.40
codegen_flags: <defaults>
</compile_context>

<pallas_src>
import math
import functools

import jax
import jax.numpy as jnp
from jax.experimental import pallas as pl
from jax.experimental.pallas import tpu as pltpu

# ---------------- module config (maps to MyTransformer.__init__ args) ----------------
D_MODEL = 32
NHEAD = 4
NUM_LAYERS = 2
DROPOUT = 0.0          # dropout is identity at inference
DIM_FF = 2048          # nn.Transformer default dim_feedforward
LN_EPS = 1e-5          # nn.Transformer default layer_norm_eps
OUT_DIM = 3
MEAN = 0.5
SCALE = 2.0


# ------------------------------ in-kernel building blocks -----------------------------
def _ln(z, g_ref, b_ref):
    """LayerNorm(z) over the last dim, eps=LN_EPS, affine params g/b (1, D)."""
    mu = jnp.mean(z, axis=-1, keepdims=True)
    zc = z - mu
    var = jnp.mean(zc * zc, axis=-1, keepdims=True)
    return zc * jax.lax.rsqrt(var + LN_EPS) * g_ref[...] + b_ref[...]


def _ffn(x, lp):
    """Two-layer ReLU FFN; bf16 weights, f32 accumulation; intermediate never leaves VMEM."""
    w1 = lp["ff_w1"][...]
    h = jnp.dot(x.astype(w1.dtype), w1,
                preferred_element_type=jnp.float32) + lp["ff_b1"][...]
    h = jnp.maximum(h, 0.0)
    w2 = lp["ff_w2"][...]
    return jnp.dot(h.astype(w2.dtype), w2,
                   preferred_element_type=jnp.float32) + lp["ff_b2"][...]


def _mha_attend(xq, xkv, ap):
    """Multi-head attention with packed qkv projection and per-head output accumulation.

    xq/xkv: (S, D) f32 values. ap: dict of refs {wqkv (D,3D), bqkv (1,3D), wo (D,D), bo (1,D)}.
    """
    d = xq.shape[-1]
    dh = d // NHEAD
    inv_sqrt_dh = 1.0 / math.sqrt(dh)

    wqkv = ap["wqkv"][...]
    bqkv = ap["bqkv"][...]
    qkv_q = jnp.dot(xq, wqkv, preferred_element_type=jnp.float32) + bqkv
    if xkv is xq:                      # self-attention: one projection matmul
        qkv_kv = qkv_q
    else:                              # cross-attention (tiny redundant q/k/v compute is negligible)
        qkv_kv = jnp.dot(xkv, wqkv, preferred_element_type=jnp.float32) + bqkv

    wo = ap["wo"][...]
    acc = None
    for h in range(NHEAD):             # static loop, nhead=4; all ops live in VMEM/vregs
        qh = qkv_q[:, h * dh:(h + 1) * dh]
        kh = qkv_kv[:, d + h * dh:d + (h + 1) * dh]
        vh = qkv_kv[:, 2 * d + h * dh:2 * d + (h + 1) * dh]
        s = jnp.dot(qh, kh.T, preferred_element_type=jnp.float32) * inv_sqrt_dh
        s = s - jnp.max(s, axis=-1, keepdims=True)
        e = jnp.exp(s)
        p = e / jnp.sum(e, axis=-1, keepdims=True)
        ctx = jnp.dot(p, vh, preferred_element_type=jnp.float32)
        part = jnp.dot(ctx, wo[h * dh:(h + 1) * dh, :],
                       preferred_element_type=jnp.float32)
        acc = part if acc is None else acc + part
    return acc + ap["bo"][...]


# --------------------------------- fused forward kernel -------------------------------
def _fused_forward_kernel(treedef, n_leaves, x_ref, *rest):
    param_refs = rest[:n_leaves]
    o_ref = rest[n_leaves]
    p = jax.tree_util.tree_unflatten(treedef, list(param_refs))

    # Input embedding: (x - mean)/scale and the positional row are folded into in_w/in_b.
    x = x_ref[...]
    h = jnp.dot(x, p["in_w"][...], preferred_element_type=jnp.float32) + p["in_b"][...]

    # ---------------- encoder ----------------
    mem = h
    for lp in p["enc_layers"]:
        sa = _mha_attend(mem, mem, lp["self_attn"])
        mem = _ln(mem + sa, lp["norm1_g"], lp["norm1_b"])
        ff = _ffn(mem, lp)
        mem = _ln(mem + ff, lp["norm2_g"], lp["norm2_b"])
    mem = _ln(mem, p["enc_norm_g"], p["enc_norm_b"])

    # ---------------- decoder ----------------
    out = h
    for lp in p["dec_layers"]:
        sa = _mha_attend(out, out, lp["self_attn"])
        out = _ln(out + sa, lp["norm1_g"], lp["norm1_b"])
        ca = _mha_attend(out, mem, lp["cross_attn"])
        out = _ln(out + ca, lp["norm2_g"], lp["norm2_b"])
        ff = _ffn(out, lp)
        out = _ln(out + ff, lp["norm3_g"], lp["norm3_b"])
    out = _ln(out, p["dec_norm_g"], p["dec_norm_b"])

    # Final projection to 3 features (only HBM store of the whole forward).
    o_ref[...] = jnp.dot(out, p["out_w"][...],
                         preferred_element_type=jnp.float32) + p["out_b"][...]


def forward(prepared, x):
    """Run the whole MyTransformer forward as a single pallas_call."""
    leaves, treedef = jax.tree_util.tree_flatten(prepared)
    s = x.shape[0]
    vmem = pl.BlockSpec(memory_space=pltpu.MemorySpace.VMEM)
    return pl.pallas_call(
        functools.partial(_fused_forward_kernel, treedef, len(leaves)),
        out_shape=jax.ShapeDtypeStruct((s, OUT_DIM), jnp.float32),
        in_specs=[vmem] * (1 + len(leaves)),
        out_specs=vmem,
        compiler_params=pltpu.CompilerParams(vmem_limit_bytes=32 * 1024 * 1024),
    )(x, *leaves)


# ------------------------------ parameter init (torch-like) ---------------------------
def _dense(key, din, dout):
    k = 1.0 / math.sqrt(din)
    kw, kb = jax.random.split(key)
    w = jax.random.uniform(kw, (din, dout), jnp.float32, -k, k)
    b = jax.random.uniform(kb, (1, dout), jnp.float32, -k, k)
    return w, b


def _mha_params(key, d):
    ks = jax.random.split(key, 4)
    wq, bq = _dense(ks[0], d, d)
    wk, bk = _dense(ks[1], d, d)
    wv, bv = _dense(ks[2], d, d)
    wo, bo = _dense(ks[3], d, d)
    return dict(wq=wq, wk=wk, wv=wv, bq=bq, bk=bk, bv=bv, wo=wo, bo=bo)


def _enc_layer_params(key, d, dff):
    ks = jax.random.split(key, 3)
    p = dict(self_attn=_mha_params(ks[0], d))
    p["ff_w1"], p["ff_b1"] = _dense(ks[1], d, dff)
    p["ff_w2"], p["ff_b2"] = _dense(ks[2], dff, d)
    p["norm1_g"], p["norm1_b"] = jnp.ones((1, d)), jnp.zeros((1, d))
    p["norm2_g"], p["norm2_b"] = jnp.ones((1, d)), jnp.zeros((1, d))
    return p


def _dec_layer_params(key, d, dff):
    ks = jax.random.split(key, 4)
    p = dict(self_attn=_mha_params(ks[0], d), cross_attn=_mha_params(ks[1], d))
    p["ff_w1"], p["ff_b1"] = _dense(ks[2], d, dff)
    p["ff_w2"], p["ff_b2"] = _dense(ks[3], dff, d)
    p["norm1_g"], p["norm1_b"] = jnp.ones((1, d)), jnp.zeros((1, d))
    p["norm2_g"], p["norm2_b"] = jnp.ones((1, d)), jnp.zeros((1, d))
    p["norm3_g"], p["norm3_b"] = jnp.ones((1, d)), jnp.zeros((1, d))
    return p


def init_params(key):
    d, dff = D_MODEL, DIM_FF
    ks = jax.random.split(key, 2 + 2 * NUM_LAYERS)
    params = {}
    params["in_w"], params["in_b"] = _dense(ks[0], d, d)
    params["pos"] = jnp.zeros((1, d), jnp.float32)     # positional_encoding[:, :1] (init zeros)
    params["out_w"], params["out_b"] = _dense(ks[1], d, OUT_DIM)
    params["enc_layers"] = [_enc_layer_params(ks[2 + i], d, dff) for i in range(NUM_LAYERS)]
    params["dec_layers"] = [_dec_layer_params(ks[2 + NUM_LAYERS + i], d, dff)
                            for i in range(NUM_LAYERS)]
    params["enc_norm_g"], params["enc_norm_b"] = jnp.ones((1, d)), jnp.zeros((1, d))
    params["dec_norm_g"], params["dec_norm_b"] = jnp.ones((1, d)), jnp.zeros((1, d))
    return params


# --------------------- one-time (pure JAX) parameter preparation ----------------------
def prepare_params(params, mean=MEAN, scale=SCALE, ff_dtype=jnp.bfloat16):
    """Fold mean/scale + positional row into the input projection, pack q/k/v weights,
    and cast the big FFN matrices to bf16. Pure JAX, done once outside the kernel."""
    fp = {}
    in_w, in_b = params["in_w"], params["in_b"]
    colsum = jnp.sum(in_w, axis=0, keepdims=True)           # (1, D)
    fp["in_w"] = in_w / scale
    fp["in_b"] = in_b - (mean / scale) * colsum + params["pos"]
    fp["out_w"], fp["out_b"] = params["out_w"], params["out_b"]
    fp["enc_norm_g"], fp["enc_norm_b"] = params["enc_norm_g"], params["enc_norm_b"]
    fp["dec_norm_g"], fp["dec_norm_b"] = params["dec_norm_g"], params["dec_norm_b"]

    def prep_attn(ap):
        return dict(
            wqkv=jnp.concatenate([ap["wq"], ap["wk"], ap["wv"]], axis=1),   # (D, 3D)
            bqkv=jnp.concatenate([ap["bq"], ap["bk"], ap["bv"]], axis=1),   # (1, 3D)
            wo=ap["wo"], bo=ap["bo"])

    def prep_layer(lp, is_dec):
        out = {k: lp[k] for k in lp if k.startswith("norm")}
        out["self_attn"] = prep_attn(lp["self_attn"])
        if is_dec:
            out["cross_attn"] = prep_attn(lp["cross_attn"])
        out["ff_w1"] = lp["ff_w1"].astype(ff_dtype)
        out["ff_w2"] = lp["ff_w2"].astype(ff_dtype)
        out["ff_b1"], out["ff_b2"] = lp["ff_b1"], lp["ff_b2"]
        return out

    fp["enc_layers"] = [prep_layer(lp, False) for lp in params["enc_layers"]]
    fp["dec_layers"] = [prep_layer(lp, True) for lp in params["dec_layers"]]
    return fp


# ------------------------------------------ main --------------------------------------
if __name__ == "__main__":
    key = jax.random.PRNGKey(0)
    pkey, xkey = jax.random.split(key)
    params = init_params(pkey)
    prepared = prepare_params(params)

    B = 8                                   # original batch dim == transformer seq length
    x = jax.random.normal(xkey, (B, D_MODEL), dtype=jnp.float32)

    out = jax.jit(forward)(prepared, x)
    out = jax.block_until_ready(out)
    assert out.shape == (B, OUT_DIM), out.shape
    assert bool(jnp.all(jnp.isfinite(out)))
    print("KERNEL_OK")
</pallas_src>

<mosaic_0001>
module attributes {stable_mosaic.version = 11 : i64} {
  func.func @_fused_forward_kernel(%arg0: memref<8x32xf32, #tpu.memory_space<vmem>>, %arg1: memref<1x32xf32, #tpu.memory_space<vmem>>, %arg2: memref<1x96xf32, #tpu.memory_space<vmem>>, %arg3: memref<32x32xf32, #tpu.memory_space<vmem>>, %arg4: memref<32x96xf32, #tpu.memory_space<vmem>>, %arg5: memref<1x2048xf32, #tpu.memory_space<vmem>>, %arg6: memref<1x32xf32, #tpu.memory_space<vmem>>, %arg7: memref<32x2048xbf16, #tpu.memory_space<vmem>>, %arg8: memref<2048x32xbf16, #tpu.memory_space<vmem>>, %arg9: memref<1x32xf32, #tpu.memory_space<vmem>>, %arg10: memref<1x32xf32, #tpu.memory_space<vmem>>, %arg11: memref<1x32xf32, #tpu.memory_space<vmem>>, %arg12: memref<1x32xf32, #tpu.memory_space<vmem>>, %arg13: memref<1x32xf32, #tpu.memory_space<vmem>>, %arg14: memref<1x32xf32, #tpu.memory_space<vmem>>, %arg15: memref<1x32xf32, #tpu.memory_space<vmem>>, %arg16: memref<1x96xf32, #tpu.memory_space<vmem>>, %arg17: memref<32x32xf32, #tpu.memory_space<vmem>>, %arg18: memref<32x96xf32, #tpu.memory_space<vmem>>, %arg19: memref<1x32xf32, #tpu.memory_space<vmem>>, %arg20: memref<1x96xf32, #tpu.memory_space<vmem>>, %arg21: memref<32x32xf32, #tpu.memory_space<vmem>>, %arg22: memref<32x96xf32, #tpu.memory_space<vmem>>, %arg23: memref<1x2048xf32, #tpu.memory_space<vmem>>, %arg24: memref<1x32xf32, #tpu.memory_space<vmem>>, %arg25: memref<32x2048xbf16, #tpu.memory_space<vmem>>, %arg26: memref<2048x32xbf16, #tpu.memory_space<vmem>>, %arg27: memref<1x32xf32, #tpu.memory_space<vmem>>, %arg28: memref<1x32xf32, #tpu.memory_space<vmem>>, %arg29: memref<1x32xf32, #tpu.memory_space<vmem>>, %arg30: memref<1x32xf32, #tpu.memory_space<vmem>>, %arg31: memref<1x32xf32, #tpu.memory_space<vmem>>, %arg32: memref<1x32xf32, #tpu.memory_space<vmem>>, %arg33: memref<1x32xf32, #tpu.memory_space<vmem>>, %arg34: memref<1x96xf32, #tpu.memory_space<vmem>>, %arg35: memref<32x32xf32, #tpu.memory_space<vmem>>, %arg36: memref<32x96xf32, #tpu.memory_space<vmem>>, %arg37: memref<1x32xf32, #tpu.memory_space<vmem>>, %arg38: memref<1x32xf32, #tpu.memory_space<vmem>>, %arg39: memref<1x2048xf32, #tpu.memory_space<vmem>>, %arg40: memref<1x32xf32, #tpu.memory_space<vmem>>, %arg41: memref<32x2048xbf16, #tpu.memory_space<vmem>>, %arg42: memref<2048x32xbf16, #tpu.memory_space<vmem>>, %arg43: memref<1x32xf32, #tpu.memory_space<vmem>>, %arg44: memref<1x32xf32, #tpu.memory_space<vmem>>, %arg45: memref<1x32xf32, #tpu.memory_space<vmem>>, %arg46: memref<1x32xf32, #tpu.memory_space<vmem>>, %arg47: memref<1x32xf32, #tpu.memory_space<vmem>>, %arg48: memref<1x96xf32, #tpu.memory_space<vmem>>, %arg49: memref<32x32xf32, #tpu.memory_space<vmem>>, %arg50: memref<32x96xf32, #tpu.memory_space<vmem>>, %arg51: memref<1x2048xf32, #tpu.memory_space<vmem>>, %arg52: memref<1x32xf32, #tpu.memory_space<vmem>>, %arg53: memref<32x2048xbf16, #tpu.memory_space<vmem>>, %arg54: memref<2048x32xbf16, #tpu.memory_space<vmem>>, %arg55: memref<1x32xf32, #tpu.memory_space<vmem>>, %arg56: memref<1x32xf32, #tpu.memory_space<vmem>>, %arg57: memref<1x32xf32, #tpu.memory_space<vmem>>, %arg58: memref<1x32xf32, #tpu.memory_space<vmem>>, %arg59: memref<1x32xf32, #tpu.memory_space<vmem>>, %arg60: memref<1x96xf32, #tpu.memory_space<vmem>>, %arg61: memref<32x32xf32, #tpu.memory_space<vmem>>, %arg62: memref<32x96xf32, #tpu.memory_space<vmem>>, %arg63: memref<1x32xf32, #tpu.memory_space<vmem>>, %arg64: memref<1x32xf32, #tpu.memory_space<vmem>>, %arg65: memref<1x32xf32, #tpu.memory_space<vmem>>, %arg66: memref<32x32xf32, #tpu.memory_space<vmem>>, %arg67: memref<1x3xf32, #tpu.memory_space<vmem>>, %arg68: memref<32x3xf32, #tpu.memory_space<vmem>>, %arg69: memref<8x3xf32, #tpu.memory_space<vmem>>) attributes {dimension_semantics = [], scalar_prefetch = 0 : i64, scratch_operands = 0 : i64, tpu.core_type = #tpu.core_type<tc>} {
    %c0 = arith.constant 0 : index
    %c0_0 = arith.constant 0 : index
    %0 = vector.load %arg0[%c0, %c0_0] : memref<8x32xf32, #tpu.memory_space<vmem>>, vector<8x32xf32>
    %c0_1 = arith.constant 0 : index
    %c0_2 = arith.constant 0 : index
    %1 = vector.load %arg66[%c0_1, %c0_2] : memref<32x32xf32, #tpu.memory_space<vmem>>, vector<32x32xf32>
    %cst = arith.constant dense<0.000000e+00> : vector<8x32xf32>
    %2 = tpu.matmul %0, %1, %cst {dimension_numbers = #tpu.dot_dimension_numbers<[1], [0], [0], [1], [0, 0, 1, 1], [], []>} : vector<8x32xf32>, vector<32x32xf32>, vector<8x32xf32> -> vector<8x32xf32>
    %c0_3 = arith.constant 0 : index
    %c0_4 = arith.constant 0 : index
    %3 = vector.load %arg65[%c0_3, %c0_4] : memref<1x32xf32, #tpu.memory_space<vmem>>, vector<1x32xf32>
    %4 = vector.broadcast %3 : vector<1x32xf32> to vector<8x32xf32>
    %5 = arith.addf %2, %4 : vector<8x32xf32>
    %c0_5 = arith.constant 0 : index
    %c0_6 = arith.constant 0 : index
    %6 = vector.load %arg50[%c0_5, %c0_6] : memref<32x96xf32, #tpu.memory_space<vmem>>, vector<32x96xf32>
    %c0_7 = arith.constant 0 : index
    %c0_8 = arith.constant 0 : index
    %7 = vector.load %arg48[%c0_7, %c0_8] : memref<1x96xf32, #tpu.memory_space<vmem>>, vector<1x96xf32>
    %cst_9 = arith.constant dense<0.000000e+00> : vector<8x96xf32>
    %8 = tpu.matmul %5, %6, %cst_9 {dimension_numbers = #tpu.dot_dimension_numbers<[1], [0], [0], [1], [0, 0, 1, 1], [], []>} : vector<8x32xf32>, vector<32x96xf32>, vector<8x96xf32> -> vector<8x96xf32>
    %9 = vector.broadcast %7 : vector<1x96xf32> to vector<8x96xf32>
    %10 = arith.addf %8, %9 : vector<8x96xf32>
    %c0_10 = arith.constant 0 : index
    %c0_11 = arith.constant 0 : index
    %11 = vector.load %arg49[%c0_10, %c0_11] : memref<32x32xf32, #tpu.memory_space<vmem>>, vector<32x32xf32>
    %12 = vector.extract_strided_slice %10 {offsets = [0, 0], sizes = [8, 8], strides = [1, 1]} : vector<8x96xf32> to vector<8x8xf32>
    %13 = vector.extract_strided_slice %10 {offsets = [0, 32], sizes = [8, 8], strides = [1, 1]} : vector<8x96xf32> to vector<8x8xf32>
    %14 = vector.extract_strided_slice %10 {offsets = [0, 64], sizes = [8, 8], strides = [1, 1]} : vector<8x96xf32> to vector<8x8xf32>
    %15 = tpu.transpose %13, [1, 0] : vector<8x8xf32> -> vector<8x8xf32>
    %cst_12 = arith.constant dense<0.000000e+00> : vector<8x8xf32>
    %16 = tpu.matmul %12, %15, %cst_12 {dimension_numbers = #tpu.dot_dimension_numbers<[1], [0], [0], [1], [0, 0, 1, 1], [], []>} : vector<8x8xf32>, vector<8x8xf32>, vector<8x8xf32> -> vector<8x8xf32>
    %cst_13 = arith.constant 0.353553385 : f32
    %17 = vector.broadcast %cst_13 : f32 to vector<8x8xf32>
    %18 = arith.mulf %16, %17 : vector<8x8xf32>
    %cst_14 = arith.constant dense<0xFF800000> : vector<8xf32>
    %19 = vector.multi_reduction <maximumf>, %18, %cst_14 [1] : vector<8x8xf32> to vector<8xf32>
    %20 = vector.shape_cast %19 : vector<8xf32> to vector<8x1xf32>
    %21 = vector.broadcast %20 : vector<8x1xf32> to vector<8x8xf32>
    %22 = arith.subf %18, %21 : vector<8x8xf32>
    %23 = math.exp %22 : vector<8x8xf32>
    %cst_15 = arith.constant dense<0.000000e+00> : vector<8xf32>
    %24 = vector.multi_reduction <add>, %23, %cst_15 [1] : vector<8x8xf32> to vector<8xf32>
    %25 = vector.shape_cast %24 : vector<8xf32> to vector<8x1xf32>
    %26 = vector.broadcast %25 : vector<8x1xf32> to vector<8x8xf32>
    %27 = arith.divf %23, %26 : vector<8x8xf32>
    %cst_16 = arith.constant dense<0.000000e+00> : vector<8x8xf32>
    %28 = tpu.matmul %27, %14, %cst_16 {dimension_numbers = #tpu.dot_dimension_numbers<[1], [0], [0], [1], [0, 0, 1, 1], [], []>} : vector<8x8xf32>, vector<8x8xf32>, vector<8x8xf32> -> vector<8x8xf32>
    %29 = vector.extract_strided_slice %11 {offsets = [0, 0], sizes = [8, 32], strides = [1, 1]} : vector<32x32xf32> to vector<8x32xf32>
    %cst_17 = arith.constant dense<0.000000e+00> : vector<8x32xf32>
    %30 = tpu.matmul %28, %29, %cst_17 {dimension_numbers = #tpu.dot_dimension_numbers<[1], [0], [0], [1], [0, 0, 1, 1], [], []>} : vector<8x8xf32>, vector<8x32xf32>, vector<8x32xf32> -> vector<8x32xf32>
    %31 = vector.extract_strided_slice %10 {offsets = [0, 8], sizes = [8, 8], strides = [1, 1]} : vector<8x96xf32> to vector<8x8xf32>
    %32 = vector.extract_strided_slice %10 {offsets = [0, 40], sizes = [8, 8], strides = [1, 1]} : vector<8x96xf32> to vector<8x8xf32>
    %33 = vector.extract_strided_slice %10 {offsets = [0, 72], sizes = [8, 8], strides = [1, 1]} : vector<8x96xf32> to vector<8x8xf32>
    %34 = tpu.transpose %32, [1, 0] : vector<8x8xf32> -> vector<8x8xf32>
    %cst_18 = arith.constant dense<0.000000e+00> : vector<8x8xf32>
    %35 = tpu.matmul %31, %34, %cst_18 {dimension_numbers = #tpu.dot_dimension_numbers<[1], [0], [0], [1], [0, 0, 1, 1], [], []>} : vector<8x8xf32>, vector<8x8xf32>, vector<8x8xf32> -> vector<8x8xf32>
    %cst_19 = arith.constant 0.353553385 : f32
    %36 = vector.broadcast %cst_19 : f32 to vector<8x8xf32>
    %37 = arith.mulf %35, %36 : vector<8x8xf32>
    %cst_20 = arith.constant dense<0xFF800000> : vector<8xf32>
    %38 = vector.multi_reduction <maximumf>, %37, %cst_20 [1] : vector<8x8xf32> to vector<8xf32>
    %39 = vector.shape_cast %38 : vector<8xf32> to vector<8x1xf32>
    %40 = vector.broadcast %39 : vector<8x1xf32> to vector<8x8xf32>
    %41 = arith.subf %37, %40 : vector<8x8xf32>
    %42 = math.exp %41 : vector<8x8xf32>
    %cst_21 = arith.constant dense<0.000000e+00> : vector<8xf32>
    %43 = vector.multi_reduction <add>, %42, %cst_21 [1] : vector<8x8xf32> to vector<8xf32>
    %44 = vector.shape_cast %43 : vector<8xf32> to vector<8x1xf32>
    %45 = vector.broadcast %44 : vector<8x1xf32> to vector<8x8xf32>
    %46 = arith.divf %42, %45 : vector<8x8xf32>
    %cst_22 = arith.constant dense<0.000000e+00> : vector<8x8xf32>
    %47 = tpu.matmul %46, %33, %cst_22 {dimension_numbers = #tpu.dot_dimension_numbers<[1], [0], [0], [1], [0, 0, 1, 1], [], []>} : vector<8x8xf32>, vector<8x8xf32>, vector<8x8xf32> -> vector<8x8xf32>
    %48 = vector.extract_strided_slice %11 {offsets = [8, 0], sizes = [8, 32], strides = [1, 1]} : vector<32x32xf32> to vector<8x32xf32>
    %cst_23 = arith.constant dense<0.000000e+00> : vector<8x32xf32>
    %49 = tpu.matmul %47, %48, %cst_23 {dimension_numbers = #tpu.dot_dimension_numbers<[1], [0], [0], [1], [0, 0, 1, 1], [], []>} : vector<8x8xf32>, vector<8x32xf32>, vector<8x32xf32> -> vector<8x32xf32>
    %50 = arith.addf %30, %49 : vector<8x32xf32>
    %51 = vector.extract_strided_slice %10 {offsets = [0, 16], sizes = [8, 8], strides = [1, 1]} : vector<8x96xf32> to vector<8x8xf32>
    %52 = vector.extract_strided_slice %10 {offsets = [0, 48], sizes = [8, 8], strides = [1, 1]} : vector<8x96xf32> to vector<8x8xf32>
    %53 = vector.extract_strided_slice %10 {offsets = [0, 80], sizes = [8, 8], strides = [1, 1]} : vector<8x96xf32> to vector<8x8xf32>
    %54 = tpu.transpose %52, [1, 0] : vector<8x8xf32> -> vector<8x8xf32>
    %cst_24 = arith.constant dense<0.000000e+00> : vector<8x8xf32>
    %55 = tpu.matmul %51, %54, %cst_24 {dimension_numbers = #tpu.dot_dimension_numbers<[1], [0], [0], [1], [0, 0, 1, 1], [], []>} : vector<8x8xf32>, vector<8x8xf32>, vector<8x8xf32> -> vector<8x8xf32>
    %cst_25 = arith.constant 0.353553385 : f32
    %56 = vector.broadcast %cst_25 : f32 to vector<8x8xf32>
    %57 = arith.mulf %55, %56 : vector<8x8xf32>
    %cst_26 = arith.constant dense<0xFF800000> : vector<8xf32>
    %58 = vector.multi_reduction <maximumf>, %57, %cst_26 [1] : vector<8x8xf32> to vector<8xf32>
    %59 = vector.shape_cast %58 : vector<8xf32> to vector<8x1xf32>
    %60 = vector.broadcast %59 : vector<8x1xf32> to vector<8x8xf32>
    %61 = arith.subf %57, %60 : vector<8x8xf32>
    %62 = math.exp %61 : vector<8x8xf32>
    %cst_27 = arith.constant dense<0.000000e+00> : vector<8xf32>
    %63 = vector.multi_reduction <add>, %62, %cst_27 [1] : vector<8x8xf32> to vector<8xf32>
    %64 = vector.shape_cast %63 : vector<8xf32> to vector<8x1xf32>
    %65 = vector.broadcast %64 : vector<8x1xf32> to vector<8x8xf32>
    %66 = arith.divf %62, %65 : vector<8x8xf32>
    %cst_28 = arith.constant dense<0.000000e+00> : vector<8x8xf32>
    %67 = tpu.matmul %66, %53, %cst_28 {dimension_numbers = #tpu.dot_dimension_numbers<[1], [0], [0], [1], [0, 0, 1, 1], [], []>} : vector<8x8xf32>, vector<8x8xf32>, vector<8x8xf32> -> vector<8x8xf32>
    %68 = vector.extract_strided_slice %11 {offsets = [16, 0], sizes = [8, 32], strides = [1, 1]} : vector<32x32xf32> to vector<8x32xf32>
    %cst_29 = arith.constant dense<0.000000e+00> : vector<8x32xf32>
    %69 = tpu.matmul %67, %68, %cst_29 {dimension_numbers = #tpu.dot_dimension_numbers<[1], [0], [0], [1], [0, 0, 1, 1], [], []>} : vector<8x8xf32>, vector<8x32xf32>, vector<8x32xf32> -> vector<8x32xf32>
    %70 = arith.addf %50, %69 : vector<8x32xf32>
    %71 = vector.extract_strided_slice %10 {offsets = [0, 24], sizes = [8, 8], strides = [1, 1]} : vector<8x96xf32> to vector<8x8xf32>
    %72 = vector.extract_strided_slice %10 {offsets = [0, 56], sizes = [8, 8], strides = [1, 1]} : vector<8x96xf32> to vector<8x8xf32>
    %73 = vector.extract_strided_slice %10 {offsets = [0, 88], sizes = [8, 8], strides = [1, 1]} : vector<8x96xf32> to vector<8x8xf32>
    %74 = tpu.transpose %72, [1, 0] : vector<8x8xf32> -> vector<8x8xf32>
    %cst_30 = arith.constant dense<0.000000e+00> : vector<8x8xf32>
    %75 = tpu.matmul %71, %74, %cst_30 {dimension_numbers = #tpu.dot_dimension_numbers<[1], [0], [0], [1], [0, 0, 1, 1], [], []>} : vector<8x8xf32>, vector<8x8xf32>, vector<8x8xf32> -> vector<8x8xf32>
    %cst_31 = arith.constant 0.353553385 : f32
    %76 = vector.broadcast %cst_31 : f32 to vector<8x8xf32>
    %77 = arith.mulf %75, %76 : vector<8x8xf32>
    %cst_32 = arith.constant dense<0xFF800000> : vector<8xf32>
    %78 = vector.multi_reduction <maximumf>, %77, %cst_32 [1] : vector<8x8xf32> to vector<8xf32>
    %79 = vector.shape_cast %78 : vector<8xf32> to vector<8x1xf32>
    %80 = vector.broadcast %79 : vector<8x1xf32> to vector<8x8xf32>
    %81 = arith.subf %77, %80 : vector<8x8xf32>
    %82 = math.exp %81 : vector<8x8xf32>
    %cst_33 = arith.constant dense<0.000000e+00> : vector<8xf32>
    %83 = vector.multi_reduction <add>, %82, %cst_33 [1] : vector<8x8xf32> to vector<8xf32>
    %84 = vector.shape_cast %83 : vector<8xf32> to vector<8x1xf32>
    %85 = vector.broadcast %84 : vector<8x1xf32> to vector<8x8xf32>
    %86 = arith.divf %82, %85 : vector<8x8xf32>
    %cst_34 = arith.constant dense<0.000000e+00> : vector<8x8xf32>
    %87 = tpu.matmul %86, %73, %cst_34 {dimension_numbers = #tpu.dot_dimension_numbers<[1], [0], [0], [1], [0, 0, 1, 1], [], []>} : vector<8x8xf32>, vector<8x8xf32>, vector<8x8xf32> -> vector<8x8xf32>
    %88 = vector.extract_strided_slice %11 {offsets = [24, 0], sizes = [8, 32], strides = [1, 1]} : vector<32x32xf32> to vector<8x32xf32>
    %cst_35 = arith.constant dense<0.000000e+00> : vector<8x32xf32>
    %89 = tpu.matmul %87, %88, %cst_35 {dimension_numbers = #tpu.dot_dimension_numbers<[1], [0], [0], [1], [0, 0, 1, 1], [], []>} : vector<8x8xf32>, vector<8x32xf32>, vector<8x32xf32> -> vector<8x32xf32>
    %90 = arith.addf %70, %89 : vector<8x32xf32>
    %c0_36 = arith.constant 0 : index
    %c0_37 = arith.constant 0 : index
    %91 = vector.load %arg47[%c0_36, %c0_37] : memref<1x32xf32, #tpu.memory_space<vmem>>, vector<1x32xf32>
    %92 = vector.broadcast %91 : vector<1x32xf32> to vector<8x32xf32>
    %93 = arith.addf %90, %92 : vector<8x32xf32>
    %94 = arith.addf %5, %93 : vector<8x32xf32>
    %cst_38 = arith.constant dense<0.000000e+00> : vector<8xf32>
    %95 = vector.multi_reduction <add>, %94, %cst_38 [1] : vector<8x32xf32> to vector<8xf32>
    %96 = vector.shape_cast %95 : vector<8xf32> to vector<8x1xf32>
    %cst_39 = arith.constant 3.200000e+01 : f32
    %97 = vector.broadcast %cst_39 : f32 to vector<8x1xf32>
    %98 = arith.divf %96, %97 : vector<8x1xf32>
    %99 = vector.broadcast %98 : vector<8x1xf32> to vector<8x32xf32>
    %100 = arith.subf %94, %99 : vector<8x32xf32>
    %101 = arith.mulf %100, %100 : vector<8x32xf32>
    %cst_40 = arith.constant dense<0.000000e+00> : vector<8xf32>
    %102 = vector.multi_reduction <add>, %101, %cst_40 [1] : vector<8x32xf32> to vector<8xf32>
    %103 = vector.shape_cast %102 : vector<8xf32> to vector<8x1xf32>
    %cst_41 = arith.constant 3.200000e+01 : f32
    %104 = vector.broadcast %cst_41 : f32 to vector<8x1xf32>
    %105 = arith.divf %103, %104 : vector<8x1xf32>
    %cst_42 = arith.constant 9.99999974E-6 : f32
    %106 = vector.broadcast %cst_42 : f32 to vector<8x1xf32>
    %107 = arith.addf %105, %106 : vector<8x1xf32>
    %108 = math.rsqrt %107 : vector<8x1xf32>
    %109 = vector.broadcast %108 : vector<8x1xf32> to vector<8x32xf32>
    %110 = arith.mulf %100, %109 : vector<8x32xf32>
    %c0_43 = arith.constant 0 : index
    %c0_44 = arith.constant 0 : index
    %111 = vector.load %arg44[%c0_43, %c0_44] : memref<1x32xf32, #tpu.memory_space<vmem>>, vector<1x32xf32>
    %112 = vector.broadcast %111 : vector<1x32xf32> to vector<8x32xf32>
    %113 = arith.mulf %110, %112 : vector<8x32xf32>
    %c0_45 = arith.constant 0 : index
    %c0_46 = arith.constant 0 : index
    %114 = vector.load %arg43[%c0_45, %c0_46] : memref<1x32xf32, #tpu.memory_space<vmem>>, vector<1x32xf32>
    %115 = vector.broadcast %114 : vector<1x32xf32> to vector<8x32xf32>
    %116 = arith.addf %113, %115 : vector<8x32xf32>
    %c0_47 = arith.constant 0 : index
    %c0_48 = arith.constant 0 : index
    %117 = vector.load %arg41[%c0_47, %c0_48] : memref<32x2048xbf16, #tpu.memory_space<vmem>>, vector<32x2048xbf16>
    %118 = arith.truncf %116 : vector<8x32xf32> to vector<8x32xbf16>
    %cst_49 = arith.constant dense<0.000000e+00> : vector<8x2048xf32>
    %119 = tpu.matmul %118, %117, %cst_49 {dimension_numbers = #tpu.dot_dimension_numbers<[1], [0], [0], [1], [0, 0, 1, 1], [], []>} : vector<8x32xbf16>, vector<32x2048xbf16>, vector<8x2048xf32> -> vector<8x2048xf32>
    %c0_50 = arith.constant 0 : index
    %c0_51 = arith.constant 0 : index
    %120 = vector.load %arg39[%c0_50, %c0_51] : memref<1x2048xf32, #tpu.memory_space<vmem>>, vector<1x2048xf32>
    %121 = vector.broadcast %120 : vector<1x2048xf32> to vector<8x2048xf32>
    %122 = arith.addf %119, %121 : vector<8x2048xf32>
    %cst_52 = arith.constant 0.000000e+00 : f32
    %123 = vector.broadcast %cst_52 : f32 to vector<8x2048xf32>
    %124 = arith.maximumf %122, %123 : vector<8x2048xf32>
    %c0_53 = arith.constant 0 : index
    %c0_54 = arith.constant 0 : index
    %125 = vector.load %arg42[%c0_53, %c0_54] : memref<2048x32xbf16, #tpu.memory_space<vmem>>, vector<2048x32xbf16>
    %126 = arith.truncf %124 : vector<8x2048xf32> to vector<8x2048xbf16>
    %cst_55 = arith.constant dense<0.000000e+00> : vector<8x32xf32>
    %127 = tpu.matmul %126, %125, %cst_55 {dimension_numbers = #tpu.dot_dimension_numbers<[1], [0], [0], [1], [0, 0, 1, 1], [], []>} : vector<8x2048xbf16>, vector<2048x32xbf16>, vector<8x32xf32> -> vector<8x32xf32>
    %c0_56 = arith.constant 0 : index
    %c0_57 = arith.constant 0 : index
    %128 = vector.load %arg40[%c0_56, %c0_57] : memref<1x32xf32, #tpu.memory_space<vmem>>, vector<1x32xf32>
    %129 = vector.broadcast %128 : vector<1x32xf32> to vector<8x32xf32>
    %130 = arith.addf %127, %129 : vector<8x32xf32>
    %131 = arith.addf %116, %130 : vector<8x32xf32>
    %cst_58 = arith.constant dense<0.000000e+00> : vector<8xf32>
    %132 = vector.multi_reduction <add>, %131, %cst_58 [1] : vector<8x32xf32> to vector<8xf32>
    %133 = vector.shape_cast %132 : vector<8xf32> to vector<8x1xf32>
    %cst_59 = arith.constant 3.200000e+01 : f32
    %134 = vector.broadcast %cst_59 : f32 to vector<8x1xf32>
    %135 = arith.divf %133, %134 : vector<8x1xf32>
    %136 = vector.broadcast %135 : vector<8x1xf32> to vector<8x32xf32>
    %137 = arith.subf %131, %136 : vector<8x32xf32>
    %138 = arith.mulf %137, %137 : vector<8x32xf32>
    %cst_60 = arith.constant dense<0.000000e+00> : vector<8xf32>
    %139 = vector.multi_reduction <add>, %138, %cst_60 [1] : vector<8x32xf32> to vector<8xf32>
    %140 = vector.shape_cast %139 : vector<8xf32> to vector<8x1xf32>
    %cst_61 = arith.constant 3.200000e+01 : f32
    %141 = vector.broadcast %cst_61 : f32 to vector<8x1xf32>
    %142 = arith.divf %140, %141 : vector<8x1xf32>
    %cst_62 = arith.constant 9.99999974E-6 : f32
    %143 = vector.broadcast %cst_62 : f32 to vector<8x1xf32>
    %144 = arith.addf %142, %143 : vector<8x1xf32>
    %145 = math.rsqrt %144 : vector<8x1xf32>
    %146 = vector.broadcast %145 : vector<8x1xf32> to vector<8x32xf32>
    %147 = arith.mulf %137, %146 : vector<8x32xf32>
    %c0_63 = arith.constant 0 : index
    %c0_64 = arith.constant 0 : index
    %148 = vector.load %arg46[%c0_63, %c0_64] : memref<1x32xf32, #tpu.memory_space<vmem>>, vector<1x32xf32>
    %149 = vector.broadcast %148 : vector<1x32xf32> to vector<8x32xf32>
    %150 = arith.mulf %147, %149 : vector<8x32xf32>
    %c0_65 = arith.constant 0 : index
    %c0_66 = arith.constant 0 : index
    %151 = vector.load %arg45[%c0_65, %c0_66] : memref<1x32xf32, #tpu.memory_space<vmem>>, vector<1x32xf32>
    %152 = vector.broadcast %151 : vector<1x32xf32> to vector<8x32xf32>
    %153 = arith.addf %150, %152 : vector<8x32xf32>
    %c0_67 = arith.constant 0 : index
    %c0_68 = arith.constant 0 : index
    %154 = vector.load %arg62[%c0_67, %c0_68] : memref<32x96xf32, #tpu.memory_space<vmem>>, vector<32x96xf32>
    %c0_69 = arith.constant 0 : index
    %c0_70 = arith.constant 0 : index
    %155 = vector.load %arg60[%c0_69, %c0_70] : memref<1x96xf32, #tpu.memory_space<vmem>>, vector<1x96xf32>
    %cst_71 = arith.constant dense<0.000000e+00> : vector<8x96xf32>
    %156 = tpu.matmul %153, %154, %cst_71 {dimension_numbers = #tpu.dot_dimension_numbers<[1], [0], [0], [1], [0, 0, 1, 1], [], []>} : vector<8x32xf32>, vector<32x96xf32>, vector<8x96xf32> -> vector<8x96xf32>
    %157 = vector.broadcast %155 : vector<1x96xf32> to vector<8x96xf32>
    %158 = arith.addf %156, %157 : vector<8x96xf32>
    %c0_72 = arith.constant 0 : index
    %c0_73 = arith.constant 0 : index
    %159 = vector.load %arg61[%c0_72, %c0_73] : memref<32x32xf32, #tpu.memory_space<vmem>>, vector<32x32xf32>
    %160 = vector.extract_strided_slice %158 {offsets = [0, 0], sizes = [8, 8], strides = [1, 1]} : vector<8x96xf32> to vector<8x8xf32>
    %161 = vector.extract_strided_slice %158 {offsets = [0, 32], sizes = [8, 8], strides = [1, 1]} : vector<8x96xf32> to vector<8x8xf32>
    %162 = vector.extract_strided_slice %158 {offsets = [0, 64], sizes = [8, 8], strides = [1, 1]} : vector<8x96xf32> to vector<8x8xf32>
    %163 = tpu.transpose %161, [1, 0] : vector<8x8xf32> -> vector<8x8xf32>
    %cst_74 = arith.constant dense<0.000000e+00> : vector<8x8xf32>
    %164 = tpu.matmul %160, %163, %cst_74 {dimension_numbers = #tpu.dot_dimension_numbers<[1], [0], [0], [1], [0, 0, 1, 1], [], []>} : vector<8x8xf32>, vector<8x8xf32>, vector<8x8xf32> -> vector<8x8xf32>
    %cst_75 = arith.constant 0.353553385 : f32
    %165 = vector.broadcast %cst_75 : f32 to vector<8x8xf32>
    %166 = arith.mulf %164, %165 : vector<8x8xf32>
    %cst_76 = arith.constant dense<0xFF800000> : vector<8xf32>
    %167 = vector.multi_reduction <maximumf>, %166, %cst_76 [1] : vector<8x8xf32> to vector<8xf32>
    %168 = vector.shape_cast %167 : vector<8xf32> to vector<8x1xf32>
    %169 = vector.broadcast %168 : vector<8x1xf32> to vector<8x8xf32>
    %170 = arith.subf %166, %169 : vector<8x8xf32>
    %171 = math.exp %170 : vector<8x8xf32>
    %cst_77 = arith.constant dense<0.000000e+00> : vector<8xf32>
    %172 = vector.multi_reduction <add>, %171, %cst_77 [1] : vector<8x8xf32> to vector<8xf32>
    %173 = vector.shape_cast %172 : vector<8xf32> to vector<8x1xf32>
    %174 = vector.broadcast %173 : vector<8x1xf32> to vector<8x8xf32>
    %175 = arith.divf %171, %174 : vector<8x8xf32>
    %cst_78 = arith.constant dense<0.000000e+00> : vector<8x8xf32>
    %176 = tpu.matmul %175, %162, %cst_78 {dimension_numbers = #tpu.dot_dimension_numbers<[1], [0], [0], [1], [0, 0, 1, 1], [], []>} : vector<8x8xf32>, vector<8x8xf32>, vector<8x8xf32> -> vector<8x8xf32>
    %177 = vector.extract_strided_slice %159 {offsets = [0, 0], sizes = [8, 32], strides = [1, 1]} : vector<32x32xf32> to vector<8x32xf32>
    %cst_79 = arith.constant dense<0.000000e+00> : vector<8x32xf32>
    %178 = tpu.matmul %176, %177, %cst_79 {dimension_numbers = #tpu.dot_dimension_numbers<[1], [0], [0], [1], [0, 0, 1, 1], [], []>} : vector<8x8xf32>, vector<8x32xf32>, vector<8x32xf32> -> vector<8x32xf32>
    %179 = vector.extract_strided_slice %158 {offsets = [0, 8], sizes = [8, 8], strides = [1, 1]} : vector<8x96xf32> to vector<8x8xf32>
    %180 = vector.extract_strided_slice %158 {offsets = [0, 40], sizes = [8, 8], strides = [1, 1]} : vector<8x96xf32> to vector<8x8xf32>
    %181 = vector.extract_strided_slice %158 {offsets = [0, 72], sizes = [8, 8], strides = [1, 1]} : vector<8x96xf32> to vector<8x8xf32>
    %182 = tpu.transpose %180, [1, 0] : vector<8x8xf32> -> vector<8x8xf32>
    %cst_80 = arith.constant dense<0.000000e+00> : vector<8x8xf32>
    %183 = tpu.matmul %179, %182, %cst_80 {dimension_numbers = #tpu.dot_dimension_numbers<[1], [0], [0], [1], [0, 0, 1, 1], [], []>} : vector<8x8xf32>, vector<8x8xf32>, vector<8x8xf32> -> vector<8x8xf32>
    %cst_81 = arith.constant 0.353553385 : f32
    %184 = vector.broadcast %cst_81 : f32 to vector<8x8xf32>
    %185 = arith.mulf %183, %184 : vector<8x8xf32>
    %cst_82 = arith.constant dense<0xFF800000> : vector<8xf32>
    %186 = vector.multi_reduction <maximumf>, %185, %cst_82 [1] : vector<8x8xf32> to vector<8xf32>
    %187 = vector.shape_cast %186 : vector<8xf32> to vector<8x1xf32>
    %188 = vector.broadcast %187 : vector<8x1xf32> to vector<8x8xf32>
    %189 = arith.subf %185, %188 : vector<8x8xf32>
    %190 = math.exp %189 : vector<8x8xf32>
    %cst_83 = arith.constant dense<0.000000e+00> : vector<8xf32>
    %191 = vector.multi_reduction <add>, %190, %cst_83 [1] : vector<8x8xf32> to vector<8xf32>
    %192 = vector.shape_cast %191 : vector<8xf32> to vector<8x1xf32>
    %193 = vector.broadcast %192 : vector<8x1xf32> to vector<8x8xf32>
    %194 = arith.divf %190, %193 : vector<8x8xf32>
    %cst_84 = arith.constant dense<0.000000e+00> : vector<8x8xf32>
    %195 = tpu.matmul %194, %181, %cst_84 {dimension_numbers = #tpu.dot_dimension_numbers<[1], [0], [0], [1], [0, 0, 1, 1], [], []>} : vector<8x8xf32>, vector<8x8xf32>, vector<8x8xf32> -> vector<8x8xf32>
    %196 = vector.extract_strided_slice %159 {offsets = [8, 0], sizes = [8, 32], strides = [1, 1]} : vector<32x32xf32> to vector<8x32xf32>
    %cst_85 = arith.constant dense<0.000000e+00> : vector<8x32xf32>
    %197 = tpu.matmul %195, %196, %cst_85 {dimension_numbers = #tpu.dot_dimension_numbers<[1], [0], [0], [1], [0, 0, 1, 1], [], []>} : vector<8x8xf32>, vector<8x32xf32>, vector<8x32xf32> -> vector<8x32xf32>
    %198 = arith.addf %178, %197 : vector<8x32xf32>
    %199 = vector.extract_strided_slice %158 {offsets = [0, 16], sizes = [8, 8], strides = [1, 1]} : vector<8x96xf32> to vector<8x8xf32>
    %200 = vector.extract_strided_slice %158 {offsets = [0, 48], sizes = [8, 8], strides = [1, 1]} : vector<8x96xf32> to vector<8x8xf32>
    %201 = vector.extract_strided_slice %158 {offsets = [0, 80], sizes = [8, 8], strides = [1, 1]} : vector<8x96xf32> to vector<8x8xf32>
    %202 = tpu.transpose %200, [1, 0] : vector<8x8xf32> -> vector<8x8xf32>
    %cst_86 = arith.constant dense<0.000000e+00> : vector<8x8xf32>
    %203 = tpu.matmul %199, %202, %cst_86 {dimension_numbers = #tpu.dot_dimension_numbers<[1], [0], [0], [1], [0, 0, 1, 1], [], []>} : vector<8x8xf32>, vector<8x8xf32>, vector<8x8xf32> -> vector<8x8xf32>
    %cst_87 = arith.constant 0.353553385 : f32
    %204 = vector.broadcast %cst_87 : f32 to vector<8x8xf32>
    %205 = arith.mulf %203, %204 : vector<8x8xf32>
    %cst_88 = arith.constant dense<0xFF800000> : vector<8xf32>
    %206 = vector.multi_reduction <maximumf>, %205, %cst_88 [1] : vector<8x8xf32> to vector<8xf32>
    %207 = vector.shape_cast %206 : vector<8xf32> to vector<8x1xf32>
    %208 = vector.broadcast %207 : vector<8x1xf32> to vector<8x8xf32>
    %209 = arith.subf %205, %208 : vector<8x8xf32>
    %210 = math.exp %209 : vector<8x8xf32>
    %cst_89 = arith.constant dense<0.000000e+00> : vector<8xf32>
    %211 = vector.multi_reduction <add>, %210, %cst_89 [1] : vector<8x8xf32> to vector<8xf32>
    %212 = vector.shape_cast %211 : vector<8xf32> to vector<8x1xf32>
    %213 = vector.broadcast %212 : vector<8x1xf32> to vector<8x8xf32>
    %214 = arith.divf %210, %213 : vector<8x8xf32>
    %cst_90 = arith.constant dense<0.000000e+00> : vector<8x8xf32>
    %215 = tpu.matmul %214, %201, %cst_90 {dimension_numbers = #tpu.dot_dimension_numbers<[1], [0], [0], [1], [0, 0, 1, 1], [], []>} : vector<8x8xf32>, vector<8x8xf32>, vector<8x8xf32> -> vector<8x8xf32>
    %216 = vector.extract_strided_slice %159 {offsets = [16, 0], sizes = [8, 32], strides = [1, 1]} : vector<32x32xf32> to vector<8x32xf32>
    %cst_91 = arith.constant dense<0.000000e+00> : vector<8x32xf32>
    %217 = tpu.matmul %215, %216, %cst_91 {dimension_numbers = #tpu.dot_dimension_numbers<[1], [0], [0], [1], [0, 0, 1, 1], [], []>} : vector<8x8xf32>, vector<8x32xf32>, vector<8x32xf32> -> vector<8x32xf32>
    %218 = arith.addf %198, %217 : vector<8x32xf32>
    %219 = vector.extract_strided_slice %158 {offsets = [0, 24], sizes = [8, 8], strides = [1, 1]} : vector<8x96xf32> to vector<8x8xf32>
    %220 = vector.extract_strided_slice %158 {offsets = [0, 56], sizes = [8, 8], strides = [1, 1]} : vector<8x96xf32> to vector<8x8xf32>
    %221 = vector.extract_strided_slice %158 {offsets = [0, 88], sizes = [8, 8], strides = [1, 1]} : vector<8x96xf32> to vector<8x8xf32>
    %222 = tpu.transpose %220, [1, 0] : vector<8x8xf32> -> vector<8x8xf32>
    %cst_92 = arith.constant dense<0.000000e+00> : vector<8x8xf32>
    %223 = tpu.matmul %219, %222, %cst_92 {dimension_numbers = #tpu.dot_dimension_numbers<[1], [0], [0], [1], [0, 0, 1, 1], [], []>} : vector<8x8xf32>, vector<8x8xf32>, vector<8x8xf32> -> vector<8x8xf32>
    %cst_93 = arith.constant 0.353553385 : f32
    %224 = vector.broadcast %cst_93 : f32 to vector<8x8xf32>
    %225 = arith.mulf %223, %224 : vector<8x8xf32>
    %cst_94 = arith.constant dense<0xFF800000> : vector<8xf32>
    %226 = vector.multi_reduction <maximumf>, %225, %cst_94 [1] : vector<8x8xf32> to vector<8xf32>
    %227 = vector.shape_cast %226 : vector<8xf32> to vector<8x1xf32>
    %228 = vector.broadcast %227 : vector<8x1xf32> to vector<8x8xf32>
    %229 = arith.subf %225, %228 : vector<8x8xf32>
    %230 = math.exp %229 : vector<8x8xf32>
    %cst_95 = arith.constant dense<0.000000e+00> : vector<8xf32>
    %231 = vector.multi_reduction <add>, %230, %cst_95 [1] : vector<8x8xf32> to vector<8xf32>
    %232 = vector.shape_cast %231 : vector<8xf32> to vector<8x1xf32>
    %233 = vector.broadcast %232 : vector<8x1xf32> to vector<8x8xf32>
    %234 = arith.divf %230, %233 : vector<8x8xf32>
    %cst_96 = arith.constant dense<0.000000e+00> : vector<8x8xf32>
    %235 = tpu.matmul %234, %221, %cst_96 {dimension_numbers = #tpu.dot_dimension_numbers<[1], [0], [0], [1], [0, 0, 1, 1], [], []>} : vector<8x8xf32>, vector<8x8xf32>, vector<8x8xf32> -> vector<8x8xf32>
    %236 = vector.extract_strided_slice %159 {offsets = [24, 0], sizes = [8, 32], strides = [1, 1]} : vector<32x32xf32> to vector<8x32xf32>
    %cst_97 = arith.constant dense<0.000000e+00> : vector<8x32xf32>
    %237 = tpu.matmul %235, %236, %cst_97 {dimension_numbers = #tpu.dot_dimension_numbers<[1], [0], [0], [1], [0, 0, 1, 1], [], []>} : vector<8x8xf32>, vector<8x32xf32>, vector<8x32xf32> -> vector<8x32xf32>
    %238 = arith.addf %218, %237 : vector<8x32xf32>
    %c0_98 = arith.constant 0 : index
    %c0_99 = arith.constant 0 : index
    %239 = vector.load %arg59[%c0_98, %c0_99] : memref<1x32xf32, #tpu.memory_space<vmem>>, vector<1x32xf32>
    %240 = vector.broadcast %239 : vector<1x32xf32> to vector<8x32xf32>
    %241 = arith.addf %238, %240 : vector<8x32xf32>
    %242 = arith.addf %153, %241 : vector<8x32xf32>
    %cst_100 = arith.constant dense<0.000000e+00> : vector<8xf32>
    %243 = vector.multi_reduction <add>, %242, %cst_100 [1] : vector<8x32xf32> to vector<8xf32>
    %244 = vector.shape_cast %243 : vector<8xf32> to vector<8x1xf32>
    %cst_101 = arith.constant 3.200000e+01 : f32
    %245 = vector.broadcast %cst_101 : f32 to vector<8x1xf32>
    %246 = arith.divf %244, %245 : vector<8x1xf32>
    %247 = vector.broadcast %246 : vector<8x1xf32> to vector<8x32xf32>
    %248 = arith.subf %242, %247 : vector<8x32xf32>
    %249 = arith.mulf %248, %248 : vector<8x32xf32>
    %cst_102 = arith.constant dense<0.000000e+00> : vector<8xf32>
    %250 = vector.multi_reduction <add>, %249, %cst_102 [1] : vector<8x32xf32> to vector<8xf32>
    %251 = vector.shape_cast %250 : vector<8xf32> to vector<8x1xf32>
    %cst_103 = arith.constant 3.200000e+01 : f32
    %252 = vector.broadcast %cst_103 : f32 to vector<8x1xf32>
    %253 = arith.divf %251, %252 : vector<8x1xf32>
    %cst_104 = arith.constant 9.99999974E-6 : f32
    %254 = vector.broadcast %cst_104 : f32 to vector<8x1xf32>
    %255 = arith.addf %253, %254 : vector<8x1xf32>
    %256 = math.rsqrt %255 : vector<8x1xf32>
    %257 = vector.broadcast %256 : vector<8x1xf32> to vector<8x32xf32>
    %258 = arith.mulf %248, %257 : vector<8x32xf32>
    %c0_105 = arith.constant 0 : index
    %c0_106 = arith.constant 0 : index
    %259 = vector.load %arg56[%c0_105, %c0_106] : memref<1x32xf32, #tpu.memory_space<vmem>>, vector<1x32xf32>
    %260 = vector.broadcast %259 : vector<1x32xf32> to vector<8x32xf32>
    %261 = arith.mulf %258, %260 : vector<8x32xf32>
    %c0_107 = arith.constant 0 : index
    %c0_108 = arith.constant 0 : index
    %262 = vector.load %arg55[%c0_107, %c0_108] : memref<1x32xf32, #tpu.memory_space<vmem>>, vector<1x32xf32>
    %263 = vector.broadcast %262 : vector<1x32xf32> to vector<8x32xf32>
    %264 = arith.addf %261, %263 : vector<8x32xf32>
    %c0_109 = arith.constant 0 : index
    %c0_110 = arith.constant 0 : index
    %265 = vector.load %arg53[%c0_109, %c0_110] : memref<32x2048xbf16, #tpu.memory_space<vmem>>, vector<32x2048xbf16>
    %266 = arith.truncf %264 : vector<8x32xf32> to vector<8x32xbf16>
    %cst_111 = arith.constant dense<0.000000e+00> : vector<8x2048xf32>
    %267 = tpu.matmul %266, %265, %cst_111 {dimension_numbers = #tpu.dot_dimension_numbers<[1], [0], [0], [1], [0, 0, 1, 1], [], []>} : vector<8x32xbf16>, vector<32x2048xbf16>, vector<8x2048xf32> -> vector<8x2048xf32>
    %c0_112 = arith.constant 0 : index
    %c0_113 = arith.constant 0 : index
    %268 = vector.load %arg51[%c0_112, %c0_113] : memref<1x2048xf32, #tpu.memory_space<vmem>>, vector<1x2048xf32>
    %269 = vector.broadcast %268 : vector<1x2048xf32> to vector<8x2048xf32>
    %270 = arith.addf %267, %269 : vector<8x2048xf32>
    %cst_114 = arith.constant 0.000000e+00 : f32
    %271 = vector.broadcast %cst_114 : f32 to vector<8x2048xf32>
    %272 = arith.maximumf %270, %271 : vector<8x2048xf32>
    %c0_115 = arith.constant 0 : index
    %c0_116 = arith.constant 0 : index
    %273 = vector.load %arg54[%c0_115, %c0_116] : memref<2048x32xbf16, #tpu.memory_space<vmem>>, vector<2048x32xbf16>
    %274 = arith.truncf %272 : vector<8x2048xf32> to vector<8x2048xbf16>
    %cst_117 = arith.constant dense<0.000000e+00> : vector<8x32xf32>
    %275 = tpu.matmul %274, %273, %cst_117 {dimension_numbers = #tpu.dot_dimension_numbers<[1], [0], [0], [1], [0, 0, 1, 1], [], []>} : vector<8x2048xbf16>, vector<2048x32xbf16>, vector<8x32xf32> -> vector<8x32xf32>
    %c0_118 = arith.constant 0 : index
    %c0_119 = arith.constant 0 : index
    %276 = vector.load %arg52[%c0_118, %c0_119] : memref<1x32xf32, #tpu.memory_space<vmem>>, vector<1x32xf32>
    %277 = vector.broadcast %276 : vector<1x32xf32> to vector<8x32xf32>
    %278 = arith.addf %275, %277 : vector<8x32xf32>
    %279 = arith.addf %264, %278 : vector<8x32xf32>
    %cst_120 = arith.constant dense<0.000000e+00> : vector<8xf32>
    %280 = vector.multi_reduction <add>, %279, %cst_120 [1] : vector<8x32xf32> to vector<8xf32>
    %281 = vector.shape_cast %280 : vector<8xf32> to vector<8x1xf32>
    %cst_121 = arith.constant 3.200000e+01 : f32
    %282 = vector.broadcast %cst_121 : f32 to vector<8x1xf32>
    %283 = arith.divf %281, %282 : vector<8x1xf32>
    %284 = vector.broadcast %283 : vector<8x1xf32> to vector<8x32xf32>
    %285 = arith.subf %279, %284 : vector<8x32xf32>
    %286 = arith.mulf %285, %285 : vector<8x32xf32>
    %cst_122 = arith.constant dense<0.000000e+00> : vector<8xf32>
    %287 = vector.multi_reduction <add>, %286, %cst_122 [1] : vector<8x32xf32> to vector<8xf32>
    %288 = vector.shape_cast %287 : vector<8xf32> to vector<8x1xf32>
    %cst_123 = arith.constant 3.200000e+01 : f32
    %289 = vector.broadcast %cst_123 : f32 to vector<8x1xf32>
    %290 = arith.divf %288, %289 : vector<8x1xf32>
    %cst_124 = arith.constant 9.99999974E-6 : f32
    %291 = vector.broadcast %cst_124 : f32 to vector<8x1xf32>
    %292 = arith.addf %290, %291 : vector<8x1xf32>
    %293 = math.rsqrt %292 : vector<8x1xf32>
    %294 = vector.broadcast %293 : vector<8x1xf32> to vector<8x32xf32>
    %295 = arith.mulf %285, %294 : vector<8x32xf32>
    %c0_125 = arith.constant 0 : index
    %c0_126 = arith.constant 0 : index
    %296 = vector.load %arg58[%c0_125, %c0_126] : memref<1x32xf32, #tpu.memory_space<vmem>>, vector<1x32xf32>
    %297 = vector.broadcast %296 : vector<1x32xf32> to vector<8x32xf32>
    %298 = arith.mulf %295, %297 : vector<8x32xf32>
    %c0_127 = arith.constant 0 : index
    %c0_128 = arith.constant 0 : index
    %299 = vector.load %arg57[%c0_127, %c0_128] : memref<1x32xf32, #tpu.memory_space<vmem>>, vector<1x32xf32>
    %300 = vector.broadcast %299 : vector<1x32xf32> to vector<8x32xf32>
    %301 = arith.addf %298, %300 : vector<8x32xf32>
    %cst_129 = arith.constant dense<0.000000e+00> : vector<8xf32>
    %302 = vector.multi_reduction <add>, %301, %cst_129 [1] : vector<8x32xf32> to vector<8xf32>
    %303 = vector.shape_cast %302 : vector<8xf32> to vector<8x1xf32>
    %cst_130 = arith.constant 3.200000e+01 : f32
    %304 = vector.broadcast %cst_130 : f32 to vector<8x1xf32>
    %305 = arith.divf %303, %304 : vector<8x1xf32>
    %306 = vector.broadcast %305 : vector<8x1xf32> to vector<8x32xf32>
    %307 = arith.subf %301, %306 : vector<8x32xf32>
    %308 = arith.mulf %307, %307 : vector<8x32xf32>
    %cst_131 = arith.constant dense<0.000000e+00> : vector<8xf32>
    %309 = vector.multi_reduction <add>, %308, %cst_131 [1] : vector<8x32xf32> to vector<8xf32>
    %310 = vector.shape_cast %309 : vector<8xf32> to vector<8x1xf32>
    %cst_132 = arith.constant 3.200000e+01 : f32
    %311 = vector.broadcast %cst_132 : f32 to vector<8x1xf32>
    %312 = arith.divf %310, %311 : vector<8x1xf32>
    %cst_133 = arith.constant 9.99999974E-6 : f32
    %313 = vector.broadcast %cst_133 : f32 to vector<8x1xf32>
    %314 = arith.addf %312, %313 : vector<8x1xf32>
    %315 = math.rsqrt %314 : vector<8x1xf32>
    %316 = vector.broadcast %315 : vector<8x1xf32> to vector<8x32xf32>
    %317 = arith.mulf %307, %316 : vector<8x32xf32>
    %c0_134 = arith.constant 0 : index
    %c0_135 = arith.constant 0 : index
    %318 = vector.load %arg64[%c0_134, %c0_135] : memref<1x32xf32, #tpu.memory_space<vmem>>, vector<1x32xf32>
    %319 = vector.broadcast %318 : vector<1x32xf32> to vector<8x32xf32>
    %320 = arith.mulf %317, %319 : vector<8x32xf32>
    %c0_136 = arith.constant 0 : index
    %c0_137 = arith.constant 0 : index
    %321 = vector.load %arg63[%c0_136, %c0_137] : memref<1x32xf32, #tpu.memory_space<vmem>>, vector<1x32xf32>
    %322 = vector.broadcast %321 : vector<1x32xf32> to vector<8x32xf32>
    %323 = arith.addf %320, %322 : vector<8x32xf32>
    %c0_138 = arith.constant 0 : index
    %c0_139 = arith.constant 0 : index
    %324 = vector.load %arg18[%c0_138, %c0_139] : memref<32x96xf32, #tpu.memory_space<vmem>>, vector<32x96xf32>
    %c0_140 = arith.constant 0 : index
    %c0_141 = arith.constant 0 : index
    %325 = vector.load %arg16[%c0_140, %c0_141] : memref<1x96xf32, #tpu.memory_space<vmem>>, vector<1x96xf32>
    %cst_142 = arith.constant dense<0.000000e+00> : vector<8x96xf32>
    %326 = tpu.matmul %5, %324, %cst_142 {dimension_numbers = #tpu.dot_dimension_numbers<[1], [0], [0], [1], [0, 0, 1, 1], [], []>} : vector<8x32xf32>, vector<32x96xf32>, vector<8x96xf32> -> vector<8x96xf32>
    %327 = vector.broadcast %325 : vector<1x96xf32> to vector<8x96xf32>
    %328 = arith.addf %326, %327 : vector<8x96xf32>
    %c0_143 = arith.constant 0 : index
    %c0_144 = arith.constant 0 : index
    %329 = vector.load %arg17[%c0_143, %c0_144] : memref<32x32xf32, #tpu.memory_space<vmem>>, vector<32x32xf32>
    %330 = vector.extract_strided_slice %328 {offsets = [0, 0], sizes = [8, 8], strides = [1, 1]} : vector<8x96xf32> to vector<8x8xf32>
    %331 = vector.extract_strided_slice %328 {offsets = [0, 32], sizes = [8, 8], strides = [1, 1]} : vector<8x96xf32> to vector<8x8xf32>
    %332 = vector.extract_strided_slice %328 {offsets = [0, 64], sizes = [8, 8], strides = [1, 1]} : vector<8x96xf32> to vector<8x8xf32>
    %333 = tpu.transpose %331, [1, 0] : vector<8x8xf32> -> vector<8x8xf32>
    %cst_145 = arith.constant dense<0.000000e+00> : vector<8x8xf32>
    %334 = tpu.matmul %330, %333, %cst_145 {dimension_numbers = #tpu.dot_dimension_numbers<[1], [0], [0], [1], [0, 0, 1, 1], [], []>} : vector<8x8xf32>, vector<8x8xf32>, vector<8x8xf32> -> vector<8x8xf32>
    %cst_146 = arith.constant 0.353553385 : f32
    %335 = vector.broadcast %cst_146 : f32 to vector<8x8xf32>
    %336 = arith.mulf %334, %335 : vector<8x8xf32>
    %cst_147 = arith.constant dense<0xFF800000> : vector<8xf32>
    %337 = vector.multi_reduction <maximumf>, %336, %cst_147 [1] : vector<8x8xf32> to vector<8xf32>
    %338 = vector.shape_cast %337 : vector<8xf32> to vector<8x1xf32>
    %339 = vector.broadcast %338 : vector<8x1xf32> to vector<8x8xf32>
    %340 = arith.subf %336, %339 : vector<8x8xf32>
    %341 = math.exp %340 : vector<8x8xf32>
    %cst_148 = arith.constant dense<0.000000e+00> : vector<8xf32>
    %342 = vector.multi_reduction <add>, %341, %cst_148 [1] : vector<8x8xf32> to vector<8xf32>
    %343 = vector.shape_cast %342 : vector<8xf32> to vector<8x1xf32>
    %344 = vector.broadcast %343 : vector<8x1xf32> to vector<8x8xf32>
    %345 = arith.divf %341, %344 : vector<8x8xf32>
    %cst_149 = arith.constant dense<0.000000e+00> : vector<8x8xf32>
    %346 = tpu.matmul %345, %332, %cst_149 {dimension_numbers = #tpu.dot_dimension_numbers<[1], [0], [0], [1], [0, 0, 1, 1], [], []>} : vector<8x8xf32>, vector<8x8xf32>, vector<8x8xf32> -> vector<8x8xf32>
    %347 = vector.extract_strided_slice %329 {offsets = [0, 0], sizes = [8, 32], strides = [1, 1]} : vector<32x32xf32> to vector<8x32xf32>
    %cst_150 = arith.constant dense<0.000000e+00> : vector<8x32xf32>
    %348 = tpu.matmul %346, %347, %cst_150 {dimension_numbers = #tpu.dot_dimension_numbers<[1], [0], [0], [1], [0, 0, 1, 1], [], []>} : vector<8x8xf32>, vector<8x32xf32>, vector<8x32xf32> -> vector<8x32xf32>
    %349 = vector.extract_strided_slice %328 {offsets = [0, 8], sizes = [8, 8], strides = [1, 1]} : vector<8x96xf32> to vector<8x8xf32>
    %350 = vector.extract_strided_slice %328 {offsets = [0, 40], sizes = [8, 8], strides = [1, 1]} : vector<8x96xf32> to vector<8x8xf32>
    %351 = vector.extract_strided_slice %328 {offsets = [0, 72], sizes = [8, 8], strides = [1, 1]} : vector<8x96xf32> to vector<8x8xf32>
    %352 = tpu.transpose %350, [1, 0] : vector<8x8xf32> -> vector<8x8xf32>
    %cst_151 = arith.constant dense<0.000000e+00> : vector<8x8xf32>
    %353 = tpu.matmul %349, %352, %cst_151 {dimension_numbers = #tpu.dot_dimension_numbers<[1], [0], [0], [1], [0, 0, 1, 1], [], []>} : vector<8x8xf32>, vector<8x8xf32>, vector<8x8xf32> -> vector<8x8xf32>
    %cst_152 = arith.constant 0.353553385 : f32
    %354 = vector.broadcast %cst_152 : f32 to vector<8x8xf32>
    %355 = arith.mulf %353, %354 : vector<8x8xf32>
    %cst_153 = arith.constant dense<0xFF800000> : vector<8xf32>
    %356 = vector.multi_reduction <maximumf>, %355, %cst_153 [1] : vector<8x8xf32> to vector<8xf32>
    %357 = vector.shape_cast %356 : vector<8xf32> to vector<8x1xf32>
    %358 = vector.broadcast %357 : vector<8x1xf32> to vector<8x8xf32>
    %359 = arith.subf %355, %358 : vector<8x8xf32>
    %360 = math.exp %359 : vector<8x8xf32>
    %cst_154 = arith.constant dense<0.000000e+00> : vector<8xf32>
    %361 = vector.multi_reduction <add>, %360, %cst_154 [1] : vector<8x8xf32> to vector<8xf32>
    %362 = vector.shape_cast %361 : vector<8xf32> to vector<8x1xf32>
    %363 = vector.broadcast %362 : vector<8x1xf32> to vector<8x8xf32>
    %364 = arith.divf %360, %363 : vector<8x8xf32>
    %cst_155 = arith.constant dense<0.000000e+00> : vector<8x8xf32>
    %365 = tpu.matmul %364, %351, %cst_155 {dimension_numbers = #tpu.dot_dimension_numbers<[1], [0], [0], [1], [0, 0, 1, 1], [], []>} : vector<8x8xf32>, vector<8x8xf32>, vector<8x8xf32> -> vector<8x8xf32>
    %366 = vector.extract_strided_slice %329 {offsets = [8, 0], sizes = [8, 32], strides = [1, 1]} : vector<32x32xf32> to vector<8x32xf32>
    %cst_156 = arith.constant dense<0.000000e+00> : vector<8x32xf32>
    %367 = tpu.matmul %365, %366, %cst_156 {dimension_numbers = #tpu.dot_dimension_numbers<[1], [0], [0], [1], [0, 0, 1, 1], [], []>} : vector<8x8xf32>, vector<8x32xf32>, vector<8x32xf32> -> vector<8x32xf32>
    %368 = arith.addf %348, %367 : vector<8x32xf32>
    %369 = vector.extract_strided_slice %328 {offsets = [0, 16], sizes = [8, 8], strides = [1, 1]} : vector<8x96xf32> to vector<8x8xf32>
    %370 = vector.extract_strided_slice %328 {offsets = [0, 48], sizes = [8, 8], strides = [1, 1]} : vector<8x96xf32> to vector<8x8xf32>
    %371 = vector.extract_strided_slice %328 {offsets = [0, 80], sizes = [8, 8], strides = [1, 1]} : vector<8x96xf32> to vector<8x8xf32>
    %372 = tpu.transpose %370, [1, 0] : vector<8x8xf32> -> vector<8x8xf32>
    %cst_157 = arith.constant dense<0.000000e+00> : vector<8x8xf32>
    %373 = tpu.matmul %369, %372, %cst_157 {dimension_numbers = #tpu.dot_dimension_numbers<[1], [0], [0], [1], [0, 0, 1, 1], [], []>} : vector<8x8xf32>, vector<8x8xf32>, vector<8x8xf32> -> vector<8x8xf32>
    %cst_158 = arith.constant 0.353553385 : f32
    %374 = vector.broadcast %cst_158 : f32 to vector<8x8xf32>
    %375 = arith.mulf %373, %374 : vector<8x8xf32>
    %cst_159 = arith.constant dense<0xFF800000> : vector<8xf32>
    %376 = vector.multi_reduction <maximumf>, %375, %cst_159 [1] : vector<8x8xf32> to vector<8xf32>
    %377 = vector.shape_cast %376 : vector<8xf32> to vector<8x1xf32>
    %378 = vector.broadcast %377 : vector<8x1xf32> to vector<8x8xf32>
    %379 = arith.subf %375, %378 : vector<8x8xf32>
    %380 = math.exp %379 : vector<8x8xf32>
    %cst_160 = arith.constant dense<0.000000e+00> : vector<8xf32>
    %381 = vector.multi_reduction <add>, %380, %cst_160 [1] : vector<8x8xf32> to vector<8xf32>
    %382 = vector.shape_cast %381 : vector<8xf32> to vector<8x1xf32>
    %383 = vector.broadcast %382 : vector<8x1xf32> to vector<8x8xf32>
    %384 = arith.divf %380, %383 : vector<8x8xf32>
    %cst_161 = arith.constant dense<0.000000e+00> : vector<8x8xf32>
    %385 = tpu.matmul %384, %371, %cst_161 {dimension_numbers = #tpu.dot_dimension_numbers<[1], [0], [0], [1], [0, 0, 1, 1], [], []>} : vector<8x8xf32>, vector<8x8xf32>, vector<8x8xf32> -> vector<8x8xf32>
    %386 = vector.extract_strided_slice %329 {offsets = [16, 0], sizes = [8, 32], strides = [1, 1]} : vector<32x32xf32> to vector<8x32xf32>
    %cst_162 = arith.constant dense<0.000000e+00> : vector<8x32xf32>
    %387 = tpu.matmul %385, %386, %cst_162 {dimension_numbers = #tpu.dot_dimension_numbers<[1], [0], [0], [1], [0, 0, 1, 1], [], []>} : vector<8x8xf32>, vector<8x32xf32>, vector<8x32xf32> -> vector<8x32xf32>
    %388 = arith.addf %368, %387 : vector<8x32xf32>
    %389 = vector.extract_strided_slice %328 {offsets = [0, 24], sizes = [8, 8], strides = [1, 1]} : vector<8x96xf32> to vector<8x8xf32>
    %390 = vector.extract_strided_slice %328 {offsets = [0, 56], sizes = [8, 8], strides = [1, 1]} : vector<8x96xf32> to vector<8x8xf32>
    %391 = vector.extract_strided_slice %328 {offsets = [0, 88], sizes = [8, 8], strides = [1, 1]} : vector<8x96xf32> to vector<8x8xf32>
    %392 = tpu.transpose %390, [1, 0] : vector<8x8xf32> -> vector<8x8xf32>
    %cst_163 = arith.constant dense<0.000000e+00> : vector<8x8xf32>
    %393 = tpu.matmul %389, %392, %cst_163 {dimension_numbers = #tpu.dot_dimension_numbers<[1], [0], [0], [1], [0, 0, 1, 1], [], []>} : vector<8x8xf32>, vector<8x8xf32>, vector<8x8xf32> -> vector<8x8xf32>
    %cst_164 = arith.constant 0.353553385 : f32
    %394 = vector.broadcast %cst_164 : f32 to vector<8x8xf32>
    %395 = arith.mulf %393, %394 : vector<8x8xf32>
    %cst_165 = arith.constant dense<0xFF800000> : vector<8xf32>
    %396 = vector.multi_reduction <maximumf>, %395, %cst_165 [1] : vector<8x8xf32> to vector<8xf32>
    %397 = vector.shape_cast %396 : vector<8xf32> to vector<8x1xf32>
    %398 = vector.broadcast %397 : vector<8x1xf32> to vector<8x8xf32>
    %399 = arith.subf %395, %398 : vector<8x8xf32>
    %400 = math.exp %399 : vector<8x8xf32>
    %cst_166 = arith.constant dense<0.000000e+00> : vector<8xf32>
    %401 = vector.multi_reduction <add>, %400, %cst_166 [1] : vector<8x8xf32> to vector<8xf32>
    %402 = vector.shape_cast %401 : vector<8xf32> to vector<8x1xf32>
    %403 = vector.broadcast %402 : vector<8x1xf32> to vector<8x8xf32>
    %404 = arith.divf %400, %403 : vector<8x8xf32>
    %cst_167 = arith.constant dense<0.000000e+00> : vector<8x8xf32>
    %405 = tpu.matmul %404, %391, %cst_167 {dimension_numbers = #tpu.dot_dimension_numbers<[1], [0], [0], [1], [0, 0, 1, 1], [], []>} : vector<8x8xf32>, vector<8x8xf32>, vector<8x8xf32> -> vector<8x8xf32>
    %406 = vector.extract_strided_slice %329 {offsets = [24, 0], sizes = [8, 32], strides = [1, 1]} : vector<32x32xf32> to vector<8x32xf32>
    %cst_168 = arith.constant dense<0.000000e+00> : vector<8x32xf32>
    %407 = tpu.matmul %405, %406, %cst_168 {dimension_numbers = #tpu.dot_dimension_numbers<[1], [0], [0], [1], [0, 0, 1, 1], [], []>} : vector<8x8xf32>, vector<8x32xf32>, vector<8x32xf32> -> vector<8x32xf32>
    %408 = arith.addf %388, %407 : vector<8x32xf32>
    %c0_169 = arith.constant 0 : index
    %c0_170 = arith.constant 0 : index
    %409 = vector.load %arg15[%c0_169, %c0_170] : memref<1x32xf32, #tpu.memory_space<vmem>>, vector<1x32xf32>
    %410 = vector.broadcast %409 : vector<1x32xf32> to vector<8x32xf32>
    %411 = arith.addf %408, %410 : vector<8x32xf32>
    %412 = arith.addf %5, %411 : vector<8x32xf32>
    %cst_171 = arith.constant dense<0.000000e+00> : vector<8xf32>
    %413 = vector.multi_reduction <add>, %412, %cst_171 [1] : vector<8x32xf32> to vector<8xf32>
    %414 = vector.shape_cast %413 : vector<8xf32> to vector<8x1xf32>
    %cst_172 = arith.constant 3.200000e+01 : f32
    %415 = vector.broadcast %cst_172 : f32 to vector<8x1xf32>
    %416 = arith.divf %414, %415 : vector<8x1xf32>
    %417 = vector.broadcast %416 : vector<8x1xf32> to vector<8x32xf32>
    %418 = arith.subf %412, %417 : vector<8x32xf32>
    %419 = arith.mulf %418, %418 : vector<8x32xf32>
    %cst_173 = arith.constant dense<0.000000e+00> : vector<8xf32>
    %420 = vector.multi_reduction <add>, %419, %cst_173 [1] : vector<8x32xf32> to vector<8xf32>
    %421 = vector.shape_cast %420 : vector<8xf32> to vector<8x1xf32>
    %cst_174 = arith.constant 3.200000e+01 : f32
    %422 = vector.broadcast %cst_174 : f32 to vector<8x1xf32>
    %423 = arith.divf %421, %422 : vector<8x1xf32>
    %cst_175 = arith.constant 9.99999974E-6 : f32
    %424 = vector.broadcast %cst_175 : f32 to vector<8x1xf32>
    %425 = arith.addf %423, %424 : vector<8x1xf32>
    %426 = math.rsqrt %425 : vector<8x1xf32>
    %427 = vector.broadcast %426 : vector<8x1xf32> to vector<8x32xf32>
    %428 = arith.mulf %418, %427 : vector<8x32xf32>
    %c0_176 = arith.constant 0 : index
    %c0_177 = arith.constant 0 : index
    %429 = vector.load %arg10[%c0_176, %c0_177] : memref<1x32xf32, #tpu.memory_space<vmem>>, vector<1x32xf32>
    %430 = vector.broadcast %429 : vector<1x32xf32> to vector<8x32xf32>
    %431 = arith.mulf %428, %430 : vector<8x32xf32>
    %c0_178 = arith.constant 0 : index
    %c0_179 = arith.constant 0 : index
    %432 = vector.load %arg9[%c0_178, %c0_179] : memref<1x32xf32, #tpu.memory_space<vmem>>, vector<1x32xf32>
    %433 = vector.broadcast %432 : vector<1x32xf32> to vector<8x32xf32>
    %434 = arith.addf %431, %433 : vector<8x32xf32>
    %c0_180 = arith.constant 0 : index
    %c0_181 = arith.constant 0 : index
    %435 = vector.load %arg4[%c0_180, %c0_181] : memref<32x96xf32, #tpu.memory_space<vmem>>, vector<32x96xf32>
    %c0_182 = arith.constant 0 : index
    %c0_183 = arith.constant 0 : index
    %436 = vector.load %arg2[%c0_182, %c0_183] : memref<1x96xf32, #tpu.memory_space<vmem>>, vector<1x96xf32>
    %cst_184 = arith.constant dense<0.000000e+00> : vector<8x96xf32>
    %437 = tpu.matmul %434, %435, %cst_184 {dimension_numbers = #tpu.dot_dimension_numbers<[1], [0], [0], [1], [0, 0, 1, 1], [], []>} : vector<8x32xf32>, vector<32x96xf32>, vector<8x96xf32> -> vector<8x96xf32>
    %438 = vector.broadcast %436 : vector<1x96xf32> to vector<8x96xf32>
    %439 = arith.addf %437, %438 : vector<8x96xf32>
    %cst_185 = arith.constant dense<0.000000e+00> : vector<8x96xf32>
    %440 = tpu.matmul %323, %435, %cst_185 {dimension_numbers = #tpu.dot_dimension_numbers<[1], [0], [0], [1], [0, 0, 1, 1], [], []>} : vector<8x32xf32>, vector<32x96xf32>, vector<8x96xf32> -> vector<8x96xf32>
    %441 = vector.broadcast %436 : vector<1x96xf32> to vector<8x96xf32>
    %442 = arith.addf %440, %441 : vector<8x96xf32>
    %c0_186 = arith.constant 0 : index
    %c0_187 = arith.constant 0 : index
    %443 = vector.load %arg3[%c0_186, %c0_187] : memref<32x32xf32, #tpu.memory_space<vmem>>, vector<32x32xf32>
    %444 = vector.extract_strided_slice %439 {offsets = [0, 0], sizes = [8, 8], strides = [1, 1]} : vector<8x96xf32> to vector<8x8xf32>
    %445 = vector.extract_strided_slice %442 {offsets = [0, 32], sizes = [8, 8], strides = [1, 1]} : vector<8x96xf32> to vector<8x8xf32>
    %446 = vector.extract_strided_slice %442 {offsets = [0, 64], sizes = [8, 8], strides = [1, 1]} : vector<8x96xf32> to vector<8x8xf32>
    %447 = tpu.transpose %445, [1, 0] : vector<8x8xf32> -> vector<8x8xf32>
    %cst_188 = arith.constant dense<0.000000e+00> : vector<8x8xf32>
    %448 = tpu.matmul %444, %447, %cst_188 {dimension_numbers = #tpu.dot_dimension_numbers<[1], [0], [0], [1], [0, 0, 1, 1], [], []>} : vector<8x8xf32>, vector<8x8xf32>, vector<8x8xf32> -> vector<8x8xf32>
    %cst_189 = arith.constant 0.353553385 : f32
    %449 = vector.broadcast %cst_189 : f32 to vector<8x8xf32>
    %450 = arith.mulf %448, %449 : vector<8x8xf32>
    %cst_190 = arith.constant dense<0xFF800000> : vector<8xf32>
    %451 = vector.multi_reduction <maximumf>, %450, %cst_190 [1] : vector<8x8xf32> to vector<8xf32>
    %452 = vector.shape_cast %451 : vector<8xf32> to vector<8x1xf32>
    %453 = vector.broadcast %452 : vector<8x1xf32> to vector<8x8xf32>
    %454 = arith.subf %450, %453 : vector<8x8xf32>
    %455 = math.exp %454 : vector<8x8xf32>
    %cst_191 = arith.constant dense<0.000000e+00> : vector<8xf32>
    %456 = vector.multi_reduction <add>, %455, %cst_191 [1] : vector<8x8xf32> to vector<8xf32>
    %457 = vector.shape_cast %456 : vector<8xf32> to vector<8x1xf32>
    %458 = vector.broadcast %457 : vector<8x1xf32> to vector<8x8xf32>
    %459 = arith.divf %455, %458 : vector<8x8xf32>
    %cst_192 = arith.constant dense<0.000000e+00> : vector<8x8xf32>
    %460 = tpu.matmul %459, %446, %cst_192 {dimension_numbers = #tpu.dot_dimension_numbers<[1], [0], [0], [1], [0, 0, 1, 1], [], []>} : vector<8x8xf32>, vector<8x8xf32>, vector<8x8xf32> -> vector<8x8xf32>
    %461 = vector.extract_strided_slice %443 {offsets = [0, 0], sizes = [8, 32], strides = [1, 1]} : vector<32x32xf32> to vector<8x32xf32>
    %cst_193 = arith.constant dense<0.000000e+00> : vector<8x32xf32>
    %462 = tpu.matmul %460, %461, %cst_193 {dimension_numbers = #tpu.dot_dimension_numbers<[1], [0], [0], [1], [0, 0, 1, 1], [], []>} : vector<8x8xf32>, vector<8x32xf32>, vector<8x32xf32> -> vector<8x32xf32>
    %463 = vector.extract_strided_slice %439 {offsets = [0, 8], sizes = [8, 8], strides = [1, 1]} : vector<8x96xf32> to vector<8x8xf32>
    %464 = vector.extract_strided_slice %442 {offsets = [0, 40], sizes = [8, 8], strides = [1, 1]} : vector<8x96xf32> to vector<8x8xf32>
    %465 = vector.extract_strided_slice %442 {offsets = [0, 72], sizes = [8, 8], strides = [1, 1]} : vector<8x96xf32> to vector<8x8xf32>
    %466 = tpu.transpose %464, [1, 0] : vector<8x8xf32> -> vector<8x8xf32>
    %cst_194 = arith.constant dense<0.000000e+00> : vector<8x8xf32>
    %467 = tpu.matmul %463, %466, %cst_194 {dimension_numbers = #tpu.dot_dimension_numbers<[1], [0], [0], [1], [0, 0, 1, 1], [], []>} : vector<8x8xf32>, vector<8x8xf32>, vector<8x8xf32> -> vector<8x8xf32>
    %cst_195 = arith.constant 0.353553385 : f32
    %468 = vector.broadcast %cst_195 : f32 to vector<8x8xf32>
    %469 = arith.mulf %467, %468 : vector<8x8xf32>
    %cst_196 = arith.constant dense<0xFF800000> : vector<8xf32>
    %470 = vector.multi_reduction <maximumf>, %469, %cst_196 [1] : vector<8x8xf32> to vector<8xf32>
    %471 = vector.shape_cast %470 : vector<8xf32> to vector<8x1xf32>
    %472 = vector.broadcast %471 : vector<8x1xf32> to vector<8x8xf32>
    %473 = arith.subf %469, %472 : vector<8x8xf32>
    %474 = math.exp %473 : vector<8x8xf32>
    %cst_197 = arith.constant dense<0.000000e+00> : vector<8xf32>
    %475 = vector.multi_reduction <add>, %474, %cst_197 [1] : vector<8x8xf32> to vector<8xf32>
    %476 = vector.shape_cast %475 : vector<8xf32> to vector<8x1xf32>
    %477 = vector.broadcast %476 : vector<8x1xf32> to vector<8x8xf32>
    %478 = arith.divf %474, %477 : vector<8x8xf32>
    %cst_198 = arith.constant dense<0.000000e+00> : vector<8x8xf32>
    %479 = tpu.matmul %478, %465, %cst_198 {dimension_numbers = #tpu.dot_dimension_numbers<[1], [0], [0], [1], [0, 0, 1, 1], [], []>} : vector<8x8xf32>, vector<8x8xf32>, vector<8x8xf32> -> vector<8x8xf32>
    %480 = vector.extract_strided_slice %443 {offsets = [8, 0], sizes = [8, 32], strides = [1, 1]} : vector<32x32xf32> to vector<8x32xf32>
    %cst_199 = arith.constant dense<0.000000e+00> : vector<8x32xf32>
    %481 = tpu.matmul %479, %480, %cst_199 {dimension_numbers = #tpu.dot_dimension_numbers<[1], [0], [0], [1], [0, 0, 1, 1], [], []>} : vector<8x8xf32>, vector<8x32xf32>, vector<8x32xf32> -> vector<8x32xf32>
    %482 = arith.addf %462, %481 : vector<8x32xf32>
    %483 = vector.extract_strided_slice %439 {offsets = [0, 16], sizes = [8, 8], strides = [1, 1]} : vector<8x96xf32> to vector<8x8xf32>
    %484 = vector.extract_strided_slice %442 {offsets = [0, 48], sizes = [8, 8], strides = [1, 1]} : vector<8x96xf32> to vector<8x8xf32>
    %485 = vector.extract_strided_slice %442 {offsets = [0, 80], sizes = [8, 8], strides = [1, 1]} : vector<8x96xf32> to vector<8x8xf32>
    %486 = tpu.transpose %484, [1, 0] : vector<8x8xf32> -> vector<8x8xf32>
    %cst_200 = arith.constant dense<0.000000e+00> : vector<8x8xf32>
    %487 = tpu.matmul %483, %486, %cst_200 {dimension_numbers = #tpu.dot_dimension_numbers<[1], [0], [0], [1], [0, 0, 1, 1], [], []>} : vector<8x8xf32>, vector<8x8xf32>, vector<8x8xf32> -> vector<8x8xf32>
    %cst_201 = arith.constant 0.353553385 : f32
    %488 = vector.broadcast %cst_201 : f32 to vector<8x8xf32>
    %489 = arith.mulf %487, %488 : vector<8x8xf32>
    %cst_202 = arith.constant dense<0xFF800000> : vector<8xf32>
    %490 = vector.multi_reduction <maximumf>, %489, %cst_202 [1] : vector<8x8xf32> to vector<8xf32>
    %491 = vector.shape_cast %490 : vector<8xf32> to vector<8x1xf32>
    %492 = vector.broadcast %491 : vector<8x1xf32> to vector<8x8xf32>
    %493 = arith.subf %489, %492 : vector<8x8xf32>
    %494 = math.exp %493 : vector<8x8xf32>
    %cst_203 = arith.constant dense<0.000000e+00> : vector<8xf32>
    %495 = vector.multi_reduction <add>, %494, %cst_203 [1] : vector<8x8xf32> to vector<8xf32>
    %496 = vector.shape_cast %495 : vector<8xf32> to vector<8x1xf32>
    %497 = vector.broadcast %496 : vector<8x1xf32> to vector<8x8xf32>
    %498 = arith.divf %494, %497 : vector<8x8xf32>
    %cst_204 = arith.constant dense<0.000000e+00> : vector<8x8xf32>
    %499 = tpu.matmul %498, %485, %cst_204 {dimension_numbers = #tpu.dot_dimension_numbers<[1], [0], [0], [1], [0, 0, 1, 1], [], []>} : vector<8x8xf32>, vector<8x8xf32>, vector<8x8xf32> -> vector<8x8xf32>
    %500 = vector.extract_strided_slice %443 {offsets = [16, 0], sizes = [8, 32], strides = [1, 1]} : vector<32x32xf32> to vector<8x32xf32>
    %cst_205 = arith.constant dense<0.000000e+00> : vector<8x32xf32>
    %501 = tpu.matmul %499, %500, %cst_205 {dimension_numbers = #tpu.dot_dimension_numbers<[1], [0], [0], [1], [0, 0, 1, 1], [], []>} : vector<8x8xf32>, vector<8x32xf32>, vector<8x32xf32> -> vector<8x32xf32>
    %502 = arith.addf %482, %501 : vector<8x32xf32>
    %503 = vector.extract_strided_slice %439 {offsets = [0, 24], sizes = [8, 8], strides = [1, 1]} : vector<8x96xf32> to vector<8x8xf32>
    %504 = vector.extract_strided_slice %442 {offsets = [0, 56], sizes = [8, 8], strides = [1, 1]} : vector<8x96xf32> to vector<8x8xf32>
    %505 = vector.extract_strided_slice %442 {offsets = [0, 88], sizes = [8, 8], strides = [1, 1]} : vector<8x96xf32> to vector<8x8xf32>
    %506 = tpu.transpose %504, [1, 0] : vector<8x8xf32> -> vector<8x8xf32>
    %cst_206 = arith.constant dense<0.000000e+00> : vector<8x8xf32>
    %507 = tpu.matmul %503, %506, %cst_206 {dimension_numbers = #tpu.dot_dimension_numbers<[1], [0], [0], [1], [0, 0, 1, 1], [], []>} : vector<8x8xf32>, vector<8x8xf32>, vector<8x8xf32> -> vector<8x8xf32>
    %cst_207 = arith.constant 0.353553385 : f32
    %508 = vector.broadcast %cst_207 : f32 to vector<8x8xf32>
    %509 = arith.mulf %507, %508 : vector<8x8xf32>
    %cst_208 = arith.constant dense<0xFF800000> : vector<8xf32>
    %510 = vector.multi_reduction <maximumf>, %509, %cst_208 [1] : vector<8x8xf32> to vector<8xf32>
    %511 = vector.shape_cast %510 : vector<8xf32> to vector<8x1xf32>
    %512 = vector.broadcast %511 : vector<8x1xf32> to vector<8x8xf32>
    %513 = arith.subf %509, %512 : vector<8x8xf32>
    %514 = math.exp %513 : vector<8x8xf32>
    %cst_209 = arith.constant dense<0.000000e+00> : vector<8xf32>
    %515 = vector.multi_reduction <add>, %514, %cst_209 [1] : vector<8x8xf32> to vector<8xf32>
    %516 = vector.shape_cast %515 : vector<8xf32> to vector<8x1xf32>
    %517 = vector.broadcast %516 : vector<8x1xf32> to vector<8x8xf32>
    %518 = arith.divf %514, %517 : vector<8x8xf32>
    %cst_210 = arith.constant dense<0.000000e+00> : vector<8x8xf32>
    %519 = tpu.matmul %518, %505, %cst_210 {dimension_numbers = #tpu.dot_dimension_numbers<[1], [0], [0], [1], [0, 0, 1, 1], [], []>} : vector<8x8xf32>, vector<8x8xf32>, vector<8x8xf32> -> vector<8x8xf32>
    %520 = vector.extract_strided_slice %443 {offsets = [24, 0], sizes = [8, 32], strides = [1, 1]} : vector<32x32xf32> to vector<8x32xf32>
    %cst_211 = arith.constant dense<0.000000e+00> : vector<8x32xf32>
    %521 = tpu.matmul %519, %520, %cst_211 {dimension_numbers = #tpu.dot_dimension_numbers<[1], [0], [0], [1], [0, 0, 1, 1], [], []>} : vector<8x8xf32>, vector<8x32xf32>, vector<8x32xf32> -> vector<8x32xf32>
    %522 = arith.addf %502, %521 : vector<8x32xf32>
    %c0_212 = arith.constant 0 : index
    %c0_213 = arith.constant 0 : index
    %523 = vector.load %arg1[%c0_212, %c0_213] : memref<1x32xf32, #tpu.memory_space<vmem>>, vector<1x32xf32>
    %524 = vector.broadcast %523 : vector<1x32xf32> to vector<8x32xf32>
    %525 = arith.addf %522, %524 : vector<8x32xf32>
    %526 = arith.addf %434, %525 : vector<8x32xf32>
    %cst_214 = arith.constant dense<0.000000e+00> : vector<8xf32>
    %527 = vector.multi_reduction <add>, %526, %cst_214 [1] : vector<8x32xf32> to vector<8xf32>
    %528 = vector.shape_cast %527 : vector<8xf32> to vector<8x1xf32>
    %cst_215 = arith.constant 3.200000e+01 : f32
    %529 = vector.broadcast %cst_215 : f32 to vector<8x1xf32>
    %530 = arith.divf %528, %529 : vector<8x1xf32>
    %531 = vector.broadcast %530 : vector<8x1xf32> to vector<8x32xf32>
    %532 = arith.subf %526, %531 : vector<8x32xf32>
    %533 = arith.mulf %532, %532 : vector<8x32xf32>
    %cst_216 = arith.constant dense<0.000000e+00> : vector<8xf32>
    %534 = vector.multi_reduction <add>, %533, %cst_216 [1] : vector<8x32xf32> to vector<8xf32>
    %535 = vector.shape_cast %534 : vector<8xf32> to vector<8x1xf32>
    %cst_217 = arith.constant 3.200000e+01 : f32
    %536 = vector.broadcast %cst_217 : f32 to vector<8x1xf32>
    %537 = arith.divf %535, %536 : vector<8x1xf32>
    %cst_218 = arith.constant 9.99999974E-6 : f32
    %538 = vector.broadcast %cst_218 : f32 to vector<8x1xf32>
    %539 = arith.addf %537, %538 : vector<8x1xf32>
    %540 = math.rsqrt %539 : vector<8x1xf32>
    %541 = vector.broadcast %540 : vector<8x1xf32> to vector<8x32xf32>
    %542 = arith.mulf %532, %541 : vector<8x32xf32>
    %c0_219 = arith.constant 0 : index
    %c0_220 = arith.constant 0 : index
    %543 = vector.load %arg12[%c0_219, %c0_220] : memref<1x32xf32, #tpu.memory_space<vmem>>, vector<1x32xf32>
    %544 = vector.broadcast %543 : vector<1x32xf32> to vector<8x32xf32>
    %545 = arith.mulf %542, %544 : vector<8x32xf32>
    %c0_221 = arith.constant 0 : index
    %c0_222 = arith.constant 0 : index
    %546 = vector.load %arg11[%c0_221, %c0_222] : memref<1x32xf32, #tpu.memory_space<vmem>>, vector<1x32xf32>
    %547 = vector.broadcast %546 : vector<1x32xf32> to vector<8x32xf32>
    %548 = arith.addf %545, %547 : vector<8x32xf32>
    %c0_223 = arith.constant 0 : index
    %c0_224 = arith.constant 0 : index
    %549 = vector.load %arg7[%c0_223, %c0_224] : memref<32x2048xbf16, #tpu.memory_space<vmem>>, vector<32x2048xbf16>
    %550 = arith.truncf %548 : vector<8x32xf32> to vector<8x32xbf16>
    %cst_225 = arith.constant dense<0.000000e+00> : vector<8x2048xf32>
    %551 = tpu.matmul %550, %549, %cst_225 {dimension_numbers = #tpu.dot_dimension_numbers<[1], [0], [0], [1], [0, 0, 1, 1], [], []>} : vector<8x32xbf16>, vector<32x2048xbf16>, vector<8x2048xf32> -> vector<8x2048xf32>
    %c0_226 = arith.constant 0 : index
    %c0_227 = arith.constant 0 : index
    %552 = vector.load %arg5[%c0_226, %c0_227] : memref<1x2048xf32, #tpu.memory_space<vmem>>, vector<1x2048xf32>
    %553 = vector.broadcast %552 : vector<1x2048xf32> to vector<8x2048xf32>
    %554 = arith.addf %551, %553 : vector<8x2048xf32>
    %cst_228 = arith.constant 0.000000e+00 : f32
    %555 = vector.broadcast %cst_228 : f32 to vector<8x2048xf32>
    %556 = arith.maximumf %554, %555 : vector<8x2048xf32>
    %c0_229 = arith.constant 0 : index
    %c0_230 = arith.constant 0 : index
    %557 = vector.load %arg8[%c0_229, %c0_230] : memref<2048x32xbf16, #tpu.memory_space<vmem>>, vector<2048x32xbf16>
    %558 = arith.truncf %556 : vector<8x2048xf32> to vector<8x2048xbf16>
    %cst_231 = arith.constant dense<0.000000e+00> : vector<8x32xf32>
    %559 = tpu.matmul %558, %557, %cst_231 {dimension_numbers = #tpu.dot_dimension_numbers<[1], [0], [0], [1], [0, 0, 1, 1], [], []>} : vector<8x2048xbf16>, vector<2048x32xbf16>, vector<8x32xf32> -> vector<8x32xf32>
    %c0_232 = arith.constant 0 : index
    %c0_233 = arith.constant 0 : index
    %560 = vector.load %arg6[%c0_232, %c0_233] : memref<1x32xf32, #tpu.memory_space<vmem>>, vector<1x32xf32>
    %561 = vector.broadcast %560 : vector<1x32xf32> to vector<8x32xf32>
    %562 = arith.addf %559, %561 : vector<8x32xf32>
    %563 = arith.addf %548, %562 : vector<8x32xf32>
    %cst_234 = arith.constant dense<0.000000e+00> : vector<8xf32>
    %564 = vector.multi_reduction <add>, %563, %cst_234 [1] : vector<8x32xf32> to vector<8xf32>
    %565 = vector.shape_cast %564 : vector<8xf32> to vector<8x1xf32>
    %cst_235 = arith.constant 3.200000e+01 : f32
    %566 = vector.broadcast %cst_235 : f32 to vector<8x1xf32>
    %567 = arith.divf %565, %566 : vector<8x1xf32>
    %568 = vector.broadcast %567 : vector<8x1xf32> to vector<8x32xf32>
    %569 = arith.subf %563, %568 : vector<8x32xf32>
    %570 = arith.mulf %569, %569 : vector<8x32xf32>
    %cst_236 = arith.constant dense<0.000000e+00> : vector<8xf32>
    %571 = vector.multi_reduction <add>, %570, %cst_236 [1] : vector<8x32xf32> to vector<8xf32>
    %572 = vector.shape_cast %571 : vector<8xf32> to vector<8x1xf32>
    %cst_237 = arith.constant 3.200000e+01 : f32
    %573 = vector.broadcast %cst_237 : f32 to vector<8x1xf32>
    %574 = arith.divf %572, %573 : vector<8x1xf32>
    %cst_238 = arith.constant 9.99999974E-6 : f32
    %575 = vector.broadcast %cst_238 : f32 to vector<8x1xf32>
    %576 = arith.addf %574, %575 : vector<8x1xf32>
    %577 = math.rsqrt %576 : vector<8x1xf32>
    %578 = vector.broadcast %577 : vector<8x1xf32> to vector<8x32xf32>
    %579 = arith.mulf %569, %578 : vector<8x32xf32>
    %c0_239 = arith.constant 0 : index
    %c0_240 = arith.constant 0 : index
    %580 = vector.load %arg14[%c0_239, %c0_240] : memref<1x32xf32, #tpu.memory_space<vmem>>, vector<1x32xf32>
    %581 = vector.broadcast %580 : vector<1x32xf32> to vector<8x32xf32>
    %582 = arith.mulf %579, %581 : vector<8x32xf32>
    %c0_241 = arith.constant 0 : index
    %c0_242 = arith.constant 0 : index
    %583 = vector.load %arg13[%c0_241, %c0_242] : memref<1x32xf32, #tpu.memory_space<vmem>>, vector<1x32xf32>
    %584 = vector.broadcast %583 : vector<1x32xf32> to vector<8x32xf32>
    %585 = arith.addf %582, %584 : vector<8x32xf32>
    %c0_243 = arith.constant 0 : index
    %c0_244 = arith.constant 0 : index
    %586 = vector.load %arg36[%c0_243, %c0_244] : memref<32x96xf32, #tpu.memory_space<vmem>>, vector<32x96xf32>
    %c0_245 = arith.constant 0 : index
    %c0_246 = arith.constant 0 : index
    %587 = vector.load %arg34[%c0_245, %c0_246] : memref<1x96xf32, #tpu.memory_space<vmem>>, vector<1x96xf32>
    %cst_247 = arith.constant dense<0.000000e+00> : vector<8x96xf32>
    %588 = tpu.matmul %585, %586, %cst_247 {dimension_numbers = #tpu.dot_dimension_numbers<[1], [0], [0], [1], [0, 0, 1, 1], [], []>} : vector<8x32xf32>, vector<32x96xf32>, vector<8x96xf32> -> vector<8x96xf32>
    %589 = vector.broadcast %587 : vector<1x96xf32> to vector<8x96xf32>
    %590 = arith.addf %588, %589 : vector<8x96xf32>
    %c0_248 = arith.constant 0 : index
    %c0_249 = arith.constant 0 : index
    %591 = vector.load %arg35[%c0_248, %c0_249] : memref<32x32xf32, #tpu.memory_space<vmem>>, vector<32x32xf32>
    %592 = vector.extract_strided_slice %590 {offsets = [0, 0], sizes = [8, 8], strides = [1, 1]} : vector<8x96xf32> to vector<8x8xf32>
    %593 = vector.extract_strided_slice %590 {offsets = [0, 32], sizes = [8, 8], strides = [1, 1]} : vector<8x96xf32> to vector<8x8xf32>
    %594 = vector.extract_strided_slice %590 {offsets = [0, 64], sizes = [8, 8], strides = [1, 1]} : vector<8x96xf32> to vector<8x8xf32>
    %595 = tpu.transpose %593, [1, 0] : vector<8x8xf32> -> vector<8x8xf32>
    %cst_250 = arith.constant dense<0.000000e+00> : vector<8x8xf32>
    %596 = tpu.matmul %592, %595, %cst_250 {dimension_numbers = #tpu.dot_dimension_numbers<[1], [0], [0], [1], [0, 0, 1, 1], [], []>} : vector<8x8xf32>, vector<8x8xf32>, vector<8x8xf32> -> vector<8x8xf32>
    %cst_251 = arith.constant 0.353553385 : f32
    %597 = vector.broadcast %cst_251 : f32 to vector<8x8xf32>
    %598 = arith.mulf %596, %597 : vector<8x8xf32>
    %cst_252 = arith.constant dense<0xFF800000> : vector<8xf32>
    %599 = vector.multi_reduction <maximumf>, %598, %cst_252 [1] : vector<8x8xf32> to vector<8xf32>
    %600 = vector.shape_cast %599 : vector<8xf32> to vector<8x1xf32>
    %601 = vector.broadcast %600 : vector<8x1xf32> to vector<8x8xf32>
    %602 = arith.subf %598, %601 : vector<8x8xf32>
    %603 = math.exp %602 : vector<8x8xf32>
    %cst_253 = arith.constant dense<0.000000e+00> : vector<8xf32>
    %604 = vector.multi_reduction <add>, %603, %cst_253 [1] : vector<8x8xf32> to vector<8xf32>
    %605 = vector.shape_cast %604 : vector<8xf32> to vector<8x1xf32>
    %606 = vector.broadcast %605 : vector<8x1xf32> to vector<8x8xf32>
    %607 = arith.divf %603, %606 : vector<8x8xf32>
    %cst_254 = arith.constant dense<0.000000e+00> : vector<8x8xf32>
    %608 = tpu.matmul %607, %594, %cst_254 {dimension_numbers = #tpu.dot_dimension_numbers<[1], [0], [0], [1], [0, 0, 1, 1], [], []>} : vector<8x8xf32>, vector<8x8xf32>, vector<8x8xf32> -> vector<8x8xf32>
    %609 = vector.extract_strided_slice %591 {offsets = [0, 0], sizes = [8, 32], strides = [1, 1]} : vector<32x32xf32> to vector<8x32xf32>
    %cst_255 = arith.constant dense<0.000000e+00> : vector<8x32xf32>
    %610 = tpu.matmul %608, %609, %cst_255 {dimension_numbers = #tpu.dot_dimension_numbers<[1], [0], [0], [1], [0, 0, 1, 1], [], []>} : vector<8x8xf32>, vector<8x32xf32>, vector<8x32xf32> -> vector<8x32xf32>
    %611 = vector.extract_strided_slice %590 {offsets = [0, 8], sizes = [8, 8], strides = [1, 1]} : vector<8x96xf32> to vector<8x8xf32>
    %612 = vector.extract_strided_slice %590 {offsets = [0, 40], sizes = [8, 8], strides = [1, 1]} : vector<8x96xf32> to vector<8x8xf32>
    %613 = vector.extract_strided_slice %590 {offsets = [0, 72], sizes = [8, 8], strides = [1, 1]} : vector<8x96xf32> to vector<8x8xf32>
    %614 = tpu.transpose %612, [1, 0] : vector<8x8xf32> -> vector<8x8xf32>
    %cst_256 = arith.constant dense<0.000000e+00> : vector<8x8xf32>
    %615 = tpu.matmul %611, %614, %cst_256 {dimension_numbers = #tpu.dot_dimension_numbers<[1], [0], [0], [1], [0, 0, 1, 1], [], []>} : vector<8x8xf32>, vector<8x8xf32>, vector<8x8xf32> -> vector<8x8xf32>
    %cst_257 = arith.constant 0.353553385 : f32
    %616 = vector.broadcast %cst_257 : f32 to vector<8x8xf32>
    %617 = arith.mulf %615, %616 : vector<8x8xf32>
    %cst_258 = arith.constant dense<0xFF800000> : vector<8xf32>
    %618 = vector.multi_reduction <maximumf>, %617, %cst_258 [1] : vector<8x8xf32> to vector<8xf32>
    %619 = vector.shape_cast %618 : vector<8xf32> to vector<8x1xf32>
    %620 = vector.broadcast %619 : vector<8x1xf32> to vector<8x8xf32>
    %621 = arith.subf %617, %620 : vector<8x8xf32>
    %622 = math.exp %621 : vector<8x8xf32>
    %cst_259 = arith.constant dense<0.000000e+00> : vector<8xf32>
    %623 = vector.multi_reduction <add>, %622, %cst_259 [1] : vector<8x8xf32> to vector<8xf32>
    %624 = vector.shape_cast %623 : vector<8xf32> to vector<8x1xf32>
    %625 = vector.broadcast %624 : vector<8x1xf32> to vector<8x8xf32>
    %626 = arith.divf %622, %625 : vector<8x8xf32>
    %cst_260 = arith.constant dense<0.000000e+00> : vector<8x8xf32>
    %627 = tpu.matmul %626, %613, %cst_260 {dimension_numbers = #tpu.dot_dimension_numbers<[1], [0], [0], [1], [0, 0, 1, 1], [], []>} : vector<8x8xf32>, vector<8x8xf32>, vector<8x8xf32> -> vector<8x8xf32>
    %628 = vector.extract_strided_slice %591 {offsets = [8, 0], sizes = [8, 32], strides = [1, 1]} : vector<32x32xf32> to vector<8x32xf32>
    %cst_261 = arith.constant dense<0.000000e+00> : vector<8x32xf32>
    %629 = tpu.matmul %627, %628, %cst_261 {dimension_numbers = #tpu.dot_dimension_numbers<[1], [0], [0], [1], [0, 0, 1, 1], [], []>} : vector<8x8xf32>, vector<8x32xf32>, vector<8x32xf32> -> vector<8x32xf32>
    %630 = arith.addf %610, %629 : vector<8x32xf32>
    %631 = vector.extract_strided_slice %590 {offsets = [0, 16], sizes = [8, 8], strides = [1, 1]} : vector<8x96xf32> to vector<8x8xf32>
    %632 = vector.extract_strided_slice %590 {offsets = [0, 48], sizes = [8, 8], strides = [1, 1]} : vector<8x96xf32> to vector<8x8xf32>
    %633 = vector.extract_strided_slice %590 {offsets = [0, 80], sizes = [8, 8], strides = [1, 1]} : vector<8x96xf32> to vector<8x8xf32>
    %634 = tpu.transpose %632, [1, 0] : vector<8x8xf32> -> vector<8x8xf32>
    %cst_262 = arith.constant dense<0.000000e+00> : vector<8x8xf32>
    %635 = tpu.matmul %631, %634, %cst_262 {dimension_numbers = #tpu.dot_dimension_numbers<[1], [0], [0], [1], [0, 0, 1, 1], [], []>} : vector<8x8xf32>, vector<8x8xf32>, vector<8x8xf32> -> vector<8x8xf32>
    %cst_263 = arith.constant 0.353553385 : f32
    %636 = vector.broadcast %cst_263 : f32 to vector<8x8xf32>
    %637 = arith.mulf %635, %636 : vector<8x8xf32>
    %cst_264 = arith.constant dense<0xFF800000> : vector<8xf32>
    %638 = vector.multi_reduction <maximumf>, %637, %cst_264 [1] : vector<8x8xf32> to vector<8xf32>
    %639 = vector.shape_cast %638 : vector<8xf32> to vector<8x1xf32>
    %640 = vector.broadcast %639 : vector<8x1xf32> to vector<8x8xf32>
    %641 = arith.subf %637, %640 : vector<8x8xf32>
    %642 = math.exp %641 : vector<8x8xf32>
    %cst_265 = arith.constant dense<0.000000e+00> : vector<8xf32>
    %643 = vector.multi_reduction <add>, %642, %cst_265 [1] : vector<8x8xf32> to vector<8xf32>
    %644 = vector.shape_cast %643 : vector<8xf32> to vector<8x1xf32>
    %645 = vector.broadcast %644 : vector<8x1xf32> to vector<8x8xf32>
    %646 = arith.divf %642, %645 : vector<8x8xf32>
    %cst_266 = arith.constant dense<0.000000e+00> : vector<8x8xf32>
    %647 = tpu.matmul %646, %633, %cst_266 {dimension_numbers = #tpu.dot_dimension_numbers<[1], [0], [0], [1], [0, 0, 1, 1], [], []>} : vector<8x8xf32>, vector<8x8xf32>, vector<8x8xf32> -> vector<8x8xf32>
    %648 = vector.extract_strided_slice %591 {offsets = [16, 0], sizes = [8, 32], strides = [1, 1]} : vector<32x32xf32> to vector<8x32xf32>
    %cst_267 = arith.constant dense<0.000000e+00> : vector<8x32xf32>
    %649 = tpu.matmul %647, %648, %cst_267 {dimension_numbers = #tpu.dot_dimension_numbers<[1], [0], [0], [1], [0, 0, 1, 1], [], []>} : vector<8x8xf32>, vector<8x32xf32>, vector<8x32xf32> -> vector<8x32xf32>
    %650 = arith.addf %630, %649 : vector<8x32xf32>
    %651 = vector.extract_strided_slice %590 {offsets = [0, 24], sizes = [8, 8], strides = [1, 1]} : vector<8x96xf32> to vector<8x8xf32>
    %652 = vector.extract_strided_slice %590 {offsets = [0, 56], sizes = [8, 8], strides = [1, 1]} : vector<8x96xf32> to vector<8x8xf32>
    %653 = vector.extract_strided_slice %590 {offsets = [0, 88], sizes = [8, 8], strides = [1, 1]} : vector<8x96xf32> to vector<8x8xf32>
    %654 = tpu.transpose %652, [1, 0] : vector<8x8xf32> -> vector<8x8xf32>
    %cst_268 = arith.constant dense<0.000000e+00> : vector<8x8xf32>
    %655 = tpu.matmul %651, %654, %cst_268 {dimension_numbers = #tpu.dot_dimension_numbers<[1], [0], [0], [1], [0, 0, 1, 1], [], []>} : vector<8x8xf32>, vector<8x8xf32>, vector<8x8xf32> -> vector<8x8xf32>
    %cst_269 = arith.constant 0.353553385 : f32
    %656 = vector.broadcast %cst_269 : f32 to vector<8x8xf32>
    %657 = arith.mulf %655, %656 : vector<8x8xf32>
    %cst_270 = arith.constant dense<0xFF800000> : vector<8xf32>
    %658 = vector.multi_reduction <maximumf>, %657, %cst_270 [1] : vector<8x8xf32> to vector<8xf32>
    %659 = vector.shape_cast %658 : vector<8xf32> to vector<8x1xf32>
    %660 = vector.broadcast %659 : vector<8x1xf32> to vector<8x8xf32>
    %661 = arith.subf %657, %660 : vector<8x8xf32>
    %662 = math.exp %661 : vector<8x8xf32>
    %cst_271 = arith.constant dense<0.000000e+00> : vector<8xf32>
    %663 = vector.multi_reduction <add>, %662, %cst_271 [1] : vector<8x8xf32> to vector<8xf32>
    %664 = vector.shape_cast %663 : vector<8xf32> to vector<8x1xf32>
    %665 = vector.broadcast %664 : vector<8x1xf32> to vector<8x8xf32>
    %666 = arith.divf %662, %665 : vector<8x8xf32>
    %cst_272 = arith.constant dense<0.000000e+00> : vector<8x8xf32>
    %667 = tpu.matmul %666, %653, %cst_272 {dimension_numbers = #tpu.dot_dimension_numbers<[1], [0], [0], [1], [0, 0, 1, 1], [], []>} : vector<8x8xf32>, vector<8x8xf32>, vector<8x8xf32> -> vector<8x8xf32>
    %668 = vector.extract_strided_slice %591 {offsets = [24, 0], sizes = [8, 32], strides = [1, 1]} : vector<32x32xf32> to vector<8x32xf32>
    %cst_273 = arith.constant dense<0.000000e+00> : vector<8x32xf32>
    %669 = tpu.matmul %667, %668, %cst_273 {dimension_numbers = #tpu.dot_dimension_numbers<[1], [0], [0], [1], [0, 0, 1, 1], [], []>} : vector<8x8xf32>, vector<8x32xf32>, vector<8x32xf32> -> vector<8x32xf32>
    %670 = arith.addf %650, %669 : vector<8x32xf32>
    %c0_274 = arith.constant 0 : index
    %c0_275 = arith.constant 0 : index
    %671 = vector.load %arg33[%c0_274, %c0_275] : memref<1x32xf32, #tpu.memory_space<vmem>>, vector<1x32xf32>
    %672 = vector.broadcast %671 : vector<1x32xf32> to vector<8x32xf32>
    %673 = arith.addf %670, %672 : vector<8x32xf32>
    %674 = arith.addf %585, %673 : vector<8x32xf32>
    %cst_276 = arith.constant dense<0.000000e+00> : vector<8xf32>
    %675 = vector.multi_reduction <add>, %674, %cst_276 [1] : vector<8x32xf32> to vector<8xf32>
    %676 = vector.shape_cast %675 : vector<8xf32> to vector<8x1xf32>
    %cst_277 = arith.constant 3.200000e+01 : f32
    %677 = vector.broadcast %cst_277 : f32 to vector<8x1xf32>
    %678 = arith.divf %676, %677 : vector<8x1xf32>
    %679 = vector.broadcast %678 : vector<8x1xf32> to vector<8x32xf32>
    %680 = arith.subf %674, %679 : vector<8x32xf32>
    %681 = arith.mulf %680, %680 : vector<8x32xf32>
    %cst_278 = arith.constant dense<0.000000e+00> : vector<8xf32>
    %682 = vector.multi_reduction <add>, %681, %cst_278 [1] : vector<8x32xf32> to vector<8xf32>
    %683 = vector.shape_cast %682 : vector<8xf32> to vector<8x1xf32>
    %cst_279 = arith.constant 3.200000e+01 : f32
    %684 = vector.broadcast %cst_279 : f32 to vector<8x1xf32>
    %685 = arith.divf %683, %684 : vector<8x1xf32>
    %cst_280 = arith.constant 9.99999974E-6 : f32
    %686 = vector.broadcast %cst_280 : f32 to vector<8x1xf32>
    %687 = arith.addf %685, %686 : vector<8x1xf32>
    %688 = math.rsqrt %687 : vector<8x1xf32>
    %689 = vector.broadcast %688 : vector<8x1xf32> to vector<8x32xf32>
    %690 = arith.mulf %680, %689 : vector<8x32xf32>
    %c0_281 = arith.constant 0 : index
    %c0_282 = arith.constant 0 : index
    %691 = vector.load %arg28[%c0_281, %c0_282] : memref<1x32xf32, #tpu.memory_space<vmem>>, vector<1x32xf32>
    %692 = vector.broadcast %691 : vector<1x32xf32> to vector<8x32xf32>
    %693 = arith.mulf %690, %692 : vector<8x32xf32>
    %c0_283 = arith.constant 0 : index
    %c0_284 = arith.constant 0 : index
    %694 = vector.load %arg27[%c0_283, %c0_284] : memref<1x32xf32, #tpu.memory_space<vmem>>, vector<1x32xf32>
    %695 = vector.broadcast %694 : vector<1x32xf32> to vector<8x32xf32>
    %696 = arith.addf %693, %695 : vector<8x32xf32>
    %c0_285 = arith.constant 0 : index
    %c0_286 = arith.constant 0 : index
    %697 = vector.load %arg22[%c0_285, %c0_286] : memref<32x96xf32, #tpu.memory_space<vmem>>, vector<32x96xf32>
    %c0_287 = arith.constant 0 : index
    %c0_288 = arith.constant 0 : index
    %698 = vector.load %arg20[%c0_287, %c0_288] : memref<1x96xf32, #tpu.memory_space<vmem>>, vector<1x96xf32>
    %cst_289 = arith.constant dense<0.000000e+00> : vector<8x96xf32>
    %699 = tpu.matmul %696, %697, %cst_289 {dimension_numbers = #tpu.dot_dimension_numbers<[1], [0], [0], [1], [0, 0, 1, 1], [], []>} : vector<8x32xf32>, vector<32x96xf32>, vector<8x96xf32> -> vector<8x96xf32>
    %700 = vector.broadcast %698 : vector<1x96xf32> to vector<8x96xf32>
    %701 = arith.addf %699, %700 : vector<8x96xf32>
    %cst_290 = arith.constant dense<0.000000e+00> : vector<8x96xf32>
    %702 = tpu.matmul %323, %697, %cst_290 {dimension_numbers = #tpu.dot_dimension_numbers<[1], [0], [0], [1], [0, 0, 1, 1], [], []>} : vector<8x32xf32>, vector<32x96xf32>, vector<8x96xf32> -> vector<8x96xf32>
    %703 = vector.broadcast %698 : vector<1x96xf32> to vector<8x96xf32>
    %704 = arith.addf %702, %703 : vector<8x96xf32>
    %c0_291 = arith.constant 0 : index
    %c0_292 = arith.constant 0 : index
    %705 = vector.load %arg21[%c0_291, %c0_292] : memref<32x32xf32, #tpu.memory_space<vmem>>, vector<32x32xf32>
    %706 = vector.extract_strided_slice %701 {offsets = [0, 0], sizes = [8, 8], strides = [1, 1]} : vector<8x96xf32> to vector<8x8xf32>
    %707 = vector.extract_strided_slice %704 {offsets = [0, 32], sizes = [8, 8], strides = [1, 1]} : vector<8x96xf32> to vector<8x8xf32>
    %708 = vector.extract_strided_slice %704 {offsets = [0, 64], sizes = [8, 8], strides = [1, 1]} : vector<8x96xf32> to vector<8x8xf32>
    %709 = tpu.transpose %707, [1, 0] : vector<8x8xf32> -> vector<8x8xf32>
    %cst_293 = arith.constant dense<0.000000e+00> : vector<8x8xf32>
    %710 = tpu.matmul %706, %709, %cst_293 {dimension_numbers = #tpu.dot_dimension_numbers<[1], [0], [0], [1], [0, 0, 1, 1], [], []>} : vector<8x8xf32>, vector<8x8xf32>, vector<8x8xf32> -> vector<8x8xf32>
    %cst_294 = arith.constant 0.353553385 : f32
    %711 = vector.broadcast %cst_294 : f32 to vector<8x8xf32>
    %712 = arith.mulf %710, %711 : vector<8x8xf32>
    %cst_295 = arith.constant dense<0xFF800000> : vector<8xf32>
    %713 = vector.multi_reduction <maximumf>, %712, %cst_295 [1] : vector<8x8xf32> to vector<8xf32>
    %714 = vector.shape_cast %713 : vector<8xf32> to vector<8x1xf32>
    %715 = vector.broadcast %714 : vector<8x1xf32> to vector<8x8xf32>
    %716 = arith.subf %712, %715 : vector<8x8xf32>
    %717 = math.exp %716 : vector<8x8xf32>
    %cst_296 = arith.constant dense<0.000000e+00> : vector<8xf32>
    %718 = vector.multi_reduction <add>, %717, %cst_296 [1] : vector<8x8xf32> to vector<8xf32>
    %719 = vector.shape_cast %718 : vector<8xf32> to vector<8x1xf32>
    %720 = vector.broadcast %719 : vector<8x1xf32> to vector<8x8xf32>
    %721 = arith.divf %717, %720 : vector<8x8xf32>
    %cst_297 = arith.constant dense<0.000000e+00> : vector<8x8xf32>
    %722 = tpu.matmul %721, %708, %cst_297 {dimension_numbers = #tpu.dot_dimension_numbers<[1], [0], [0], [1], [0, 0, 1, 1], [], []>} : vector<8x8xf32>, vector<8x8xf32>, vector<8x8xf32> -> vector<8x8xf32>
    %723 = vector.extract_strided_slice %705 {offsets = [0, 0], sizes = [8, 32], strides = [1, 1]} : vector<32x32xf32> to vector<8x32xf32>
    %cst_298 = arith.constant dense<0.000000e+00> : vector<8x32xf32>
    %724 = tpu.matmul %722, %723, %cst_298 {dimension_numbers = #tpu.dot_dimension_numbers<[1], [0], [0], [1], [0, 0, 1, 1], [], []>} : vector<8x8xf32>, vector<8x32xf32>, vector<8x32xf32> -> vector<8x32xf32>
    %725 = vector.extract_strided_slice %701 {offsets = [0, 8], sizes = [8, 8], strides = [1, 1]} : vector<8x96xf32> to vector<8x8xf32>
    %726 = vector.extract_strided_slice %704 {offsets = [0, 40], sizes = [8, 8], strides = [1, 1]} : vector<8x96xf32> to vector<8x8xf32>
    %727 = vector.extract_strided_slice %704 {offsets = [0, 72], sizes = [8, 8], strides = [1, 1]} : vector<8x96xf32> to vector<8x8xf32>
    %728 = tpu.transpose %726, [1, 0] : vector<8x8xf32> -> vector<8x8xf32>
    %cst_299 = arith.constant dense<0.000000e+00> : vector<8x8xf32>
    %729 = tpu.matmul %725, %728, %cst_299 {dimension_numbers = #tpu.dot_dimension_numbers<[1], [0], [0], [1], [0, 0, 1, 1], [], []>} : vector<8x8xf32>, vector<8x8xf32>, vector<8x8xf32> -> vector<8x8xf32>
    %cst_300 = arith.constant 0.353553385 : f32
    %730 = vector.broadcast %cst_300 : f32 to vector<8x8xf32>
    %731 = arith.mulf %729, %730 : vector<8x8xf32>
    %cst_301 = arith.constant dense<0xFF800000> : vector<8xf32>
    %732 = vector.multi_reduction <maximumf>, %731, %cst_301 [1] : vector<8x8xf32> to vector<8xf32>
    %733 = vector.shape_cast %732 : vector<8xf32> to vector<8x1xf32>
    %734 = vector.broadcast %733 : vector<8x1xf32> to vector<8x8xf32>
    %735 = arith.subf %731, %734 : vector<8x8xf32>
    %736 = math.exp %735 : vector<8x8xf32>
    %cst_302 = arith.constant dense<0.000000e+00> : vector<8xf32>
    %737 = vector.multi_reduction <add>, %736, %cst_302 [1] : vector<8x8xf32> to vector<8xf32>
    %738 = vector.shape_cast %737 : vector<8xf32> to vector<8x1xf32>
    %739 = vector.broadcast %738 : vector<8x1xf32> to vector<8x8xf32>
    %740 = arith.divf %736, %739 : vector<8x8xf32>
    %cst_303 = arith.constant dense<0.000000e+00> : vector<8x8xf32>
    %741 = tpu.matmul %740, %727, %cst_303 {dimension_numbers = #tpu.dot_dimension_numbers<[1], [0], [0], [1], [0, 0, 1, 1], [], []>} : vector<8x8xf32>, vector<8x8xf32>, vector<8x8xf32> -> vector<8x8xf32>
    %742 = vector.extract_strided_slice %705 {offsets = [8, 0], sizes = [8, 32], strides = [1, 1]} : vector<32x32xf32> to vector<8x32xf32>
    %cst_304 = arith.constant dense<0.000000e+00> : vector<8x32xf32>
    %743 = tpu.matmul %741, %742, %cst_304 {dimension_numbers = #tpu.dot_dimension_numbers<[1], [0], [0], [1], [0, 0, 1, 1], [], []>} : vector<8x8xf32>, vector<8x32xf32>, vector<8x32xf32> -> vector<8x32xf32>
    %744 = arith.addf %724, %743 : vector<8x32xf32>
    %745 = vector.extract_strided_slice %701 {offsets = [0, 16], sizes = [8, 8], strides = [1, 1]} : vector<8x96xf32> to vector<8x8xf32>
    %746 = vector.extract_strided_slice %704 {offsets = [0, 48], sizes = [8, 8], strides = [1, 1]} : vector<8x96xf32> to vector<8x8xf32>
    %747 = vector.extract_strided_slice %704 {offsets = [0, 80], sizes = [8, 8], strides = [1, 1]} : vector<8x96xf32> to vector<8x8xf32>
    %748 = tpu.transpose %746, [1, 0] : vector<8x8xf32> -> vector<8x8xf32>
    %cst_305 = arith.constant dense<0.000000e+00> : vector<8x8xf32>
    %749 = tpu.matmul %745, %748, %cst_305 {dimension_numbers = #tpu.dot_dimension_numbers<[1], [0], [0], [1], [0, 0, 1, 1], [], []>} : vector<8x8xf32>, vector<8x8xf32>, vector<8x8xf32> -> vector<8x8xf32>
    %cst_306 = arith.constant 0.353553385 : f32
    %750 = vector.broadcast %cst_306 : f32 to vector<8x8xf32>
    %751 = arith.mulf %749, %750 : vector<8x8xf32>
    %cst_307 = arith.constant dense<0xFF800000> : vector<8xf32>
    %752 = vector.multi_reduction <maximumf>, %751, %cst_307 [1] : vector<8x8xf32> to vector<8xf32>
    %753 = vector.shape_cast %752 : vector<8xf32> to vector<8x1xf32>
    %754 = vector.broadcast %753 : vector<8x1xf32> to vector<8x8xf32>
    %755 = arith.subf %751, %754 : vector<8x8xf32>
    %756 = math.exp %755 : vector<8x8xf32>
    %cst_308 = arith.constant dense<0.000000e+00> : vector<8xf32>
    %757 = vector.multi_reduction <add>, %756, %cst_308 [1] : vector<8x8xf32> to vector<8xf32>
    %758 = vector.shape_cast %757 : vector<8xf32> to vector<8x1xf32>
    %759 = vector.broadcast %758 : vector<8x1xf32> to vector<8x8xf32>
    %760 = arith.divf %756, %759 : vector<8x8xf32>
    %cst_309 = arith.constant dense<0.000000e+00> : vector<8x8xf32>
    %761 = tpu.matmul %760, %747, %cst_309 {dimension_numbers = #tpu.dot_dimension_numbers<[1], [0], [0], [1], [0, 0, 1, 1], [], []>} : vector<8x8xf32>, vector<8x8xf32>, vector<8x8xf32> -> vector<8x8xf32>
    %762 = vector.extract_strided_slice %705 {offsets = [16, 0], sizes = [8, 32], strides = [1, 1]} : vector<32x32xf32> to vector<8x32xf32>
    %cst_310 = arith.constant dense<0.000000e+00> : vector<8x32xf32>
    %763 = tpu.matmul %761, %762, %cst_310 {dimension_numbers = #tpu.dot_dimension_numbers<[1], [0], [0], [1], [0, 0, 1, 1], [], []>} : vector<8x8xf32>, vector<8x32xf32>, vector<8x32xf32> -> vector<8x32xf32>
    %764 = arith.addf %744, %763 : vector<8x32xf32>
    %765 = vector.extract_strided_slice %701 {offsets = [0, 24], sizes = [8, 8], strides = [1, 1]} : vector<8x96xf32> to vector<8x8xf32>
    %766 = vector.extract_strided_slice %704 {offsets = [0, 56], sizes = [8, 8], strides = [1, 1]} : vector<8x96xf32> to vector<8x8xf32>
    %767 = vector.extract_strided_slice %704 {offsets = [0, 88], sizes = [8, 8], strides = [1, 1]} : vector<8x96xf32> to vector<8x8xf32>
    %768 = tpu.transpose %766, [1, 0] : vector<8x8xf32> -> vector<8x8xf32>
    %cst_311 = arith.constant dense<0.000000e+00> : vector<8x8xf32>
    %769 = tpu.matmul %765, %768, %cst_311 {dimension_numbers = #tpu.dot_dimension_numbers<[1], [0], [0], [1], [0, 0, 1, 1], [], []>} : vector<8x8xf32>, vector<8x8xf32>, vector<8x8xf32> -> vector<8x8xf32>
    %cst_312 = arith.constant 0.353553385 : f32
    %770 = vector.broadcast %cst_312 : f32 to vector<8x8xf32>
    %771 = arith.mulf %769, %770 : vector<8x8xf32>
    %cst_313 = arith.constant dense<0xFF800000> : vector<8xf32>
    %772 = vector.multi_reduction <maximumf>, %771, %cst_313 [1] : vector<8x8xf32> to vector<8xf32>
    %773 = vector.shape_cast %772 : vector<8xf32> to vector<8x1xf32>
    %774 = vector.broadcast %773 : vector<8x1xf32> to vector<8x8xf32>
    %775 = arith.subf %771, %774 : vector<8x8xf32>
    %776 = math.exp %775 : vector<8x8xf32>
    %cst_314 = arith.constant dense<0.000000e+00> : vector<8xf32>
    %777 = vector.multi_reduction <add>, %776, %cst_314 [1] : vector<8x8xf32> to vector<8xf32>
    %778 = vector.shape_cast %777 : vector<8xf32> to vector<8x1xf32>
    %779 = vector.broadcast %778 : vector<8x1xf32> to vector<8x8xf32>
    %780 = arith.divf %776, %779 : vector<8x8xf32>
    %cst_315 = arith.constant dense<0.000000e+00> : vector<8x8xf32>
    %781 = tpu.matmul %780, %767, %cst_315 {dimension_numbers = #tpu.dot_dimension_numbers<[1], [0], [0], [1], [0, 0, 1, 1], [], []>} : vector<8x8xf32>, vector<8x8xf32>, vector<8x8xf32> -> vector<8x8xf32>
    %782 = vector.extract_strided_slice %705 {offsets = [24, 0], sizes = [8, 32], strides = [1, 1]} : vector<32x32xf32> to vector<8x32xf32>
    %cst_316 = arith.constant dense<0.000000e+00> : vector<8x32xf32>
    %783 = tpu.matmul %781, %782, %cst_316 {dimension_numbers = #tpu.dot_dimension_numbers<[1], [0], [0], [1], [0, 0, 1, 1], [], []>} : vector<8x8xf32>, vector<8x32xf32>, vector<8x32xf32> -> vector<8x32xf32>
    %784 = arith.addf %764, %783 : vector<8x32xf32>
    %c0_317 = arith.constant 0 : index
    %c0_318 = arith.constant 0 : index
    %785 = vector.load %arg19[%c0_317, %c0_318] : memref<1x32xf32, #tpu.memory_space<vmem>>, vector<1x32xf32>
    %786 = vector.broadcast %785 : vector<1x32xf32> to vector<8x32xf32>
    %787 = arith.addf %784, %786 : vector<8x32xf32>
    %788 = arith.addf %696, %787 : vector<8x32xf32>
    %cst_319 = arith.constant dense<0.000000e+00> : vector<8xf32>
    %789 = vector.multi_reduction <add>, %788, %cst_319 [1] : vector<8x32xf32> to vector<8xf32>
    %790 = vector.shape_cast %789 : vector<8xf32> to vector<8x1xf32>
    %cst_320 = arith.constant 3.200000e+01 : f32
    %791 = vector.broadcast %cst_320 : f32 to vector<8x1xf32>
    %792 = arith.divf %790, %791 : vector<8x1xf32>
    %793 = vector.broadcast %792 : vector<8x1xf32> to vector<8x32xf32>
    %794 = arith.subf %788, %793 : vector<8x32xf32>
    %795 = arith.mulf %794, %794 : vector<8x32xf32>
    %cst_321 = arith.constant dense<0.000000e+00> : vector<8xf32>
    %796 = vector.multi_reduction <add>, %795, %cst_321 [1] : vector<8x32xf32> to vector<8xf32>
    %797 = vector.shape_cast %796 : vector<8xf32> to vector<8x1xf32>
    %cst_322 = arith.constant 3.200000e+01 : f32
    %798 = vector.broadcast %cst_322 : f32 to vector<8x1xf32>
    %799 = arith.divf %797, %798 : vector<8x1xf32>
    %cst_323 = arith.constant 9.99999974E-6 : f32
    %800 = vector.broadcast %cst_323 : f32 to vector<8x1xf32>
    %801 = arith.addf %799, %800 : vector<8x1xf32>
    %802 = math.rsqrt %801 : vector<8x1xf32>
    %803 = vector.broadcast %802 : vector<8x1xf32> to vector<8x32xf32>
    %804 = arith.mulf %794, %803 : vector<8x32xf32>
    %c0_324 = arith.constant 0 : index
    %c0_325 = arith.constant 0 : index
    %805 = vector.load %arg30[%c0_324, %c0_325] : memref<1x32xf32, #tpu.memory_space<vmem>>, vector<1x32xf32>
    %806 = vector.broadcast %805 : vector<1x32xf32> to vector<8x32xf32>
    %807 = arith.mulf %804, %806 : vector<8x32xf32>
    %c0_326 = arith.constant 0 : index
    %c0_327 = arith.constant 0 : index
    %808 = vector.load %arg29[%c0_326, %c0_327] : memref<1x32xf32, #tpu.memory_space<vmem>>, vector<1x32xf32>
    %809 = vector.broadcast %808 : vector<1x32xf32> to vector<8x32xf32>
    %810 = arith.addf %807, %809 : vector<8x32xf32>
    %c0_328 = arith.constant 0 : index
    %c0_329 = arith.constant 0 : index
    %811 = vector.load %arg25[%c0_328, %c0_329] : memref<32x2048xbf16, #tpu.memory_space<vmem>>, vector<32x2048xbf16>
    %812 = arith.truncf %810 : vector<8x32xf32> to vector<8x32xbf16>
    %cst_330 = arith.constant dense<0.000000e+00> : vector<8x2048xf32>
    %813 = tpu.matmul %812, %811, %cst_330 {dimension_numbers = #tpu.dot_dimension_numbers<[1], [0], [0], [1], [0, 0, 1, 1], [], []>} : vector<8x32xbf16>, vector<32x2048xbf16>, vector<8x2048xf32> -> vector<8x2048xf32>
    %c0_331 = arith.constant 0 : index
    %c0_332 = arith.constant 0 : index
    %814 = vector.load %arg23[%c0_331, %c0_332] : memref<1x2048xf32, #tpu.memory_space<vmem>>, vector<1x2048xf32>
    %815 = vector.broadcast %814 : vector<1x2048xf32> to vector<8x2048xf32>
    %816 = arith.addf %813, %815 : vector<8x2048xf32>
    %cst_333 = arith.constant 0.000000e+00 : f32
    %817 = vector.broadcast %cst_333 : f32 to vector<8x2048xf32>
    %818 = arith.maximumf %816, %817 : vector<8x2048xf32>
    %c0_334 = arith.constant 0 : index
    %c0_335 = arith.constant 0 : index
    %819 = vector.load %arg26[%c0_334, %c0_335] : memref<2048x32xbf16, #tpu.memory_space<vmem>>, vector<2048x32xbf16>
    %820 = arith.truncf %818 : vector<8x2048xf32> to vector<8x2048xbf16>
    %cst_336 = arith.constant dense<0.000000e+00> : vector<8x32xf32>
    %821 = tpu.matmul %820, %819, %cst_336 {dimension_numbers = #tpu.dot_dimension_numbers<[1], [0], [0], [1], [0, 0, 1, 1], [], []>} : vector<8x2048xbf16>, vector<2048x32xbf16>, vector<8x32xf32> -> vector<8x32xf32>
    %c0_337 = arith.constant 0 : index
    %c0_338 = arith.constant 0 : index
    %822 = vector.load %arg24[%c0_337, %c0_338] : memref<1x32xf32, #tpu.memory_space<vmem>>, vector<1x32xf32>
    %823 = vector.broadcast %822 : vector<1x32xf32> to vector<8x32xf32>
    %824 = arith.addf %821, %823 : vector<8x32xf32>
    %825 = arith.addf %810, %824 : vector<8x32xf32>
    %cst_339 = arith.constant dense<0.000000e+00> : vector<8xf32>
    %826 = vector.multi_reduction <add>, %825, %cst_339 [1] : vector<8x32xf32> to vector<8xf32>
    %827 = vector.shape_cast %826 : vector<8xf32> to vector<8x1xf32>
    %cst_340 = arith.constant 3.200000e+01 : f32
    %828 = vector.broadcast %cst_340 : f32 to vector<8x1xf32>
    %829 = arith.divf %827, %828 : vector<8x1xf32>
    %830 = vector.broadcast %829 : vector<8x1xf32> to vector<8x32xf32>
    %831 = arith.subf %825, %830 : vector<8x32xf32>
    %832 = arith.mulf %831, %831 : vector<8x32xf32>
    %cst_341 = arith.constant dense<0.000000e+00> : vector<8xf32>
    %833 = vector.multi_reduction <add>, %832, %cst_341 [1] : vector<8x32xf32> to vector<8xf32>
    %834 = vector.shape_cast %833 : vector<8xf32> to vector<8x1xf32>
    %cst_342 = arith.constant 3.200000e+01 : f32
    %835 = vector.broadcast %cst_342 : f32 to vector<8x1xf32>
    %836 = arith.divf %834, %835 : vector<8x1xf32>
    %cst_343 = arith.constant 9.99999974E-6 : f32
    %837 = vector.broadcast %cst_343 : f32 to vector<8x1xf32>
    %838 = arith.addf %836, %837 : vector<8x1xf32>
    %839 = math.rsqrt %838 : vector<8x1xf32>
    %840 = vector.broadcast %839 : vector<8x1xf32> to vector<8x32xf32>
    %841 = arith.mulf %831, %840 : vector<8x32xf32>
    %c0_344 = arith.constant 0 : index
    %c0_345 = arith.constant 0 : index
    %842 = vector.load %arg32[%c0_344, %c0_345] : memref<1x32xf32, #tpu.memory_space<vmem>>, vector<1x32xf32>
    %843 = vector.broadcast %842 : vector<1x32xf32> to vector<8x32xf32>
    %844 = arith.mulf %841, %843 : vector<8x32xf32>
    %c0_346 = arith.constant 0 : index
    %c0_347 = arith.constant 0 : index
    %845 = vector.load %arg31[%c0_346, %c0_347] : memref<1x32xf32, #tpu.memory_space<vmem>>, vector<1x32xf32>
    %846 = vector.broadcast %845 : vector<1x32xf32> to vector<8x32xf32>
    %847 = arith.addf %844, %846 : vector<8x32xf32>
    %cst_348 = arith.constant dense<0.000000e+00> : vector<8xf32>
    %848 = vector.multi_reduction <add>, %847, %cst_348 [1] : vector<8x32xf32> to vector<8xf32>
    %849 = vector.shape_cast %848 : vector<8xf32> to vector<8x1xf32>
    %cst_349 = arith.constant 3.200000e+01 : f32
    %850 = vector.broadcast %cst_349 : f32 to vector<8x1xf32>
    %851 = arith.divf %849, %850 : vector<8x1xf32>
    %852 = vector.broadcast %851 : vector<8x1xf32> to vector<8x32xf32>
    %853 = arith.subf %847, %852 : vector<8x32xf32>
    %854 = arith.mulf %853, %853 : vector<8x32xf32>
    %cst_350 = arith.constant dense<0.000000e+00> : vector<8xf32>
    %855 = vector.multi_reduction <add>, %854, %cst_350 [1] : vector<8x32xf32> to vector<8xf32>
    %856 = vector.shape_cast %855 : vector<8xf32> to vector<8x1xf32>
    %cst_351 = arith.constant 3.200000e+01 : f32
    %857 = vector.broadcast %cst_351 : f32 to vector<8x1xf32>
    %858 = arith.divf %856, %857 : vector<8x1xf32>
    %cst_352 = arith.constant 9.99999974E-6 : f32
    %859 = vector.broadcast %cst_352 : f32 to vector<8x1xf32>
    %860 = arith.addf %858, %859 : vector<8x1xf32>
    %861 = math.rsqrt %860 : vector<8x1xf32>
    %862 = vector.broadcast %861 : vector<8x1xf32> to vector<8x32xf32>
    %863 = arith.mulf %853, %862 : vector<8x32xf32>
    %c0_353 = arith.constant 0 : index
    %c0_354 = arith.constant 0 : index
    %864 = vector.load %arg38[%c0_353, %c0_354] : memref<1x32xf32, #tpu.memory_space<vmem>>, vector<1x32xf32>
    %865 = vector.broadcast %864 : vector<1x32xf32> to vector<8x32xf32>
    %866 = arith.mulf %863, %865 : vector<8x32xf32>
    %c0_355 = arith.constant 0 : index
    %c0_356 = arith.constant 0 : index
    %867 = vector.load %arg37[%c0_355, %c0_356] : memref<1x32xf32, #tpu.memory_space<vmem>>, vector<1x32xf32>
    %868 = vector.broadcast %867 : vector<1x32xf32> to vector<8x32xf32>
    %869 = arith.addf %866, %868 : vector<8x32xf32>
    %c0_357 = arith.constant 0 : index
    %c0_358 = arith.constant 0 : index
    %870 = vector.load %arg68[%c0_357, %c0_358] : memref<32x3xf32, #tpu.memory_space<vmem>>, vector<32x3xf32>
    %cst_359 = arith.constant dense<0.000000e+00> : vector<8x3xf32>
    %871 = tpu.matmul %869, %870, %cst_359 {dimension_numbers = #tpu.dot_dimension_numbers<[1], [0], [0], [1], [0, 0, 1, 1], [], []>} : vector<8x32xf32>, vector<32x3xf32>, vector<8x3xf32> -> vector<8x3xf32>
    %c0_360 = arith.constant 0 : index
    %c0_361 = arith.constant 0 : index
    %872 = vector.load %arg67[%c0_360, %c0_361] : memref<1x3xf32, #tpu.memory_space<vmem>>, vector<1x3xf32>
    %873 = vector.broadcast %872 : vector<1x3xf32> to vector<8x3xf32>
    %874 = arith.addf %871, %873 : vector<8x3xf32>
    %c0_362 = arith.constant 0 : index
    %c0_363 = arith.constant 0 : index
    %875 = vector.load %arg69[%c0_362, %c0_363] : memref<8x3xf32, #tpu.memory_space<vmem>>, vector<8x3xf32>
    tpu.vector_store %arg69[%c0_362, %c0_363], %874 {strides = array<i32>} : memref<8x3xf32, #tpu.memory_space<vmem>>, vector<8x3xf32>,
    return
  }
}

</mosaic_0001>

<bundles_post_ra>
// kernel: forward.1
= control target key start
LH: loop header
LB: loop body
LE: loop exit
PB: predicated region body
PF: predicated region fallthrough
CT: control target
= control target key end

     0   :  { %s19250_s6 = smov 1   ;;  %s19251_s10 = smov 2   ;;  %s21552_s0 = inlined_call_operand.smem [shape: u32[70], index: -1, kind: input, shape index: {}] }
   0x1   :  { %s19369_s5 = sld [smem:[%s21552_s0]]   ;;  %s19252_s14 = smov 3  }
   0x2   :  { %s19374_s9 = sld [smem:[%s21552_s0 + %s19250_s6]]   ;;  %s19253_s18 = smov 4  }
   0x3   :  { %s19379_s13 = sld [smem:[%s21552_s0 + %s19251_s10]]   ;;  %s19254_s22 = smov 5  }
   0x4   :  { %s19384_s17 = sld [smem:[%s21552_s0 + %s19252_s14]]   ;;  %s19255_s26 = smov 6  }
   0x5   :  { %s19389_s21 = sld [smem:[%s21552_s0 + %s19253_s18]]   ;;  %s19256_s30 = smov 7  }
   0x6   :  { %s19394_s25 = sld [smem:[%s21552_s0 + %s19254_s22]]   ;;  %s19257_s4 = smov 8  }
   0x7   :  { %21589 = sst [smem:[#allocation57_spill]] %s19369_s5  ;;  %s19258_s10 = smov 9  }
   0x8   :  { %21590 = sst [smem:[#allocation58_spill]] %s19374_s9  ;;  %s19259_s15 = smov 10  }
   0x9   :  { %21591 = sst [smem:[#allocation59_spill]] %s19379_s13  ;;  %s19260_s20 = smov 11  }
   0xa   :  { %21592 = sst [smem:[#allocation60_spill]] %s19384_s17  ;;  %s19262_s1 = smov 13  }
   0xb   :  { %21593 = sst [smem:[#allocation61_spill]] %s19389_s21  ;;  %s19263_s7 = smov 14  }
   0xc   :  { %21594 = sst [smem:[#allocation62_spill]] %s19394_s25  ;;  %s19265_s22 = smov 16  }
   0xd   :  { %s19399_s29 = sld [smem:[%s21552_s0 + %s19255_s26]]   ;;  %s19261_s26 = smov 12  }
   0xe   :  { %s19404_s3 = sld [smem:[%s21552_s0 + %s19256_s30]]   ;;  %s19266_s28 = smov 17  }
   0xf   :  { %s19409_s8 = sld [smem:[%s21552_s0 + %s19257_s4]]  }
  0x10   :  { %s19414_s14 = sld [smem:[%s21552_s0 + %s19258_s10]]  }
  0x11   :  { %s19419_s19 = sld [smem:[%s21552_s0 + %s19259_s15]]   ;;  %s19264_s15 = smov 15  }
  0x12   :  { %s19424_s24 = sld [smem:[%s21552_s0 + %s19260_s20]]  }
  0x13   :  { %21595 = sst [smem:[#allocation63_spill]] %s19399_s29 }
  0x14   :  { %21596 = sst [smem:[#allocation64_spill]] %s19404_s3 }
  0x15   :  { %21597 = sst [smem:[#allocation65_spill]] %s19409_s8 }
  0x16   :  { %21598 = sst [smem:[#allocation66_spill]] %s19414_s14 }
  0x17   :  { %21599 = sst [smem:[#allocation67_spill]] %s19419_s19 }
  0x18   :  { %21600 = sst [smem:[#allocation68_spill]] %s19424_s24 }
  0x19   :  { %s19429_s30 = sld [smem:[%s21552_s0 + %s19261_s26]]  }
  0x1a   :  { %s19434_s6 = sld [smem:[%s21552_s0 + %s19262_s1]]  }
  0x1b   :  { %s19439_s12 = sld [smem:[%s21552_s0 + %s19263_s7]]   ;;  %s19267_s7 = smov 18  }
  0x1c   :  { %s19444_s20 = sld [smem:[%s21552_s0 + %s19264_s15]]   ;;  %s19268_s15 = smov 19  }
  0x1d   :  { %s19449_s27 = sld [smem:[%s21552_s0 + %s19265_s22]]   ;;  %s19269_s22 = smov 20  }
  0x1e   :  { %s19454_s4 = sld [smem:[%s21552_s0 + %s19266_s28]]   ;;  %s19270_s28 = smov 21  }
  0x1f   :  { %21601 = sst [smem:[#allocation69_spill]] %s19429_s30 }
  0x20   :  { %21602 = sst [smem:[#allocation70_spill]] %s19434_s6 }
  0x21   :  { %21603 = sst [smem:[#allocation71_spill]] %s19439_s12 }
  0x22   :  { %21604 = sst [smem:[#allocation72_spill]] %s19444_s20 }
  0x23   :  { %21605 = sst [smem:[#allocation73_spill]] %s19449_s27 }
  0x24   :  { %21606 = sst [smem:[#allocation74_spill]] %s19454_s4 }
  0x25   :  { %s19459_s6 = sld [smem:[%s21552_s0 + %s19267_s7]]   ;;  %s19271_s7 = smov 22  }
  0x26   :  { %s19464_s12 = sld [smem:[%s21552_s0 + %s19268_s15]]   ;;  %s19272_s15 = smov 23  }
  0x27   :  { %s19469_s29 = sld [smem:[%s21552_s0 + %s19269_s22]]   ;;  %s19273_s22 = smov 24  }
  0x28   :  { %s19474_s25 = sld [smem:[%s21552_s0 + %s19270_s28]]   ;;  %s19274_s28 = smov 25  }
  0x29   :  { %s19479_s8 = sld [smem:[%s21552_s0 + %s19271_s7]]   ;;  %s19275_s7 = smov 26  }
  0x2b   :  { %21607 = sst [smem:[#allocation75_spill]] %s19459_s6 }
  0x2c   :  { %21608 = sst [smem:[#allocation76_spill]] %s19464_s12 }
  0x2d   :  { %21609 = sst [smem:[#allocation77_spill]] %s19469_s29 }
  0x2e   :  { %21610 = sst [smem:[#allocation78_spill]] %s19474_s25 }
  0x2f   :  { %21611 = sst [smem:[#allocation79_spill]] %s19479_s8 }
  0x30   :  { %s19484_s12 = sld [smem:[%s21552_s0 + %s19272_s15]]   ;;  %s19276_s15 = smov 27  }
  0x31   :  { %s19489_s29 = sld [smem:[%s21552_s0 + %s19273_s22]]   ;;  %s19277_s22 = smov 28  }
  0x32   :  { %s19494_s25 = sld [smem:[%s21552_s0 + %s19274_s28]]   ;;  %s19278_s28 = smov 29  }
  0x33   :  { %s19499_s8 = sld [smem:[%s21552_s0 + %s19275_s7]]   ;;  %s19279_s7 = smov 30  }
  0x36   :  { %21612 = sst [smem:[#allocation80_spill]] %s19484_s12 }
  0x37   :  { %21613 = sst [smem:[#allocation81_spill]] %s19489_s29 }
  0x38   :  { %21614 = sst [smem:[#allocation82_spill]] %s19494_s25 }
  0x39   :  { %21615 = sst [smem:[#allocation83_spill]] %s19499_s8 }
  0x3a   :  { %s19504_s12 = sld [smem:[%s21552_s0 + %s19276_s15]]   ;;  %s19280_s15 = smov 31  }
  0x3b   :  { %s19509_s29 = sld [smem:[%s21552_s0 + %s19277_s22]]   ;;  %s19281_s22 = smov 32  }
  0x3c   :  { %s19514_s25 = sld [smem:[%s21552_s0 + %s19278_s28]]   ;;  %s19282_s28 = smov 33  }
  0x3d   :  { %s19519_s8 = sld [smem:[%s21552_s0 + %s19279_s7]]   ;;  %s19283_s7 = smov 34  }
  0x3e   :  { %s19529_s24 = sld [smem:[%s21552_s0 + %s19281_s22]]   ;;  %s19285_s22 = smov 36  }
  0x3f   :  { %s19534_s30 = sld [smem:[%s21552_s0 + %s19282_s28]]   ;;  %s19286_s28 = smov 37  }
  0x40   :  { %21616 = sst [smem:[#allocation84_spill]] %s19504_s12 }
  0x41   :  { %s19524_s12 = sld [smem:[%s21552_s0 + %s19280_s15]]   ;;  %s19284_s15 = smov 35  }
  0x42   :  { %s19539_s3 = sld [smem:[%s21552_s0 + %s19283_s7]]   ;;  %s19287_s7 = smov 38  }
  0x43   :  { %21617 = sst [smem:[#allocation85_spill]] %s19519_s8 }
  0x44   :  { %21618 = sst [smem:[#allocation86_spill]] %s19529_s24 }
  0x45   :  { %s19544_s9 = sld [smem:[%s21552_s0 + %s19284_s15]]   ;;  %s19288_s15 = smov 39  }
  0x46   :  { %s19549_s17 = sld [smem:[%s21552_s0 + %s19285_s22]]   ;;  %s19289_s22 = smov 40  }
  0x47   :  { %s19554_s13 = sld [smem:[%s21552_s0 + %s19286_s28]]   ;;  %s19290_s28 = smov 41  }
  0x48   :  { %21619 = sst [smem:[#allocation87_spill]] %s19539_s3 }
  0x49   :  { %s19559_s14 = sld [smem:[%s21552_s0 + %s19287_s7]]   ;;  %s19291_s7 = smov 42  }
  0x4a   :  { %s19574_s19 = sld [smem:[%s21552_s0 + %s19290_s28]]   ;;  %s19294_s28 = smov 45  }
  0x4b   :  { %21620 = sst [smem:[#allocation88_spill]] %s19544_s9 }
  0x4c   :  { %21621 = sst [smem:[#allocation89_spill]] %s19549_s17 }
  0x4d   :  { %s19564_s9 = sld [smem:[%s21552_s0 + %s19288_s15]]   ;;  %s19292_s15 = smov 43  }
  0x4e   :  { %s19569_s17 = sld [smem:[%s21552_s0 + %s19289_s22]]   ;;  %s19293_s22 = smov 44  }
  0x4f   :  { %21622 = sst [smem:[#allocation90_spill]] %s19559_s14 }
  0x50   :  { %21624 = sst [smem:[#allocation92_spill]] %s19574_s19 }
  0x51   :  { %s19579_s21 = sld [smem:[%s21552_s0 + %s19291_s7]]   ;;  %s19295_s7 = smov 46  }
  0x52   :  { %s19584_s20 = sld [smem:[%s21552_s0 + %s19292_s15]]   ;;  %s19296_s15 = smov 47  }
  0x53   :  { %21623 = sst [smem:[#allocation91_spill]] %s19564_s9 }
  0x54   :  { %s19589_s4 = sld [smem:[%s21552_s0 + %s19293_s22]]   ;;  %s19297_s22 = smov 48  }
  0x55   :  { %s19594_s27 = sld [smem:[%s21552_s0 + %s19294_s28]]   ;;  %s19298_s28 = smov 49  }
  0x56   :  { %s19599_s6 = sld [smem:[%s21552_s0 + %s19295_s7]]   ;;  %s19299_s7 = smov 50  }
  0x57   :  { %21625 = sst [smem:[#allocation93_spill]] %s19579_s21 }
  0x58   :  { %21626 = sst [smem:[#allocation94_spill]] %s19584_s20 }
  0x59   :  { %s19604_s9 = sld [smem:[%s21552_s0 + %s19296_s15]]   ;;  %s19300_s15 = smov 51  }
  0x5a   :  { %s19609_s21 = sld [smem:[%s21552_s0 + %s19297_s22]]   ;;  %s19301_s22 = smov 52  }
  0x5b   :  { %21627 = sst [smem:[#allocation95_spill]] %s19594_s27 }
  0x5c   :  { %s19614_s19 = sld [smem:[%s21552_s0 + %s19298_s28]]   ;;  %s19302_s28 = smov 53  }
  0x5d   :  { %s19619_s5 = sld [smem:[%s21552_s0 + %s19299_s7]]   ;;  %s19303_s7 = smov 54  }
  0x5e   :  { %s19629_s27 = sld [smem:[%s21552_s0 + %s19301_s22]]   ;;  %s19305_s22 = smov 56  }
  0x5f   :  { %21628 = sst [smem:[#allocation96_spill]] %s19604_s9 }
  0x60   :  { %s19624_s9 = sld [smem:[%s21552_s0 + %s19300_s15]]   ;;  %s19304_s15 = smov 55  }
  0x62   :  { %21629 = sst [smem:[#allocation97_spill]] %s19614_s19 }
  0x63   :  { %21630 = sst [smem:[#allocation98_spill]] %s19619_s5 }
  0x64   :  { %21632 = sst [smem:[#allocation100_spill]] %s19629_s27 }
  0x65   :  { %s19634_s19 = sld [smem:[%s21552_s0 + %s19302_s28]]   ;;  %s19306_s28 = smov 57  }
  0x66   :  { %21631 = sst [smem:[#allocation99_spill]] %s19624_s9 }
  0x67   :  { %s19639_s5 = sld [smem:[%s21552_s0 + %s19303_s7]]   ;;  %s19307_s7 = smov 58  }
  0x68   :  { %s19644_s9 = sld [smem:[%s21552_s0 + %s19304_s15]]   ;;  %s19308_s15 = smov 59  }
  0x69   :  { %s19649_s27 = sld [smem:[%s21552_s0 + %s19305_s22]]   ;;  %s19309_s22 = smov 60  }
  0x6a   :  { %s19664_s20 = sld [smem:[%s21552_s0 + %s19308_s15]]   ;;  %s19312_s15 = smov 63  }
  0x6b   :  { %21633 = sst [smem:[#allocation101_spill]] %s19634_s19 }
  0x6c   :  { %s19654_s19 = sld [smem:[%s21552_s0 + %s19306_s28]]   ;;  %s19310_s28 = smov 61  }
  0x6d   :  { %21634 = sst [smem:[#allocation102_spill]] %s19639_s5 }
  0x6e   :  { %s19659_s5 = sld [smem:[%s21552_s0 + %s19307_s7]]   ;;  %s19311_s7 = smov 62  }
  0x6f   :  { %21635 = sst [smem:[#allocation103_spill]] %s19649_s27 }
  0x70   :  { %s19669_s27 = sld [smem:[%s21552_s0 + %s19309_s22]]   ;;  %s19313_s22 = smov 64  }
  0x71   :  { %s19674_s14 = sld [smem:[%s21552_s0 + %s19310_s28]]   ;;  %s19314_s28 = smov 65  }
  0x72   :  { %s19684_s3 = sld [smem:[%s21552_s0 + %s19312_s15]]   ;;  %s19316_s15 = smov 67  }
  0x73   :  { %s19704_s24 = sld [smem:[%s21552_s0 + %s19316_s15]]  }
  0x74   :  { %21636 = sst [smem:[#allocation104_spill]] %s19659_s5 }
  0x75   :  { %s19679_s5 = sld [smem:[%s21552_s0 + %s19311_s7]]   ;;  %s19315_s7 = smov 66  }
  0x76   :  { %21637 = sst [smem:[#allocation105_spill]] %s19669_s27 }
  0x77   :  { %21638 = sst [smem:[#allocation106_spill]] %s19674_s14 }
  0x78   :  { %s19689_s27 = sld [smem:[%s21552_s0 + %s19313_s22]]   ;;  %s19317_s22 = smov 68  }
  0x79   :  { %s19694_s14 = sld [smem:[%s21552_s0 + %s19314_s28]]   ;;  %s19318_s28 = smov 69  }
  0x7a   :  { %s19714_s8 = sld [smem:[%s21552_s0 + %s19318_s28]]  }
  0x7b   :  { %21639 = sst [smem:[#allocation107_spill]] %s19679_s5 }
  0x7c   :  { %s19699_s5 = sld [smem:[%s21552_s0 + %s19315_s7]]  }
  0x7e   :  { %21640 = sst [smem:[#allocation108_spill]] %s19689_s27 }
  0x7f   :  { %s19709_s27 = sld [smem:[%s21552_s0 + %s19317_s22]]  }
  0x80   :  { %144 = vsyncpa [#allocation3], 0 }
  0x81   :  { %145 = vsyncpa [#allocation5], 0 }
  0x82   :  { %146 = vsyncpa [#allocation8], 0 }
  0x83   :  { %147 = vsyncpa [#allocation11], 0 }
  0x84   :  { %148 = vsyncpa [#allocation14], 0 }
  0x85   :  { %149 = vsyncpa [#allocation17], 0 }
  0x86   :  { %150 = vsyncpa [#allocation20], 0 }
  0x87   :  { %151 = vsyncpa [#allocation23], 0 }
  0x88   :  { %152 = vsyncpa [#allocation26], 0 }
  0x89   :  { %153 = vsyncpa [#allocation29], 0 }
  0x8a   :  { %154 = vsyncpa [#allocation32], 0 }
  0x8b   :  { %155 = vsyncpa [#allocation35], 0 }
  0x8c   :  { %156 = vsyncpa [#allocation38], 0 }
  0x8d   :  { %157 = vsyncpa [#allocation41], 0  ;;  %s19319_s7 = smov [#allocation4]   ;;  %s19320_s10 = smov [#allocation7]  }
  0x8e   :  { %s230_s0 = sshll.u32 %s19319_s7, 4  ;;  %s250_s11 = sshll.u32 %s19320_s10, 4  ;;  %s231_s0 = int_to_ptr.vmem [resolvable:$true] %s230_s0  ;;  %s251_s11 = int_to_ptr.vmem [resolvable:$true] %s250_s11 }
  0x8f   :  { %s18628_s15 = scalar_lea.hbm %s19514_s25, 16 }
  0x90   :  { %p18629_p0 = scmp.ne.s32.totalorder %s19514_s25, %s18628_s15  ;;  %p18632_p1 = scmp.lt.u32.totalorder %s18628_s15, %s19514_s25 }
  0x92   :  { %p18634_p2 = pnand %p18632_p1, %p18629_p0 }
  0x94   :  { %18637 = shalt.err (!%p18634_p2)
}
  0x95   :  { %s18638_s16 = scalar_lea.vmem %s231_s0, 16  ;;  %s18642_s18 = scalar_lea.vmem %s231_s0, 32 }
  0x96   :  { %p18639_p3 = scmp.ne.s32.totalorder %s231_s0, %s18638_s16  ;;  %p18643_p4 = scmp.lt.s32.totalorder %s231_s0, %s231_s0 }
  0x97   :  { %p18644_p5 = scmp.lt.s32.totalorder %s18642_s18, %s18638_s16 }
  0x99   :  { %p18645_p6 = por %p18644_p5, %p18643_p4 }
  0x9b   :  { %p18646_p7 = pnand %p18645_p6, %p18639_p3 }
  0x9d   :  { %18649 = shalt.err (!%p18646_p7)
}
  0x9e   :  { %233 = dma.hbm_to_vmem [thread:$0]  %s19514_s25, 16, %s231_s0, [#allocation5]  }
  0x9f   :  { %s18650_s22 = scalar_lea.hbm %s19524_s12, 16 }
  0xa0   :  { %p18651_p8 = scmp.ne.s32.totalorder %s19524_s12, %s18650_s22  ;;  %p18654_p9 = scmp.lt.u32.totalorder %s18650_s22, %s19524_s12 }
  0xa2   :  { %p18656_p10 = pnand %p18654_p9, %p18651_p8 }
  0xa4   :  { %18659 = shalt.err (!%p18656_p10)
}
  0xa5   :  { %s18660_s23 = scalar_lea.vmem %s251_s11, 16  ;;  %s18664_s26 = scalar_lea.vmem %s251_s11, 32 }
  0xa6   :  { %p18661_p11 = scmp.ne.s32.totalorder %s251_s11, %s18660_s23  ;;  %p18665_p12 = scmp.lt.s32.totalorder %s251_s11, %s251_s11 }
  0xa7   :  { %p18666_p13 = scmp.lt.s32.totalorder %s18664_s26, %s18660_s23 }
  0xa9   :  { %p18667_p0 = por %p18666_p13, %p18665_p12 }
  0xab   :  { %p18668_p1 = pnand %p18667_p0, %p18661_p11 }
  0xad   :  { %18671 = shalt.err (!%p18668_p1)
}
  0xae   :  { %253 = dma.hbm_to_vmem [thread:$0]  %s19524_s12, 16, %s251_s11, [#allocation8]  }
  0xaf   :  { %s19321_s28 = smov [#allocation10]   ;;  %s19322_s1 = smov [#allocation13]  }
  0xb0   :  { %s270_s25 = sshll.u32 %s19321_s28, 4  ;;  %s294_s2 = sshll.u32 %s19322_s1, 4  ;;  %s271_s25 = int_to_ptr.vmem [resolvable:$true] %s270_s25  ;;  %s295_s2 = int_to_ptr.vmem [resolvable:$true] %s294_s2 }
  0xb1   :  { %s18672_s7 = scalar_lea.hbm %s19534_s30, 16 }
  0xb2   :  { %p18673_p2 = scmp.ne.s32.totalorder %s19534_s30, %s18672_s7  ;;  %p18676_p3 = scmp.lt.u32.totalorder %s18672_s7, %s19534_s30 }
  0xb4   :  { %p18678_p4 = pnand %p18676_p3, %p18673_p2 }
  0xb6   :  { %18681 = shalt.err (!%p18678_p4)
}
  0xb7   :  { %s18682_s0 = scalar_lea.vmem %s271_s25, 16  ;;  %s18686_s10 = scalar_lea.vmem %s271_s25, 32 }
  0xb8   :  { %p18683_p5 = scmp.ne.s32.totalorder %s271_s25, %s18682_s0  ;;  %p18687_p6 = scmp.lt.s32.totalorder %s271_s25, %s271_s25 }
  0xb9   :  { %p18688_p7 = scmp.lt.s32.totalorder %s18686_s10, %s18682_s0 }
  0xbb   :  { %p18689_p8 = por %p18688_p7, %p18687_p6 }
  0xbd   :  { %p18690_p9 = pnand %p18689_p8, %p18683_p5 }
  0xbf   :  { %18693 = shalt.err (!%p18690_p9)
}
  0xc0   :  { %273 = dma.hbm_to_vmem [thread:$0]  %s19534_s30, 16, %s271_s25, [#allocation11]  }
  0xc1   :  { %s18694_s12 = scalar_lea.hbm %s19554_s13, 16 }
  0xc2   :  { %p18695_p10 = scmp.ne.s32.totalorder %s19554_s13, %s18694_s12  ;;  %p18698_p11 = scmp.lt.u32.totalorder %s18694_s12, %s19554_s13 }
  0xc4   :  { %p18700_p12 = pnand %p18698_p11, %p18695_p10 }
  0xc6   :  { %18703 = shalt.err (!%p18700_p12)
}
  0xc7   :  { %s18704_s11 = scalar_lea.vmem %s295_s2, 16  ;;  %s18708_s15 = scalar_lea.vmem %s295_s2, 32 }
  0xc8   :  { %p18705_p13 = scmp.ne.s32.totalorder %s295_s2, %s18704_s11  ;;  %p18709_p0 = scmp.lt.s32.totalorder %s295_s2, %s295_s2 }
  0xc9   :  { %p18710_p1 = scmp.lt.s32.totalorder %s18708_s15, %s18704_s11 }
  0xcb   :  { %p18711_p2 = por %p18710_p1, %p18709_p0 }
  0xcd   :  { %p18712_p3 = pnand %p18711_p2, %p18705_p13 }
  0xcf   :  { %18715 = shalt.err (!%p18712_p3)
}
  0xd0   :  { %297 = dma.hbm_to_vmem [thread:$0]  %s19554_s13, 16, %s295_s2, [#allocation14]  }
  0xd1   :  { %s19323_s16 = smov [#allocation16]   ;;  %s19324_s18 = smov [#allocation19]  }
  0xd2   :  { %s316_s30 = sshll.u32 %s19323_s16, 4  ;;  %s340_s22 = sshll.u32 %s19324_s18, 4  ;;  %s317_s30 = int_to_ptr.vmem [resolvable:$true] %s316_s30  ;;  %s341_s22 = int_to_ptr.vmem [resolvable:$true] %s340_s22 }
  0xd3   :  { %s18716_s23 = scalar_lea.hbm %s19569_s17, 16 }
  0xd4   :  { %p18717_p4 = scmp.ne.s32.totalorder %s19569_s17, %s18716_s23  ;;  %p18720_p5 = scmp.lt.u32.totalorder %s18716_s23, %s19569_s17 }
  0xd6   :  { %p18722_p6 = pnand %p18720_p5, %p18717_p4 }
  0xd8   :  { %18725 = shalt.err (!%p18722_p6)
}
  0xd9   :  { %s18726_s26 = scalar_lea.vmem %s317_s30, 16  ;;  %s18730_s28 = scalar_lea.vmem %s317_s30, 32 }
  0xda   :  { %p18727_p7 = scmp.ne.s32.totalorder %s317_s30, %s18726_s26  ;;  %p18731_p8 = scmp.lt.s32.totalorder %s317_s30, %s317_s30 }
  0xdb   :  { %p18732_p9 = scmp.lt.s32.totalorder %s18730_s28, %s18726_s26 }
  0xdd   :  { %p18733_p10 = por %p18732_p9, %p18731_p8 }
  0xdf   :  { %p18734_p11 = pnand %p18733_p10, %p18727_p7 }
  0xe1   :  { %18737 = shalt.err (!%p18734_p11)
}
  0xe2   :  { %319 = dma.hbm_to_vmem [thread:$0]  %s19569_s17, 16, %s317_s30, [#allocation17]  }
  0xe3   :  { %s18738_s13 = scalar_lea.hbm %s19589_s4, 16 }
  0xe4   :  { %p18739_p12 = scmp.ne.s32.totalorder %s19589_s4, %s18738_s13  ;;  %p18742_p13 = scmp.lt.u32.totalorder %s18738_s13, %s19589_s4 }
  0xe6   :  { %p18744_p0 = pnand %p18742_p13, %p18739_p12 }
  0xe8   :  { %18747 = shalt.err (!%p18744_p0)
}
  0xe9   :  { %s18748_s25 = scalar_lea.vmem %s341_s22, 16  ;;  %s18752_s1 = scalar_lea.vmem %s341_s22, 32 }
  0xea   :  { %p18749_p1 = scmp.ne.s32.totalorder %s341_s22, %s18748_s25  ;;  %p18753_p2 = scmp.lt.s32.totalorder %s341_s22, %s341_s22 }
  0xeb   :  { %p18754_p3 = scmp.lt.s32.totalorder %s18752_s1, %s18748_s25 }
  0xed   :  { %p18755_p4 = por %p18754_p3, %p18753_p2 }
  0xef   :  { %p18756_p5 = pnand %p18755_p4, %p18749_p1 }
  0xf1   :  { %18759 = shalt.err (!%p18756_p5)
}
  0xf2   :  { %343 = dma.hbm_to_vmem [thread:$0]  %s19589_s4, 16, %s341_s22, [#allocation20]  }
  0xf3   :  { %s19325_s2 = smov [#allocation22]   ;;  %s19326_s7 = smov [#allocation25]  }
  0xf4   :  { %s360_s17 = sshll.u32 %s19325_s2, 4  ;;  %s380_s0 = sshll.u32 %s19326_s7, 4  ;;  %s361_s17 = int_to_ptr.vmem [resolvable:$true] %s360_s17  ;;  %s381_s0 = int_to_ptr.vmem [resolvable:$true] %s380_s0 }
  0xf5   :  { %s18760_s10 = scalar_lea.hbm %s19599_s6, 16 }
  0xf6   :  { %p18761_p6 = scmp.ne.s32.totalorder %s19599_s6, %s18760_s10  ;;  %p18764_p7 = scmp.lt.u32.totalorder %s18760_s10, %s19599_s6 }
  0xf8   :  { %p18766_p8 = pnand %p18764_p7, %p18761_p6 }
  0xfa   :  { %18769 = shalt.err (!%p18766_p8)
}
  0xfb   :  { %s18770_s12 = scalar_lea.vmem %s361_s17, 16  ;;  %s18774_s11 = scalar_lea.vmem %s361_s17, 32 }
  0xfc   :  { %p18771_p9 = scmp.ne.s32.totalorder %s361_s17, %s18770_s12  ;;  %p18775_p10 = scmp.lt.s32.totalorder %s361_s17, %s361_s17 }
  0xfd   :  { %p18776_p11 = scmp.lt.s32.totalorder %s18774_s11, %s18770_s12 }
  0xff   :  { %p18777_p12 = por %p18776_p11, %p18775_p10 }
 0x101   :  { %p18778_p13 = pnand %p18777_p12, %p18771_p9 }
 0x103   :  { %18781 = shalt.err (!%p18778_p13)
}
 0x104   :  { %363 = dma.hbm_to_vmem [thread:$0]  %s19599_s6, 16, %s361_s17, [#allocation23]  }
 0x105   :  { %s18782_s4 = scalar_lea.hbm %s19609_s21, 16 }
 0x106   :  { %p18783_p0 = scmp.ne.s32.totalorder %s19609_s21, %s18782_s4  ;;  %p18786_p1 = scmp.lt.u32.totalorder %s18782_s4, %s19609_s21 }
 0x108   :  { %p18788_p2 = pnand %p18786_p1, %p18783_p0 }
 0x10a   :  { %18791 = shalt.err (!%p18788_p2)
}
 0x10b   :  { %s18792_s15 = scalar_lea.vmem %s381_s0, 16  ;;  %s18796_s16 = scalar_lea.vmem %s381_s0, 32 }
 0x10c   :  { %p18793_p3 = scmp.ne.s32.totalorder %s381_s0, %s18792_s15  ;;  %p18797_p4 = scmp.lt.s32.totalorder %s381_s0, %s381_s0 }
 0x10d   :  { %p18798_p5 = scmp.lt.s32.totalorder %s18796_s16, %s18792_s15 }
 0x10f   :  { %p18799_p6 = por %p18798_p5, %p18797_p4 }
 0x111   :  { %p18800_p7 = pnand %p18799_p6, %p18793_p3 }
 0x113   :  { %18803 = shalt.err (!%p18800_p7)
}
 0x114   :  { %383 = dma.hbm_to_vmem [thread:$0]  %s19609_s21, 16, %s381_s0, [#allocation26]  }
 0x115   :  { %s19327_s30 = smov [#allocation28]   ;;  %s19328_s18 = smov [#allocation31]  }
 0x116   :  { %s410_s6 = sshll.u32 %s19327_s30, 4  ;;  %s430_s22 = sshll.u32 %s19328_s18, 4  ;;  %s411_s6 = int_to_ptr.vmem [resolvable:$true] %s410_s6  ;;  %s431_s22 = int_to_ptr.vmem [resolvable:$true] %s430_s22 }
 0x117   :  { %s18804_s23 = scalar_lea.hbm %s19644_s9, 16 }
 0x118   :  { %p18805_p8 = scmp.ne.s32.totalorder %s19644_s9, %s18804_s23  ;;  %p18808_p9 = scmp.lt.u32.totalorder %s18804_s23, %s19644_s9 }
 0x11a   :  { %p18810_p10 = pnand %p18808_p9, %p18805_p8 }
 0x11c   :  { %18813 = shalt.err (!%p18810_p10)
}
 0x11d   :  { %s18814_s26 = scalar_lea.vmem %s411_s6, 16  ;;  %s18818_s28 = scalar_lea.vmem %s411_s6, 32 }
 0x11e   :  { %p18815_p11 = scmp.ne.s32.totalorder %s411_s6, %s18814_s26  ;;  %p18819_p12 = scmp.lt.s32.totalorder %s411_s6, %s411_s6 }
 0x11f   :  { %p18820_p13 = scmp.lt.s32.totalorder %s18818_s28, %s18814_s26 }
 0x121   :  { %p18821_p0 = por %p18820_p13, %p18819_p12 }
 0x123   :  { %p18822_p1 = pnand %p18821_p0, %p18815_p11 }
 0x125   :  { %18825 = shalt.err (!%p18822_p1)
}
 0x126   :  { %413 = dma.hbm_to_vmem [thread:$0]  %s19644_s9, 16, %s411_s6, [#allocation29]  }
 0x127   :  { %s18826_s21 = scalar_lea.hbm %s19654_s19, 16 }
 0x128   :  { %p18827_p2 = scmp.ne.s32.totalorder %s19654_s19, %s18826_s21  ;;  %p18830_p3 = scmp.lt.u32.totalorder %s18826_s21, %s19654_s19 }
 0x12a   :  { %p18832_p4 = pnand %p18830_p3, %p18827_p2 }
 0x12c   :  { %18835 = shalt.err (!%p18832_p4)
}
 0x12d   :  { %s18836_s13 = scalar_lea.vmem %s431_s22, 16  ;;  %s18840_s25 = scalar_lea.vmem %s431_s22, 32 }
 0x12e   :  { %p18837_p5 = scmp.ne.s32.totalorder %s431_s22, %s18836_s13  ;;  %p18841_p6 = scmp.lt.s32.totalorder %s431_s22, %s431_s22 }
 0x12f   :  { %p18842_p7 = scmp.lt.s32.totalorder %s18840_s25, %s18836_s13 }
 0x131   :  { %p18843_p8 = por %p18842_p7, %p18841_p6 }
 0x133   :  { %p18844_p9 = pnand %p18843_p8, %p18837_p5 }
 0x135   :  { %18847 = shalt.err (!%p18844_p9)
}
 0x136   :  { %433 = dma.hbm_to_vmem [thread:$0]  %s19654_s19, 16, %s431_s22, [#allocation32]  }
 0x137   :  { %s19329_s1 = smov [#allocation34]   ;;  %s19330_s2 = smov [#allocation37]  }
 0x138   :  { %s450_s9 = sshll.u32 %s19329_s1, 4  ;;  %s474_s17 = sshll.u32 %s19330_s2, 4  ;;  %s451_s9 = int_to_ptr.vmem [resolvable:$true] %s450_s9  ;;  %s475_s17 = int_to_ptr.vmem [resolvable:$true] %s474_s17 }
 0x139   :  { %s18848_s7 = scalar_lea.hbm %s19664_s20, 16 }
 0x13a   :  { %p18849_p10 = scmp.ne.s32.totalorder %s19664_s20, %s18848_s7  ;;  %p18852_p11 = scmp.lt.u32.totalorder %s18848_s7, %s19664_s20 }
 0x13c   :  { %p18854_p12 = pnand %p18852_p11, %p18849_p10 }
 0x13e   :  { %18857 = shalt.err (!%p18854_p12)
}
 0x13f   :  { %s18858_s0 = scalar_lea.vmem %s451_s9, 16  ;;  %s18862_s10 = scalar_lea.vmem %s451_s9, 32 }
 0x140   :  { %p18859_p13 = scmp.ne.s32.totalorder %s451_s9, %s18858_s0  ;;  %p18863_p0 = scmp.lt.s32.totalorder %s451_s9, %s451_s9 }
 0x141   :  { %p18864_p1 = scmp.lt.s32.totalorder %s18862_s10, %s18858_s0 }
 0x143   :  { %p18865_p2 = por %p18864_p1, %p18863_p0 }
 0x145   :  { %p18866_p3 = pnand %p18865_p2, %p18859_p13 }
 0x147   :  { %18869 = shalt.err (!%p18866_p3)
}
 0x148   :  { %453 = dma.hbm_to_vmem [thread:$0]  %s19664_s20, 16, %s451_s9, [#allocation35]  }
 0x149   :  { %s18870_s19 = scalar_lea.hbm %s19684_s3, 16 }
 0x14a   :  { %p18871_p4 = scmp.ne.s32.totalorder %s19684_s3, %s18870_s19  ;;  %p18874_p5 = scmp.lt.u32.totalorder %s18870_s19, %s19684_s3 }
 0x14c   :  { %p18876_p6 = pnand %p18874_p5, %p18871_p4 }
 0x14e   :  { %18879 = shalt.err (!%p18876_p6)
}
 0x14f   :  { %s18880_s12 = scalar_lea.vmem %s475_s17, 16  ;;  %s18884_s11 = scalar_lea.vmem %s475_s17, 32 }
 0x150   :  { %p18881_p7 = scmp.ne.s32.totalorder %s475_s17, %s18880_s12  ;;  %p18885_p8 = scmp.lt.s32.totalorder %s475_s17, %s475_s17 }
 0x151   :  { %p18886_p9 = scmp.lt.s32.totalorder %s18884_s11, %s18880_s12 }
 0x153   :  { %p18887_p10 = por %p18886_p9, %p18885_p8 }
 0x155   :  { %p18888_p11 = pnand %p18887_p10, %p18881_p7 }
 0x157   :  { %18891 = shalt.err (!%p18888_p11)
}
 0x158   :  { %477 = dma.hbm_to_vmem [thread:$0]  %s19684_s3, 16, %s475_s17, [#allocation38]  }
 0x159   :  { %s19331_s4 = smov [#allocation40]   ;;  %s19332_s15 = smov [#allocation2]  }
 0x15a   :  { %s494_s20 = sshll.u32 %s19331_s4, 4  ;;  %s220_s16 = sshll.u32 %s19332_s15, 4  ;;  %s495_s20 = int_to_ptr.vmem [resolvable:$true] %s494_s20  ;;  %s221_s16 = int_to_ptr.vmem [resolvable:$true] %s220_s16 }
 0x15b   :  { %s18892_s30 = scalar_lea.hbm %s19694_s14, 16 }
 0x15c   :  { %p18893_p12 = scmp.ne.s32.totalorder %s19694_s14, %s18892_s30  ;;  %p18896_p13 = scmp.lt.u32.totalorder %s18892_s30, %s19694_s14 }
 0x15e   :  { %p18898_p0 = pnand %p18896_p13, %p18893_p12 }
 0x160   :  { %18901 = shalt.err (!%p18898_p0)
}
 0x161   :  { %s18902_s6 = scalar_lea.vmem %s495_s20, 16  ;;  %s18906_s18 = scalar_lea.vmem %s495_s20, 32 }
 0x162   :  { %p18903_p1 = scmp.ne.s32.totalorder %s495_s20, %s18902_s6  ;;  %p18907_p2 = scmp.lt.s32.totalorder %s495_s20, %s495_s20 }
 0x163   :  { %p18908_p3 = scmp.lt.s32.totalorder %s18906_s18, %s18902_s6 }
 0x165   :  { %p18909_p4 = por %p18908_p3, %p18907_p2 }
 0x167   :  { %p18910_p5 = pnand %p18909_p4, %p18903_p1 }
 0x169   :  { %18913 = shalt.err (!%p18910_p5)
}
 0x16a   :  { %497 = dma.hbm_to_vmem [thread:$0]  %s19694_s14, 16, %s495_s20, [#allocation41]  }
 0x16b   :  { %s18914_s3 = scalar_lea.hbm %s19509_s29, 16 }
 0x16c   :  { %p18915_p6 = scmp.ne.s32.totalorder %s19509_s29, %s18914_s3  ;;  %p18918_p7 = scmp.lt.u32.totalorder %s18914_s3, %s19509_s29 }
 0x16e   :  { %p18920_p8 = pnand %p18918_p7, %p18915_p6 }
 0x170   :  { %18923 = shalt.err (!%p18920_p8)
}
 0x171   :  { %s18924_s22 = scalar_lea.vmem %s221_s16, 16  ;;  %s18928_s23 = scalar_lea.vmem %s221_s16, 32 }
 0x172   :  { %p18925_p9 = scmp.ne.s32.totalorder %s221_s16, %s18924_s22  ;;  %p18929_p10 = scmp.lt.s32.totalorder %s221_s16, %s221_s16 }
 0x173   :  { %p18930_p11 = scmp.lt.s32.totalorder %s18928_s23, %s18924_s22 }
 0x175   :  { %p18931_p12 = por %p18930_p11, %p18929_p10 }
 0x177   :  { %p18932_p13 = pnand %p18931_p12, %p18925_p9 }
 0x179   :  { %18935 = shalt.err (!%p18932_p13)
}
 0x17a   :  { %s21641_s26 = sld [smem:[#allocation85_spill]]  ;;  %s19333_s28 = smov [#allocation6]  }
 0x17b   :  { %223 = dma.hbm_to_vmem [thread:$0]  %s19509_s29, 16, %s221_s16, [#allocation3]  }
 0x17c   :  { %s240_s14 = sshll.u32 %s19333_s28, 4  ;;  %s19334_s21 = smov [#allocation9]   ;;  %s241_s14 = int_to_ptr.vmem [resolvable:$true] %s240_s14 }
 0x17d   :  { %s260_s13 = sshll.u32 %s19334_s21, 4  ;;  %s261_s13 = int_to_ptr.vmem [resolvable:$true] %s260_s13 }
 0x180   :  { %s18936_s25 = scalar_lea.hbm %s21641_s26, 16 }
 0x181   :  { %p18937_p0 = scmp.ne.s32.totalorder %s21641_s26, %s18936_s25  ;;  %p18940_p1 = scmp.lt.u32.totalorder %s18936_s25, %s21641_s26 }
 0x183   :  { %p18942_p2 = pnand %p18940_p1, %p18937_p0 }
 0x185   :  { %18945 = shalt.err (!%p18942_p2)
}
 0x186   :  { %s18946_s1 = scalar_lea.vmem %s241_s14, 16  ;;  %s18950_s9 = scalar_lea.vmem %s241_s14, 32 }
 0x187   :  { %p18947_p3 = scmp.ne.s32.totalorder %s241_s14, %s18946_s1  ;;  %p18951_p4 = scmp.lt.s32.totalorder %s241_s14, %s241_s14 }
 0x188   :  { %p18952_p5 = scmp.lt.s32.totalorder %s18950_s9, %s18946_s1 }
 0x18a   :  { %p18953_p6 = por %p18952_p5, %p18951_p4 }
 0x18c   :  { %p18954_p7 = pnand %p18953_p6, %p18947_p3 }
 0x18e   :  { %18957 = shalt.err (!%p18954_p7)
}
 0x18f   :  { %s21642_s29 = sld [smem:[#allocation86_spill]] }
 0x190   :  { %243 = dma.hbm_to_vmem [thread:$0]  %s21641_s26, 16, %s241_s14, [#allocation5]  }
 0x195   :  { %s18958_s2 = scalar_lea.hbm %s21642_s29, 16 }
 0x196   :  { %p18959_p8 = scmp.ne.s32.totalorder %s21642_s29, %s18958_s2  ;;  %p18962_p9 = scmp.lt.u32.totalorder %s18958_s2, %s21642_s29 }
 0x198   :  { %p18964_p10 = pnand %p18962_p9, %p18959_p8 }
 0x19a   :  { %18967 = shalt.err (!%p18964_p10)
}
 0x19b   :  { %s18968_s17 = scalar_lea.vmem %s261_s13, 16  ;;  %s18972_s7 = scalar_lea.vmem %s261_s13, 32 }
 0x19c   :  { %p18969_p11 = scmp.ne.s32.totalorder %s261_s13, %s18968_s17  ;;  %p18973_p12 = scmp.lt.s32.totalorder %s261_s13, %s261_s13 }
 0x19d   :  { %p18974_p13 = scmp.lt.s32.totalorder %s18972_s7, %s18968_s17 }
 0x19f   :  { %p18975_p0 = por %p18974_p13, %p18973_p12 }
 0x1a1   :  { %p18976_p1 = pnand %p18975_p0, %p18969_p11 }
 0x1a3   :  { %18979 = shalt.err (!%p18976_p1)
}
 0x1a4   :  { %s21643_s0 = sld [smem:[#allocation87_spill]]  ;;  %s19335_s10 = smov [#allocation12]  }
 0x1a5   :  { %263 = dma.hbm_to_vmem [thread:$0]  %s21642_s29, 16, %s261_s13, [#allocation8]  }
 0x1a6   :  { %s280_s19 = sshll.u32 %s19335_s10, 4  ;;  %s19336_s12 = smov [#allocation15]   ;;  %s281_s19 = int_to_ptr.vmem [resolvable:$true] %s280_s19 }
 0x1a7   :  { %s304_s11 = sshll.u32 %s19336_s12, 4  ;;  %s305_s11 = int_to_ptr.vmem [resolvable:$true] %s304_s11 }
 0x1aa   :  { %s18980_s4 = scalar_lea.hbm %s21643_s0, 16 }
 0x1ab   :  { %p18981_p2 = scmp.ne.s32.totalorder %s21643_s0, %s18980_s4  ;;  %p18984_p3 = scmp.lt.u32.totalorder %s18980_s4, %s21643_s0 }
 0x1ad   :  { %p18986_p4 = pnand %p18984_p3, %p18981_p2 }
 0x1af   :  { %18989 = shalt.err (!%p18986_p4)
}
 0x1b0   :  { %s18990_s20 = scalar_lea.vmem %s281_s19, 16  ;;  %s18994_s15 = scalar_lea.vmem %s281_s19, 32 }
 0x1b1   :  { %p18991_p5 = scmp.ne.s32.totalorder %s281_s19, %s18990_s20  ;;  %p18995_p6 = scmp.lt.s32.totalorder %s281_s19, %s281_s19 }
 0x1b2   :  { %p18996_p7 = scmp.lt.s32.totalorder %s18994_s15, %s18990_s20 }
 0x1b4   :  { %p18997_p8 = por %p18996_p7, %p18995_p6 }
 0x1b6   :  { %p18998_p9 = pnand %p18997_p8, %p18991_p5 }
 0x1b8   :  { %19001 = shalt.err (!%p18998_p9)
}
 0x1b9   :  { %s21644_s16 = sld [smem:[#allocation90_spill]] }
 0x1ba   :  { %283 = dma.hbm_to_vmem [thread:$0]  %s21643_s0, 16, %s281_s19, [#allocation11]  }
 0x1bf   :  { %s19002_s30 = scalar_lea.hbm %s21644_s16, 16 }
 0x1c0   :  { %p19003_p10 = scmp.ne.s32.totalorder %s21644_s16, %s19002_s30  ;;  %p19006_p11 = scmp.lt.u32.totalorder %s19002_s30, %s21644_s16 }
 0x1c2   :  { %p19008_p12 = pnand %p19006_p11, %p19003_p10 }
 0x1c4   :  { %19011 = shalt.err (!%p19008_p12)
}
 0x1c5   :  { %s19012_s6 = scalar_lea.vmem %s305_s11, 16  ;;  %s19016_s18 = scalar_lea.vmem %s305_s11, 32 }
 0x1c6   :  { %p19013_p13 = scmp.ne.s32.totalorder %s305_s11, %s19012_s6  ;;  %p19017_p0 = scmp.lt.s32.totalorder %s305_s11, %s305_s11 }
 0x1c7   :  { %p19018_p1 = scmp.lt.s32.totalorder %s19016_s18, %s19012_s6 }
 0x1c9   :  { %p19019_p2 = por %p19018_p1, %p19017_p0 }
 0x1cb   :  { %p19020_p3 = pnand %p19019_p2, %p19013_p13 }
 0x1cd   :  { %19023 = shalt.err (!%p19020_p3)
}
 0x1ce   :  { %s21645_s3 = sld [smem:[#allocation94_spill]]  ;;  %s19337_s22 = smov [#allocation18]  }
 0x1cf   :  { %307 = dma.hbm_to_vmem [thread:$0]  %s21644_s16, 16, %s305_s11, [#allocation14]  }
 0x1d0   :  { %s330_s23 = sshll.u32 %s19337_s22, 4  ;;  %s19338_s26 = smov [#allocation21]   ;;  %s331_s23 = int_to_ptr.vmem [resolvable:$true] %s330_s23 }
 0x1d1   :  { %s350_s28 = sshll.u32 %s19338_s26, 4  ;;  %s351_s28 = int_to_ptr.vmem [resolvable:$true] %s350_s28 }
 0x1d4   :  { %s19024_s14 = scalar_lea.hbm %s21645_s3, 16 }
 0x1d5   :  { %p19025_p4 = scmp.ne.s32.totalorder %s21645_s3, %s19024_s14  ;;  %p19028_p5 = scmp.lt.u32.totalorder %s19024_s14, %s21645_s3 }
 0x1d7   :  { %p19030_p6 = pnand %p19028_p5, %p19025_p4 }
 0x1d9   :  { %19033 = shalt.err (!%p19030_p6)
}
 0x1da   :  { %s19034_s21 = scalar_lea.vmem %s331_s23, 16  ;;  %s19038_s13 = scalar_lea.vmem %s331_s23, 32 }
 0x1db   :  { %p19035_p7 = scmp.ne.s32.totalorder %s331_s23, %s19034_s21  ;;  %p19039_p8 = scmp.lt.s32.totalorder %s331_s23, %s331_s23 }
 0x1dc   :  { %p19040_p9 = scmp.lt.s32.totalorder %s19038_s13, %s19034_s21 }
 0x1de   :  { %p19041_p10 = por %p19040_p9, %p19039_p8 }
 0x1e0   :  { %p19042_p11 = pnand %p19041_p10, %p19035_p7 }
 0x1e2   :  { %19045 = shalt.err (!%p19042_p11)
}
 0x1e3   :  { %s21646_s25 = sld [smem:[#allocation95_spill]] }
 0x1e4   :  { %333 = dma.hbm_to_vmem [thread:$0]  %s21645_s3, 16, %s331_s23, [#allocation17]  }
 0x1e9   :  { %s19046_s1 = scalar_lea.hbm %s21646_s25, 16 }
 0x1ea   :  { %p19047_p12 = scmp.ne.s32.totalorder %s21646_s25, %s19046_s1  ;;  %p19050_p13 = scmp.lt.u32.totalorder %s19046_s1, %s21646_s25 }
 0x1ec   :  { %p19052_p0 = pnand %p19050_p13, %p19047_p12 }
 0x1ee   :  { %19055 = shalt.err (!%p19052_p0)
}
 0x1ef   :  { %s19056_s9 = scalar_lea.vmem %s351_s28, 16  ;;  %s19060_s29 = scalar_lea.vmem %s351_s28, 32 }
 0x1f0   :  { %p19057_p1 = scmp.ne.s32.totalorder %s351_s28, %s19056_s9  ;;  %p19061_p2 = scmp.lt.s32.totalorder %s351_s28, %s351_s28 }
 0x1f1   :  { %p19062_p3 = scmp.lt.s32.totalorder %s19060_s29, %s19056_s9 }
 0x1f3   :  { %p19063_p4 = por %p19062_p3, %p19061_p2 }
 0x1f5   :  { %p19064_p5 = pnand %p19063_p4, %p19057_p1 }
 0x1f7   :  { %19067 = shalt.err (!%p19064_p5)
}
 0x1f8   :  { %s21647_s2 = sld [smem:[#allocation96_spill]]  ;;  %s19339_s17 = smov [#allocation24]  }
 0x1f9   :  { %353 = dma.hbm_to_vmem [thread:$0]  %s21646_s25, 16, %s351_s28, [#allocation20]  }
 0x1fa   :  { %s370_s7 = sshll.u32 %s19339_s17, 4  ;;  %s19340_s0 = smov [#allocation27]   ;;  %s371_s7 = int_to_ptr.vmem [resolvable:$true] %s370_s7 }
 0x1fb   :  { %s396_s10 = sshll.u32 %s19340_s0, 4  ;;  %s397_s10 = int_to_ptr.vmem [resolvable:$true] %s396_s10 }
 0x1fe   :  { %s19068_s19 = scalar_lea.hbm %s21647_s2, 16 }
 0x1ff   :  { %p19069_p6 = scmp.ne.s32.totalorder %s21647_s2, %s19068_s19  ;;  %p19072_p7 = scmp.lt.u32.totalorder %s19068_s19, %s21647_s2 }
 0x201   :  { %p19074_p8 = pnand %p19072_p7, %p19069_p6 }
 0x203   :  { %19077 = shalt.err (!%p19074_p8)
}
 0x204   :  { %s19078_s12 = scalar_lea.vmem %s371_s7, 16  ;;  %s19082_s11 = scalar_lea.vmem %s371_s7, 32 }
 0x205   :  { %p19079_p9 = scmp.ne.s32.totalorder %s371_s7, %s19078_s12  ;;  %p19083_p10 = scmp.lt.s32.totalorder %s371_s7, %s371_s7 }
 0x206   :  { %p19084_p11 = scmp.lt.s32.totalorder %s19082_s11, %s19078_s12 }
 0x208   :  { %p19085_p12 = por %p19084_p11, %p19083_p10 }
 0x20a   :  { %p19086_p13 = pnand %p19085_p12, %p19079_p9 }
 0x20c   :  { %19089 = shalt.err (!%p19086_p13)
}
 0x20d   :  { %s21648_s4 = sld [smem:[#allocation100_spill]] }
 0x20e   :  { %373 = dma.hbm_to_vmem [thread:$0]  %s21647_s2, 16, %s371_s7, [#allocation23]  }
 0x213   :  { %s19090_s20 = scalar_lea.hbm %s21648_s4, 16 }
 0x214   :  { %p19091_p0 = scmp.ne.s32.totalorder %s21648_s4, %s19090_s20  ;;  %p19094_p1 = scmp.lt.u32.totalorder %s19090_s20, %s21648_s4 }
 0x216   :  { %p19096_p2 = pnand %p19094_p1, %p19091_p0 }
 0x218   :  { %19099 = shalt.err (!%p19096_p2)
}
 0x219   :  { %s19100_s15 = scalar_lea.vmem %s397_s10, 16  ;;  %s19104_s16 = scalar_lea.vmem %s397_s10, 32 }
 0x21a   :  { %p19101_p3 = scmp.ne.s32.totalorder %s397_s10, %s19100_s15  ;;  %p19105_p4 = scmp.lt.s32.totalorder %s397_s10, %s397_s10 }
 0x21b   :  { %p19106_p5 = scmp.lt.s32.totalorder %s19104_s16, %s19100_s15 }
 0x21d   :  { %p19107_p6 = por %p19106_p5, %p19105_p4 }
 0x21f   :  { %p19108_p7 = pnand %p19107_p6, %p19101_p3 }
 0x221   :  { %19111 = shalt.err (!%p19108_p7)
}
 0x222   :  { %s21649_s30 = sld [smem:[#allocation103_spill]]  ;;  %s19341_s6 = smov [#allocation30]  }
 0x223   :  { %399 = dma.hbm_to_vmem [thread:$0]  %s21648_s4, 16, %s397_s10, [#allocation26]  }
 0x224   :  { %s420_s18 = sshll.u32 %s19341_s6, 4  ;;  %s19342_s3 = smov [#allocation33]   ;;  %s421_s18 = int_to_ptr.vmem [resolvable:$true] %s420_s18 }
 0x225   :  { %s440_s22 = sshll.u32 %s19342_s3, 4  ;;  %s441_s22 = int_to_ptr.vmem [resolvable:$true] %s440_s22 }
 0x228   :  { %s19112_s23 = scalar_lea.hbm %s21649_s30, 16 }
 0x229   :  { %p19113_p8 = scmp.ne.s32.totalorder %s21649_s30, %s19112_s23  ;;  %p19116_p9 = scmp.lt.u32.totalorder %s19112_s23, %s21649_s30 }
 0x22b   :  { %p19118_p10 = pnand %p19116_p9, %p19113_p8 }
 0x22d   :  { %19121 = shalt.err (!%p19118_p10)
}
 0x22e   :  { %s19122_s26 = scalar_lea.vmem %s421_s18, 16  ;;  %s19126_s28 = scalar_lea.vmem %s421_s18, 32 }
 0x22f   :  { %p19123_p11 = scmp.ne.s32.totalorder %s421_s18, %s19122_s26  ;;  %p19127_p12 = scmp.lt.s32.totalorder %s421_s18, %s421_s18 }
 0x230   :  { %p19128_p13 = scmp.lt.s32.totalorder %s19126_s28, %s19122_s26 }
 0x232   :  { %p19129_p0 = por %p19128_p13, %p19127_p12 }
 0x234   :  { %p19130_p1 = pnand %p19129_p0, %p19123_p11 }
 0x236   :  { %19133 = shalt.err (!%p19130_p1)
}
 0x237   :  { %s21650_s14 = sld [smem:[#allocation104_spill]] }
 0x238   :  { %423 = dma.hbm_to_vmem [thread:$0]  %s21649_s30, 16, %s421_s18, [#allocation29]  }
 0x23d   :  { %s19134_s21 = scalar_lea.hbm %s21650_s14, 16 }
 0x23e   :  { %p19135_p2 = scmp.ne.s32.totalorder %s21650_s14, %s19134_s21  ;;  %p19138_p3 = scmp.lt.u32.totalorder %s19134_s21, %s21650_s14 }
 0x240   :  { %p19140_p4 = pnand %p19138_p3, %p19135_p2 }
 0x242   :  { %19143 = shalt.err (!%p19140_p4)
}
 0x243   :  { %s19144_s13 = scalar_lea.vmem %s441_s22, 16  ;;  %s19148_s25 = scalar_lea.vmem %s441_s22, 32 }
 0x244   :  { %p19145_p5 = scmp.ne.s32.totalorder %s441_s22, %s19144_s13  ;;  %p19149_p6 = scmp.lt.s32.totalorder %s441_s22, %s441_s22 }
 0x245   :  { %p19150_p7 = scmp.lt.s32.totalorder %s19148_s25, %s19144_s13 }
 0x247   :  { %p19151_p8 = por %p19150_p7, %p19149_p6 }
 0x249   :  { %p19152_p9 = pnand %p19151_p8, %p19145_p5 }
 0x24b   :  { %19155 = shalt.err (!%p19152_p9)
}
 0x24c   :  { %s21651_s1 = sld [smem:[#allocation105_spill]]  ;;  %s19343_s9 = smov [#allocation36]  }
 0x24d   :  { %443 = dma.hbm_to_vmem [thread:$0]  %s21650_s14, 16, %s441_s22, [#allocation32]  }
 0x24e   :  { %s460_s29 = sshll.u32 %s19343_s9, 4  ;;  %s19344_s2 = smov [#allocation39]   ;;  %s461_s29 = int_to_ptr.vmem [resolvable:$true] %s460_s29 }
 0x24f   :  { %s484_s17 = sshll.u32 %s19344_s2, 4  ;;  %s485_s17 = int_to_ptr.vmem [resolvable:$true] %s484_s17 }
 0x252   :  { %s19156_s7 = scalar_lea.hbm %s21651_s1, 16 }
 0x253   :  { %p19157_p10 = scmp.ne.s32.totalorder %s21651_s1, %s19156_s7  ;;  %p19160_p11 = scmp.lt.u32.totalorder %s19156_s7, %s21651_s1 }
 0x255   :  { %p19162_p12 = pnand %p19160_p11, %p19157_p10 }
 0x257   :  { %19165 = shalt.err (!%p19162_p12)
}
 0x258   :  { %s19166_s0 = scalar_lea.vmem %s461_s29, 16  ;;  %s19170_s10 = scalar_lea.vmem %s461_s29, 32 }
 0x259   :  { %p19167_p13 = scmp.ne.s32.totalorder %s461_s29, %s19166_s0  ;;  %p19171_p0 = scmp.lt.s32.totalorder %s461_s29, %s461_s29 }
 0x25a   :  { %p19172_p1 = scmp.lt.s32.totalorder %s19170_s10, %s19166_s0 }
 0x25c   :  { %p19173_p2 = por %p19172_p1, %p19171_p0 }
 0x25e   :  { %p19174_p3 = pnand %p19173_p2, %p19167_p13 }
 0x260   :  { %19177 = shalt.err (!%p19174_p3)
}
 0x261   :  { %s21652_s19 = sld [smem:[#allocation108_spill]] }
 0x262   :  { %463 = dma.hbm_to_vmem [thread:$0]  %s21651_s1, 16, %s461_s29, [#allocation35]  }
 0x267   :  { %s19178_s12 = scalar_lea.hbm %s21652_s19, 16 }
 0x268   :  { %p19179_p4 = scmp.ne.s32.totalorder %s21652_s19, %s19178_s12  ;;  %p19182_p5 = scmp.lt.u32.totalorder %s19178_s12, %s21652_s19 }
 0x26a   :  { %p19184_p6 = pnand %p19182_p5, %p19179_p4 }
 0x26c   :  { %19187 = shalt.err (!%p19184_p6)
}
 0x26d   :  { %s19188_s11 = scalar_lea.vmem %s485_s17, 16  ;;  %s19192_s4 = scalar_lea.vmem %s485_s17, 32 }
 0x26e   :  { %p19189_p7 = scmp.ne.s32.totalorder %s485_s17, %s19188_s11  ;;  %p19193_p8 = scmp.lt.s32.totalorder %s485_s17, %s485_s17 }
 0x26f   :  { %p19194_p9 = scmp.lt.s32.totalorder %s19192_s4, %s19188_s11 }
 0x271   :  { %p19195_p10 = por %p19194_p9, %p19193_p8 }
 0x273   :  { %p19196_p11 = pnand %p19195_p10, %p19189_p7 }
 0x275   :  { %19199 = shalt.err (!%p19196_p11)
}
 0x276   :  { %487 = dma.hbm_to_vmem [thread:$0]  %s21652_s19, 16, %s485_s17, [#allocation38]  }
 0x277   :  { %s19345_s20 = smov [#allocation42]   ;;  %s19200_s16 = scalar_lea.hbm %s19704_s24, 16 }
 0x278   :  { %s506_s15 = sshll.u32 %s19345_s20, 4  ;;  %p19201_p12 = scmp.ne.s32.totalorder %s19704_s24, %s19200_s16  ;;  %s507_s15 = int_to_ptr.vmem [resolvable:$true] %s506_s15 }
 0x279   :  { %p19204_p13 = scmp.lt.u32.totalorder %s19200_s16, %s19704_s24 }
 0x27b   :  { %p19206_p0 = pnand %p19204_p13, %p19201_p12 }
 0x27d   :  { %19209 = shalt.err (!%p19206_p0)
}
 0x27e   :  { %s19210_s30 = scalar_lea.vmem %s507_s15, 16  ;;  %s19214_s6 = scalar_lea.vmem %s507_s15, 32 }
 0x27f   :  { %p19211_p1 = scmp.ne.s32.totalorder %s507_s15, %s19210_s30  ;;  %p19215_p2 = scmp.lt.s32.totalorder %s507_s15, %s507_s15 }
 0x280   :  { %p19216_p3 = scmp.lt.s32.totalorder %s19214_s6, %s19210_s30 }
 0x282   :  { %p19217_p4 = por %p19216_p3, %p19215_p2 }
 0x284   :  { %p19218_p5 = pnand %p19217_p4, %p19211_p1 }
 0x286   :  { %19221 = shalt.err (!%p19218_p5)
}
 0x287   :  { %509 = dma.hbm_to_vmem [thread:$0]  %s19704_s24, 16, %s507_s15, [#allocation41]  }
 0x288   :  { %19222 = dma.done.wait [#allocation3], 16  }
 0x289   :  { %19223 = vsyncadd [#allocation3], 4294967280 }
 0x28a   :  { %19224 = dma.done.wait [#allocation5], 32  }
 0x28b   :  { %19225 = vsyncadd [#allocation5], 4294967264 }
 0x28c   :  { %19226 = dma.done.wait [#allocation8], 32  }
 0x28d   :  { %19227 = vsyncadd [#allocation8], 4294967264 }
 0x28e   :  { %19228 = dma.done.wait [#allocation11], 32  }
 0x28f   :  { %19229 = vsyncadd [#allocation11], 4294967264 }
 0x290   :  { %19230 = dma.done.wait [#allocation14], 32  }
 0x291   :  { %19231 = vsyncadd [#allocation14], 4294967264 }
 0x292   :  { %19232 = dma.done.wait [#allocation17], 32  }
 0x293   :  { %19233 = vsyncadd [#allocation17], 4294967264 }
 0x294   :  { %19234 = dma.done.wait [#allocation20], 32  }
 0x295   :  { %19235 = vsyncadd [#allocation20], 4294967264 }
 0x296   :  { %19236 = dma.done.wait [#allocation23], 32  }
 0x297   :  { %19237 = vsyncadd [#allocation23], 4294967264 }
 0x298   :  { %19238 = dma.done.wait [#allocation26], 32  }
 0x299   :  { %19239 = vsyncadd [#allocation26], 4294967264 }
 0x29a   :  { %19240 = dma.done.wait [#allocation29], 32  }
 0x29b   :  { %19241 = vsyncadd [#allocation29], 4294967264 }
 0x29c   :  { %19242 = dma.done.wait [#allocation32], 32  }
 0x29d   :  { %19243 = vsyncadd [#allocation32], 4294967264 }
 0x29e   :  { %19244 = dma.done.wait [#allocation35], 32  }
 0x29f   :  { %19245 = vsyncadd [#allocation35], 4294967264 }
 0x2a0   :  { %19246 = dma.done.wait [#allocation38], 32  }
 0x2a1   :  { %19247 = vsyncadd [#allocation38], 4294967264 }
 0x2a2   :  { %19248 = dma.done.wait [#allocation41], 32  }
 0x2a3   :  { %19249 = vsyncadd [#allocation41], 4294967264  ;;  %s21653_s24 = sld [smem:[#allocation98_spill]]  ;;  %v19346_v0 = vmov 0.0|0.0   ;;  %vm19347_vm0 = vmmov 0   ;;  %v19348_v1 = vmov 0.0  }
 0x2a4   :  { %17825 = vmatprep.subr.bf16.mxu0 %v19346_v0  ;;  %s21654_s18 = sld [smem:[#allocation57_spill]]  ;;  %17363 = vmatprep.mubr.msk.f32.mxu0 %vm19347_vm0, %v19348_v1  ;;  %v595_v2 = vld [vmem:[%s19699_s5] sm:$0xff]  ;;  %v596_v3 = vld [vmem:[%s19699_s5 + $0x8] sm:$0xff]  ;;  %v597_v4 = vld [vmem:[%s19699_s5 + $0x10] sm:$0xff]  ;;  %vm606_vm1 = vcmask 261120   ;;  %s19350_s3 = smov 96  }
 0x2a5   :  { %17831 = vmatprep.subr.bf16.mxu1 %v19346_v0  ;;  %17374 = vmatprep.mubr.msk.f32.mxu1 %vm19347_vm0, %v19348_v1  ;;  %v17826_v5 = vpack.c.bf16 %v596_v3, %v595_v2  ;;  %v598_v6 = vld [vmem:[%s19699_s5 + $0x18] sm:$0xff]  ;;  %v15637_v15 = vld [vmem:[#allocation40] ss:$0 sm:$0xff]  ;;  %s19349_s5 = smov 120   ;;  %s19351_s22 = smov 88   ;;  %vm771_vm2 = vcmask 64512  }
 0x2a6   :  { %v17829_v9 = vpack.c.bf16 %v598_v6, %v597_v4  ;;  %v15639_v19 = vld [vmem:[#allocation25] ss:$0 sm:$0xff]  ;;  %s21655_s23 = sld [smem:[#allocation97_spill]]  ;;  %s19352_s26 = smov 56   ;;  %vm15548_vm3 = vcmask 23552  }
 0x2a7   :  { %17827 = vmatpush3.bf16.msra.mxu0 %v17826_v5  ;;  %s19353_s28 = smov 64   ;;  %s19354_s14 = smov 80  }
 0x2a8   :  { %17828 = vmatprep.subr.bf16.mxu0 %v19346_v0  ;;  %s19355_s21 = smov 112   ;;  %s19356_s13 = smov 72  }
 0x2a9   :  { %v680_v7 = vld [vmem:[%s21653_s24] sm:$0xff]  ;;  %v681_v8 = vld [vmem:[%s21653_s24 + $0x8] sm:$0xff]  ;;  %v682_v12 = vld [vmem:[%s21653_s24 + $0x10] sm:$0xff]  ;;  %s19357_s25 = smov 104   ;;  %s19358_s1 = smov 48  }
 0x2aa   :  { %v17832_v10 = vpack.c.bf16 %v681_v8, %v680_v7  ;;  %v594_v11 = vld [vmem:[%s21654_s18] sm:$0xff]  ;;  %v683_v13 = vld [vmem:[%s21653_s24 + $0x18] sm:$0xff]  ;;  %s19359_s9 = smov 40   ;;  %s21656_s29 = sld [smem:[#allocation92_spill]] }
 0x2ab   :  { %17830 = vmatpush3.bf16.msra.mxu0 %v17829_v9  ;;  %v17835_v14 = vpack.c.bf16 %v683_v13, %v682_v12  ;;  %s21657_s2 = sld [smem:[#allocation93_spill]]  ;;  %s21658_s17 = sld [smem:[#allocation91_spill]] }
 0x2ac   :  { %17833 = vmatpush3.bf16.msra.mxu1 %v17832_v10  ;;  %17377 = vmatprep.subr.mxu0 %v19348_v1  ;;  %v765_v44 = vld [vmem:[%s21655_s23 + $0x8] sm:$0xff]  ;;  %v764_v53 = vld [vmem:[%s21655_s23] sm:$0xff]  ;;  %s21659_s7 = sld [smem:[#allocation107_spill]]  ;;  %s21660_s0 = sld [smem:[#allocation106_spill]] }
 0x2ad   :  { %17834 = vmatprep.subr.bf16.mxu1 %v19346_v0  ;;  %s21661_s10 = sld [smem:[#allocation101_spill]]  ;;  %s21662_s19 = sld [smem:[#allocation102_spill]] }
 0x2ae   :  { %17364 = vmatmul.mubr.msk.f32.vlgmr.msra.gmra.mrb[0].mxu0 %vm606_vm1, %v594_v11  ;;  %s21663_s12 = sld [smem:[#allocation99_spill]]  ;;  %s21665_s4 = sld [smem:[#allocation73_spill]] }
 0x2af   :  { %17379 = vmatprep.mubr.msk.f32.mxu0 %vm19347_vm0, %v19348_v1  ;;  %s21664_s11 = sld [smem:[#allocation75_spill]]  ;;  %s21666_s20 = sld [smem:[#allocation74_spill]] }
 0x2b0   :  { %17836 = vmatpush3.bf16.msra.mxu1 %v17835_v14  ;;  %s21667_s15 = sld [smem:[#allocation72_spill]]  ;;  %s21668_s16 = sld [smem:[#allocation61_spill]] }
 0x2b1   :  { %17382 = vmatprep.subr.mxu1 %v19348_v1  ;;  %s21669_s30 = sld [smem:[#allocation67_spill]]  ;;  %s21670_s6 = sld [smem:[#allocation66_spill]] }
 0x2b2   :  { %s21671_s24 = sld [smem:[#allocation59_spill]]  ;;  %s21672_s18 = sld [smem:[#allocation60_spill]] }
 0x381   :  { %v676_v16 = vpop.f32.mrb[0].mxu0 }
 0x382   :  { %v19846_v17 = vadd.f32 %v15637_v15, %v676_v16  ;;  %v17365_v18 = vpop.f32.mrb[1].mxu0 }
 0x384   :  { %17375 = vmatmul.mubr.msk.f32.vlgmr.msra.gmra.mrb[0].mxu1 %vm606_vm1, %v19846_v17 }
 0x385   :  { %17384 = vmatprep.mubr.msk.f32.mxu1 %vm19347_vm0, %v19348_v1 }
 0x457   :  { %v760_v20 = vpop.f32.mrb[0].mxu1 }
 0x458   :  { %v19852_v21 = vadd.f32 %v15639_v19, %v760_v20  ;;  %v17376_v22 = vpop.f32.mrb[1].mxu1  ;;  %v766_v19 = vld [vmem:[%s21655_s23 + $0x10] sm:$0xff] }
 0x45a   :  { %934 = vrot.lane.b32.xlu1 %v19852_v21, %s19349_s5  ;;  %769 = vrot.lane.b32.xlu0 %v19852_v21, %s19350_s3 }
 0x45e   :  { %936 = vrot.lane.b32.xlu0 %v19852_v21, %s19351_s22 }
 0x4cc   :  { %v770_v23 = vpop.permute.xlu0 %769  ;;  %v935_v25 = vpop.permute.xlu1 %934 }
 0x4cd   :  { %17378 = vmatpush3.xpose.msk.msra.mxu0 %vm771_vm2, %v770_v23 }
 0x4ce   :  { %17387 = vmatprep.subr.mxu0 %v19348_v1 }
 0x4d0   :  { %17380 = vmatmul.mubr.msk.f32.vlgmr.msra.gmra.mrb[2].mxu0 %vm771_vm2, %v19852_v21  ;;  %v937_v24 = vpop.permute.xlu0 %936 }
 0x4d1   :  { %17388 = vmatpush3.xpose.msk.msra.mxu0 %vm771_vm2, %v937_v24  ;;  %17389 = vmatprep.mubr.msk.f32.mxu0 %vm19347_vm0, %v19348_v1 }
 0x4d2   :  { %17397 = vmatprep.subr.mxu0 %v19348_v1 }
 0x4d4   :  { %17390 = vmatmul.mubr.msk.f32.vlgmr.msra.gmra.mrb[4].mxu0 %vm771_vm2, %v935_v25 }
 0x4d5   :  { %17399 = vmatprep.mubr.msk.f32.mxu0 %vm19347_vm0, %v19348_v1  ;;  %17398 = vmatpush3.msra.mxu0 %v765_v44 }
 0x4d6   :  { %17407 = vmatprep.subr.mxu0 %v19348_v1 }
 0x5a3   :  { %v842_v26 = vpop.f32.mrb[2].mxu0 }
 0x5a4   :  { %v846_v27 = vmul.f32 0.35355338, %v842_v26  ;;  %v17381_v28 = vpop.f32.mrb[3].mxu0 }
 0x5a6   :  { %v847_v29 = vsel %vm771_vm2, %v846_v27, -inf }
 0x5a7   :  { %848 = vmax.xlane.f32.xlu1 %v847_v29  ;;  %v1008_v30 = vpop.f32.mrb[4].mxu0 }
 0x5a8   :  { %v1012_v31 = vmul.f32 0.35355338, %v1008_v30  ;;  %v17391_v32 = vpop.f32.mrb[5].mxu0 }
 0x5aa   :  { %v1013_v33 = vsel %vm771_vm2, %v1012_v31, -inf }
 0x5ab   :  { %1014 = vmax.xlane.f32.xlu0 %v1013_v33 }
 0x634   :  { %v849_v34 = vpop.xlane.xlu1 %848 }
 0x635   :  { %v850_v35 = vsub.f32 %v846_v27, %v849_v34 }
 0x637   :  { %v851_v36 = vmul.f32 1.442695, %v850_v35 }
 0x638   :  { %v1015_v37 = vpop.xlane.xlu0 %1014 }
 0x639   :  { %18508 = vpow2.f32 %v851_v36  ;;  %v1016_v38 = vsub.f32 %v1012_v31, %v1015_v37 }
 0x63b   :  { %v1017_v39 = vmul.f32 1.442695, %v1016_v38 }
 0x63d   :  { %18510 = vpow2.f32 %v1017_v39 }
 0x643   :  { %v18509_v40 = vpop.eup %18508 }
 0x644   :  { %v853_v41 = vsel %vm771_vm2, %v18509_v40, 0.0 }
 0x645   :  { %854 = vadd.xlane.f32.xlu0 %v853_v41 }
 0x647   :  { %v18511_v42 = vpop.eup %18510 }
 0x648   :  { %v1019_v43 = vsel %vm771_vm2, %v18511_v42, 0.0 }
 0x649   :  { %1020 = vadd.xlane.f32.xlu1 %v1019_v43 }
 0x65a   :  { %1024 = vrot.lane.b32.xlu1 %v19852_v21, %s19352_s26 }
 0x65b   :  { %858 = vrot.lane.b32.xlu0 %v19852_v21, %s19353_s28 }
 0x65e   :  { %1248 = vrot.lane.b32.xlu1 %v19852_v21, %s19354_s14 }
 0x65f   :  { %1246 = vrot.lane.b32.xlu0 %v19852_v21, %s19355_s21 }
 0x6d2   :  { %v855_v45 = vpop.xlane.xlu0 %854 }
 0x6d3   :  { %18512 = vrcp.f32 %v855_v45 }
 0x6d6   :  { %v1021_v46 = vpop.xlane.xlu1 %1020  ;;  %v859_v47 = vpop.permute.xlu0 %858 }
 0x6d7   :  { %18514 = vrcp.f32 %v1021_v46  ;;  %17383 = vmatpush3.msra.mxu1 %v859_v47 }
 0x6d8   :  { %17392 = vmatprep.subr.mxu1 %v19348_v1 }
 0x6da   :  { %v1025_v50 = vpop.permute.xlu1 %1024  ;;  %v1247_v59 = vpop.permute.xlu0 %1246 }
 0x6dd   :  { %v18513_v48 = vpop.eup %18512 }
 0x6de   :  { %v857_v49 = vmul.f32 %v18513_v48, %v18509_v40  ;;  %v1249_v57 = vpop.permute.xlu1 %1248 }
 0x6e0   :  { %17385 = vmatmul.mubr.msk.f32.vlgmr.msra.gmra.mrb[2].mxu1 %vm771_vm2, %v857_v49 }
 0x6e1   :  { %v18515_v51 = vpop.eup %18514  ;;  %17393 = vmatpush3.msra.mxu1 %v1025_v50  ;;  %17394 = vmatprep.mubr.msk.f32.mxu1 %vm19347_vm0, %v19348_v1 }
 0x6e2   :  { %v1023_v52 = vmul.f32 %v18515_v51, %v18511_v42  ;;  %17402 = vmatprep.subr.mxu1 %v19348_v1  ;;  %v15657_v42 = vld [vmem:[#allocation24] ss:$0 sm:$0xff] }
 0x6e4   :  { %17395 = vmatmul.mubr.msk.f32.vlgmr.msra.gmra.mrb[4].mxu1 %vm771_vm2, %v1023_v52 }
 0x6e5   :  { %17404 = vmatprep.mubr.msk.f32.mxu1 %vm19347_vm0, %v19348_v1  ;;  %17403 = vmatpush3.msra.mxu1 %v764_v53  ;;  %v1765_v53 = vld [vmem:[%s21656_s29] sm:$0xff] }
 0x6e6   :  { %17412 = vmatprep.subr.mxu1 %v19348_v1 }
 0x7b3   :  { %v930_v54 = vpop.f32.mrb[2].mxu1 }
 0x7b4   :  { %v17386_v55 = vpop.f32.mrb[3].mxu1  ;;  %17405 = vmatmul.mubr.msk.f32.vlgmr.msra.gmra.mrb[6].mxu1 %vm771_vm2, %v930_v54  ;;  %v1773_v54 = vld [vmem:[%s21656_s29 + $0x40] sm:$0xff] }
 0x7b5   :  { %17414 = vmatprep.mubr.msk.f32.mxu1 %vm19347_vm0, %v19348_v1  ;;  %v1766_v55 = vld [vmem:[%s21656_s29 + $0x8] sm:$0xff] }
 0x7b7   :  { %v1096_v56 = vpop.f32.mrb[4].mxu1 }
 0x7b8   :  { %v17396_v58 = vpop.f32.mrb[5].mxu1  ;;  %17400 = vmatmul.mubr.msk.f32.vlgmr.msra.gmra.mrb[6].mxu0 %vm771_vm2, %v1096_v56  ;;  %v15661_v56 = vcombine.high %v1765_v53, %v1773_v54 }
 0x7b9   :  { %17408 = vmatpush3.xpose.msk.msra.mxu0 %vm771_vm2, %v1249_v57  ;;  %17409 = vmatprep.mubr.msk.f32.mxu0 %vm19347_vm0, %v19348_v1  ;;  %v1774_v57 = vld [vmem:[%s21656_s29 + $0x48] sm:$0xff]  ;;  %v15660_v58 = vcombine.low %v1765_v53, %v1773_v54 }
 0x7ba   :  { %17417 = vmatprep.subr.mxu0 %v19348_v1 }
 0x7bc   :  { %17410 = vmatmul.mubr.msk.f32.vlgmr.msra.gmra.mrb[8].mxu0 %vm771_vm2, %v1247_v59  ;;  %v15662_v59 = vcombine.low %v1766_v55, %v1774_v57 }
 0x7bd   :  { %17419 = vmatprep.mubr.msk.f32.mxu0 %vm19347_vm0, %v19348_v1  ;;  %17418 = vmatpush3.msra.mxu0 %v766_v19 }
 0x7be   :  { %17427 = vmatprep.subr.mxu0 %v19348_v1 }
 0x887   :  { %v1242_v60 = vpop.f32.mrb[6].mxu1 }
 0x888   :  { %v17406_v61 = vpop.f32.mrb[7].mxu1 }
 0x889   :  { %v1781_v61 = vld [vmem:[%s21656_s29 + $0x80] sm:$0xff] }
 0x88b   :  { %v1169_v62 = vpop.f32.mrb[6].mxu0 }
 0x88c   :  { %v1243_v63 = vadd.f32 %v1242_v60, %v1169_v62  ;;  %v17401_v2 = vpop.f32.mrb[7].mxu0  ;;  %v15663_v60 = vcombine.high %v1766_v55, %v1774_v57  ;;  %v1789_v62 = vld [vmem:[%s21656_s29 + $0xc0] sm:$0xff]  ;;  %v1787_v57 = vld [vmem:[%s21656_s29 + $0xb0] sm:$0xff] }
 0x88d   :  { %v15677_v2 = vcombine.high %v1781_v61, %v1789_v62 }
 0x88f   :  { %v1320_v3 = vpop.f32.mrb[8].mxu0 }
 0x890   :  { %v1324_v4 = vmul.f32 0.35355338, %v1320_v3  ;;  %v17411_v5 = vpop.f32.mrb[9].mxu0  ;;  %v1790_v3 = vld [vmem:[%s21656_s29 + $0xc8] sm:$0xff] }
 0x892   :  { %v1325_v6 = vsel %vm771_vm2, %v1324_v4, -inf }
 0x893   :  { %1326 = vmax.xlane.f32.xlu1 %v1325_v6 }
 0x8a4   :  { %1488 = vrot.lane.b32.xlu1 %v19852_v21, %s19356_s13 }
 0x8a8   :  { %1486 = vrot.lane.b32.xlu1 %v19852_v21, %s19357_s25 }
 0x920   :  { %v1327_v7 = vpop.xlane.xlu1 %1326 }
 0x921   :  { %v1328_v8 = vsub.f32 %v1324_v4, %v1327_v7  ;;  %v15676_v4 = vcombine.low %v1781_v61, %v1789_v62  ;;  %v1767_v7 = vld [vmem:[%s21656_s29 + $0x10] sm:$0xff] }
 0x923   :  { %v1329_v9 = vmul.f32 1.442695, %v1328_v8  ;;  %v1775_v8 = vld [vmem:[%s21656_s29 + $0x50] sm:$0xff] }
 0x924   :  { %v1489_v15 = vpop.permute.xlu1 %1488 }
 0x925   :  { %18516 = vpow2.f32 %v1329_v9  ;;  %v1768_v9 = vld [vmem:[%s21656_s29 + $0x18] sm:$0xff] }
 0x928   :  { %v1487_v18 = vpop.permute.xlu1 %1486 }
 0x92f   :  { %v18517_v10 = vpop.eup %18516 }
 0x930   :  { %v1331_v11 = vsel %vm771_vm2, %v18517_v10, 0.0 }
 0x931   :  { %1332 = vadd.xlane.f32.xlu0 %v1331_v11  ;;  %v15665_v11 = vcombine.high %v1767_v7, %v1775_v8 }
 0x947   :  { %1336 = vrot.lane.b32.xlu0 %v19852_v21, %s19358_s1 }
 0x9be   :  { %v1333_v12 = vpop.xlane.xlu0 %1332 }
 0x9bf   :  { %18518 = vrcp.f32 %v1333_v12  ;;  %v1776_v12 = vld [vmem:[%s21656_s29 + $0x58] sm:$0xff] }
 0x9c2   :  { %v1337_v13 = vpop.permute.xlu0 %1336 }
 0x9c3   :  { %17413 = vmatpush3.msra.mxu1 %v1337_v13  ;;  %v15664_v13 = vcombine.low %v1767_v7, %v1775_v8  ;;  %v17998_v7 = vld [vmem:[%s21657_s2] sm:$0xff]  }
 0x9c4   :  { %17422 = vmatprep.subr.mxu1 %v19348_v1  ;;  %v17999_v8 = vld [vmem:[%s21657_s2 + $0x80] sm:$0xff]  }
 0x9c9   :  { %v18519_v14 = vpop.eup %18518 }
 0x9ca   :  { %v1335_v16 = vmul.f32 %v18519_v14, %v18517_v10  ;;  %v19360_v10 = vmov 0   ;;  %v15666_v14 = vcombine.low %v1768_v9, %v1776_v12 }
 0x9cc   :  { %17415 = vmatmul.mubr.msk.f32.vlgmr.msra.gmra.mrb[8].mxu1 %vm771_vm2, %v1335_v16 }
 0x9cd   :  { %17423 = vmatpush3.xpose.msk.msra.mxu1 %vm771_vm2, %v1489_v15  ;;  %17424 = vmatprep.mubr.msk.f32.mxu1 %vm19347_vm0, %v19348_v1  ;;  %v15667_v15 = vcombine.high %v1768_v9, %v1776_v12  ;;  %v18000_v9 = vld [vmem:[%s21657_s2 + $0x48] sm:$0xff]  }
 0x9ce   :  { %17432 = vmatprep.subr.mxu1 %v19348_v1  ;;  %v18002_v12 = vld [vmem:[%s21657_s2 + $0x8] sm:$0xff]  }
 0x9d0   :  { %17425 = vmatmul.mubr.msk.f32.vlgmr.msra.gmra.mrb[10].mxu1 %vm771_vm2, %v1487_v18 }
 0x9d1   :  { %17434 = vmatprep.mubr.msk.f32.mxu1 %vm19347_vm0, %v19348_v1 }
 0xa9f   :  { %v1408_v20 = vpop.f32.mrb[8].mxu1 }
 0xaa0   :  { %v17416_v22 = vpop.f32.mrb[9].mxu1  ;;  %17420 = vmatmul.mubr.msk.f32.vlgmr.msra.gmra.mrb[10].mxu0 %vm771_vm2, %v1408_v20 }
 0xaa1   :  { %17429 = vmatprep.mubr.msk.f32.mxu0 %vm19347_vm0, %v19348_v1  ;;  %v15658_v22 = vld [vmem:[#allocation19] ss:$0 sm:$0xff] }
 0xaa3   :  { %v1560_v23 = vpop.f32.mrb[10].mxu1 }
 0xaa4   :  { %v1564_v24 = vmul.f32 0.35355338, %v1560_v23  ;;  %v17426_v25 = vpop.f32.mrb[11].mxu1 }
 0xaa6   :  { %v1565_v26 = vsel %vm771_vm2, %v1564_v24, -inf }
 0xaa7   :  { %1566 = vmax.xlane.f32.xlu0 %v1565_v26  ;;  %v1783_v26 = vld [vmem:[%s21656_s29 + $0x90] sm:$0xff] }
 0xabd   :  { %1576 = vrot.lane.b32.xlu0 %v19852_v21, %s19359_s9  ;;  %v767_v21 = vld [vmem:[%s21655_s23 + $0x18] sm:$0xff]  ;;  %s21673_s23 = sld [smem:[#allocation58_spill]] }
 0xabe   :  { %17433 = vmatpush3.msra.mxu1 %v767_v21 }
 0xabf   :  { %2086 = vmatprep.subr.bf16.mxu1 %v15663_v60  ;;  %v1796_v60 = vld [vmem:[%s21656_s29 + $0xf8] sm:$0xff] }
 0xb34   :  { %v1567_v27 = vpop.xlane.xlu0 %1566 }
 0xb35   :  { %v1568_v28 = vsub.f32 %v1564_v24, %v1567_v27  ;;  %v15659_v24 = vld [vmem:[#allocation18] ss:$0 sm:$0xff] }
 0xb36   :  { %v1791_v27 = vld [vmem:[%s21656_s29 + $0xd0] sm:$0xff] }
 0xb37   :  { %v1569_v29 = vmul.f32 1.442695, %v1568_v28  ;;  %v1784_v28 = vld [vmem:[%s21656_s29 + $0x98] sm:$0xff] }
 0xb38   :  { %v1577_v30 = vpop.permute.xlu0 %1576 }
 0xb39   :  { %18520 = vpow2.f32 %v1569_v29  ;;  %17428 = vmatpush3.msra.mxu0 %v1577_v30  ;;  %v1792_v29 = vld [vmem:[%s21656_s29 + $0xd8] sm:$0xff] }
 0xb3a   :  { %2045 = vmatprep.subr.bf16.mxu0 %v15661_v56  ;;  %v15682_v21 = vcombine.low %v1784_v28, %v1792_v29 }
 0xb43   :  { %v18521_v31 = vpop.eup %18520 }
 0xb44   :  { %v1571_v32 = vsel %vm771_vm2, %v18521_v31, 0.0 }
 0xb45   :  { %1572 = vadd.xlane.f32.xlu1 %v1571_v32  ;;  %v15681_v32 = vcombine.high %v1783_v26, %v1791_v27 }
 0xb73   :  { %v1481_v33 = vpop.f32.mrb[10].mxu0 }
 0xb74   :  { %v1485_v34 = vadd.f32 %v1481_v33, %v1243_v63  ;;  %v17421_v35 = vpop.f32.mrb[11].mxu0  ;;  %v1782_v63 = vld [vmem:[%s21656_s29 + $0x88] sm:$0xff]  ;;  %v15683_v33 = vcombine.high %v1784_v28, %v1792_v29 }
 0xb75   :  { %v15678_v5 = vcombine.low %v1782_v63, %v1790_v3  ;;  %v15679_v6 = vcombine.high %v1782_v63, %v1790_v3  ;;  %v1777_v35 = vld [vmem:[%s21656_s29 + $0x60] sm:$0xff]  ;;  %v18016_v28 = vld [vmem:[%s21657_s2 + $0x68] sm:$0xff]  }
 0xb76   :  { %v18017_v29 = vld [vmem:[%s21657_s2 + $0xe8] sm:$0xff]  }
 0xbd2   :  { %v1573_v36 = vpop.xlane.xlu1 %1572 }
 0xbd3   :  { %18522 = vrcp.f32 %v1573_v36  ;;  %v1770_v36 = vld [vmem:[%s21656_s29 + $0x28] sm:$0xff] }
 0xbdd   :  { %v18523_v37 = vpop.eup %18522 }
 0xbde   :  { %v1575_v38 = vmul.f32 %v18523_v37, %v18521_v31  ;;  %v1778_v37 = vld [vmem:[%s21656_s29 + $0x68] sm:$0xff] }
 0xbe0   :  { %17430 = vmatmul.mubr.msk.f32.vlgmr.msra.gmra.mrb[12].mxu0 %vm771_vm2, %v1575_v38  ;;  %v15680_v38 = vcombine.low %v1783_v26, %v1791_v27  ;;  %v18014_v26 = vld [vmem:[%s21657_s2 + $0x20] sm:$0xff]  }
 0xbe1   :  { %2046 = vmatpush1.bf16.msra.mxu0 %v15660_v58  ;;  %2077 = vmatprep.mubr.bf16.mxu0 %v19360_v10  ;;  %v1795_v58 = vld [vmem:[%s21656_s29 + $0xf0] sm:$0xff]  ;;  %v18015_v27 = vld [vmem:[%s21657_s2 + $0xa0] sm:$0xff]  }
 0xbe2   :  { %2047 = vmatprep.subr.bf16.mxu0 %v15677_v2  ;;  %v15689_v63 = vcombine.high %v1787_v57, %v1795_v58  ;;  %v15688_v3 = vcombine.low %v1787_v57, %v1795_v58 }
 0xbe5   :  { %2048 = vmatpush1.bf16.msra.mxu0 %v15676_v4 }
 0xbe6   :  { %2127 = vmatprep.subr.bf16.mxu0 %v15665_v11  ;;  %v18001_v11 = vld [vmem:[%s21657_s2 + $0xc8] sm:$0xff]  }
 0xcb3   :  { %v1648_v39 = vpop.f32.mrb[12].mxu0 }
 0xcb4   :  { %v17431_v40 = vpop.f32.mrb[13].mxu0  ;;  %17435 = vmatmul.mubr.msk.f32.vlgmr.msra.gmra.mrb[12].mxu1 %vm771_vm2, %v1648_v39 }
 0xcb5   :  { %2087 = vmatpush1.bf16.msra.mxu1 %v15662_v59  ;;  %2118 = vmatprep.mubr.bf16.mxu1 %v19360_v10  ;;  %v15671_v40 = vcombine.high %v1770_v36, %v1778_v37  ;;  %v1788_v59 = vld [vmem:[%s21656_s29 + $0xb8] sm:$0xff] }
 0xcb6   :  { %2088 = vmatprep.subr.bf16.mxu1 %v15679_v6  ;;  %v15691_v2 = vcombine.high %v1788_v59, %v1796_v60  ;;  %v15690_v4 = vcombine.low %v1788_v59, %v1796_v60  ;;  %v17997_v6 = vld [vmem:[%s21657_s2 + $0xc0] sm:$0xff]  }
 0xcb9   :  { %2089 = vmatpush1.bf16.msra.mxu1 %v15678_v5  ;;  %v17996_v5 = vld [vmem:[%s21657_s2 + $0x40] sm:$0xff]  }
 0xcba   :  { %2168 = vmatprep.subr.bf16.mxu1 %v15667_v15  ;;  %v18005_v15 = vld [vmem:[%s21657_s2 + $0xd0] sm:$0xff]  }
 0xd87   :  { %v1721_v41 = vpop.f32.mrb[12].mxu1 }
 0xd88   :  { %v1725_v43 = vadd.f32 %v1721_v41, %v1485_v34  ;;  %v17436_v44 = vpop.f32.mrb[13].mxu1  ;;  %v1769_v34 = vld [vmem:[%s21656_s29 + $0x20] sm:$0xff] }
 0xd89   :  { %v15669_v39 = vcombine.high %v1769_v34, %v1777_v35  ;;  %v1785_v41 = vld [vmem:[%s21656_s29 + $0xa0] sm:$0xff]  ;;  %v1794_v44 = vld [vmem:[%s21656_s29 + $0xe8] sm:$0xff] }
 0xd8a   :  { %v1733_v45 = vadd.f32 %v15657_v42, %v1725_v43  ;;  %v1793_v42 = vld [vmem:[%s21656_s29 + $0xe0] sm:$0xff]  ;;  %v1786_v43 = vld [vmem:[%s21656_s29 + $0xa8] sm:$0xff] }
 0xd8b   :  { %v15684_v53 = vcombine.low %v1785_v41, %v1793_v42  ;;  %v15686_v54 = vcombine.low %v1786_v43, %v1794_v44 }
 0xd8c   :  { %v1734_v46 = vadd.f32 %v1733_v45, %v19846_v17  ;;  %v15668_v45 = vcombine.low %v1769_v34, %v1777_v35  ;;  %v18021_v34 = vld [vmem:[%s21657_s2 + $0xf0] sm:$0xff]  }
 0xd8d   :  { %v18022_v35 = vld [vmem:[%s21657_s2 + $0x30] sm:$0xff]  }
 0xd8e   :  { %v1735_v47 = vsel %vm606_vm1, %v1734_v46, 0.0 }
 0xd8f   :  { %1736 = vadd.xlane.f32.xlu1 %v1735_v47  ;;  %v15685_v47 = vcombine.high %v1785_v41, %v1793_v42  ;;  %v18029_v41 = vld [vmem:[%s21657_s2 + $0x1c0] sm:$0xff]   ;;  %v1802_v42 = vlaneseq }
 0xe1c   :  { %v1737_v48 = vpop.xlane.xlu1 %1736 }
 0xe1d   :  { %v1739_v49 = vmul.f32 0.03125, %v1737_v48  ;;  %v15687_v48 = vcombine.high %v1786_v43, %v1794_v44  ;;  %v20034_v43 = vshrl.u32 %v1802_v42, 7  ;;  %v18040_v42 = vld [vmem:[%s21657_s2 + $0x158] sm:$0xff]  }
 0xe1f   :  { %v1740_v50 = vsub.f32 %v1734_v46, %v1739_v49  ;;  %v15670_v46 = vcombine.low %v1770_v36, %v1778_v37  ;;  %v1771_v49 = vld [vmem:[%s21656_s29 + $0x30] sm:$0xff]  ;;  %v18024_v37 = vld [vmem:[%s21657_s2 + $0x78] sm:$0xff]   ;;  %v20037_v44 = vsub.s32 0, %v20034_v43 }
 0xe20   :  { %v18023_v36 = vld [vmem:[%s21657_s2 + $0xb0] sm:$0xff]  }
 0xe21   :  { %v1741_v51 = vmul.f32 %v1740_v50, %v1740_v50 }
 0xe23   :  { %v1742_v52 = vsel %vm606_vm1, %v1741_v51, 0.0  ;;  %v1772_v51 = vld [vmem:[%s21656_s29 + $0x38] sm:$0xff] }
 0xe24   :  { %1743 = vadd.xlane.f32.xlu1 %v1742_v52  ;;  %v1780_v52 = vld [vmem:[%s21656_s29 + $0x78] sm:$0xff] }
 0xe25   :  { %v15675_v56 = vcombine.high %v1772_v51, %v1780_v52  ;;  %v15674_v62 = vcombine.low %v1772_v51, %v1780_v52 }
 0xeb1   :  { %v1744_v16 = vpop.xlane.xlu1 %1743 }
 0xeb2   :  { %v1745_v18 = vmul.f32 0.03125, %v1744_v16  ;;  %v18006_v16 = vld [vmem:[%s21657_s2 + $0x10] sm:$0xff]  }
 0xeb4   :  { %v1746_v19 = vadd.f32 1e-05, %v1745_v18  ;;  %v18007_v18 = vld [vmem:[%s21657_s2 + $0x90] sm:$0xff]  }
 0xeb6   :  { %18524 = vrsqrt.f32 %v1746_v19  ;;  %v18008_v19 = vld [vmem:[%s21657_s2 + $0x58] sm:$0xff]  }
 0xec0   :  { %v18525_v20 = vpop.eup %18524 }
 0xec1   :  { %v1748_v23 = vmul.f32 %v18525_v20, %v1740_v50  ;;  %v1779_v50 = vld [vmem:[%s21656_s29 + $0x70] sm:$0xff]  ;;  %v18009_v20 = vld [vmem:[%s21657_s2 + $0xd8] sm:$0xff]   ;;  %s21674_s29 = sld [smem:[#allocation64_spill]] }
 0xec2   :  { %v15673_v55 = vcombine.high %v1771_v49, %v1779_v50  ;;  %v15672_v61 = vcombine.low %v1771_v49, %v1779_v50 }
 0xec3   :  { %v1756_v25 = vmul.f32 %v15658_v22, %v1748_v23  ;;  %v18010_v22 = vld [vmem:[%s21657_s2 + $0x18] sm:$0xff]  }
 0xec4   :  { %v18011_v23 = vld [vmem:[%s21657_s2 + $0x98] sm:$0xff]  }
 0xec5   :  { %v19956_v30 = vadd.f32 %v15659_v24, %v1756_v25  ;;  %v18012_v24 = vld [vmem:[%s21657_s2 + $0x60] sm:$0xff]  }
 0xec6   :  { %v18013_v25 = vld [vmem:[%s21657_s2 + $0xe0] sm:$0xff]  }
 0xec7   :  { %v19960_v31 = vpack.c.bf16 %v19956_v30, %v19956_v30 }
 0xec9   :  { %15692 = vmatmul.mubr.msk.bf16.vlgmr.msra.gmra.mrb[16].mxu0 %vm606_vm1, %v19960_v31  ;;  %15693 = vmatmul.mubr.msk.bf16.vlgmr.msra.gmra.mrb[16].mxu1 %vm606_vm1, %v19960_v31 }
 0xeca   :  { %2128 = vmatpush1.bf16.msra.mxu0 %v15664_v13  ;;  %2169 = vmatpush1.bf16.msra.mxu1 %v15666_v14  ;;  %v18003_v13 = vld [vmem:[%s21657_s2 + $0x88] sm:$0xff]   ;;  %v18004_v14 = vld [vmem:[%s21657_s2 + $0x50] sm:$0xff]  }
 0xecb   :  { %2129 = vmatprep.subr.bf16.mxu0 %v15681_v32  ;;  %2170 = vmatprep.subr.bf16.mxu1 %v15683_v33  ;;  %v18019_v32 = vld [vmem:[%s21657_s2 + $0xa8] sm:$0xff]   ;;  %v18020_v33 = vld [vmem:[%s21657_s2 + $0x70] sm:$0xff]  }
 0xecc   :  { %2159 = vmatprep.mubr.bf16.mxu0 %v19360_v10  ;;  %2200 = vmatprep.mubr.bf16.mxu1 %v19360_v10 }
 0xece   :  { %2130 = vmatpush1.bf16.msra.mxu0 %v15680_v38  ;;  %2171 = vmatpush1.bf16.msra.mxu1 %v15682_v21  ;;  %v18025_v38 = vld [vmem:[%s21657_s2 + $0xf8] sm:$0xff]  }
 0xecf   :  { %2209 = vmatprep.subr.bf16.mxu0 %v15669_v39  ;;  %2250 = vmatprep.subr.bf16.mxu1 %v15671_v40  ;;  %v18026_v21 = vld [vmem:[%s21657_s2 + $0x38] sm:$0xff]   ;;  %v18028_v40 = vld [vmem:[%s21657_s2 + $0x140] sm:$0xff]  }
 0xed0   :  { %v18027_v39 = vld [vmem:[%s21657_s2 + $0xb8] sm:$0xff]  }
 0xed1   :  { %15694 = vmatmul.mubr.msk.bf16.vlgmr.msra.gmra.mrb[20].mxu0 %vm606_vm1, %v19960_v31  ;;  %15695 = vmatmul.mubr.msk.bf16.vlgmr.msra.gmra.mrb[20].mxu1 %vm606_vm1, %v19960_v31 }
 0xed2   :  { %2210 = vmatpush1.bf16.msra.mxu0 %v15668_v45  ;;  %2251 = vmatpush1.bf16.msra.mxu1 %v15670_v46  ;;  %v20040_v45 = vsub.s32 2, %v20034_v43  ;;  %v20043_v46 = vld [vmem:[%s21658_s17] sm:$0xff] }
 0xed3   :  { %2211 = vmatprep.subr.bf16.mxu0 %v15685_v47  ;;  %2252 = vmatprep.subr.bf16.mxu1 %v15687_v48  ;;  %v20046_v47 = vsub.s32 1, %v20034_v43  ;;  %v20049_v48 = vsub.s32 3, %v20034_v43  ;;  %v1805_v49 = vrot.slane %v20043_v46, %v20037_v44 }
 0xed4   :  { %2241 = vmatprep.mubr.bf16.mxu0 %v19360_v10  ;;  %2282 = vmatprep.mubr.bf16.mxu1 %v19360_v10  ;;  %v1813_v50 = vrot.slane %v20043_v46, %v20040_v45 }
 0xed5   :  { %v1809_v51 = vrot.slane %v20043_v46, %v20046_v47  ;;  %v1817_v52 = vrot.slane %v20043_v46, %v20049_v48 }
 0xed6   :  { %2212 = vmatpush1.bf16.msra.mxu0 %v15684_v53  ;;  %2253 = vmatpush1.bf16.msra.mxu1 %v15686_v54 }
 0xed7   :  { %2291 = vmatprep.subr.bf16.mxu0 %v15673_v55  ;;  %2332 = vmatprep.subr.bf16.mxu1 %v15675_v56 }
 0xed9   :  { %15696 = vmatmul.mubr.msk.bf16.vlgmr.msra.gmra.mrb[24].mxu0 %vm606_vm1, %v19960_v31  ;;  %15697 = vmatmul.mubr.msk.bf16.vlgmr.msra.gmra.mrb[24].mxu1 %vm606_vm1, %v19960_v31 }
 0xeda   :  { %2292 = vmatpush1.bf16.msra.mxu0 %v15672_v61  ;;  %2333 = vmatpush1.bf16.msra.mxu1 %v15674_v62 }
 0xedb   :  { %2293 = vmatprep.subr.bf16.mxu0 %v15689_v63  ;;  %2334 = vmatprep.subr.bf16.mxu1 %v15691_v2  ;;  %v20060_v63 = vsub.s32 5, %v20034_v43  ;;  %v20063_v2 = vsub.s32 7, %v20034_v43 }
 0xedc   :  { %2323 = vmatprep.mubr.bf16.mxu0 %v19360_v10  ;;  %2364 = vmatprep.mubr.bf16.mxu1 %v19360_v10 }
 0xede   :  { %2294 = vmatpush1.bf16.msra.mxu0 %v15688_v3  ;;  %2335 = vmatpush1.bf16.msra.mxu1 %v15690_v4 }
 0xedf   :  { %16491 = vmatprep.subr.bf16.mxu0 %v17996_v5  ;;  %16513 = vmatprep.subr.bf16.mxu1 %v17997_v6 }
 0xee1   :  { %15698 = vmatmul.mubr.msk.bf16.vlgmr.msra.gmra.mrb[28].mxu0 %vm606_vm1, %v19960_v31  ;;  %15699 = vmatmul.mubr.msk.bf16.vlgmr.msra.gmra.mrb[28].mxu1 %vm606_vm1, %v19960_v31  ;;  %v18018_v31 = vld [vmem:[%s21657_s2 + $0x28] sm:$0xff]  }
 0xee2   :  { %16492 = vmatpush3.bf16.msra.mxu0 %v17998_v7  ;;  %16514 = vmatpush3.bf16.msra.mxu1 %v17999_v8 }
 0xee3   :  { %16493 = vmatprep.subr.bf16.mxu0 %v18000_v9  ;;  %16515 = vmatprep.subr.bf16.mxu1 %v18001_v11 }
 0xee6   :  { %16494 = vmatpush3.bf16.msra.mxu0 %v18002_v12  ;;  %16516 = vmatpush3.bf16.msra.mxu1 %v18003_v13  ;;  %v1825_v12 = vrot.slane %v20043_v46, %v20060_v63  ;;  %v1833_v13 = vrot.slane %v20043_v46, %v20063_v2 }
 0xee7   :  { %16495 = vmatprep.subr.bf16.mxu0 %v18004_v14  ;;  %16517 = vmatprep.subr.bf16.mxu1 %v18005_v15  ;;  %v18030_v14 = vld [vmem:[%s21657_s2 + $0x100] sm:$0xff]  }
 0xee8   :  { %v18031_v15 = vld [vmem:[%s21657_s2 + $0x180] sm:$0xff]  }
 0xeea   :  { %16496 = vmatpush3.bf16.msra.mxu0 %v18006_v16  ;;  %16518 = vmatpush3.bf16.msra.mxu1 %v18007_v18 }
 0xeeb   :  { %16497 = vmatprep.subr.bf16.mxu0 %v18008_v19  ;;  %16519 = vmatprep.subr.bf16.mxu1 %v18009_v20  ;;  %v18032_v19 = vld [vmem:[%s21657_s2 + $0x148] sm:$0xff]  }
 0xeec   :  { %v18033_v20 = vld [vmem:[%s21657_s2 + $0x1c8] sm:$0xff]  }
 0xeee   :  { %16498 = vmatpush3.bf16.msra.mxu0 %v18010_v22  ;;  %16520 = vmatpush3.bf16.msra.mxu1 %v18011_v23 }
 0xeef   :  { %16499 = vmatprep.subr.bf16.mxu0 %v18012_v24  ;;  %16521 = vmatprep.subr.bf16.mxu1 %v18013_v25 }
 0xef2   :  { %16500 = vmatpush3.bf16.msra.mxu0 %v18014_v26  ;;  %16522 = vmatpush3.bf16.msra.mxu1 %v18015_v27 }
 0xef3   :  { %16501 = vmatprep.subr.bf16.mxu0 %v18016_v28  ;;  %16523 = vmatprep.subr.bf16.mxu1 %v18017_v29 }
 0xef6   :  { %16502 = vmatpush3.bf16.msra.mxu0 %v18018_v31  ;;  %16524 = vmatpush3.bf16.msra.mxu1 %v18019_v32  ;;  %v18034_v31 = vld [vmem:[%s21657_s2 + $0x108] sm:$0xff]  }
 0xef7   :  { %16503 = vmatprep.subr.bf16.mxu0 %v18020_v33  ;;  %16525 = vmatprep.subr.bf16.mxu1 %v18021_v34  ;;  %v18035_v32 = vld [vmem:[%s21657_s2 + $0x188] sm:$0xff]  }
 0xefa   :  { %16504 = vmatpush3.bf16.msra.mxu0 %v18022_v35  ;;  %16526 = vmatpush3.bf16.msra.mxu1 %v18023_v36  ;;  %v18036_v35 = vld [vmem:[%s21657_s2 + $0x150] sm:$0xff]  }
 0xefb   :  { %16505 = vmatprep.subr.bf16.mxu0 %v18024_v37  ;;  %16527 = vmatprep.subr.bf16.mxu1 %v18025_v38  ;;  %v18037_v36 = vld [vmem:[%s21657_s2 + $0x1d0] sm:$0xff]  }
 0xefe   :  { %16506 = vmatpush3.bf16.msra.mxu0 %v18026_v21  ;;  %16528 = vmatpush3.bf16.msra.mxu1 %v18027_v39 }
 0xeff   :  { %16535 = vmatprep.subr.bf16.mxu0 %v18028_v40  ;;  %16557 = vmatprep.subr.bf16.mxu1 %v18029_v41  ;;  %v18038_v40 = vld [vmem:[%s21657_s2 + $0x110] sm:$0xff]  }
 0xf00   :  { %v18039_v41 = vld [vmem:[%s21657_s2 + $0x190] sm:$0xff]  }
 0xf9c   :  { %v2079_v53 = vpop.f32.mrb[16].mxu0  ;;  %v2120_v54 = vpop.f32.mrb[16].mxu1 }
 0xf9d   :  { %v2080_v55 = vadd.f32 %v2079_v53, %v1805_v49  ;;  %v2121_v56 = vadd.f32 %v2120_v54, %v1813_v50  ;;  %v2081_v57 = vpop.f32.mrb[17].mxu0  ;;  %v2122_v58 = vpop.f32.mrb[17].mxu1  ;;  %v18041_v49 = vld [vmem:[%s21657_s2 + $0x1d8] sm:$0xff]  }
 0xf9e   :  { %v2082_v59 = vadd.f32 %v2081_v57, %v1809_v51  ;;  %v2123_v60 = vadd.f32 %v2122_v58, %v1817_v52  ;;  %v2083_v61 = vpop.f32.mrb[18].mxu0  ;;  %v2124_v62 = vpop.f32.mrb[18].mxu1  ;;  %v18043_v57 = vld [vmem:[%s21657_s2 + $0x198] sm:$0xff]   ;;  %v20092_v58 = vsub.s32 6, %v20034_v43 }
 0xf9f   :  { %v2373_v3 = vmax.f32 %v2080_v55, 0.0  ;;  %v2375_v4 = vmax.f32 %v2121_v56, 0.0  ;;  %v2084_v5 = vpop.f32.mrb[19].mxu0  ;;  %v2125_v6 = vpop.f32.mrb[19].mxu1  ;;  %v18042_v56 = vld [vmem:[%s21657_s2 + $0x118] sm:$0xff]   ;;  %v18044_v61 = vld [vmem:[%s21657_s2 + $0x160] sm:$0xff]  }
 0xfa0   :  { %v2374_v7 = vmax.f32 %v2082_v59, 0.0  ;;  %v2376_v8 = vmax.f32 %v2123_v60, 0.0  ;;  %v18045_v62 = vld [vmem:[%s21657_s2 + $0x1e0] sm:$0xff]  }
 0xfa1   :  { %v2645_v16 = vpack.c.bf16 %v2373_v3, %v2373_v3  ;;  %v2647_v18 = vpack.c.bf16 %v2375_v4, %v2375_v4  ;;  %v20097_v3 = vld [vmem:[%s21658_s17 + $0x8] sm:$0xff]  ;;  %v18046_v5 = vld [vmem:[%s21657_s2 + $0x120] sm:$0xff]   ;;  %s21676_s17 = sld [smem:[#allocation68_spill]] }
 0xfa2   :  { %v2646_v9 = vpack.c.bf16 %v2374_v7, %v2374_v7  ;;  %v2648_v11 = vpack.c.bf16 %v2376_v8, %v2376_v8  ;;  %v1861_v4 = vrot.slane %v20097_v3, %v20092_v58  ;;  %v18047_v6 = vld [vmem:[%s21657_s2 + $0x1a0] sm:$0xff]   ;;  %v20104_v7 = vsub.s32 4, %v20034_v43  ;;  %v18048_v8 = vld [vmem:[%s21657_s2 + $0x168] sm:$0xff]  }
 0xfa4   :  { %v20073_v22 = vpop.f32.mrb[20].mxu0  ;;  %v20075_v23 = vpop.f32.mrb[20].mxu1  ;;  %3468 = vmatprep.mubr.bf16.mxu0 %v2646_v9  ;;  %3508 = vmatprep.mubr.bf16.mxu1 %v2648_v11  ;;  %v18049_v9 = vld [vmem:[%s21657_s2 + $0x1e8] sm:$0xff]  }
 0xfa5   :  { %v2163_v24 = vpop.f32.mrb[21].mxu0  ;;  %v2204_v25 = vpop.f32.mrb[21].mxu1  ;;  %3469 = vmatmul.mubr.bf16.vlgmr.msra.gmra.mrb[32].mxu0 %v2645_v16  ;;  %3509 = vmatmul.mubr.bf16.vlgmr.msra.gmra.mrb[32].mxu1 %v2647_v18  ;;  %v18050_v18 = vld [vmem:[%s21657_s2 + $0x128] sm:$0xff]  }
 0xfa6   :  { %v2164_v26 = vadd.f32 %v2163_v24, %v1825_v12  ;;  %v2205_v27 = vadd.f32 %v2204_v25, %v1833_v13  ;;  %16536 = vmatpush3.bf16.msra.mxu0 %v18030_v14  ;;  %16558 = vmatpush3.bf16.msra.mxu1 %v18031_v15  ;;  %v2165_v28 = vpop.f32.mrb[22].mxu0  ;;  %v2206_v29 = vpop.f32.mrb[22].mxu1  ;;  %v1829_v24 = vrot.slane %v20043_v46, %v20092_v58 }
 0xfa7   :  { %v2166_v33 = vpop.f32.mrb[23].mxu0  ;;  %v2207_v34 = vpop.f32.mrb[23].mxu1  ;;  %16537 = vmatprep.subr.bf16.mxu0 %v18032_v19  ;;  %16559 = vmatprep.subr.bf16.mxu1 %v18033_v20  ;;  %v18051_v19 = vld [vmem:[%s21657_s2 + $0x1a8] sm:$0xff]   ;;  %v1821_v20 = vrot.slane %v20043_v46, %v20104_v7  ;;  %v18053_v28 = vld [vmem:[%s21657_s2 + $0x1f0] sm:$0xff]   ;;  %v1841_v29 = vrot.slane %v20097_v3, %v20046_v47 }
 0xfa8   :  { %v2378_v37 = vmax.f32 %v2164_v26, 0.0  ;;  %v2380_v38 = vmax.f32 %v2205_v27, 0.0  ;;  %v18052_v27 = vld [vmem:[%s21657_s2 + $0x170] sm:$0xff]   ;;  %v2203_v34 = vadd.f32 %v20075_v23, %v1829_v24  ;;  %v18061_v23 = vld [vmem:[%s21657_s2 + $0x2c0] sm:$0xff]  }
 0xfa9   :  { %v18055_v46 = vld [vmem:[%s21657_s2 + $0x1b0] sm:$0xff]   ;;  %v2162_v33 = vadd.f32 %v20073_v22, %v1821_v20  ;;  %v18060_v22 = vld [vmem:[%s21657_s2 + $0x240] sm:$0xff]  }
 0xfaa   :  { %v2650_v21 = vpack.c.bf16 %v2378_v37, %v2378_v37  ;;  %v2652_v39 = vpack.c.bf16 %v2380_v38, %v2380_v38  ;;  %16538 = vmatpush3.bf16.msra.mxu0 %v18034_v31  ;;  %16560 = vmatpush3.bf16.msra.mxu1 %v18035_v32  ;;  %v1849_v31 = vrot.slane %v20097_v3, %v20049_v48  ;;  %v18054_v32 = vld [vmem:[%s21657_s2 + $0x130] sm:$0xff]   ;;  %v18078_v20 = vld [vmem:[%s21657_s2 + $0x220] sm:$0xff]  }
 0xfab   :  { %16539 = vmatprep.subr.bf16.mxu0 %v18036_v35  ;;  %16561 = vmatprep.subr.bf16.mxu1 %v18037_v36  ;;  %v18056_v35 = vld [vmem:[%s21657_s2 + $0x178] sm:$0xff]   ;;  %v18079_v24 = vld [vmem:[%s21657_s2 + $0x2a0] sm:$0xff]  }
 0xfac   :  { %v20085_v50 = vpop.f32.mrb[24].mxu0  ;;  %v20087_v51 = vpop.f32.mrb[24].mxu1  ;;  %3548 = vmatprep.mubr.bf16.mxu0 %v2650_v21  ;;  %3588 = vmatprep.mubr.bf16.mxu1 %v2652_v39  ;;  %v18057_v36 = vld [vmem:[%s21657_s2 + $0x1f8] sm:$0xff]  }
 0xfad   :  { %v2245_v52 = vpop.f32.mrb[25].mxu0  ;;  %v2286_v53 = vpop.f32.mrb[25].mxu1  ;;  %v18058_v21 = vld [vmem:[%s21657_s2 + $0x138] sm:$0xff]  }
 0xfae   :  { %16540 = vmatpush3.bf16.msra.mxu0 %v18038_v40  ;;  %16562 = vmatpush3.bf16.msra.mxu1 %v18039_v41  ;;  %v2247_v54 = vpop.f32.mrb[26].mxu0  ;;  %v2288_v55 = vpop.f32.mrb[26].mxu1  ;;  %v2246_v37 = vadd.f32 %v2245_v52, %v1841_v29  ;;  %v2287_v38 = vadd.f32 %v2286_v53, %v1849_v31  ;;  %v18059_v39 = vld [vmem:[%s21657_s2 + $0x1b8] sm:$0xff]   ;;  %v2377_v40 = vmax.f32 %v2162_v33, 0.0  ;;  %v2379_v41 = vmax.f32 %v2203_v34, 0.0  ;;  %v18062_v52 = vld [vmem:[%s21657_s2 + $0x200] sm:$0xff]  }
 0xfaf   :  { %v2248_v59 = vpop.f32.mrb[27].mxu0  ;;  %v2289_v60 = vpop.f32.mrb[27].mxu1  ;;  %16541 = vmatprep.subr.bf16.mxu0 %v18040_v42  ;;  %16563 = vmatprep.subr.bf16.mxu1 %v18041_v49  ;;  %v18063_v55 = vld [vmem:[%s21657_s2 + $0x280] sm:$0xff]   ;;  %v18083_v29 = vld [vmem:[%s21657_s2 + $0x2a8] sm:$0xff]   ;;  %v18084_v31 = vld [vmem:[%s21657_s2 + $0x270] sm:$0xff]   ;;  %v1857_v33 = vrot.slane %v20097_v3, %v20060_v63  ;;  %v1865_v34 = vrot.slane %v20097_v3, %v20063_v2 }
 0xfb0   :  { %v2382_v42 = vmax.f32 %v2246_v37, 0.0  ;;  %v2384_v49 = vmax.f32 %v2287_v38, 0.0  ;;  %v2649_v53 = vpack.c.bf16 %v2377_v40, %v2377_v40  ;;  %v2651_v54 = vpack.c.bf16 %v2379_v41, %v2379_v41  ;;  %v18065_v59 = vld [vmem:[%s21657_s2 + $0x2c8] sm:$0xff]   ;;  %v18087_v37 = vld [vmem:[%s21657_s2 + $0x2b0] sm:$0xff]   ;;  %v18088_v38 = vld [vmem:[%s21657_s2 + $0x278] sm:$0xff]  }
 0xfb2   :  { %16542 = vmatpush3.bf16.msra.mxu0 %v18042_v56  ;;  %16564 = vmatpush3.bf16.msra.mxu1 %v18043_v57  ;;  %v2654_v56 = vpack.c.bf16 %v2382_v42, %v2382_v42  ;;  %v18064_v57 = vld [vmem:[%s21657_s2 + $0x248] sm:$0xff]   ;;  %v2656_v60 = vpack.c.bf16 %v2384_v49, %v2384_v49  ;;  %v18092_v42 = vld [vmem:[%s21657_s2 + $0x340] sm:$0xff]  }
 0xfb3   :  { %16543 = vmatprep.subr.bf16.mxu0 %v18044_v61  ;;  %16565 = vmatprep.subr.bf16.mxu1 %v18045_v62  ;;  %v18066_v61 = vld [vmem:[%s21657_s2 + $0x208] sm:$0xff]  }
 0xfb4   :  { %v20108_v11 = vpop.f32.mrb[28].mxu0  ;;  %v2366_v12 = vpop.f32.mrb[28].mxu1  ;;  %v18067_v62 = vld [vmem:[%s21657_s2 + $0x288] sm:$0xff]  }
 0xfb5   :  { %v20110_v13 = vadd.f32 %v2366_v12, %v1861_v4  ;;  %v20112_v14 = vpop.f32.mrb[29].mxu0  ;;  %v20114_v15 = vpop.f32.mrb[29].mxu1  ;;  %v18068_v4 = vld [vmem:[%s21657_s2 + $0x250] sm:$0xff]   ;;  %v18073_v12 = vld [vmem:[%s21657_s2 + $0x2d8] sm:$0xff]  }
 0xfb6   :  { %16544 = vmatpush3.bf16.msra.mxu0 %v18046_v5  ;;  %16566 = vmatpush3.bf16.msra.mxu1 %v18047_v6  ;;  %v2329_v16 = vpop.f32.mrb[30].mxu0  ;;  %v2370_v43 = vpop.f32.mrb[30].mxu1  ;;  %v18069_v5 = vld [vmem:[%s21657_s2 + $0x2d0] sm:$0xff]   ;;  %v2328_v40 = vadd.f32 %v20112_v14, %v1857_v33  ;;  %v2369_v41 = vadd.f32 %v20114_v15, %v1865_v34  ;;  %v18094_v14 = vld [vmem:[%s21657_s2 + $0x300] sm:$0xff]  }
 0xfb7   :  { %v2330_v25 = vpop.f32.mrb[31].mxu0  ;;  %v2371_v26 = vpop.f32.mrb[31].mxu1  ;;  %16545 = vmatprep.subr.bf16.mxu0 %v18048_v8  ;;  %16567 = vmatprep.subr.bf16.mxu1 %v18049_v9  ;;  %v18070_v6 = vld [vmem:[%s21657_s2 + $0x210] sm:$0xff]   ;;  %v18072_v9 = vld [vmem:[%s21657_s2 + $0x258] sm:$0xff]   ;;  %v18095_v15 = vld [vmem:[%s21657_s2 + $0x380] sm:$0xff]  }
 0xfb8   :  { %v18071_v8 = vld [vmem:[%s21657_s2 + $0x290] sm:$0xff]   ;;  %v18074_v16 = vld [vmem:[%s21657_s2 + $0x218] sm:$0xff]   ;;  %v18080_v25 = vld [vmem:[%s21657_s2 + $0x268] sm:$0xff]  }
 0xfb9   :  { %v18075_v43 = vld [vmem:[%s21657_s2 + $0x298] sm:$0xff]   ;;  %v18081_v26 = vld [vmem:[%s21657_s2 + $0x2e8] sm:$0xff]   ;;  %v18119_v34 = vld [vmem:[%s21657_s2 + $0x3b0] sm:$0xff]  }
 0xfba   :  { %16546 = vmatpush3.bf16.msra.mxu0 %v18050_v18  ;;  %16568 = vmatpush3.bf16.msra.mxu1 %v18051_v19  ;;  %v18076_v18 = vld [vmem:[%s21657_s2 + $0x260] sm:$0xff]  }
 0xfbb   :  { %16547 = vmatprep.subr.bf16.mxu0 %v18052_v27  ;;  %16569 = vmatprep.subr.bf16.mxu1 %v18053_v28  ;;  %v18077_v19 = vld [vmem:[%s21657_s2 + $0x2e0] sm:$0xff]   ;;  %v18082_v27 = vld [vmem:[%s21657_s2 + $0x228] sm:$0xff]   ;;  %v1837_v28 = vrot.slane %v20097_v3, %v20037_v44 }
 0xfbe   :  { %16548 = vmatpush3.bf16.msra.mxu0 %v18054_v32  ;;  %16570 = vmatpush3.bf16.msra.mxu1 %v18055_v46  ;;  %v1845_v32 = vrot.slane %v20097_v3, %v20040_v45  ;;  %v18085_v46 = vld [vmem:[%s21657_s2 + $0x2f0] sm:$0xff]  }
 0xfbf   :  { %16549 = vmatprep.subr.bf16.mxu0 %v18056_v35  ;;  %16571 = vmatprep.subr.bf16.mxu1 %v18057_v36  ;;  %v18086_v35 = vld [vmem:[%s21657_s2 + $0x230] sm:$0xff]   ;;  %v2244_v36 = vadd.f32 %v20085_v50, %v1837_v28  ;;  %v18091_v50 = vld [vmem:[%s21657_s2 + $0x2b8] sm:$0xff]   ;;  %v1853_v28 = vrot.slane %v20097_v3, %v20104_v7 }
 0xfc0   :  { %v18122_v3 = vld [vmem:[%s21657_s2 + $0x338] sm:$0xff]  }
 0xfc1   :  { %v2326_v33 = vadd.f32 %v20108_v11, %v1853_v28 }
 0xfc2   :  { %16550 = vmatpush3.bf16.msra.mxu0 %v18058_v21  ;;  %16572 = vmatpush3.bf16.msra.mxu1 %v18059_v39  ;;  %v2285_v21 = vadd.f32 %v20087_v51, %v1845_v32  ;;  %v18089_v39 = vld [vmem:[%s21657_s2 + $0x2f8] sm:$0xff]   ;;  %v18093_v51 = vld [vmem:[%s21657_s2 + $0x3c0] sm:$0xff]   ;;  %v18117_v32 = vld [vmem:[%s21657_s2 + $0x3f0] sm:$0xff]  }
 0xfc3   :  { %16579 = vmatprep.subr.bf16.mxu0 %v18060_v22  ;;  %16601 = vmatprep.subr.bf16.mxu1 %v18061_v23  ;;  %v18090_v22 = vld [vmem:[%s21657_s2 + $0x238] sm:$0xff]   ;;  %v2381_v23 = vmax.f32 %v2244_v36, 0.0 }
 0xfc4   :  { %v2383_v49 = vmax.f32 %v2285_v21, 0.0  ;;  %v18121_v36 = vld [vmem:[%s21657_s2 + $0x3f8] sm:$0xff]   ;;  %v2387_v21 = vmax.f32 %v20110_v13, 0.0  ;;  %v15700_v13 = vld [vmem:[#allocation16] ss:$0 sm:$0xff] }
 0xfc5   :  { %3549 = vmatmul.mubr.bf16.vlgmr.msra.gmra.mrb[36].mxu0 %v2649_v53  ;;  %3589 = vmatmul.mubr.bf16.vlgmr.msra.gmra.mrb[36].mxu1 %v2651_v54  ;;  %v2388_v53 = vmax.f32 %v2369_v41, 0.0  ;;  %v2653_v54 = vpack.c.bf16 %v2381_v23, %v2381_v23 }
 0xfc6   :  { %16580 = vmatpush3.bf16.msra.mxu0 %v18062_v52  ;;  %3628 = vmatprep.mubr.bf16.mxu0 %v2654_v56  ;;  %v2386_v52 = vmax.f32 %v2328_v40, 0.0  ;;  %v18096_v56 = vld [vmem:[%s21657_s2 + $0x348] sm:$0xff]   ;;  %v2659_v11 = vpack.c.bf16 %v2387_v21, %v2387_v21 }
 0xfc7   :  { %16602 = vmatpush3.bf16.msra.mxu1 %v18063_v55  ;;  %3668 = vmatprep.mubr.bf16.mxu1 %v2656_v60  ;;  %v2655_v55 = vpack.c.bf16 %v2383_v49, %v2383_v49  ;;  %v2660_v60 = vpack.c.bf16 %v2388_v53, %v2388_v53 }
 0xfc8   :  { %16581 = vmatprep.subr.bf16.mxu0 %v18064_v57  ;;  %16603 = vmatprep.subr.bf16.mxu1 %v18065_v59  ;;  %v2658_v57 = vpack.c.bf16 %v2386_v52, %v2386_v52  ;;  %v18097_v59 = vld [vmem:[%s21657_s2 + $0x3c8] sm:$0xff]  }
 0xfca   :  { %16582 = vmatpush3.bf16.msra.mxu0 %v18066_v61  ;;  %v18098_v61 = vld [vmem:[%s21657_s2 + $0x308] sm:$0xff]  }
 0xfcb   :  { %16604 = vmatpush3.bf16.msra.mxu1 %v18067_v62  ;;  %16583 = vmatprep.subr.bf16.mxu0 %v18068_v4  ;;  %v18099_v62 = vld [vmem:[%s21657_s2 + $0x388] sm:$0xff]   ;;  %v18100_v4 = vld [vmem:[%s21657_s2 + $0x350] sm:$0xff]  }
 0xfcc   :  { %16605 = vmatprep.subr.bf16.mxu1 %v18069_v5  ;;  %v18101_v5 = vld [vmem:[%s21657_s2 + $0x3d0] sm:$0xff]  }
 0xfce   :  { %16584 = vmatpush3.bf16.msra.mxu0 %v18070_v6  ;;  %v18102_v6 = vld [vmem:[%s21657_s2 + $0x310] sm:$0xff]  }
 0xfcf   :  { %16606 = vmatpush3.bf16.msra.mxu1 %v18071_v8  ;;  %16585 = vmatprep.subr.bf16.mxu0 %v18072_v9  ;;  %v18103_v8 = vld [vmem:[%s21657_s2 + $0x390] sm:$0xff]   ;;  %v18104_v9 = vld [vmem:[%s21657_s2 + $0x358] sm:$0xff]  }
 0xfd0   :  { %16607 = vmatprep.subr.bf16.mxu1 %v18073_v12  ;;  %v18105_v12 = vld [vmem:[%s21657_s2 + $0x3d8] sm:$0xff]  }
 0xfd2   :  { %16586 = vmatpush3.bf16.msra.mxu0 %v18074_v16  ;;  %v18106_v16 = vld [vmem:[%s21657_s2 + $0x318] sm:$0xff]  }
 0xfd3   :  { %16608 = vmatpush3.bf16.msra.mxu1 %v18075_v43  ;;  %16587 = vmatprep.subr.bf16.mxu0 %v18076_v18  ;;  %v18107_v43 = vld [vmem:[%s21657_s2 + $0x398] sm:$0xff]   ;;  %v18108_v18 = vld [vmem:[%s21657_s2 + $0x360] sm:$0xff]  }
 0xfd4   :  { %16609 = vmatprep.subr.bf16.mxu1 %v18077_v19  ;;  %v18109_v19 = vld [vmem:[%s21657_s2 + $0x3e0] sm:$0xff]  }
 0xfd6   :  { %16588 = vmatpush3.bf16.msra.mxu0 %v18078_v20  ;;  %v18110_v20 = vld [vmem:[%s21657_s2 + $0x320] sm:$0xff]  }
 0xfd7   :  { %16610 = vmatpush3.bf16.msra.mxu1 %v18079_v24  ;;  %16589 = vmatprep.subr.bf16.mxu0 %v18080_v25  ;;  %v18111_v24 = vld [vmem:[%s21657_s2 + $0x3a0] sm:$0xff]   ;;  %v18112_v25 = vld [vmem:[%s21657_s2 + $0x368] sm:$0xff]  }
 0xfd8   :  { %16611 = vmatprep.subr.bf16.mxu1 %v18081_v26  ;;  %v18113_v26 = vld [vmem:[%s21657_s2 + $0x3e8] sm:$0xff]  }
 0xfda   :  { %16590 = vmatpush3.bf16.msra.mxu0 %v18082_v27  ;;  %v18114_v27 = vld [vmem:[%s21657_s2 + $0x328] sm:$0xff]  }
 0xfdb   :  { %16612 = vmatpush3.bf16.msra.mxu1 %v18083_v29  ;;  %16591 = vmatprep.subr.bf16.mxu0 %v18084_v31  ;;  %v18115_v29 = vld [vmem:[%s21657_s2 + $0x3a8] sm:$0xff]   ;;  %v18116_v31 = vld [vmem:[%s21657_s2 + $0x370] sm:$0xff]  }
 0xfdc   :  { %16613 = vmatprep.subr.bf16.mxu1 %v18085_v46  ;;  %v18118_v46 = vld [vmem:[%s21657_s2 + $0x330] sm:$0xff]  }
 0xfde   :  { %16592 = vmatpush3.bf16.msra.mxu0 %v18086_v35  ;;  %v18120_v35 = vld [vmem:[%s21657_s2 + $0x378] sm:$0xff]  }
 0xfdf   :  { %16614 = vmatpush3.bf16.msra.mxu1 %v18087_v37  ;;  %16593 = vmatprep.subr.bf16.mxu0 %v18088_v38  ;;  %v2385_v37 = vmax.f32 %v2326_v33, 0.0  ;;  %v18123_v38 = vld [vmem:[%s21657_s2 + $0x3b8] sm:$0xff]   ;;  %s21675_s2 = sld [smem:[#allocation69_spill]] }
 0xfe0   :  { %16615 = vmatprep.subr.bf16.mxu1 %v18089_v39 }
 0xfe1   :  { %v2657_v39 = vpack.c.bf16 %v2385_v37, %v2385_v37 }
 0xfe2   :  { %16594 = vmatpush3.bf16.msra.mxu0 %v18090_v22 }
 0xfe3   :  { %16616 = vmatpush3.bf16.msra.mxu1 %v18091_v50  ;;  %16623 = vmatprep.subr.bf16.mxu0 %v18092_v42 }
 0xfe4   :  { %16645 = vmatprep.subr.bf16.mxu1 %v18093_v51 }
 0xfe5   :  { %3629 = vmatmul.mubr.bf16.vlgmr.msra.gmra.mrb[40].mxu0 %v2653_v54 }
 0xfe6   :  { %3669 = vmatmul.mubr.bf16.vlgmr.msra.gmra.mrb[40].mxu1 %v2655_v55  ;;  %16624 = vmatpush3.bf16.msra.mxu0 %v18094_v14 }
 0xfe7   :  { %3708 = vmatprep.mubr.bf16.mxu0 %v2658_v57  ;;  %16646 = vmatpush3.bf16.msra.mxu1 %v18095_v15 }
 0xfe8   :  { %3748 = vmatprep.mubr.bf16.mxu1 %v2660_v60  ;;  %16625 = vmatprep.subr.bf16.mxu0 %v18096_v56 }
 0xfe9   :  { %16647 = vmatprep.subr.bf16.mxu1 %v18097_v59 }
 0xfea   :  { %16626 = vmatpush3.bf16.msra.mxu0 %v18098_v61 }
 0xfeb   :  { %16648 = vmatpush3.bf16.msra.mxu1 %v18099_v62  ;;  %16627 = vmatprep.subr.bf16.mxu0 %v18100_v4 }
 0xfec   :  { %16649 = vmatprep.subr.bf16.mxu1 %v18101_v5 }
 0xfee   :  { %16628 = vmatpush3.bf16.msra.mxu0 %v18102_v6 }
 0xfef   :  { %16650 = vmatpush3.bf16.msra.mxu1 %v18103_v8  ;;  %16629 = vmatprep.subr.bf16.mxu0 %v18104_v9 }
 0xff0   :  { %16651 = vmatprep.subr.bf16.mxu1 %v18105_v12 }
 0xff2   :  { %16630 = vmatpush3.bf16.msra.mxu0 %v18106_v16 }
 0xff3   :  { %16652 = vmatpush3.bf16.msra.mxu1 %v18107_v43  ;;  %16631 = vmatprep.subr.bf16.mxu0 %v18108_v18 }
 0xff4   :  { %16653 = vmatprep.subr.bf16.mxu1 %v18109_v19 }
 0xff6   :  { %16632 = vmatpush3.bf16.msra.mxu0 %v18110_v20 }
 0xff7   :  { %16654 = vmatpush3.bf16.msra.mxu1 %v18111_v24  ;;  %16633 = vmatprep.subr.bf16.mxu0 %v18112_v25 }
 0xff8   :  { %16655 = vmatprep.subr.bf16.mxu1 %v18113_v26 }
 0xffa   :  { %16634 = vmatpush3.bf16.msra.mxu0 %v18114_v27 }
 0xffb   :  { %16656 = vmatpush3.bf16.msra.mxu1 %v18115_v29  ;;  %16635 = vmatprep.subr.bf16.mxu0 %v18116_v31 }
 0xffc   :  { %16657 = vmatprep.subr.bf16.mxu1 %v18117_v32 }
 0xffe   :  { %16636 = vmatpush3.bf16.msra.mxu0 %v18118_v46 }
 0xfff   :  { %16658 = vmatpush3.bf16.msra.mxu1 %v18119_v34  ;;  %16637 = vmatprep.subr.bf16.mxu0 %v18120_v35 }
0x1000   :  { %16659 = vmatprep.subr.bf16.mxu1 %v18121_v36 }
0x1002   :  { %16638 = vmatpush3.bf16.msra.mxu0 %v18122_v3 }
0x1003   :  { %16660 = vmatpush3.bf16.msra.mxu1 %v18123_v38  ;;  %17837 = vmatprep.subr.bf16.mxu0 %v19346_v0 }
0x1004   :  { %17448 = vmatprep.subr.mxu1 %v19348_v1 }
0x1005   :  { %3709 = vmatmul.mubr.bf16.vlgmr.msra.gmra.mrb[44].mxu0 %v2657_v39 }
0x1006   :  { %3749 = vmatmul.mubr.bf16.vlgmr.msra.gmra.mrb[44].mxu1 %v2659_v11  ;;  %17445 = vmatprep.mubr.msk.f32.mxu0 %vm19347_vm0, %v19348_v1 }
0x1007   :  { %17450 = vmatprep.mubr.msk.f32.mxu1 %vm19347_vm0, %v19348_v1 }
0x1078   :  { %v16507_v40 = vpop.f32.mrb[32].mxu0  ;;  %v16529_v41 = vpop.f32.mrb[32].mxu1 }
0x1079   :  { %v16508_v22 = vpop.f32.mrb[33].mxu0  ;;  %v16530_v23 = vpop.f32.mrb[33].mxu1 }
0x107a   :  { %v16509_v50 = vadd.f32 %v16508_v22, %v16507_v40  ;;  %v16531_v42 = vadd.f32 %v16530_v23, %v16529_v41  ;;  %v16510_v49 = vpop.f32.mrb[34].mxu0  ;;  %v16532_v51 = vpop.f32.mrb[34].mxu1 }
0x107b   :  { %v16511_v52 = vpop.f32.mrb[35].mxu0  ;;  %v16533_v53 = vpop.f32.mrb[35].mxu1  ;;  %v3788_v51 = vld [vmem:[%s21659_s7 + $0x10] sm:$0xff] }
0x107c   :  { %v3471_v14 = vadd.f32 %v16509_v50, %v15700_v13  ;;  %v3786_v50 = vld [vmem:[%s21659_s7] sm:$0xff]  ;;  %v3789_v52 = vld [vmem:[%s21659_s7 + $0x18] sm:$0xff] }
0x107d   :  { %v17841_v53 = vpack.c.bf16 %v3789_v52, %v3788_v51 }
0x107e   :  { %v3511_v54 = vadd.f32 %v16531_v42, %v3471_v14  ;;  %v3787_v42 = vld [vmem:[%s21659_s7 + $0x8] sm:$0xff]  ;;  %s21677_s7 = sld [smem:[#allocation65_spill]] }
0x107f   :  { %v17838_v49 = vpack.c.bf16 %v3787_v42, %v3786_v50 }
0x1081   :  { %17839 = vmatpush3.bf16.msra.mxu0 %v17838_v49 }
0x1082   :  { %17840 = vmatprep.subr.bf16.mxu0 %v19346_v0 }
0x1085   :  { %17842 = vmatpush3.bf16.msra.mxu0 %v17841_v53 }
0x1086   :  { %17453 = vmatprep.subr.mxu0 %v19348_v1 }
0x1098   :  { %v16551_v15 = vpop.f32.mrb[36].mxu0  ;;  %v16573_v55 = vpop.f32.mrb[36].mxu1 }
0x1099   :  { %v16552_v56 = vpop.f32.mrb[37].mxu0  ;;  %v16574_v57 = vpop.f32.mrb[37].mxu1 }
0x109a   :  { %v16553_v59 = vadd.f32 %v16552_v56, %v16551_v15  ;;  %v16575_v60 = vadd.f32 %v16574_v57, %v16573_v55  ;;  %v16554_v61 = vpop.f32.mrb[38].mxu0  ;;  %v16576_v62 = vpop.f32.mrb[38].mxu1  ;;  %v15829_v55 = vld [vmem:[#allocation22] ss:$0 sm:$0xff]  ;;  %v15830_v57 = vld [vmem:[#allocation21] ss:$0 sm:$0xff] }
0x109b   :  { %v16555_v4 = vpop.f32.mrb[39].mxu0  ;;  %v16577_v5 = vpop.f32.mrb[39].mxu1  ;;  %v15831_v61 = vld [vmem:[#allocation36] ss:$0 sm:$0xff] }
0x109c   :  { %v3551_v6 = vadd.f32 %v16553_v59, %v3511_v54 }
0x109e   :  { %v3591_v8 = vadd.f32 %v16575_v60, %v3551_v6 }
0x10b8   :  { %v16595_v9 = vpop.f32.mrb[40].mxu0 }
0x10b9   :  { %v16617_v12 = vpop.f32.mrb[40].mxu1  ;;  %v16596_v16 = vpop.f32.mrb[41].mxu0 }
0x10ba   :  { %v16597_v43 = vadd.f32 %v16596_v16, %v16595_v9  ;;  %v16618_v18 = vpop.f32.mrb[41].mxu1  ;;  %v16598_v19 = vpop.f32.mrb[42].mxu0 }
0x10bb   :  { %v16619_v20 = vadd.f32 %v16618_v18, %v16617_v12  ;;  %v16620_v24 = vpop.f32.mrb[42].mxu1  ;;  %v16599_v25 = vpop.f32.mrb[43].mxu0 }
0x10bc   :  { %v3631_v26 = vadd.f32 %v16597_v43, %v3591_v8  ;;  %v16621_v27 = vpop.f32.mrb[43].mxu1 }
0x10be   :  { %v3671_v28 = vadd.f32 %v16619_v20, %v3631_v26 }
0x10d8   :  { %v16639_v29 = vpop.f32.mrb[44].mxu0 }
0x10d9   :  { %v16661_v31 = vpop.f32.mrb[44].mxu1  ;;  %v16640_v32 = vpop.f32.mrb[45].mxu0 }
0x10da   :  { %v16641_v46 = vadd.f32 %v16640_v32, %v16639_v29  ;;  %v16662_v33 = vpop.f32.mrb[45].mxu1  ;;  %v16642_v34 = vpop.f32.mrb[46].mxu0 }
0x10db   :  { %v16663_v35 = vadd.f32 %v16662_v33, %v16661_v31  ;;  %v16664_v36 = vpop.f32.mrb[46].mxu1  ;;  %v16643_v3 = vpop.f32.mrb[47].mxu0 }
0x10dc   :  { %v3711_v37 = vadd.f32 %v16641_v46, %v3671_v28  ;;  %v16665_v38 = vpop.f32.mrb[47].mxu1  ;;  %v3871_v36 = vld [vmem:[%s21660_s0 + $0x8] sm:$0xff] }
0x10de   :  { %v3751_v21 = vadd.f32 %v16663_v35, %v3711_v37 }
0x10e0   :  { %v3756_v39 = vadd.f32 %v3751_v21, %v19956_v30 }
0x10e2   :  { %v3757_v11 = vsel %vm606_vm1, %v3756_v39, 0.0 }
0x10e3   :  { %3758 = vadd.xlane.f32.xlu1 %v3757_v11 }
0x1170   :  { %v3759_v40 = vpop.xlane.xlu1 %3758 }
0x1171   :  { %v3760_v41 = vmul.f32 0.03125, %v3759_v40 }
0x1173   :  { %v3761_v13 = vsub.f32 %v3756_v39, %v3760_v41 }
0x1175   :  { %v3762_v22 = vmul.f32 %v3761_v13, %v3761_v13 }
0x1177   :  { %v3763_v23 = vsel %vm606_vm1, %v3762_v22, 0.0 }
0x1178   :  { %3764 = vadd.xlane.f32.xlu1 %v3763_v23 }
0x1205   :  { %v3765_v30 = vpop.xlane.xlu1 %3764 }
0x1206   :  { %v3766_v14 = vmul.f32 0.03125, %v3765_v30 }
0x1208   :  { %v3767_v54 = vadd.f32 1e-05, %v3766_v14 }
0x120a   :  { %18526 = vrsqrt.f32 %v3767_v54 }
0x1214   :  { %v18527_v15 = vpop.eup %18526 }
0x1215   :  { %v3769_v56 = vmul.f32 %v18527_v15, %v3761_v13  ;;  %v3870_v13 = vld [vmem:[%s21660_s0] sm:$0xff] }
0x1217   :  { %v3777_v59 = vmul.f32 %v15829_v55, %v3769_v56 }
0x1219   :  { %v20231_v60 = vadd.f32 %v15830_v57, %v3777_v59 }
0x121b   :  { %17446 = vmatmul.mubr.msk.f32.vlgmr.msra.gmra.mrb[14].mxu0 %vm606_vm1, %v20231_v60 }
0x121c   :  { %17455 = vmatprep.mubr.msk.f32.mxu0 %vm19347_vm0, %v19348_v1 }
0x12ee   :  { %v3866_v62 = vpop.f32.mrb[14].mxu0 }
0x12ef   :  { %v20237_v4 = vadd.f32 %v15831_v61, %v3866_v62  ;;  %v17447_v5 = vpop.f32.mrb[15].mxu0 }
0x12f1   :  { %4041 = vrot.lane.b32.xlu0 %v20237_v4, %s19351_s22  ;;  %3875 = vrot.lane.b32.xlu1 %v20237_v4, %s19350_s3 }
0x12f5   :  { %4039 = vrot.lane.b32.xlu0 %v20237_v4, %s19349_s5 }
0x1363   :  { %v3876_v6 = vpop.permute.xlu1 %3875  ;;  %v4042_v8 = vpop.permute.xlu0 %4041 }
0x1364   :  { %17449 = vmatpush3.xpose.msk.msra.mxu1 %vm771_vm2, %v3876_v6 }
0x1365   :  { %17458 = vmatprep.subr.mxu1 %v19348_v1 }
0x1367   :  { %17451 = vmatmul.mubr.msk.f32.vlgmr.msra.gmra.mrb[14].mxu1 %vm771_vm2, %v20237_v4  ;;  %v4040_v9 = vpop.permute.xlu0 %4039 }
0x1368   :  { %17459 = vmatpush3.xpose.msk.msra.mxu1 %vm771_vm2, %v4042_v8  ;;  %17460 = vmatprep.mubr.msk.f32.mxu1 %vm19347_vm0, %v19348_v1 }
0x1369   :  { %17468 = vmatprep.subr.mxu1 %v19348_v1 }
0x136b   :  { %17461 = vmatmul.mubr.msk.f32.vlgmr.msra.gmra.mrb[48].mxu1 %vm771_vm2, %v4040_v9 }
0x136c   :  { %17470 = vmatprep.mubr.msk.f32.mxu1 %vm19347_vm0, %v19348_v1  ;;  %17469 = vmatpush3.msra.mxu1 %v3871_v36 }
0x136d   :  { %17478 = vmatprep.subr.mxu1 %v19348_v1 }
0x143a   :  { %v3947_v12 = vpop.f32.mrb[14].mxu1 }
0x143b   :  { %v3951_v16 = vmul.f32 0.35355338, %v3947_v12  ;;  %v17452_v43 = vpop.f32.mrb[15].mxu1 }
0x143d   :  { %v3952_v18 = vsel %vm771_vm2, %v3951_v16, -inf }
0x143e   :  { %3953 = vmax.xlane.f32.xlu0 %v3952_v18  ;;  %v4113_v19 = vpop.f32.mrb[48].mxu1 }
0x143f   :  { %v4117_v20 = vmul.f32 0.35355338, %v4113_v19  ;;  %v17462_v24 = vpop.f32.mrb[49].mxu1  ;;  %v3872_v19 = vld [vmem:[%s21660_s0 + $0x10] sm:$0xff] }
0x1441   :  { %v4118_v25 = vsel %vm771_vm2, %v4117_v20, -inf }
0x1442   :  { %4119 = vmax.xlane.f32.xlu1 %v4118_v25 }
0x1453   :  { %4129 = vrot.lane.b32.xlu1 %v20237_v4, %s19352_s26 }
0x1457   :  { %4351 = vrot.lane.b32.xlu1 %v20237_v4, %s19355_s21 }
0x14cb   :  { %v3954_v26 = vpop.xlane.xlu0 %3953 }
0x14cc   :  { %v3955_v27 = vsub.f32 %v3951_v16, %v3954_v26 }
0x14ce   :  { %v3956_v28 = vmul.f32 1.442695, %v3955_v27 }
0x14cf   :  { %v4120_v29 = vpop.xlane.xlu1 %4119 }
0x14d0   :  { %18528 = vpow2.f32 %v3956_v28  ;;  %v4121_v31 = vsub.f32 %v4117_v20, %v4120_v29 }
0x14d2   :  { %v4122_v32 = vmul.f32 1.442695, %v4121_v31 }
0x14d3   :  { %v4130_v11 = vpop.permute.xlu1 %4129 }
0x14d4   :  { %18530 = vpow2.f32 %v4122_v32 }
0x14d7   :  { %v4352_v51 = vpop.permute.xlu1 %4351 }
0x14da   :  { %v18529_v46 = vpop.eup %18528 }
0x14db   :  { %v3958_v33 = vsel %vm771_vm2, %v18529_v46, 0.0 }
0x14dc   :  { %3959 = vadd.xlane.f32.xlu0 %v3958_v33 }
0x14de   :  { %v18531_v34 = vpop.eup %18530 }
0x14df   :  { %v4124_v35 = vsel %vm771_vm2, %v18531_v34, 0.0 }
0x14e0   :  { %4125 = vadd.xlane.f32.xlu0 %v4124_v35 }
0x14f6   :  { %3963 = vrot.lane.b32.xlu0 %v20237_v4, %s19353_s28 }
0x14fa   :  { %4353 = vrot.lane.b32.xlu0 %v20237_v4, %s19354_s14 }
0x1569   :  { %v3960_v3 = vpop.xlane.xlu0 %3959 }
0x156a   :  { %18532 = vrcp.f32 %v3960_v3 }
0x156d   :  { %v4126_v37 = vpop.xlane.xlu0 %4125 }
0x156e   :  { %18534 = vrcp.f32 %v4126_v37 }
0x1571   :  { %v3964_v38 = vpop.permute.xlu0 %3963 }
0x1572   :  { %17454 = vmatpush3.msra.mxu0 %v3964_v38 }
0x1573   :  { %17463 = vmatprep.subr.mxu0 %v19348_v1 }
0x1574   :  { %v18533_v21 = vpop.eup %18532 }
0x1575   :  { %v3962_v39 = vmul.f32 %v18533_v21, %v18529_v46  ;;  %v4354_v42 = vpop.permute.xlu0 %4353 }
0x1577   :  { %17456 = vmatmul.mubr.msk.f32.vlgmr.msra.gmra.mrb[48].mxu0 %vm771_vm2, %v3962_v39  ;;  %v3873_v39 = vld [vmem:[%s21660_s0 + $0x18] sm:$0xff]  ;;  %s21678_s0 = sld [smem:[#allocation62_spill]] }
0x1578   :  { %v18535_v40 = vpop.eup %18534  ;;  %17464 = vmatpush3.msra.mxu0 %v4130_v11  ;;  %17465 = vmatprep.mubr.msk.f32.mxu0 %vm19347_vm0, %v19348_v1 }
0x1579   :  { %v4128_v41 = vmul.f32 %v18535_v40, %v18531_v34  ;;  %17473 = vmatprep.subr.mxu0 %v19348_v1 }
0x157b   :  { %17466 = vmatmul.mubr.msk.f32.vlgmr.msra.gmra.mrb[50].mxu0 %vm771_vm2, %v4128_v41  ;;  %v15849_v41 = vld [vmem:[#allocation34] ss:$0 sm:$0xff] }
0x157c   :  { %17475 = vmatprep.mubr.msk.f32.mxu0 %vm19347_vm0, %v19348_v1  ;;  %17474 = vmatpush3.msra.mxu0 %v3870_v13 }
0x157d   :  { %17483 = vmatprep.subr.mxu0 %v19348_v1 }
0x164a   :  { %v4035_v22 = vpop.f32.mrb[48].mxu0 }
0x164b   :  { %v17457_v23 = vpop.f32.mrb[49].mxu0  ;;  %17476 = vmatmul.mubr.msk.f32.vlgmr.msra.gmra.mrb[52].mxu0 %vm771_vm2, %v4035_v22 }
0x164c   :  { %17485 = vmatprep.mubr.msk.f32.mxu0 %vm19347_vm0, %v19348_v1 }
0x164e   :  { %v4201_v50 = vpop.f32.mrb[50].mxu0 }
0x164f   :  { %v17467_v49 = vpop.f32.mrb[51].mxu0  ;;  %17471 = vmatmul.mubr.msk.f32.vlgmr.msra.gmra.mrb[50].mxu1 %vm771_vm2, %v4201_v50 }
0x1650   :  { %17479 = vmatpush3.xpose.msk.msra.mxu1 %vm771_vm2, %v4354_v42  ;;  %17480 = vmatprep.mubr.msk.f32.mxu1 %vm19347_vm0, %v19348_v1 }
0x1651   :  { %17488 = vmatprep.subr.mxu1 %v19348_v1 }
0x1653   :  { %17481 = vmatmul.mubr.msk.f32.vlgmr.msra.gmra.mrb[52].mxu1 %vm771_vm2, %v4352_v51 }
0x1654   :  { %17490 = vmatprep.mubr.msk.f32.mxu1 %vm19347_vm0, %v19348_v1  ;;  %17489 = vmatpush3.msra.mxu1 %v3872_v19  ;;  %v4872_v19 = vld [vmem:[%s21661_s10 + $0x18] sm:$0xff] }
0x1655   :  { %17498 = vmatprep.subr.mxu1 %v19348_v1 }
0x171e   :  { %v4347_v52 = vpop.f32.mrb[52].mxu0 }
0x171f   :  { %v17477_v53 = vpop.f32.mrb[53].mxu0 }
0x1722   :  { %v4274_v30 = vpop.f32.mrb[50].mxu1 }
0x1723   :  { %v4348_v14 = vadd.f32 %v4347_v52, %v4274_v30  ;;  %v17472_v54 = vpop.f32.mrb[51].mxu1 }
0x1724   :  { %v4877_v54 = vld [vmem:[%s21661_s10 + $0x40] sm:$0xff] }
0x1726   :  { %v4425_v15 = vpop.f32.mrb[52].mxu1 }
0x1727   :  { %v4429_v55 = vmul.f32 0.35355338, %v4425_v15  ;;  %v17482_v56 = vpop.f32.mrb[53].mxu1  ;;  %v4870_v15 = vld [vmem:[%s21661_s10 + $0x8] sm:$0xff] }
0x1728   :  { %v4878_v56 = vld [vmem:[%s21661_s10 + $0x48] sm:$0xff] }
0x1729   :  { %v4430_v57 = vsel %vm771_vm2, %v4429_v55, -inf }
0x172a   :  { %4431 = vmax.xlane.f32.xlu0 %v4430_v57  ;;  %v15854_v57 = vcombine.low %v4870_v15, %v4878_v56 }
0x1740   :  { %4441 = vrot.lane.b32.xlu0 %v20237_v4, %s19358_s1 }
0x1744   :  { %4591 = vrot.lane.b32.xlu0 %v20237_v4, %s19357_s25 }
0x17b7   :  { %v4432_v59 = vpop.xlane.xlu0 %4431 }
0x17b8   :  { %v4433_v61 = vsub.f32 %v4429_v55, %v4432_v59  ;;  %v15855_v59 = vcombine.high %v4870_v15, %v4878_v56  ;;  %v4875_v56 = vld [vmem:[%s21661_s10 + $0x30] sm:$0xff] }
0x17ba   :  { %v4434_v62 = vmul.f32 1.442695, %v4433_v61  ;;  %v4885_v61 = vld [vmem:[%s21661_s10 + $0x80] sm:$0xff] }
0x17bb   :  { %v4442_v5 = vpop.permute.xlu0 %4441 }
0x17bc   :  { %18536 = vpow2.f32 %v4434_v62  ;;  %17484 = vmatpush3.msra.mxu0 %v4442_v5  ;;  %v4893_v62 = vld [vmem:[%s21661_s10 + $0xc0] sm:$0xff]  ;;  %v4886_v5 = vld [vmem:[%s21661_s10 + $0x88] sm:$0xff] }
0x17bd   :  { %17493 = vmatprep.subr.mxu0 %v19348_v1 }
0x17bf   :  { %v4592_v18 = vpop.permute.xlu0 %4591 }
0x17c6   :  { %v18537_v6 = vpop.eup %18536 }
0x17c7   :  { %v4436_v8 = vsel %vm771_vm2, %v18537_v6, 0.0 }
0x17c8   :  { %4437 = vadd.xlane.f32.xlu1 %v4436_v8  ;;  %v4894_v8 = vld [vmem:[%s21661_s10 + $0xc8] sm:$0xff] }
0x17d9   :  { %4593 = vrot.lane.b32.xlu1 %v20237_v4, %s19356_s13 }
0x1855   :  { %v4438_v9 = vpop.xlane.xlu1 %4437 }
0x1856   :  { %18538 = vrcp.f32 %v4438_v9  ;;  %v15868_v9 = vcombine.low %v4885_v61, %v4893_v62 }
0x1859   :  { %v4594_v43 = vpop.permute.xlu1 %4593 }
0x1860   :  { %v18539_v12 = vpop.eup %18538 }
0x1861   :  { %v4440_v16 = vmul.f32 %v18539_v12, %v18537_v6  ;;  %v15869_v6 = vcombine.high %v4885_v61, %v4893_v62  ;;  %v15870_v12 = vcombine.low %v4886_v5, %v4894_v8 }
0x1863   :  { %17486 = vmatmul.mubr.msk.f32.vlgmr.msra.gmra.mrb[54].mxu0 %vm771_vm2, %v4440_v16  ;;  %v15871_v16 = vcombine.high %v4886_v5, %v4894_v8  ;;  %v4891_v8 = vld [vmem:[%s21661_s10 + $0xb0] sm:$0xff] }
0x1864   :  { %17494 = vmatpush3.xpose.msk.msra.mxu0 %vm771_vm2, %v4594_v43  ;;  %17495 = vmatprep.mubr.msk.f32.mxu0 %vm19347_vm0, %v19348_v1  ;;  %v4871_v43 = vld [vmem:[%s21661_s10 + $0x10] sm:$0xff] }
0x1865   :  { %17503 = vmatprep.subr.mxu0 %v19348_v1 }
0x1867   :  { %17496 = vmatmul.mubr.msk.f32.vlgmr.msra.gmra.mrb[56].mxu0 %vm771_vm2, %v4592_v18  ;;  %v4879_v18 = vld [vmem:[%s21661_s10 + $0x50] sm:$0xff] }
0x1868   :  { %17505 = vmatprep.mubr.msk.f32.mxu0 %vm19347_vm0, %v19348_v1  ;;  %17504 = vmatpush3.msra.mxu0 %v3873_v39 }
0x1869   :  { %5190 = vmatprep.subr.bf16.mxu0 %v15855_v59  ;;  %v4884_v59 = vld [vmem:[%s21661_s10 + $0x78] sm:$0xff] }
0x1936   :  { %v4513_v20 = vpop.f32.mrb[54].mxu0 }
0x1937   :  { %v17487_v24 = vpop.f32.mrb[55].mxu0  ;;  %17491 = vmatmul.mubr.msk.f32.vlgmr.msra.gmra.mrb[54].mxu1 %vm771_vm2, %v4513_v20  ;;  %v15856_v20 = vcombine.low %v4871_v43, %v4879_v18 }
0x1938   :  { %17500 = vmatprep.mubr.msk.f32.mxu1 %vm19347_vm0, %v19348_v1  ;;  %v15857_v24 = vcombine.high %v4871_v43, %v4879_v18 }
0x193a   :  { %v4665_v25 = vpop.f32.mrb[56].mxu0 }
0x193b   :  { %v4669_v26 = vmul.f32 0.35355338, %v4665_v25  ;;  %v17497_v27 = vpop.f32.mrb[57].mxu0  ;;  %v4880_v25 = vld [vmem:[%s21661_s10 + $0x58] sm:$0xff] }
0x193c   :  { %v15859_v27 = vcombine.high %v4872_v19, %v4880_v25 }
0x193d   :  { %v4670_v28 = vsel %vm771_vm2, %v4669_v26, -inf }
0x193e   :  { %4671 = vmax.xlane.f32.xlu1 %v4670_v28 }
0x19cb   :  { %v4672_v29 = vpop.xlane.xlu1 %4671 }
0x19cc   :  { %v4673_v31 = vsub.f32 %v4669_v26, %v4672_v29  ;;  %v15858_v26 = vcombine.low %v4872_v19, %v4880_v25 }
0x19ce   :  { %v4674_v32 = vmul.f32 1.442695, %v4673_v31 }
0x19d0   :  { %18540 = vpow2.f32 %v4674_v32 }
0x19da   :  { %v18541_v46 = vpop.eup %18540 }
0x19db   :  { %v4676_v33 = vsel %vm771_vm2, %v18541_v46, 0.0 }
0x19dc   :  { %4677 = vadd.xlane.f32.xlu0 %v4676_v33 }
0x19f2   :  { %4681 = vrot.lane.b32.xlu0 %v20237_v4, %s19359_s9 }
0x1a0a   :  { %v4586_v34 = vpop.f32.mrb[54].mxu1 }
0x1a0b   :  { %v4590_v35 = vadd.f32 %v4586_v34, %v4348_v14  ;;  %v17492_v36 = vpop.f32.mrb[55].mxu1  ;;  %v4869_v14 = vld [vmem:[%s21661_s10] sm:$0xff] }
0x1a0c   :  { %v15853_v55 = vcombine.high %v4869_v14, %v4877_v54  ;;  %v15851_v34 = vld [vmem:[#allocation28] ss:$0 sm:$0xff]  ;;  %v4887_v36 = vld [vmem:[%s21661_s10 + $0x90] sm:$0xff] }
0x1a69   :  { %v4678_v3 = vpop.xlane.xlu0 %4677 }
0x1a6a   :  { %18542 = vrcp.f32 %v4678_v3  ;;  %v4895_v3 = vld [vmem:[%s21661_s10 + $0xd0] sm:$0xff] }
0x1a6d   :  { %v4682_v37 = vpop.permute.xlu0 %4681 }
0x1a6e   :  { %17499 = vmatpush3.msra.mxu1 %v4682_v37  ;;  %v4888_v37 = vld [vmem:[%s21661_s10 + $0x98] sm:$0xff] }
0x1a6f   :  { %5149 = vmatprep.subr.bf16.mxu1 %v15853_v55 }
0x1a74   :  { %v18543_v38 = vpop.eup %18542 }
0x1a75   :  { %v4680_v21 = vmul.f32 %v18543_v38, %v18541_v46  ;;  %v15850_v46 = vld [vmem:[#allocation30] ss:$0 sm:$0xff]  ;;  %v4896_v38 = vld [vmem:[%s21661_s10 + $0xd8] sm:$0xff] }
0x1a77   :  { %17501 = vmatmul.mubr.msk.f32.vlgmr.msra.gmra.mrb[56].mxu1 %vm771_vm2, %v4680_v21 }
0x1a78   :  { %5181 = vmatprep.mubr.bf16.mxu1 %v19360_v10 }
0x1b4a   :  { %v4753_v11 = vpop.f32.mrb[56].mxu1 }
0x1b4b   :  { %v17502_v40 = vpop.f32.mrb[57].mxu1  ;;  %17506 = vmatmul.mubr.msk.f32.vlgmr.msra.gmra.mrb[58].mxu0 %vm771_vm2, %v4753_v11  ;;  %v15873_v11 = vcombine.high %v4887_v36, %v4895_v3 }
0x1b4c   :  { %5222 = vmatprep.mubr.bf16.mxu0 %v19360_v10  ;;  %5191 = vmatpush1.bf16.msra.mxu0 %v15854_v57  ;;  %v15875_v40 = vcombine.high %v4888_v37, %v4896_v38  ;;  %v4876_v57 = vld [vmem:[%s21661_s10 + $0x38] sm:$0xff] }
0x1b4d   :  { %5192 = vmatprep.subr.bf16.mxu0 %v15871_v16  ;;  %v4900_v16 = vld [vmem:[%s21661_s10 + $0xf8] sm:$0xff]  ;;  %v15866_v18 = vcombine.low %v4876_v57, %v4884_v59 }
0x1b50   :  { %5193 = vmatpush1.bf16.msra.mxu0 %v15870_v12  ;;  %v4892_v12 = vld [vmem:[%s21661_s10 + $0xb8] sm:$0xff] }
0x1b51   :  { %5272 = vmatprep.subr.bf16.mxu0 %v15859_v27  ;;  %v15882_v25 = vcombine.low %v4892_v12, %v4900_v16  ;;  %v18125_v27 = vld [vmem:[%s21662_s19 + $0xc0] sm:$0xff]  }
0x1c1e   :  { %v4826_v4 = vpop.f32.mrb[58].mxu0 }
0x1c1f   :  { %v4830_v13 = vadd.f32 %v4826_v4, %v4590_v35  ;;  %v17507_v22 = vpop.f32.mrb[59].mxu0  ;;  %v4873_v4 = vld [vmem:[%s21661_s10 + $0x20] sm:$0xff] }
0x1c20   :  { %v4882_v22 = vld [vmem:[%s21661_s10 + $0x68] sm:$0xff] }
0x1c21   :  { %v4838_v23 = vadd.f32 %v15849_v41, %v4830_v13  ;;  %v4881_v41 = vld [vmem:[%s21661_s10 + $0x60] sm:$0xff]  ;;  %v4874_v13 = vld [vmem:[%s21661_s10 + $0x28] sm:$0xff] }
0x1c23   :  { %v4839_v50 = vadd.f32 %v4838_v23, %v20231_v60  ;;  %v15852_v60 = vcombine.low %v4869_v14, %v4877_v54  ;;  %v15872_v23 = vcombine.low %v4887_v36, %v4895_v3  ;;  %v15860_v14 = vcombine.low %v4873_v4, %v4881_v41  ;;  %v18134_v36 = vld [vmem:[%s21662_s19 + $0x10] sm:$0xff]  }
0x1c24   :  { %v15862_v54 = vcombine.low %v4874_v13, %v4882_v22  ;;  %v18135_v3 = vld [vmem:[%s21662_s19 + $0x90] sm:$0xff]  }
0x1c25   :  { %v4840_v42 = vsel %vm606_vm1, %v4839_v50, 0.0  ;;  %5150 = vmatpush1.bf16.msra.mxu1 %v15852_v60  ;;  %v4883_v60 = vld [vmem:[%s21661_s10 + $0x70] sm:$0xff] }
0x1c26   :  { %4841 = vadd.xlane.f32.xlu1 %v4840_v42  ;;  %5151 = vmatprep.subr.bf16.mxu1 %v15869_v6  ;;  %v15861_v42 = vcombine.high %v4873_v4, %v4881_v41  ;;  %v15865_v5 = vcombine.high %v4875_v56, %v4883_v60  ;;  %v15867_v6 = vcombine.high %v4876_v57, %v4884_v59  ;;  %v18141_v4 = vld [vmem:[%s21662_s19 + $0xe0] sm:$0xff]  }
0x1c27   :  { %v15864_v43 = vcombine.low %v4875_v56, %v4883_v60  ;;  %v18142_v41 = vld [vmem:[%s21662_s19 + $0x20] sm:$0xff]  }
0x1c28   :  { %v18157_v56 = vld [vmem:[%s21662_s19 + $0x1c0] sm:$0xff]  }
0x1c29   :  { %5152 = vmatpush1.bf16.msra.mxu1 %v15868_v9  ;;  %v4899_v9 = vld [vmem:[%s21661_s10 + $0xf0] sm:$0xff]  ;;  %v20420_v60 = vld [vmem:[%s21663_s12] sm:$0xff] }
0x1c2a   :  { %5231 = vmatprep.subr.bf16.mxu1 %v15857_v24  ;;  %v15881_v19 = vcombine.high %v4891_v8, %v4899_v9  ;;  %v15880_v24 = vcombine.low %v4891_v8, %v4899_v9  ;;  %v4909_v57 = vrot.slane %v20420_v60, %v20037_v44  ;;  %v4917_v59 = vrot.slane %v20420_v60, %v20040_v45 }
0x1cb3   :  { %v4842_v49 = vpop.xlane.xlu1 %4841 }
0x1cb4   :  { %v4843_v51 = vmul.f32 0.03125, %v4842_v49  ;;  %v15863_v49 = vcombine.high %v4874_v13, %v4882_v22  ;;  %v18143_v13 = vld [vmem:[%s21662_s19 + $0xa0] sm:$0xff]   ;;  %v18144_v22 = vld [vmem:[%s21662_s19 + $0x68] sm:$0xff]  }
0x1cb6   :  { %v4844_v52 = vsub.f32 %v4839_v50, %v4843_v51  ;;  %v15874_v50 = vcombine.low %v4888_v37, %v4896_v38  ;;  %v4889_v51 = vld [vmem:[%s21661_s10 + $0xa0] sm:$0xff]  ;;  %v18136_v37 = vld [vmem:[%s21662_s19 + $0x58] sm:$0xff]  }
0x1cb7   :  { %v18137_v38 = vld [vmem:[%s21662_s19 + $0xd8] sm:$0xff]  }
0x1cb8   :  { %v4845_v53 = vmul.f32 %v4844_v52, %v4844_v52 }
0x1cba   :  { %v4846_v30 = vsel %vm606_vm1, %v4845_v53, 0.0  ;;  %v4890_v53 = vld [vmem:[%s21661_s10 + $0xa8] sm:$0xff] }
0x1cbb   :  { %4847 = vadd.xlane.f32.xlu1 %v4846_v30  ;;  %v4898_v30 = vld [vmem:[%s21661_s10 + $0xe8] sm:$0xff] }
0x1cbc   :  { %v15879_v55 = vcombine.high %v4890_v53, %v4898_v30  ;;  %v15878_v62 = vcombine.low %v4890_v53, %v4898_v30  ;;  %v18151_v53 = vld [vmem:[%s21662_s19 + $0xb0] sm:$0xff]   ;;  %v18152_v30 = vld [vmem:[%s21662_s19 + $0x78] sm:$0xff]  }
0x1d48   :  { %v4848_v28 = vpop.xlane.xlu1 %4847 }
0x1d49   :  { %v4849_v29 = vmul.f32 0.03125, %v4848_v28  ;;  %v18126_v28 = vld [vmem:[%s21662_s19] sm:$0xff]  }
0x1d4b   :  { %v4850_v31 = vadd.f32 1e-05, %v4849_v29  ;;  %v18127_v29 = vld [vmem:[%s21662_s19 + $0x80] sm:$0xff]  }
0x1d4d   :  { %18544 = vrsqrt.f32 %v4850_v31  ;;  %v18128_v31 = vld [vmem:[%s21662_s19 + $0x48] sm:$0xff]  }
0x1d57   :  { %v18545_v32 = vpop.eup %18544 }
0x1d58   :  { %v4852_v33 = vmul.f32 %v18545_v32, %v4844_v52  ;;  %v4897_v52 = vld [vmem:[%s21661_s10 + $0xe0] sm:$0xff]  ;;  %v18129_v32 = vld [vmem:[%s21662_s19 + $0xc8] sm:$0xff]   ;;  %s21679_s10 = sld [smem:[#allocation63_spill]] }
0x1d59   :  { %v15877_v15 = vcombine.high %v4889_v51, %v4897_v52  ;;  %v15876_v61 = vcombine.low %v4889_v51, %v4897_v52  ;;  %v18149_v51 = vld [vmem:[%s21662_s19 + $0xf0] sm:$0xff]  }
0x1d5a   :  { %v4860_v35 = vmul.f32 %v15850_v46, %v4852_v33  ;;  %v18130_v46 = vld [vmem:[%s21662_s19 + $0x8] sm:$0xff]   ;;  %v18150_v52 = vld [vmem:[%s21662_s19 + $0x30] sm:$0xff]  }
0x1d5b   :  { %v18131_v33 = vld [vmem:[%s21662_s19 + $0x88] sm:$0xff]  }
0x1d5c   :  { %v20341_v21 = vadd.f32 %v15851_v34, %v4860_v35  ;;  %v18132_v34 = vld [vmem:[%s21662_s19 + $0x50] sm:$0xff]  }
0x1d5d   :  { %v18133_v35 = vld [vmem:[%s21662_s19 + $0xd0] sm:$0xff]  }
0x1d5e   :  { %v20345_v39 = vpack.c.bf16 %v20341_v21, %v20341_v21 }
0x1d60   :  { %15884 = vmatmul.mubr.msk.bf16.vlgmr.msra.gmra.mrb[60].mxu1 %vm606_vm1, %v20345_v39  ;;  %15885 = vmatmul.mubr.msk.bf16.vlgmr.msra.gmra.mrb[60].mxu0 %vm606_vm1, %v20345_v39 }
0x1d61   :  { %5232 = vmatpush1.bf16.msra.mxu1 %v15856_v20  ;;  %5273 = vmatpush1.bf16.msra.mxu0 %v15858_v26  ;;  %v15883_v20 = vcombine.high %v4892_v12, %v4900_v16  ;;  %v18124_v26 = vld [vmem:[%s21662_s19 + $0x40] sm:$0xff]  }
0x1d62   :  { %5233 = vmatprep.subr.bf16.mxu1 %v15873_v11  ;;  %5274 = vmatprep.subr.bf16.mxu0 %v15875_v40  ;;  %v18139_v11 = vld [vmem:[%s21662_s19 + $0x98] sm:$0xff]   ;;  %v18140_v40 = vld [vmem:[%s21662_s19 + $0x60] sm:$0xff]  }
0x1d63   :  { %5263 = vmatprep.mubr.bf16.mxu1 %v19360_v10  ;;  %5304 = vmatprep.mubr.bf16.mxu0 %v19360_v10 }
0x1d65   :  { %5234 = vmatpush1.bf16.msra.mxu1 %v15872_v23  ;;  %5275 = vmatpush1.bf16.msra.mxu0 %v15874_v50  ;;  %v18145_v23 = vld [vmem:[%s21662_s19 + $0xe8] sm:$0xff]  }
0x1d66   :  { %5313 = vmatprep.subr.bf16.mxu1 %v15861_v42  ;;  %5354 = vmatprep.subr.bf16.mxu0 %v15863_v49  ;;  %v18146_v50 = vld [vmem:[%s21662_s19 + $0x28] sm:$0xff]   ;;  %v18148_v49 = vld [vmem:[%s21662_s19 + $0x70] sm:$0xff]  }
0x1d67   :  { %v18147_v42 = vld [vmem:[%s21662_s19 + $0xa8] sm:$0xff]  }
0x1d68   :  { %15886 = vmatmul.mubr.msk.bf16.vlgmr.msra.gmra.mrb[64].mxu1 %vm606_vm1, %v20345_v39  ;;  %15887 = vmatmul.mubr.msk.bf16.vlgmr.msra.gmra.mrb[64].mxu0 %vm606_vm1, %v20345_v39 }
0x1d69   :  { %5314 = vmatpush1.bf16.msra.mxu1 %v15860_v14  ;;  %5355 = vmatpush1.bf16.msra.mxu0 %v15862_v54  ;;  %v18153_v14 = vld [vmem:[%s21662_s19 + $0xf8] sm:$0xff]  }
0x1d6a   :  { %5315 = vmatprep.subr.bf16.mxu1 %v15877_v15  ;;  %5356 = vmatprep.subr.bf16.mxu0 %v15879_v55  ;;  %v18154_v54 = vld [vmem:[%s21662_s19 + $0x38] sm:$0xff]   ;;  %v18156_v55 = vld [vmem:[%s21662_s19 + $0x140] sm:$0xff]  }
0x1d6b   :  { %5345 = vmatprep.mubr.bf16.mxu1 %v19360_v10  ;;  %5386 = vmatprep.mubr.bf16.mxu0 %v19360_v10  ;;  %v18155_v15 = vld [vmem:[%s21662_s19 + $0xb8] sm:$0xff]  }
0x1d6d   :  { %5316 = vmatpush1.bf16.msra.mxu1 %v15876_v61  ;;  %5357 = vmatpush1.bf16.msra.mxu0 %v15878_v62  ;;  %v4913_v61 = vrot.slane %v20420_v60, %v20046_v47  ;;  %v4921_v62 = vrot.slane %v20420_v60, %v20049_v48 }
0x1d6e   :  { %5395 = vmatprep.subr.bf16.mxu1 %v15865_v5  ;;  %5436 = vmatprep.subr.bf16.mxu0 %v15867_v6 }
0x1d70   :  { %15888 = vmatmul.mubr.msk.bf16.vlgmr.msra.gmra.mrb[68].mxu1 %vm606_vm1, %v20345_v39  ;;  %15889 = vmatmul.mubr.msk.bf16.vlgmr.msra.gmra.mrb[68].mxu0 %vm606_vm1, %v20345_v39 }
0x1d71   :  { %5396 = vmatpush1.bf16.msra.mxu1 %v15864_v43  ;;  %5437 = vmatpush1.bf16.msra.mxu0 %v15866_v18 }
0x1d72   :  { %5397 = vmatprep.subr.bf16.mxu1 %v15881_v19  ;;  %5438 = vmatprep.subr.bf16.mxu0 %v15883_v20 }
0x1d73   :  { %5427 = vmatprep.mubr.bf16.mxu1 %v19360_v10  ;;  %5468 = vmatprep.mubr.bf16.mxu0 %v19360_v10 }
0x1d75   :  { %5398 = vmatpush1.bf16.msra.mxu1 %v15880_v24  ;;  %5439 = vmatpush1.bf16.msra.mxu0 %v15882_v25 }
0x1d76   :  { %16696 = vmatprep.subr.bf16.mxu1 %v18124_v26  ;;  %16718 = vmatprep.subr.bf16.mxu0 %v18125_v27 }
0x1d78   :  { %15890 = vmatmul.mubr.msk.bf16.vlgmr.msra.gmra.mrb[72].mxu1 %vm606_vm1, %v20345_v39  ;;  %15891 = vmatmul.mubr.msk.bf16.vlgmr.msra.gmra.mrb[72].mxu0 %vm606_vm1, %v20345_v39  ;;  %v18138_v39 = vld [vmem:[%s21662_s19 + $0x18] sm:$0xff]  }
0x1d79   :  { %16697 = vmatpush3.bf16.msra.mxu1 %v18126_v28  ;;  %16719 = vmatpush3.bf16.msra.mxu0 %v18127_v29 }
0x1d7a   :  { %16698 = vmatprep.subr.bf16.mxu1 %v18128_v31  ;;  %16720 = vmatprep.subr.bf16.mxu0 %v18129_v32 }
0x1d7d   :  { %16699 = vmatpush3.bf16.msra.mxu1 %v18130_v46  ;;  %16721 = vmatpush3.bf16.msra.mxu0 %v18131_v33  ;;  %v4929_v46 = vrot.slane %v20420_v60, %v20060_v63  ;;  %v4937_v33 = vrot.slane %v20420_v60, %v20063_v2 }
0x1d7e   :  { %16700 = vmatprep.subr.bf16.mxu1 %v18132_v34  ;;  %16722 = vmatprep.subr.bf16.mxu0 %v18133_v35  ;;  %v18158_v34 = vld [vmem:[%s21662_s19 + $0x100] sm:$0xff]  }
0x1d7f   :  { %v18159_v35 = vld [vmem:[%s21662_s19 + $0x180] sm:$0xff]  }
0x1d81   :  { %16701 = vmatpush3.bf16.msra.mxu1 %v18134_v36  ;;  %16723 = vmatpush3.bf16.msra.mxu0 %v18135_v3 }
0x1d82   :  { %16702 = vmatprep.subr.bf16.mxu1 %v18136_v37  ;;  %16724 = vmatprep.subr.bf16.mxu0 %v18137_v38  ;;  %v18160_v37 = vld [vmem:[%s21662_s19 + $0x148] sm:$0xff]  }
0x1d83   :  { %v18161_v38 = vld [vmem:[%s21662_s19 + $0x1c8] sm:$0xff]  }
0x1d85   :  { %16703 = vmatpush3.bf16.msra.mxu1 %v18138_v39  ;;  %16725 = vmatpush3.bf16.msra.mxu0 %v18139_v11 }
0x1d86   :  { %16704 = vmatprep.subr.bf16.mxu1 %v18140_v40  ;;  %16726 = vmatprep.subr.bf16.mxu0 %v18141_v4 }
0x1d89   :  { %16705 = vmatpush3.bf16.msra.mxu1 %v18142_v41  ;;  %16727 = vmatpush3.bf16.msra.mxu0 %v18143_v13 }
0x1d8a   :  { %16706 = vmatprep.subr.bf16.mxu1 %v18144_v22  ;;  %16728 = vmatprep.subr.bf16.mxu0 %v18145_v23 }
0x1d8d   :  { %16707 = vmatpush3.bf16.msra.mxu1 %v18146_v50  ;;  %16729 = vmatpush3.bf16.msra.mxu0 %v18147_v42  ;;  %v18162_v50 = vld [vmem:[%s21662_s19 + $0x108] sm:$0xff]  }
0x1d8e   :  { %16708 = vmatprep.subr.bf16.mxu1 %v18148_v49  ;;  %16730 = vmatprep.subr.bf16.mxu0 %v18149_v51  ;;  %v18163_v42 = vld [vmem:[%s21662_s19 + $0x188] sm:$0xff]  }
0x1d91   :  { %16709 = vmatpush3.bf16.msra.mxu1 %v18150_v52  ;;  %16731 = vmatpush3.bf16.msra.mxu0 %v18151_v53  ;;  %v18164_v52 = vld [vmem:[%s21662_s19 + $0x150] sm:$0xff]  }
0x1d92   :  { %16710 = vmatprep.subr.bf16.mxu1 %v18152_v30  ;;  %16732 = vmatprep.subr.bf16.mxu0 %v18153_v14  ;;  %v18165_v53 = vld [vmem:[%s21662_s19 + $0x1d0] sm:$0xff]  }
0x1d95   :  { %16711 = vmatpush3.bf16.msra.mxu1 %v18154_v54  ;;  %16733 = vmatpush3.bf16.msra.mxu0 %v18155_v15 }
0x1d96   :  { %16740 = vmatprep.subr.bf16.mxu1 %v18156_v55  ;;  %16762 = vmatprep.subr.bf16.mxu0 %v18157_v56  ;;  %v18166_v55 = vld [vmem:[%s21662_s19 + $0x110] sm:$0xff]  }
0x1d97   :  { %v18167_v56 = vld [vmem:[%s21662_s19 + $0x190] sm:$0xff]  }
0x1e33   :  { %v5183_v5 = vpop.f32.mrb[60].mxu1  ;;  %v5224_v6 = vpop.f32.mrb[60].mxu0 }
0x1e34   :  { %v5184_v8 = vadd.f32 %v5183_v5, %v4909_v57  ;;  %v5225_v9 = vadd.f32 %v5224_v6, %v4917_v59  ;;  %v5185_v12 = vpop.f32.mrb[61].mxu1  ;;  %v5226_v16 = vpop.f32.mrb[61].mxu0  ;;  %v18168_v57 = vld [vmem:[%s21662_s19 + $0x158] sm:$0xff]  }
0x1e35   :  { %v5186_v43 = vadd.f32 %v5185_v12, %v4913_v61  ;;  %v5227_v18 = vadd.f32 %v5226_v16, %v4921_v62  ;;  %v5187_v19 = vpop.f32.mrb[62].mxu1  ;;  %v5228_v20 = vpop.f32.mrb[62].mxu0  ;;  %v18169_v59 = vld [vmem:[%s21662_s19 + $0x1d8] sm:$0xff]  }
0x1e36   :  { %v5477_v24 = vmax.f32 %v5184_v8, 0.0  ;;  %v5479_v25 = vmax.f32 %v5225_v9, 0.0  ;;  %v5188_v26 = vpop.f32.mrb[63].mxu1  ;;  %v5229_v27 = vpop.f32.mrb[63].mxu0  ;;  %v18170_v12 = vld [vmem:[%s21662_s19 + $0x118] sm:$0xff]   ;;  %v18172_v19 = vld [vmem:[%s21662_s19 + $0x160] sm:$0xff]  }
0x1e37   :  { %v5478_v28 = vmax.f32 %v5186_v43, 0.0  ;;  %v5480_v29 = vmax.f32 %v5227_v18, 0.0  ;;  %v18171_v16 = vld [vmem:[%s21662_s19 + $0x198] sm:$0xff]   ;;  %v18173_v20 = vld [vmem:[%s21662_s19 + $0x1e0] sm:$0xff]  }
0x1e38   :  { %v5749_v36 = vpack.c.bf16 %v5477_v24, %v5477_v24  ;;  %v5751_v3 = vpack.c.bf16 %v5479_v25, %v5479_v25  ;;  %v20459_v24 = vld [vmem:[%s21663_s12 + $0x8] sm:$0xff]  ;;  %v18174_v26 = vld [vmem:[%s21662_s19 + $0x120] sm:$0xff]   ;;  %s21681_s12 = sld [smem:[#allocation71_spill]] }
0x1e39   :  { %v5750_v31 = vpack.c.bf16 %v5478_v28, %v5478_v28  ;;  %v5752_v32 = vpack.c.bf16 %v5480_v29, %v5480_v29  ;;  %v4965_v25 = vrot.slane %v20459_v24, %v20092_v58  ;;  %v18175_v27 = vld [vmem:[%s21662_s19 + $0x1a0] sm:$0xff]   ;;  %v18176_v28 = vld [vmem:[%s21662_s19 + $0x168] sm:$0xff]  }
0x1e3a   :  { %v18177_v29 = vld [vmem:[%s21662_s19 + $0x1e8] sm:$0xff]  }
0x1e3b   :  { %v20438_v39 = vpop.f32.mrb[64].mxu1  ;;  %v20440_v11 = vpop.f32.mrb[64].mxu0  ;;  %6572 = vmatprep.mubr.bf16.mxu1 %v5750_v31  ;;  %6612 = vmatprep.mubr.bf16.mxu0 %v5752_v32 }
0x1e3c   :  { %v5267_v40 = vpop.f32.mrb[65].mxu1  ;;  %v5308_v4 = vpop.f32.mrb[65].mxu0  ;;  %6573 = vmatmul.mubr.bf16.vlgmr.msra.gmra.mrb[76].mxu1 %v5749_v36  ;;  %6613 = vmatmul.mubr.bf16.vlgmr.msra.gmra.mrb[76].mxu0 %v5751_v3  ;;  %v18178_v3 = vld [vmem:[%s21662_s19 + $0x128] sm:$0xff]  }
0x1e3d   :  { %v5268_v41 = vadd.f32 %v5267_v40, %v4929_v46  ;;  %v5309_v13 = vadd.f32 %v5308_v4, %v4937_v33  ;;  %16741 = vmatpush3.bf16.msra.mxu1 %v18158_v34  ;;  %16763 = vmatpush3.bf16.msra.mxu0 %v18159_v35  ;;  %v5269_v22 = vpop.f32.mrb[66].mxu1  ;;  %v5310_v23 = vpop.f32.mrb[66].mxu0  ;;  %v4933_v40 = vrot.slane %v20420_v60, %v20092_v58 }
0x1e3e   :  { %v5270_v49 = vpop.f32.mrb[67].mxu1  ;;  %v5311_v51 = vpop.f32.mrb[67].mxu0  ;;  %16742 = vmatprep.subr.bf16.mxu1 %v18160_v37  ;;  %16764 = vmatprep.subr.bf16.mxu0 %v18161_v38  ;;  %v18179_v37 = vld [vmem:[%s21662_s19 + $0x1a8] sm:$0xff]   ;;  %v4925_v38 = vrot.slane %v20420_v60, %v20104_v7  ;;  %v18181_v22 = vld [vmem:[%s21662_s19 + $0x1f0] sm:$0xff]   ;;  %v4945_v23 = vrot.slane %v20459_v24, %v20046_v47 }
0x1e3f   :  { %v5482_v30 = vmax.f32 %v5268_v41, 0.0  ;;  %v5484_v14 = vmax.f32 %v5309_v13, 0.0  ;;  %v18180_v13 = vld [vmem:[%s21662_s19 + $0x170] sm:$0xff]   ;;  %v5307_v51 = vadd.f32 %v20440_v11, %v4933_v40  ;;  %v18189_v11 = vld [vmem:[%s21662_s19 + $0x2c0] sm:$0xff]  }
0x1e40   :  { %v18183_v60 = vld [vmem:[%s21662_s19 + $0x1b0] sm:$0xff]   ;;  %v5266_v49 = vadd.f32 %v20438_v39, %v4925_v38  ;;  %v18188_v39 = vld [vmem:[%s21662_s19 + $0x240] sm:$0xff]  }
0x1e41   :  { %v5754_v54 = vpack.c.bf16 %v5482_v30, %v5482_v30  ;;  %v5756_v15 = vpack.c.bf16 %v5484_v14, %v5484_v14  ;;  %16743 = vmatpush3.bf16.msra.mxu1 %v18162_v50  ;;  %16765 = vmatpush3.bf16.msra.mxu0 %v18163_v42  ;;  %v4953_v50 = vrot.slane %v20459_v24, %v20049_v48  ;;  %v18182_v42 = vld [vmem:[%s21662_s19 + $0x130] sm:$0xff]   ;;  %v18206_v38 = vld [vmem:[%s21662_s19 + $0x220] sm:$0xff]  }
0x1e42   :  { %16744 = vmatprep.subr.bf16.mxu1 %v18164_v52  ;;  %16766 = vmatprep.subr.bf16.mxu0 %v18165_v53  ;;  %v18184_v52 = vld [vmem:[%s21662_s19 + $0x178] sm:$0xff]   ;;  %v18207_v40 = vld [vmem:[%s21662_s19 + $0x2a0] sm:$0xff]  }
0x1e43   :  { %v20450_v61 = vpop.f32.mrb[68].mxu1  ;;  %v20452_v62 = vpop.f32.mrb[68].mxu0  ;;  %6652 = vmatprep.mubr.bf16.mxu1 %v5754_v54  ;;  %6692 = vmatprep.mubr.bf16.mxu0 %v5756_v15  ;;  %v18185_v53 = vld [vmem:[%s21662_s19 + $0x1f8] sm:$0xff]  }
0x1e44   :  { %v5349_v5 = vpop.f32.mrb[69].mxu1  ;;  %v5390_v6 = vpop.f32.mrb[69].mxu0  ;;  %v18186_v54 = vld [vmem:[%s21662_s19 + $0x138] sm:$0xff]  }
0x1e45   :  { %16745 = vmatpush3.bf16.msra.mxu1 %v18166_v55  ;;  %16767 = vmatpush3.bf16.msra.mxu0 %v18167_v56  ;;  %v5351_v8 = vpop.f32.mrb[70].mxu1  ;;  %v5392_v9 = vpop.f32.mrb[70].mxu0  ;;  %v5350_v30 = vadd.f32 %v5349_v5, %v4945_v23  ;;  %v5391_v14 = vadd.f32 %v5390_v6, %v4953_v50  ;;  %v18187_v15 = vld [vmem:[%s21662_s19 + $0x1b8] sm:$0xff]   ;;  %v5481_v55 = vmax.f32 %v5266_v49, 0.0  ;;  %v5483_v56 = vmax.f32 %v5307_v51, 0.0  ;;  %v18190_v5 = vld [vmem:[%s21662_s19 + $0x200] sm:$0xff]  }
0x1e46   :  { %v5352_v43 = vpop.f32.mrb[71].mxu1  ;;  %v5393_v18 = vpop.f32.mrb[71].mxu0  ;;  %16746 = vmatprep.subr.bf16.mxu1 %v18168_v57  ;;  %16768 = vmatprep.subr.bf16.mxu0 %v18169_v59  ;;  %v18191_v9 = vld [vmem:[%s21662_s19 + $0x280] sm:$0xff]   ;;  %v18211_v23 = vld [vmem:[%s21662_s19 + $0x2a8] sm:$0xff]   ;;  %v18212_v50 = vld [vmem:[%s21662_s19 + $0x270] sm:$0xff]   ;;  %v4961_v49 = vrot.slane %v20459_v24, %v20060_v63  ;;  %v4969_v51 = vrot.slane %v20459_v24, %v20063_v2 }
0x1e47   :  { %v5486_v57 = vmax.f32 %v5350_v30, 0.0  ;;  %v5488_v59 = vmax.f32 %v5391_v14, 0.0  ;;  %v5753_v6 = vpack.c.bf16 %v5481_v55, %v5481_v55  ;;  %v5755_v8 = vpack.c.bf16 %v5483_v56, %v5483_v56  ;;  %v18193_v43 = vld [vmem:[%s21662_s19 + $0x2c8] sm:$0xff]   ;;  %v18215_v30 = vld [vmem:[%s21662_s19 + $0x2b0] sm:$0xff]   ;;  %v18216_v14 = vld [vmem:[%s21662_s19 + $0x278] sm:$0xff]  }
0x1e49   :  { %16747 = vmatpush3.bf16.msra.mxu1 %v18170_v12  ;;  %16769 = vmatpush3.bf16.msra.mxu0 %v18171_v16  ;;  %v5758_v12 = vpack.c.bf16 %v5486_v57, %v5486_v57  ;;  %v18192_v16 = vld [vmem:[%s21662_s19 + $0x248] sm:$0xff]   ;;  %v5760_v18 = vpack.c.bf16 %v5488_v59, %v5488_v59  ;;  %v18220_v57 = vld [vmem:[%s21662_s19 + $0x340] sm:$0xff]  }
0x1e4a   :  { %16748 = vmatprep.subr.bf16.mxu1 %v18172_v19  ;;  %16770 = vmatprep.subr.bf16.mxu0 %v18173_v20  ;;  %v18194_v19 = vld [vmem:[%s21662_s19 + $0x208] sm:$0xff]  }
0x1e4b   :  { %v20467_v31 = vpop.f32.mrb[72].mxu1  ;;  %v5470_v32 = vpop.f32.mrb[72].mxu0  ;;  %v18195_v20 = vld [vmem:[%s21662_s19 + $0x288] sm:$0xff]  }
0x1e4c   :  { %v20469_v46 = vadd.f32 %v5470_v32, %v4965_v25  ;;  %v20471_v33 = vpop.f32.mrb[73].mxu1  ;;  %v20473_v34 = vpop.f32.mrb[73].mxu0  ;;  %v18196_v25 = vld [vmem:[%s21662_s19 + $0x250] sm:$0xff]   ;;  %v18201_v32 = vld [vmem:[%s21662_s19 + $0x2d8] sm:$0xff]  }
0x1e4d   :  { %16749 = vmatpush3.bf16.msra.mxu1 %v18174_v26  ;;  %16771 = vmatpush3.bf16.msra.mxu0 %v18175_v27  ;;  %v5433_v35 = vpop.f32.mrb[74].mxu1  ;;  %v5474_v36 = vpop.f32.mrb[74].mxu0  ;;  %v18197_v26 = vld [vmem:[%s21662_s19 + $0x2d0] sm:$0xff]   ;;  %v5432_v55 = vadd.f32 %v20471_v33, %v4961_v49  ;;  %v5473_v56 = vadd.f32 %v20473_v34, %v4969_v51  ;;  %v18222_v33 = vld [vmem:[%s21662_s19 + $0x300] sm:$0xff]  }
0x1e4e   :  { %v5434_v4 = vpop.f32.mrb[75].mxu1  ;;  %v5475_v41 = vpop.f32.mrb[75].mxu0  ;;  %16750 = vmatprep.subr.bf16.mxu1 %v18176_v28  ;;  %16772 = vmatprep.subr.bf16.mxu0 %v18177_v29  ;;  %v18198_v27 = vld [vmem:[%s21662_s19 + $0x210] sm:$0xff]   ;;  %v18200_v29 = vld [vmem:[%s21662_s19 + $0x258] sm:$0xff]   ;;  %v18223_v34 = vld [vmem:[%s21662_s19 + $0x380] sm:$0xff]  }
0x1e4f   :  { %v18199_v28 = vld [vmem:[%s21662_s19 + $0x290] sm:$0xff]   ;;  %v18202_v35 = vld [vmem:[%s21662_s19 + $0x218] sm:$0xff]   ;;  %v18208_v4 = vld [vmem:[%s21662_s19 + $0x268] sm:$0xff]  }
0x1e50   :  { %v18203_v36 = vld [vmem:[%s21662_s19 + $0x298] sm:$0xff]   ;;  %v18209_v41 = vld [vmem:[%s21662_s19 + $0x2e8] sm:$0xff]   ;;  %v18247_v51 = vld [vmem:[%s21662_s19 + $0x3b0] sm:$0xff]  }
0x1e51   :  { %16751 = vmatpush3.bf16.msra.mxu1 %v18178_v3  ;;  %16773 = vmatpush3.bf16.msra.mxu0 %v18179_v37  ;;  %v18204_v3 = vld [vmem:[%s21662_s19 + $0x260] sm:$0xff]  }
0x1e52   :  { %16752 = vmatprep.subr.bf16.mxu1 %v18180_v13  ;;  %16774 = vmatprep.subr.bf16.mxu0 %v18181_v22  ;;  %v18205_v37 = vld [vmem:[%s21662_s19 + $0x2e0] sm:$0xff]   ;;  %v18210_v13 = vld [vmem:[%s21662_s19 + $0x228] sm:$0xff]   ;;  %v4941_v22 = vrot.slane %v20459_v24, %v20037_v44 }
0x1e55   :  { %16753 = vmatpush3.bf16.msra.mxu1 %v18182_v42  ;;  %16775 = vmatpush3.bf16.msra.mxu0 %v18183_v60  ;;  %v4949_v42 = vrot.slane %v20459_v24, %v20040_v45  ;;  %v18213_v60 = vld [vmem:[%s21662_s19 + $0x2f0] sm:$0xff]  }
0x1e56   :  { %16754 = vmatprep.subr.bf16.mxu1 %v18184_v52  ;;  %16776 = vmatprep.subr.bf16.mxu0 %v18185_v53  ;;  %v18214_v52 = vld [vmem:[%s21662_s19 + $0x230] sm:$0xff]   ;;  %v5348_v53 = vadd.f32 %v20450_v61, %v4941_v22  ;;  %v18219_v61 = vld [vmem:[%s21662_s19 + $0x2b8] sm:$0xff]   ;;  %v4957_v22 = vrot.slane %v20459_v24, %v20104_v7 }
0x1e57   :  { %v18249_v24 = vld [vmem:[%s21662_s19 + $0x3f8] sm:$0xff]  }
0x1e58   :  { %v5430_v49 = vadd.f32 %v20467_v31, %v4957_v22 }
0x1e59   :  { %16755 = vmatpush3.bf16.msra.mxu1 %v18186_v54  ;;  %16777 = vmatpush3.bf16.msra.mxu0 %v18187_v15  ;;  %v5389_v54 = vadd.f32 %v20452_v62, %v4949_v42  ;;  %v18217_v15 = vld [vmem:[%s21662_s19 + $0x2f8] sm:$0xff]   ;;  %v18221_v62 = vld [vmem:[%s21662_s19 + $0x3c0] sm:$0xff]   ;;  %v18245_v42 = vld [vmem:[%s21662_s19 + $0x3f0] sm:$0xff]  }
0x1e5a   :  { %16784 = vmatprep.subr.bf16.mxu1 %v18188_v39  ;;  %16806 = vmatprep.subr.bf16.mxu0 %v18189_v11  ;;  %v18218_v39 = vld [vmem:[%s21662_s19 + $0x238] sm:$0xff]   ;;  %v5485_v11 = vmax.f32 %v5348_v53, 0.0 }
0x1e5b   :  { %v5487_v59 = vmax.f32 %v5389_v54, 0.0  ;;  %v18250_v53 = vld [vmem:[%s21662_s19 + $0x338] sm:$0xff]   ;;  %v6919_v54 = vld [vmem:[%s21664_s11] sm:$0xff] }
0x1e5c   :  { %6653 = vmatmul.mubr.bf16.vlgmr.msra.gmra.mrb[80].mxu1 %v5753_v6  ;;  %6693 = vmatmul.mubr.bf16.vlgmr.msra.gmra.mrb[80].mxu0 %v5755_v8  ;;  %v5492_v6 = vmax.f32 %v5473_v56, 0.0  ;;  %v5757_v8 = vpack.c.bf16 %v5485_v11, %v5485_v11  ;;  %v6922_v11 = vld [vmem:[%s21664_s11 + $0x18] sm:$0xff] }
0x1e5d   :  { %16785 = vmatpush3.bf16.msra.mxu1 %v18190_v5  ;;  %6732 = vmatprep.mubr.bf16.mxu1 %v5758_v12  ;;  %v5490_v5 = vmax.f32 %v5432_v55, 0.0  ;;  %v18224_v12 = vld [vmem:[%s21662_s19 + $0x348] sm:$0xff]   ;;  %v5491_v55 = vmax.f32 %v20469_v46, 0.0 }
0x1e5e   :  { %16807 = vmatpush3.bf16.msra.mxu0 %v18191_v9  ;;  %6772 = vmatprep.mubr.bf16.mxu0 %v5760_v18  ;;  %v5759_v9 = vpack.c.bf16 %v5487_v59, %v5487_v59  ;;  %v5764_v18 = vpack.c.bf16 %v5492_v6, %v5492_v6 }
0x1e5f   :  { %16786 = vmatprep.subr.bf16.mxu1 %v18192_v16  ;;  %16808 = vmatprep.subr.bf16.mxu0 %v18193_v43  ;;  %v5762_v16 = vpack.c.bf16 %v5490_v5, %v5490_v5  ;;  %v18225_v43 = vld [vmem:[%s21662_s19 + $0x3c8] sm:$0xff]  }
0x1e61   :  { %16787 = vmatpush3.bf16.msra.mxu1 %v18194_v19  ;;  %v18226_v19 = vld [vmem:[%s21662_s19 + $0x308] sm:$0xff]  }
0x1e62   :  { %16809 = vmatpush3.bf16.msra.mxu0 %v18195_v20  ;;  %16788 = vmatprep.subr.bf16.mxu1 %v18196_v25  ;;  %v18227_v20 = vld [vmem:[%s21662_s19 + $0x388] sm:$0xff]   ;;  %v18228_v25 = vld [vmem:[%s21662_s19 + $0x350] sm:$0xff]  }
0x1e63   :  { %16810 = vmatprep.subr.bf16.mxu0 %v18197_v26  ;;  %v18229_v26 = vld [vmem:[%s21662_s19 + $0x3d0] sm:$0xff]  }
0x1e65   :  { %16789 = vmatpush3.bf16.msra.mxu1 %v18198_v27  ;;  %v18230_v27 = vld [vmem:[%s21662_s19 + $0x310] sm:$0xff]  }
0x1e66   :  { %16811 = vmatpush3.bf16.msra.mxu0 %v18199_v28  ;;  %16790 = vmatprep.subr.bf16.mxu1 %v18200_v29  ;;  %v18231_v28 = vld [vmem:[%s21662_s19 + $0x390] sm:$0xff]   ;;  %v18232_v29 = vld [vmem:[%s21662_s19 + $0x358] sm:$0xff]  }
0x1e67   :  { %16812 = vmatprep.subr.bf16.mxu0 %v18201_v32  ;;  %v18233_v32 = vld [vmem:[%s21662_s19 + $0x3d8] sm:$0xff]  }
0x1e69   :  { %16791 = vmatpush3.bf16.msra.mxu1 %v18202_v35  ;;  %v18234_v35 = vld [vmem:[%s21662_s19 + $0x318] sm:$0xff]  }
0x1e6a   :  { %16813 = vmatpush3.bf16.msra.mxu0 %v18203_v36  ;;  %16792 = vmatprep.subr.bf16.mxu1 %v18204_v3  ;;  %v18235_v36 = vld [vmem:[%s21662_s19 + $0x398] sm:$0xff]   ;;  %v18236_v3 = vld [vmem:[%s21662_s19 + $0x360] sm:$0xff]  }
0x1e6b   :  { %16814 = vmatprep.subr.bf16.mxu0 %v18205_v37  ;;  %v18237_v37 = vld [vmem:[%s21662_s19 + $0x3e0] sm:$0xff]  }
0x1e6d   :  { %16793 = vmatpush3.bf16.msra.mxu1 %v18206_v38  ;;  %v18238_v38 = vld [vmem:[%s21662_s19 + $0x320] sm:$0xff]  }
0x1e6e   :  { %16815 = vmatpush3.bf16.msra.mxu0 %v18207_v40  ;;  %16794 = vmatprep.subr.bf16.mxu1 %v18208_v4  ;;  %v18239_v40 = vld [vmem:[%s21662_s19 + $0x3a0] sm:$0xff]   ;;  %v18240_v4 = vld [vmem:[%s21662_s19 + $0x368] sm:$0xff]  }
0x1e6f   :  { %16816 = vmatprep.subr.bf16.mxu0 %v18209_v41  ;;  %v18241_v41 = vld [vmem:[%s21662_s19 + $0x3e8] sm:$0xff]  }
0x1e71   :  { %16795 = vmatpush3.bf16.msra.mxu1 %v18210_v13  ;;  %v18242_v13 = vld [vmem:[%s21662_s19 + $0x328] sm:$0xff]  }
0x1e72   :  { %16817 = vmatpush3.bf16.msra.mxu0 %v18211_v23  ;;  %16796 = vmatprep.subr.bf16.mxu1 %v18212_v50  ;;  %v18243_v23 = vld [vmem:[%s21662_s19 + $0x3a8] sm:$0xff]   ;;  %v18244_v50 = vld [vmem:[%s21662_s19 + $0x370] sm:$0xff]  }
0x1e73   :  { %16818 = vmatprep.subr.bf16.mxu0 %v18213_v60  ;;  %v18246_v60 = vld [vmem:[%s21662_s19 + $0x330] sm:$0xff]  }
0x1e75   :  { %16797 = vmatpush3.bf16.msra.mxu1 %v18214_v52  ;;  %v18248_v52 = vld [vmem:[%s21662_s19 + $0x378] sm:$0xff]  }
0x1e76   :  { %16819 = vmatpush3.bf16.msra.mxu0 %v18215_v30  ;;  %16798 = vmatprep.subr.bf16.mxu1 %v18216_v14  ;;  %v5489_v30 = vmax.f32 %v5430_v49, 0.0  ;;  %v18251_v14 = vld [vmem:[%s21662_s19 + $0x3b8] sm:$0xff]   ;;  %s21680_s19 = sld [smem:[#allocation89_spill]] }
0x1e77   :  { %16820 = vmatprep.subr.bf16.mxu0 %v18217_v15  ;;  %v6920_v15 = vld [vmem:[%s21664_s11 + $0x8] sm:$0xff] }
0x1e78   :  { %v17844_v31 = vpack.c.bf16 %v6920_v15, %v6919_v54  ;;  %v5761_v56 = vpack.c.bf16 %v5489_v30, %v5489_v30 }
0x1e79   :  { %16799 = vmatpush3.bf16.msra.mxu1 %v18218_v39  ;;  %v6921_v39 = vld [vmem:[%s21664_s11 + $0x10] sm:$0xff]  ;;  %s21682_s11 = sld [smem:[#allocation70_spill]] }
0x1e7a   :  { %16821 = vmatpush3.bf16.msra.mxu0 %v18219_v61  ;;  %16828 = vmatprep.subr.bf16.mxu1 %v18220_v57  ;;  %v5763_v61 = vpack.c.bf16 %v5491_v55, %v5491_v55  ;;  %v17847_v57 = vpack.c.bf16 %v6922_v11, %v6921_v39 }
0x1e7b   :  { %16850 = vmatprep.subr.bf16.mxu0 %v18221_v62  ;;  %v15892_v62 = vld [vmem:[#allocation27] ss:$0 sm:$0xff] }
0x1e7c   :  { %6733 = vmatmul.mubr.bf16.vlgmr.msra.gmra.mrb[84].mxu1 %v5757_v8 }
0x1e7d   :  { %6773 = vmatmul.mubr.bf16.vlgmr.msra.gmra.mrb[84].mxu0 %v5759_v9  ;;  %16829 = vmatpush3.bf16.msra.mxu1 %v18222_v33 }
0x1e7e   :  { %6812 = vmatprep.mubr.bf16.mxu1 %v5762_v16  ;;  %16851 = vmatpush3.bf16.msra.mxu0 %v18223_v34 }
0x1e7f   :  { %6852 = vmatprep.mubr.bf16.mxu0 %v5764_v18  ;;  %16830 = vmatprep.subr.bf16.mxu1 %v18224_v12 }
0x1e80   :  { %16852 = vmatprep.subr.bf16.mxu0 %v18225_v43 }
0x1e81   :  { %16831 = vmatpush3.bf16.msra.mxu1 %v18226_v19 }
0x1e82   :  { %16853 = vmatpush3.bf16.msra.mxu0 %v18227_v20  ;;  %16832 = vmatprep.subr.bf16.mxu1 %v18228_v25 }
0x1e83   :  { %16854 = vmatprep.subr.bf16.mxu0 %v18229_v26 }
0x1e85   :  { %16833 = vmatpush3.bf16.msra.mxu1 %v18230_v27 }
0x1e86   :  { %16855 = vmatpush3.bf16.msra.mxu0 %v18231_v28  ;;  %16834 = vmatprep.subr.bf16.mxu1 %v18232_v29 }
0x1e87   :  { %16856 = vmatprep.subr.bf16.mxu0 %v18233_v32 }
0x1e89   :  { %16835 = vmatpush3.bf16.msra.mxu1 %v18234_v35 }
0x1e8a   :  { %16857 = vmatpush3.bf16.msra.mxu0 %v18235_v36  ;;  %16836 = vmatprep.subr.bf16.mxu1 %v18236_v3 }
0x1e8b   :  { %16858 = vmatprep.subr.bf16.mxu0 %v18237_v37 }
0x1e8d   :  { %16837 = vmatpush3.bf16.msra.mxu1 %v18238_v38 }
0x1e8e   :  { %16859 = vmatpush3.bf16.msra.mxu0 %v18239_v40  ;;  %16838 = vmatprep.subr.bf16.mxu1 %v18240_v4 }
0x1e8f   :  { %16860 = vmatprep.subr.bf16.mxu0 %v18241_v41 }
0x1e91   :  { %16839 = vmatpush3.bf16.msra.mxu1 %v18242_v13 }
0x1e92   :  { %16861 = vmatpush3.bf16.msra.mxu0 %v18243_v23  ;;  %16840 = vmatprep.subr.bf16.mxu1 %v18244_v50 }
0x1e93   :  { %16862 = vmatprep.subr.bf16.mxu0 %v18245_v42 }
0x1e95   :  { %16841 = vmatpush3.bf16.msra.mxu1 %v18246_v60 }
0x1e96   :  { %16863 = vmatpush3.bf16.msra.mxu0 %v18247_v51  ;;  %16842 = vmatprep.subr.bf16.mxu1 %v18248_v52 }
0x1e97   :  { %16864 = vmatprep.subr.bf16.mxu0 %v18249_v24 }
0x1e99   :  { %16843 = vmatpush3.bf16.msra.mxu1 %v18250_v53 }
0x1e9a   :  { %16865 = vmatpush3.bf16.msra.mxu0 %v18251_v14  ;;  %17843 = vmatprep.subr.bf16.mxu1 %v19346_v0 }
0x1e9b   :  { %17519 = vmatprep.subr.mxu0 %v19348_v1 }
0x1e9c   :  { %6813 = vmatmul.mubr.bf16.vlgmr.msra.gmra.mrb[88].mxu1 %v5761_v56 }
0x1e9d   :  { %6853 = vmatmul.mubr.bf16.vlgmr.msra.gmra.mrb[88].mxu0 %v5763_v61  ;;  %17845 = vmatpush3.bf16.msra.mxu1 %v17844_v31  ;;  %v16025_v61 = vld [vmem:[%s21665_s4] ss:$0 sm:$0xff]  ;;  %s21683_s4 = sld [smem:[#allocation88_spill]] }
0x1e9e   :  { %17846 = vmatprep.subr.bf16.mxu1 %v19346_v0  ;;  %17516 = vmatprep.mubr.msk.f32.mxu1 %vm19347_vm0, %v19348_v1 }
0x1e9f   :  { %17521 = vmatprep.mubr.msk.f32.mxu0 %vm19347_vm0, %v19348_v1 }
0x1ea1   :  { %17848 = vmatpush3.bf16.msra.mxu1 %v17847_v57 }
0x1ea2   :  { %17524 = vmatprep.subr.mxu1 %v19348_v1 }
0x1ea4   :  { %17517 = vmatmul.mubr.msk.f32.vlgmr.msra.gmra.mrb[58].mxu1 %vm606_vm1, %v19846_v17 }
0x1ea5   :  { %17526 = vmatprep.mubr.msk.f32.mxu1 %vm19347_vm0, %v19348_v1 }
0x1f0f   :  { %v16712_v46 = vpop.f32.mrb[76].mxu1  ;;  %v16734_v59 = vpop.f32.mrb[76].mxu0 }
0x1f10   :  { %v16713_v5 = vpop.f32.mrb[77].mxu1  ;;  %v16735_v6 = vpop.f32.mrb[77].mxu0 }
0x1f11   :  { %v16714_v33 = vadd.f32 %v16713_v5, %v16712_v46  ;;  %v16736_v8 = vadd.f32 %v16735_v6, %v16734_v59  ;;  %v16715_v34 = vpop.f32.mrb[78].mxu1  ;;  %v16737_v9 = vpop.f32.mrb[78].mxu0 }
0x1f12   :  { %v16716_v12 = vpop.f32.mrb[79].mxu1  ;;  %v16738_v16 = vpop.f32.mrb[79].mxu0 }
0x1f13   :  { %v6575_v43 = vadd.f32 %v16714_v33, %v15892_v62 }
0x1f15   :  { %v6615_v18 = vadd.f32 %v16736_v8, %v6575_v43 }
0x1f2f   :  { %v16756_v19 = vpop.f32.mrb[80].mxu1  ;;  %v16778_v20 = vpop.f32.mrb[80].mxu0 }
0x1f30   :  { %v16757_v25 = vpop.f32.mrb[81].mxu1  ;;  %v16779_v26 = vpop.f32.mrb[81].mxu0 }
0x1f31   :  { %v16758_v27 = vadd.f32 %v16757_v25, %v16756_v19  ;;  %v16780_v28 = vadd.f32 %v16779_v26, %v16778_v20  ;;  %v16759_v29 = vpop.f32.mrb[82].mxu1  ;;  %v16781_v32 = vpop.f32.mrb[82].mxu0 }
0x1f32   :  { %v16760_v35 = vpop.f32.mrb[83].mxu1  ;;  %v16782_v36 = vpop.f32.mrb[83].mxu0 }
0x1f33   :  { %v6655_v3 = vadd.f32 %v16758_v27, %v6615_v18 }
0x1f35   :  { %v6695_v37 = vadd.f32 %v16780_v28, %v6655_v3  ;;  %v7001_v3 = vld [vmem:[%s21666_s20 + $0x8] sm:$0xff] }
0x1f4f   :  { %v16800_v38 = vpop.f32.mrb[84].mxu1 }
0x1f50   :  { %v16822_v40 = vpop.f32.mrb[84].mxu0  ;;  %v16801_v4 = vpop.f32.mrb[85].mxu1 }
0x1f51   :  { %v16802_v41 = vadd.f32 %v16801_v4, %v16800_v38  ;;  %v16823_v13 = vpop.f32.mrb[85].mxu0  ;;  %v16803_v22 = vpop.f32.mrb[86].mxu1 }
0x1f52   :  { %v16824_v23 = vadd.f32 %v16823_v13, %v16822_v40  ;;  %v16825_v50 = vpop.f32.mrb[86].mxu0  ;;  %v16804_v42 = vpop.f32.mrb[87].mxu1 }
0x1f53   :  { %v6735_v60 = vadd.f32 %v16802_v41, %v6695_v37  ;;  %v16826_v49 = vpop.f32.mrb[87].mxu0  ;;  %v7000_v50 = vld [vmem:[%s21666_s20] sm:$0xff] }
0x1f55   :  { %v6775_v51 = vadd.f32 %v16824_v23, %v6735_v60 }
0x1f6f   :  { %v16844_v52 = vpop.f32.mrb[88].mxu1 }
0x1f70   :  { %v16866_v24 = vpop.f32.mrb[88].mxu0  ;;  %v16845_v53 = vpop.f32.mrb[89].mxu1 }
0x1f71   :  { %v16846_v30 = vadd.f32 %v16845_v53, %v16844_v52  ;;  %v16867_v14 = vpop.f32.mrb[89].mxu0  ;;  %v16847_v54 = vpop.f32.mrb[90].mxu1 }
0x1f72   :  { %v16868_v15 = vadd.f32 %v16867_v14, %v16866_v24  ;;  %v16869_v55 = vpop.f32.mrb[90].mxu0  ;;  %v16848_v31 = vpop.f32.mrb[91].mxu1 }
0x1f73   :  { %v6815_v56 = vadd.f32 %v16846_v30, %v6775_v51  ;;  %v16870_v39 = vpop.f32.mrb[91].mxu0 }
0x1f75   :  { %v20591_v11 = vadd.f32 %v16868_v15, %v6815_v56 }
0x1f77   :  { %v6996_v57 = vpop.f32.mrb[58].mxu1 }
0x1f78   :  { %v20594_v46 = vadd.f32 %v16025_v61, %v6996_v57  ;;  %v17518_v59 = vpop.f32.mrb[59].mxu1 }
0x1f7a   :  { %7171 = vrot.lane.b32.xlu0 %v20594_v46, %s19351_s22  ;;  %7005 = vrot.lane.b32.xlu1 %v20594_v46, %s19350_s3 }
0x1f7e   :  { %7169 = vrot.lane.b32.xlu0 %v20594_v46, %s19349_s5 }
0x1fec   :  { %v7006_v62 = vpop.permute.xlu1 %7005  ;;  %v7172_v5 = vpop.permute.xlu0 %7171 }
0x1fed   :  { %17520 = vmatpush3.xpose.msk.msra.mxu0 %vm771_vm2, %v7006_v62 }
0x1fee   :  { %17529 = vmatprep.subr.mxu0 %v19348_v1 }
0x1ff0   :  { %17522 = vmatmul.mubr.msk.f32.vlgmr.msra.gmra.mrb[92].mxu0 %vm771_vm2, %v20594_v46  ;;  %v7170_v6 = vpop.permute.xlu0 %7169 }
0x1ff1   :  { %17530 = vmatpush3.xpose.msk.msra.mxu0 %vm771_vm2, %v7172_v5  ;;  %17531 = vmatprep.mubr.msk.f32.mxu0 %vm19347_vm0, %v19348_v1 }
0x1ff2   :  { %17539 = vmatprep.subr.mxu0 %v19348_v1 }
0x1ff4   :  { %17532 = vmatmul.mubr.msk.f32.vlgmr.msra.gmra.mrb[94].mxu0 %vm771_vm2, %v7170_v6 }
0x1ff5   :  { %17541 = vmatprep.mubr.msk.f32.mxu0 %vm19347_vm0, %v19348_v1  ;;  %17540 = vmatpush3.msra.mxu0 %v7001_v3  ;;  %v6860_v3 = vadd.f32 %v20591_v11, %v20341_v21  ;;  %v7003_v21 = vld [vmem:[%s21666_s20 + $0x18] sm:$0xff] }
0x1ff6   :  { %17549 = vmatprep.subr.mxu0 %v19348_v1 }
0x20c3   :  { %v7077_v33 = vpop.f32.mrb[92].mxu0 }
0x20c4   :  { %v7081_v8 = vmul.f32 0.35355338, %v7077_v33  ;;  %v17523_v34 = vpop.f32.mrb[93].mxu0 }
0x20c6   :  { %v7082_v9 = vsel %vm771_vm2, %v7081_v8, -inf }
0x20c7   :  { %7083 = vmax.xlane.f32.xlu1 %v7082_v9  ;;  %v7243_v12 = vpop.f32.mrb[94].mxu0 }
0x20c8   :  { %v7247_v16 = vmul.f32 0.35355338, %v7243_v12  ;;  %v17533_v43 = vpop.f32.mrb[95].mxu0 }
0x20ca   :  { %v7248_v18 = vsel %vm771_vm2, %v7247_v16, -inf }
0x20cb   :  { %7249 = vmax.xlane.f32.xlu0 %v7248_v18 }
0x2154   :  { %v7084_v19 = vpop.xlane.xlu1 %7083 }
0x2155   :  { %v7085_v20 = vsub.f32 %v7081_v8, %v7084_v19 }
0x2157   :  { %v7086_v25 = vmul.f32 1.442695, %v7085_v20 }
0x2158   :  { %v7250_v26 = vpop.xlane.xlu0 %7249 }
0x2159   :  { %18546 = vpow2.f32 %v7086_v25  ;;  %v7251_v27 = vsub.f32 %v7247_v16, %v7250_v26  ;;  %v7002_v16 = vld [vmem:[%s21666_s20 + $0x10] sm:$0xff]  ;;  %s21684_s20 = sld [smem:[#allocation79_spill]] }
0x215b   :  { %v7252_v28 = vmul.f32 1.442695, %v7251_v27 }
0x215d   :  { %18548 = vpow2.f32 %v7252_v28 }
0x2163   :  { %v18547_v29 = vpop.eup %18546 }
0x2164   :  { %v7088_v32 = vsel %vm771_vm2, %v18547_v29, 0.0 }
0x2165   :  { %7089 = vadd.xlane.f32.xlu0 %v7088_v32 }
0x2167   :  { %v18549_v35 = vpop.eup %18548 }
0x2168   :  { %v7254_v36 = vsel %vm771_vm2, %v18549_v35, 0.0 }
0x2169   :  { %7255 = vadd.xlane.f32.xlu1 %v7254_v36 }
0x217a   :  { %7259 = vrot.lane.b32.xlu1 %v20594_v46, %s19352_s26 }
0x217b   :  { %7093 = vrot.lane.b32.xlu0 %v20594_v46, %s19353_s28 }
0x217e   :  { %7483 = vrot.lane.b32.xlu1 %v20594_v46, %s19354_s14 }
0x217f   :  { %7481 = vrot.lane.b32.xlu0 %v20594_v46, %s19355_s21 }
0x21f2   :  { %v7090_v37 = vpop.xlane.xlu0 %7089 }
0x21f3   :  { %18550 = vrcp.f32 %v7090_v37  ;;  %v6861_v37 = vsel %vm606_vm1, %v6860_v3, 0.0 }
0x21f6   :  { %v7256_v38 = vpop.xlane.xlu1 %7255  ;;  %v7094_v40 = vpop.permute.xlu0 %7093 }
0x21f7   :  { %18552 = vrcp.f32 %v7256_v38  ;;  %17525 = vmatpush3.msra.mxu1 %v7094_v40 }
0x21f8   :  { %17534 = vmatprep.subr.mxu1 %v19348_v1 }
0x21fa   :  { %v7260_v13 = vpop.permute.xlu1 %7259  ;;  %v7482_v24 = vpop.permute.xlu0 %7481 }
0x21fd   :  { %v18551_v4 = vpop.eup %18550 }
0x21fe   :  { %v7092_v41 = vmul.f32 %v18551_v4, %v18547_v29  ;;  %v7484_v51 = vpop.permute.xlu1 %7483 }
0x2200   :  { %17527 = vmatmul.mubr.msk.f32.vlgmr.msra.gmra.mrb[92].mxu1 %vm771_vm2, %v7092_v41 }
0x2201   :  { %v18553_v22 = vpop.eup %18552  ;;  %17535 = vmatpush3.msra.mxu1 %v7260_v13  ;;  %17536 = vmatprep.mubr.msk.f32.mxu1 %vm19347_vm0, %v19348_v1 }
0x2202   :  { %v7258_v23 = vmul.f32 %v18553_v22, %v18549_v35  ;;  %17544 = vmatprep.subr.mxu1 %v19348_v1 }
0x2204   :  { %17537 = vmatmul.mubr.msk.f32.vlgmr.msra.gmra.mrb[94].mxu1 %vm771_vm2, %v7258_v23 }
0x2205   :  { %17546 = vmatprep.mubr.msk.f32.mxu1 %vm19347_vm0, %v19348_v1  ;;  %17545 = vmatpush3.msra.mxu1 %v7000_v50 }
0x2206   :  { %17554 = vmatprep.subr.mxu1 %v19348_v1 }
0x22d3   :  { %v7165_v42 = vpop.f32.mrb[92].mxu1 }
0x22d4   :  { %v17528_v60 = vpop.f32.mrb[93].mxu1  ;;  %17547 = vmatmul.mubr.msk.f32.vlgmr.msra.gmra.mrb[96].mxu1 %vm771_vm2, %v7165_v42 }
0x22d5   :  { %17556 = vmatprep.mubr.msk.f32.mxu1 %vm19347_vm0, %v19348_v1 }
0x22d7   :  { %v7331_v49 = vpop.f32.mrb[94].mxu1 }
0x22d8   :  { %v17538_v52 = vpop.f32.mrb[95].mxu1  ;;  %17542 = vmatmul.mubr.msk.f32.vlgmr.msra.gmra.mrb[96].mxu0 %vm771_vm2, %v7331_v49 }
0x22d9   :  { %17550 = vmatpush3.xpose.msk.msra.mxu0 %vm771_vm2, %v7484_v51  ;;  %17551 = vmatprep.mubr.msk.f32.mxu0 %vm19347_vm0, %v19348_v1 }
0x22da   :  { %17559 = vmatprep.subr.mxu0 %v19348_v1 }
0x22dc   :  { %17552 = vmatmul.mubr.msk.f32.vlgmr.msra.gmra.mrb[98].mxu0 %vm771_vm2, %v7482_v24  ;;  %v16021_v24 = vld [vmem:[#allocation33] ss:$0 sm:$0xff] }
0x22dd   :  { %17561 = vmatprep.mubr.msk.f32.mxu0 %vm19347_vm0, %v19348_v1  ;;  %17560 = vmatpush3.msra.mxu0 %v7002_v16  ;;  %v8000_v16 = vld [vmem:[%s21668_s16 + $0x8] sm:$0xff] }
0x22de   :  { %17569 = vmatprep.subr.mxu0 %v19348_v1 }
0x23a7   :  { %v7477_v53 = vpop.f32.mrb[96].mxu1 }
0x23a8   :  { %v17548_v30 = vpop.f32.mrb[97].mxu1 }
0x23a9   :  { %v16022_v30 = vld [vmem:[#allocation31] ss:$0 sm:$0xff] }
0x23ab   :  { %v7404_v14 = vpop.f32.mrb[96].mxu0 }
0x23ac   :  { %v7478_v54 = vadd.f32 %v7477_v53, %v7404_v14  ;;  %v17543_v15 = vpop.f32.mrb[97].mxu0 }
0x23af   :  { %v7555_v55 = vpop.f32.mrb[98].mxu0 }
0x23b0   :  { %v7559_v31 = vmul.f32 0.35355338, %v7555_v55  ;;  %v17553_v56 = vpop.f32.mrb[99].mxu0 }
0x23b2   :  { %v7560_v39 = vsel %vm771_vm2, %v7559_v31, -inf }
0x23b3   :  { %7561 = vmax.xlane.f32.xlu1 %v7560_v39 }
0x23c4   :  { %7723 = vrot.lane.b32.xlu1 %v20594_v46, %s19356_s13 }
0x23c8   :  { %7721 = vrot.lane.b32.xlu1 %v20594_v46, %s19357_s25 }
0x2440   :  { %v7562_v61 = vpop.xlane.xlu1 %7561 }
0x2441   :  { %v7563_v57 = vsub.f32 %v7559_v31, %v7562_v61 }
0x2443   :  { %v7564_v59 = vmul.f32 1.442695, %v7563_v57  ;;  %v16043_v57 = vld [vmem:[%s21667_s15] ss:$0 sm:$0xff]  ;;  %s21685_s15 = sld [smem:[#allocation77_spill]] }
0x2444   :  { %v7724_v34 = vpop.permute.xlu1 %7723 }
0x2445   :  { %18554 = vpow2.f32 %v7564_v59 }
0x2448   :  { %v7722_v12 = vpop.permute.xlu1 %7721 }
0x244f   :  { %v18555_v62 = vpop.eup %18554 }
0x2450   :  { %v7566_v5 = vsel %vm771_vm2, %v18555_v62, 0.0 }
0x2451   :  { %7567 = vadd.xlane.f32.xlu0 %v7566_v5 }
0x2467   :  { %7571 = vrot.lane.b32.xlu0 %v20594_v46, %s19358_s1 }
0x24de   :  { %v7568_v6 = vpop.xlane.xlu0 %7567 }
0x24df   :  { %18556 = vrcp.f32 %v7568_v6 }
0x24e2   :  { %v7572_v33 = vpop.permute.xlu0 %7571 }
0x24e3   :  { %17555 = vmatpush3.msra.mxu1 %v7572_v33 }
0x24e4   :  { %17564 = vmatprep.subr.mxu1 %v19348_v1 }
0x24e9   :  { %v18557_v8 = vpop.eup %18556 }
0x24ea   :  { %v7570_v9 = vmul.f32 %v18557_v8, %v18555_v62 }
0x24ec   :  { %17557 = vmatmul.mubr.msk.f32.vlgmr.msra.gmra.mrb[98].mxu1 %vm771_vm2, %v7570_v9 }
0x24ed   :  { %17565 = vmatpush3.xpose.msk.msra.mxu1 %vm771_vm2, %v7724_v34  ;;  %17566 = vmatprep.mubr.msk.f32.mxu1 %vm19347_vm0, %v19348_v1 }
0x24ee   :  { %17574 = vmatprep.subr.mxu1 %v19348_v1 }
0x24f0   :  { %17567 = vmatmul.mubr.msk.f32.vlgmr.msra.gmra.mrb[100].mxu1 %vm771_vm2, %v7722_v12  ;;  %v7999_v12 = vld [vmem:[%s21668_s16] sm:$0xff] }
0x24f1   :  { %17576 = vmatprep.mubr.msk.f32.mxu1 %vm19347_vm0, %v19348_v1  ;;  %17575 = vmatpush3.msra.mxu1 %v7003_v21 }
0x24f2   :  { %17855 = vmatprep.subr.bf16.mxu1 %v19346_v0 }
0x25bf   :  { %v7643_v43 = vpop.f32.mrb[98].mxu1 }
0x25c0   :  { %v17558_v18 = vpop.f32.mrb[99].mxu1  ;;  %17562 = vmatmul.mubr.msk.f32.vlgmr.msra.gmra.mrb[100].mxu0 %vm771_vm2, %v7643_v43  ;;  %v17850_v43 = vpack.c.bf16 %v8000_v16, %v7999_v12 }
0x25c1   :  { %17571 = vmatprep.mubr.msk.f32.mxu0 %vm19347_vm0, %v19348_v1  ;;  %v8001_v18 = vld [vmem:[%s21668_s16 + $0x10] sm:$0xff] }
0x25c3   :  { %v7795_v19 = vpop.f32.mrb[100].mxu1 }
0x25c4   :  { %v7799_v20 = vmul.f32 0.35355338, %v7795_v19  ;;  %v17568_v25 = vpop.f32.mrb[101].mxu1  ;;  %v8002_v19 = vld [vmem:[%s21668_s16 + $0x18] sm:$0xff]  ;;  %s21686_s16 = sld [smem:[#allocation84_spill]] }
0x25c6   :  { %v7800_v26 = vsel %vm771_vm2, %v7799_v20, -inf }
0x25c7   :  { %7801 = vmax.xlane.f32.xlu0 %v7800_v26 }
0x25dd   :  { %7811 = vrot.lane.b32.xlu0 %v20594_v46, %s19359_s9 }
0x2654   :  { %v7802_v27 = vpop.xlane.xlu0 %7801 }
0x2655   :  { %v7803_v28 = vsub.f32 %v7799_v20, %v7802_v27  ;;  %v17853_v20 = vpack.c.bf16 %v8002_v19, %v8001_v18 }
0x2657   :  { %v7804_v29 = vmul.f32 1.442695, %v7803_v28 }
0x2658   :  { %v7812_v32 = vpop.permute.xlu0 %7811 }
0x2659   :  { %18558 = vpow2.f32 %v7804_v29  ;;  %17570 = vmatpush3.msra.mxu0 %v7812_v32 }
0x265a   :  { %17849 = vmatprep.subr.bf16.mxu0 %v19346_v0 }
0x2663   :  { %v18559_v35 = vpop.eup %18558 }
0x2664   :  { %v7806_v36 = vsel %vm771_vm2, %v18559_v35, 0.0 }
0x2665   :  { %7807 = vadd.xlane.f32.xlu1 %v7806_v36 }
0x2669   :  { %6862 = vadd.xlane.f32.xlu1 %v6861_v37 }
0x2693   :  { %v7716_v46 = vpop.f32.mrb[100].mxu0 }
0x2694   :  { %v7720_v38 = vadd.f32 %v7716_v46, %v7478_v54  ;;  %v17563_v40 = vpop.f32.mrb[101].mxu0  ;;  %v16024_v46 = vld [vmem:[#allocation37] ss:$0 sm:$0xff] }
0x26f2   :  { %v7808_v4 = vpop.xlane.xlu1 %7807 }
0x26f3   :  { %18560 = vrcp.f32 %v7808_v4 }
0x26f6   :  { %v6863_v41 = vpop.xlane.xlu1 %6862 }
0x26f7   :  { %v6864_v13 = vmul.f32 0.03125, %v6863_v41 }
0x26f9   :  { %v6865_v22 = vsub.f32 %v6860_v3, %v6864_v13  ;;  %v16023_v3 = vld [vmem:[#allocation39] ss:$0 sm:$0xff] }
0x26fb   :  { %v6866_v23 = vmul.f32 %v6865_v22, %v6865_v22 }
0x26fd   :  { %v18561_v50 = vpop.eup %18560  ;;  %v6867_v42 = vsel %vm606_vm1, %v6866_v23, 0.0  ;;  %v16044_v23 = vld [vmem:[%s21669_s30] ss:$0 sm:$0xff] }
0x26fe   :  { %v7810_v60 = vmul.f32 %v18561_v50, %v18559_v35  ;;  %6868 = vadd.xlane.f32.xlu1 %v6867_v42  ;;  %v16045_v42 = vld [vmem:[%s21670_s6] ss:$0 sm:$0xff] }
0x2700   :  { %17572 = vmatmul.mubr.msk.f32.vlgmr.msra.gmra.mrb[102].mxu0 %vm771_vm2, %v7810_v60 }
0x2701   :  { %17587 = vmatprep.mubr.msk.f32.mxu0 %vm19347_vm0, %v19348_v1  ;;  %17851 = vmatpush3.bf16.msra.mxu0 %v17850_v43 }
0x2702   :  { %17852 = vmatprep.subr.bf16.mxu0 %v19346_v0 }
0x2705   :  { %17854 = vmatpush3.bf16.msra.mxu0 %v17853_v20 }
0x2706   :  { %17601 = vmatprep.subr.mxu0 %v19348_v1 }
0x278b   :  { %v6869_v11 = vpop.xlane.xlu1 %6868 }
0x278c   :  { %v6870_v49 = vmul.f32 0.03125, %v6869_v11  ;;  %v16046_v11 = vld [vmem:[%s21671_s24] ss:$0 sm:$0xff] }
0x278e   :  { %v6871_v51 = vadd.f32 1e-05, %v6870_v49 }
0x2790   :  { %18562 = vrsqrt.f32 %v6871_v51 }
0x279a   :  { %v18563_v52 = vpop.eup %18562 }
0x279b   :  { %v6873_v53 = vmul.f32 %v18563_v52, %v6865_v22 }
0x279d   :  { %v6881_v14 = vmul.f32 %v16021_v24, %v6873_v53 }
0x279f   :  { %v6889_v54 = vadd.f32 %v16022_v30, %v6881_v14 }
0x27a1   :  { %v6890_v15 = vsel %vm606_vm1, %v6889_v54, 0.0 }
0x27a2   :  { %6891 = vadd.xlane.f32.xlu1 %v6890_v15 }
0x27d3   :  { %v7883_v55 = vpop.f32.mrb[102].mxu0 }
0x27d4   :  { %v17573_v31 = vpop.f32.mrb[103].mxu0  ;;  %17577 = vmatmul.mubr.msk.f32.vlgmr.msra.gmra.mrb[102].mxu1 %vm771_vm2, %v7883_v55 }
0x27d5   :  { %17598 = vmatprep.mubr.msk.f32.mxu1 %vm19347_vm0, %v19348_v1  ;;  %17857 = vmatpush3.bf16.msra.mxu1 %v17850_v43 }
0x27d6   :  { %17858 = vmatprep.subr.bf16.mxu1 %v19346_v0 }
0x27d9   :  { %17860 = vmatpush3.bf16.msra.mxu1 %v17853_v20 }
0x27da   :  { %17606 = vmatprep.subr.mxu1 %v19348_v1 }
0x282f   :  { %v6892_v56 = vpop.xlane.xlu1 %6891 }
0x2830   :  { %v6893_v39 = vmul.f32 0.03125, %v6892_v56 }
0x2832   :  { %v6894_v5 = vsub.f32 %v6889_v54, %v6893_v39 }
0x2834   :  { %v6895_v34 = vmul.f32 %v6894_v5, %v6894_v5 }
0x2836   :  { %v6896_v9 = vsel %vm606_vm1, %v6895_v34, 0.0 }
0x28a7   :  { %v7956_v61 = vpop.f32.mrb[102].mxu1 }
0x28a8   :  { %v7960_v59 = vadd.f32 %v7956_v61, %v7720_v38  ;;  %v17578_v62 = vpop.f32.mrb[103].mxu1 }
0x28aa   :  { %v7968_v6 = vadd.f32 %v16043_v57, %v7960_v59 }
0x28ac   :  { %v7969_v33 = vadd.f32 %v7968_v6, %v19846_v17 }
0x28ae   :  { %v7970_v8 = vsel %vm606_vm1, %v7969_v33, 0.0 }
0x28af   :  { %7971 = vadd.xlane.f32.xlu1 %v7970_v8 }
0x28b3   :  { %6897 = vadd.xlane.f32.xlu1 %v6896_v9 }
0x293c   :  { %v7972_v17 = vpop.xlane.xlu1 %7971 }
0x293d   :  { %v7973_v25 = vmul.f32 0.03125, %v7972_v17 }
0x293f   :  { %v7974_v26 = vsub.f32 %v7969_v33, %v7973_v25 }
0x2940   :  { %v6898_v27 = vpop.xlane.xlu1 %6897 }
0x2941   :  { %v6899_v28 = vmul.f32 0.03125, %v6898_v27  ;;  %v7975_v29 = vmul.f32 %v7974_v26, %v7974_v26 }
0x2943   :  { %v6900_v32 = vadd.f32 1e-05, %v6899_v28  ;;  %v7976_v35 = vsel %vm606_vm1, %v7975_v29, 0.0 }
0x2944   :  { %7977 = vadd.xlane.f32.xlu0 %v7976_v35  ;;  %v8157_v35 = vld [vmem:[%s21672_s18 + $0x8] sm:$0xff] }
0x2945   :  { %18564 = vrsqrt.f32 %v6900_v32  ;;  %v8156_v32 = vld [vmem:[%s21672_s18] sm:$0xff] }
0x294f   :  { %v18565_v36 = vpop.eup %18564 }
0x2950   :  { %v6902_v37 = vmul.f32 %v18565_v36, %v6894_v5 }
0x2952   :  { %v6910_v38 = vmul.f32 %v16023_v3, %v6902_v37 }
0x2954   :  { %v20701_v40 = vadd.f32 %v16024_v46, %v6910_v38 }
0x2956   :  { %17599 = vmatmul.mubr.msk.f32.vlgmr.msra.gmra.mrb[104].mxu1 %vm606_vm1, %v20701_v40 }
0x2957   :  { %17608 = vmatprep.mubr.msk.f32.mxu1 %vm19347_vm0, %v19348_v1 }
0x29d1   :  { %v7978_v4 = vpop.xlane.xlu0 %7977 }
0x29d2   :  { %v7979_v41 = vmul.f32 0.03125, %v7978_v4 }
0x29d4   :  { %v7980_v13 = vadd.f32 1e-05, %v7979_v41 }
0x29d6   :  { %18566 = vrsqrt.f32 %v7980_v13 }
0x29e0   :  { %v18567_v22 = vpop.eup %18566 }
0x29e1   :  { %v7982_v50 = vmul.f32 %v18567_v22, %v7974_v26 }
0x29e3   :  { %v7990_v60 = vmul.f32 %v16044_v23, %v7982_v50 }
0x29e5   :  { %v20709_v21 = vadd.f32 %v16045_v42, %v7990_v60 }
0x29e7   :  { %17588 = vmatmul.mubr.msk.f32.vlgmr.msra.gmra.mrb[104].mxu0 %vm606_vm1, %v20709_v21 }
0x29e8   :  { %17603 = vmatprep.mubr.msk.f32.mxu0 %vm19347_vm0, %v19348_v1 }
0x2a29   :  { %v8152_v49 = vpop.f32.mrb[104].mxu1 }
0x2a2a   :  { %v20716_v51 = vadd.f32 %v16046_v11, %v8152_v49  ;;  %v17600_v52 = vpop.f32.mrb[105].mxu1 }
0x2a2c   :  { %8161 = vrot.lane.b32.xlu1 %v20716_v51, %s19350_s3 }
0x2a30   :  { %8328 = vrot.lane.b32.xlu1 %v20716_v51, %s19351_s22 }
0x2a9e   :  { %v8162_v24 = vpop.permute.xlu1 %8161 }
0x2a9f   :  { %17602 = vmatpush3.xpose.msk.msra.mxu0 %vm771_vm2, %v8162_v24 }
0x2aa0   :  { %17611 = vmatprep.subr.mxu0 %v19348_v1 }
0x2aa2   :  { %v8329_v54 = vpop.permute.xlu1 %8328 }
0x2aba   :  { %v8079_v53 = vpop.f32.mrb[104].mxu0 }
0x2abb   :  { %v20724_v30 = vadd.f32 %v16046_v11, %v8079_v53  ;;  %v17589_v14 = vpop.f32.mrb[105].mxu0 }
0x2abd   :  { %8326 = vrot.lane.b32.xlu1 %v20724_v30, %s19349_s5  ;;  %17604 = vmatmul.mubr.msk.f32.vlgmr.msra.gmra.mrb[106].mxu0 %vm771_vm2, %v20724_v30 }
0x2abe   :  { %17612 = vmatpush3.xpose.msk.msra.mxu0 %vm771_vm2, %v8329_v54  ;;  %17613 = vmatprep.mubr.msk.f32.mxu0 %vm19347_vm0, %v19348_v1 }
0x2abf   :  { %17621 = vmatprep.subr.mxu0 %v19348_v1 }
0x2b2f   :  { %v8327_v15 = vpop.permute.xlu1 %8326 }
0x2b30   :  { %17614 = vmatmul.mubr.msk.f32.vlgmr.msra.gmra.mrb[108].mxu0 %vm771_vm2, %v8327_v15 }
0x2b31   :  { %17623 = vmatprep.mubr.msk.f32.mxu0 %vm19347_vm0, %v19348_v1  ;;  %17622 = vmatpush3.msra.mxu0 %v8157_v35 }
0x2b32   :  { %17631 = vmatprep.subr.mxu0 %v19348_v1 }
0x2b90   :  { %v8234_v55 = vpop.f32.mrb[106].mxu0 }
0x2b91   :  { %v8238_v31 = vmul.f32 0.35355338, %v8234_v55  ;;  %v17605_v56 = vpop.f32.mrb[107].mxu0 }
0x2b93   :  { %v8239_v39 = vsel %vm771_vm2, %v8238_v31, -inf }
0x2b94   :  { %8240 = vmax.xlane.f32.xlu1 %v8239_v39 }
0x2ba5   :  { %8416 = vrot.lane.b32.xlu1 %v20716_v51, %s19352_s26 }
0x2c03   :  { %v8400_v61 = vpop.f32.mrb[108].mxu0 }
0x2c04   :  { %v8404_v57 = vmul.f32 0.35355338, %v8400_v61  ;;  %v17615_v59 = vpop.f32.mrb[109].mxu0  ;;  %v8158_v61 = vld [vmem:[%s21672_s18 + $0x10] sm:$0xff] }
0x2c06   :  { %v8405_v62 = vsel %vm771_vm2, %v8404_v57, -inf }
0x2c07   :  { %8406 = vmax.xlane.f32.xlu0 %v8405_v62 }
0x2c21   :  { %v8241_v5 = vpop.xlane.xlu1 %8240 }
0x2c22   :  { %v8242_v6 = vsub.f32 %v8238_v31, %v8241_v5 }
0x2c24   :  { %v8243_v33 = vmul.f32 1.442695, %v8242_v6 }
0x2c25   :  { %v8417_v27 = vpop.permute.xlu1 %8416 }
0x2c26   :  { %18568 = vpow2.f32 %v8243_v33 }
0x2c30   :  { %v18569_v8 = vpop.eup %18568 }
0x2c31   :  { %v8245_v34 = vsel %vm771_vm2, %v18569_v8, 0.0 }
0x2c32   :  { %8246 = vadd.xlane.f32.xlu0 %v8245_v34 }
0x2c94   :  { %v8407_v9 = vpop.xlane.xlu0 %8406 }
0x2c95   :  { %v8408_v12 = vsub.f32 %v8404_v57, %v8407_v9 }
0x2c97   :  { %v8409_v16 = vmul.f32 1.442695, %v8408_v12 }
0x2c99   :  { %18570 = vpow2.f32 %v8409_v16 }
0x2ca3   :  { %v18571_v43 = vpop.eup %18570 }
0x2ca4   :  { %v8411_v18 = vsel %vm771_vm2, %v18571_v43, 0.0 }
0x2ca5   :  { %8412 = vadd.xlane.f32.xlu0 %v8411_v18 }
0x2cbb   :  { %8250 = vrot.lane.b32.xlu0 %v20716_v51, %s19353_s28 }
0x2cbf   :  { %8640 = vrot.lane.b32.xlu0 %v20716_v51, %s19354_s14  ;;  %v8247_v19 = vpop.xlane.xlu0 %8246 }
0x2cc0   :  { %18572 = vrcp.f32 %v8247_v19 }
0x2cc3   :  { %8638 = vrot.lane.b32.xlu0 %v20724_v30, %s19355_s21 }
0x2cca   :  { %v18573_v17 = vpop.eup %18572 }
0x2ccb   :  { %v8249_v25 = vmul.f32 %v18573_v17, %v18569_v8 }
0x2d32   :  { %v8413_v20 = vpop.xlane.xlu0 %8412 }
0x2d33   :  { %18574 = vrcp.f32 %v8413_v20 }
0x2d36   :  { %v8251_v26 = vpop.permute.xlu0 %8250 }
0x2d37   :  { %17607 = vmatpush3.msra.mxu1 %v8251_v26 }
0x2d38   :  { %17609 = vmatmul.mubr.msk.f32.vlgmr.msra.gmra.mrb[106].mxu1 %vm771_vm2, %v8249_v25  ;;  %17616 = vmatprep.subr.mxu1 %v19348_v1 }
0x2d39   :  { %17617 = vmatpush3.msra.mxu1 %v8417_v27  ;;  %17618 = vmatprep.mubr.msk.f32.mxu1 %vm19347_vm0, %v19348_v1 }
0x2d3a   :  { %17626 = vmatprep.subr.mxu1 %v19348_v1  ;;  %v8641_v37 = vpop.permute.xlu0 %8640 }
0x2d3d   :  { %v18575_v28 = vpop.eup %18574 }
0x2d3e   :  { %v8415_v29 = vmul.f32 %v18575_v28, %v18571_v43  ;;  %v8639_v4 = vpop.permute.xlu0 %8638 }
0x2d40   :  { %17619 = vmatmul.mubr.msk.f32.vlgmr.msra.gmra.mrb[108].mxu1 %vm771_vm2, %v8415_v29 }
0x2d41   :  { %17628 = vmatprep.mubr.msk.f32.mxu1 %vm19347_vm0, %v19348_v1  ;;  %17627 = vmatpush3.msra.mxu1 %v8156_v32  ;;  %v16065_v32 = vld [vmem:[%s21673_s23] ss:$0 sm:$0xff] }
0x2d42   :  { %17636 = vmatprep.subr.mxu1 %v19348_v1 }
0x2e0b   :  { %v8322_v36 = vpop.f32.mrb[106].mxu1 }
0x2e0c   :  { %v17610_v3 = vpop.f32.mrb[107].mxu1  ;;  %17629 = vmatmul.mubr.msk.f32.vlgmr.msra.gmra.mrb[110].mxu1 %vm771_vm2, %v8322_v36 }
0x2e0d   :  { %17638 = vmatprep.mubr.msk.f32.mxu1 %vm19347_vm0, %v19348_v1 }
0x2e13   :  { %v8488_v46 = vpop.f32.mrb[108].mxu1 }
0x2e14   :  { %v17620_v38 = vpop.f32.mrb[109].mxu1  ;;  %17624 = vmatmul.mubr.msk.f32.vlgmr.msra.gmra.mrb[110].mxu0 %vm771_vm2, %v8488_v46 }
0x2e15   :  { %17632 = vmatpush3.xpose.msk.msra.mxu0 %vm771_vm2, %v8641_v37  ;;  %17633 = vmatprep.mubr.msk.f32.mxu0 %vm19347_vm0, %v19348_v1 }
0x2e16   :  { %17641 = vmatprep.subr.mxu0 %v19348_v1 }
0x2e18   :  { %17634 = vmatmul.mubr.msk.f32.vlgmr.msra.gmra.mrb[112].mxu0 %vm771_vm2, %v8639_v4 }
0x2e19   :  { %17643 = vmatprep.mubr.msk.f32.mxu0 %vm19347_vm0, %v19348_v1  ;;  %17642 = vmatpush3.msra.mxu0 %v8158_v61  ;;  %v9159_v61 = vld [vmem:[%s21674_s29 + $0x18] sm:$0xff] }
0x2e1a   :  { %17651 = vmatprep.subr.mxu0 %v19348_v1 }
0x2edf   :  { %v8634_v41 = vpop.f32.mrb[110].mxu1 }
0x2ee0   :  { %v17630_v13 = vpop.f32.mrb[111].mxu1 }
0x2ee7   :  { %v8561_v22 = vpop.f32.mrb[110].mxu0 }
0x2ee8   :  { %v8635_v23 = vadd.f32 %v8634_v41, %v8561_v22  ;;  %v17625_v50 = vpop.f32.mrb[111].mxu0 }
0x2ee9   :  { %v9164_v50 = vld [vmem:[%s21674_s29 + $0x40] sm:$0xff] }
0x2eeb   :  { %v8712_v42 = vpop.f32.mrb[112].mxu0 }
0x2eec   :  { %v8716_v60 = vmul.f32 0.35355338, %v8712_v42  ;;  %v17635_v11 = vpop.f32.mrb[113].mxu0  ;;  %v9157_v42 = vld [vmem:[%s21674_s29 + $0x8] sm:$0xff] }
0x2eed   :  { %v9165_v11 = vld [vmem:[%s21674_s29 + $0x48] sm:$0xff] }
0x2eee   :  { %v8717_v49 = vsel %vm771_vm2, %v8716_v60, -inf }
0x2eef   :  { %8718 = vmax.xlane.f32.xlu0 %v8717_v49  ;;  %v16070_v49 = vcombine.low %v9157_v42, %v9165_v11 }
0x2f05   :  { %8728 = vrot.lane.b32.xlu0 %v20716_v51, %s19358_s1 }
0x2f09   :  { %8878 = vrot.lane.b32.xlu0 %v20724_v30, %s19357_s25 }
0x2f7c   :  { %v8719_v52 = vpop.xlane.xlu0 %8718 }
0x2f7d   :  { %v8720_v24 = vsub.f32 %v8716_v60, %v8719_v52  ;;  %v16071_v52 = vcombine.high %v9157_v42, %v9165_v11  ;;  %v9162_v11 = vld [vmem:[%s21674_s29 + $0x30] sm:$0xff] }
0x2f7f   :  { %v8721_v53 = vmul.f32 1.442695, %v8720_v24  ;;  %v9172_v24 = vld [vmem:[%s21674_s29 + $0x80] sm:$0xff] }
0x2f80   :  { %v8729_v14 = vpop.permute.xlu0 %8728 }
0x2f81   :  { %18576 = vpow2.f32 %v8721_v53  ;;  %17637 = vmatpush3.msra.mxu1 %v8729_v14  ;;  %v9180_v53 = vld [vmem:[%s21674_s29 + $0xc0] sm:$0xff]  ;;  %v9173_v14 = vld [vmem:[%s21674_s29 + $0x88] sm:$0xff] }
0x2f82   :  { %17646 = vmatprep.subr.mxu1 %v19348_v1 }
0x2f84   :  { %v8879_v39 = vpop.permute.xlu0 %8878 }
0x2f8b   :  { %v18577_v54 = vpop.eup %18576 }
0x2f8c   :  { %v8723_v15 = vsel %vm771_vm2, %v18577_v54, 0.0 }
0x2f8d   :  { %8724 = vadd.xlane.f32.xlu1 %v8723_v15  ;;  %v9181_v15 = vld [vmem:[%s21674_s29 + $0xc8] sm:$0xff] }
0x2f9e   :  { %8880 = vrot.lane.b32.xlu1 %v20716_v51, %s19356_s13 }
0x301a   :  { %v8725_v55 = vpop.xlane.xlu1 %8724 }
0x301b   :  { %18578 = vrcp.f32 %v8725_v55  ;;  %v16084_v55 = vcombine.low %v9172_v24, %v9180_v53 }
0x301e   :  { %v8881_v56 = vpop.permute.xlu1 %8880 }
0x3025   :  { %v18579_v31 = vpop.eup %18578 }
0x3026   :  { %v8727_v30 = vmul.f32 %v18579_v31, %v18577_v54  ;;  %v16085_v54 = vcombine.high %v9172_v24, %v9180_v53  ;;  %v16086_v31 = vcombine.low %v9173_v14, %v9181_v15 }
0x3028   :  { %17639 = vmatmul.mubr.msk.f32.vlgmr.msra.gmra.mrb[112].mxu1 %vm771_vm2, %v8727_v30  ;;  %v16087_v30 = vcombine.high %v9173_v14, %v9181_v15  ;;  %v9178_v15 = vld [vmem:[%s21674_s29 + $0xb0] sm:$0xff] }
0x3029   :  { %17647 = vmatpush3.xpose.msk.msra.mxu1 %vm771_vm2, %v8881_v56  ;;  %17648 = vmatprep.mubr.msk.f32.mxu1 %vm19347_vm0, %v19348_v1  ;;  %v9158_v56 = vld [vmem:[%s21674_s29 + $0x10] sm:$0xff] }
0x302a   :  { %17656 = vmatprep.subr.mxu1 %v19348_v1 }
0x302c   :  { %17649 = vmatmul.mubr.msk.f32.vlgmr.msra.gmra.mrb[114].mxu1 %vm771_vm2, %v8879_v39  ;;  %v9166_v39 = vld [vmem:[%s21674_s29 + $0x50] sm:$0xff] }
0x302d   :  { %17658 = vmatprep.mubr.msk.f32.mxu1 %vm19347_vm0, %v19348_v1 }
0x30fb   :  { %v8800_v57 = vpop.f32.mrb[112].mxu1 }
0x30fc   :  { %v17640_v59 = vpop.f32.mrb[113].mxu1  ;;  %17644 = vmatmul.mubr.msk.f32.vlgmr.msra.gmra.mrb[114].mxu0 %vm771_vm2, %v8800_v57  ;;  %v16072_v57 = vcombine.low %v9158_v56, %v9166_v39 }
0x30fd   :  { %17653 = vmatprep.mubr.msk.f32.mxu0 %vm19347_vm0, %v19348_v1  ;;  %v16073_v59 = vcombine.high %v9158_v56, %v9166_v39 }
0x30ff   :  { %v8952_v62 = vpop.f32.mrb[114].mxu1 }
0x3100   :  { %v8956_v5 = vmul.f32 0.35355338, %v8952_v62  ;;  %v17650_v6 = vpop.f32.mrb[115].mxu1  ;;  %v9167_v62 = vld [vmem:[%s21674_s29 + $0x58] sm:$0xff] }
0x3101   :  { %v16075_v6 = vcombine.high %v9159_v61, %v9167_v62 }
0x3102   :  { %v8957_v33 = vsel %vm771_vm2, %v8956_v5, -inf }
0x3103   :  { %8958 = vmax.xlane.f32.xlu0 %v8957_v33 }
0x3119   :  { %8968 = vrot.lane.b32.xlu0 %v20716_v51, %s19359_s9  ;;  %v8159_v51 = vld [vmem:[%s21672_s18 + $0x18] sm:$0xff] }
0x311a   :  { %17657 = vmatpush3.msra.mxu1 %v8159_v51 }
0x311b   :  { %9477 = vmatprep.subr.bf16.mxu1 %v16071_v52  ;;  %v9171_v52 = vld [vmem:[%s21674_s29 + $0x78] sm:$0xff] }
0x3190   :  { %v8959_v8 = vpop.xlane.xlu0 %8958 }
0x3191   :  { %v8960_v34 = vsub.f32 %v8956_v5, %v8959_v8  ;;  %v16074_v5 = vcombine.low %v9159_v61, %v9167_v62 }
0x3193   :  { %v8961_v9 = vmul.f32 1.442695, %v8960_v34 }
0x3194   :  { %v8969_v12 = vpop.permute.xlu0 %8968 }
0x3195   :  { %18580 = vpow2.f32 %v8961_v9  ;;  %17652 = vmatpush3.msra.mxu0 %v8969_v12  ;;  %v16066_v12 = vld [vmem:[%s21675_s2] ss:$0 sm:$0xff] }
0x319f   :  { %v18581_v16 = vpop.eup %18580 }
0x31a0   :  { %v8963_v43 = vsel %vm771_vm2, %v18581_v16, 0.0 }
0x31a1   :  { %8964 = vadd.xlane.f32.xlu1 %v8963_v43  ;;  %v16067_v43 = vld [vmem:[%s21676_s17] ss:$0 sm:$0xff] }
0x31cf   :  { %v8873_v18 = vpop.f32.mrb[114].mxu0 }
0x31d0   :  { %v8877_v19 = vadd.f32 %v8873_v18, %v8635_v23  ;;  %v17645_v20 = vpop.f32.mrb[115].mxu0  ;;  %v9156_v23 = vld [vmem:[%s21674_s29] sm:$0xff] }
0x31d1   :  { %v16069_v60 = vcombine.high %v9156_v23, %v9164_v50  ;;  %v9182_v20 = vld [vmem:[%s21674_s29 + $0xd0] sm:$0xff] }
0x31d3   :  { %9436 = vmatprep.subr.bf16.mxu0 %v16069_v60 }
0x322e   :  { %v8965_v17 = vpop.xlane.xlu1 %8964 }
0x322f   :  { %18582 = vrcp.f32 %v8965_v17  ;;  %v9175_v17 = vld [vmem:[%s21674_s29 + $0x98] sm:$0xff] }
0x3239   :  { %v18583_v25 = vpop.eup %18582 }
0x323a   :  { %v8967_v26 = vmul.f32 %v18583_v25, %v18581_v16  ;;  %v9183_v25 = vld [vmem:[%s21674_s29 + $0xd8] sm:$0xff] }
0x323c   :  { %17654 = vmatmul.mubr.msk.f32.vlgmr.msra.gmra.mrb[116].mxu0 %vm771_vm2, %v8967_v26 }
0x323d   :  { %9468 = vmatprep.mubr.bf16.mxu0 %v19360_v10 }
0x330f   :  { %v9040_v27 = vpop.f32.mrb[116].mxu0 }
0x3310   :  { %v17655_v28 = vpop.f32.mrb[117].mxu0  ;;  %17659 = vmatmul.mubr.msk.f32.vlgmr.msra.gmra.mrb[116].mxu1 %vm771_vm2, %v9040_v27 }
0x3311   :  { %9509 = vmatprep.mubr.bf16.mxu1 %v19360_v10  ;;  %9478 = vmatpush1.bf16.msra.mxu1 %v16070_v49  ;;  %v16091_v28 = vcombine.high %v9175_v17, %v9183_v25  ;;  %v9163_v49 = vld [vmem:[%s21674_s29 + $0x38] sm:$0xff] }
0x3312   :  { %9479 = vmatprep.subr.bf16.mxu1 %v16087_v30  ;;  %v9187_v30 = vld [vmem:[%s21674_s29 + $0xf8] sm:$0xff]  ;;  %v16082_v39 = vcombine.low %v9163_v49, %v9171_v52 }
0x3315   :  { %9480 = vmatpush1.bf16.msra.mxu1 %v16086_v31  ;;  %v9179_v31 = vld [vmem:[%s21674_s29 + $0xb8] sm:$0xff] }
0x3316   :  { %9559 = vmatprep.subr.bf16.mxu1 %v16075_v6  ;;  %v16098_v62 = vcombine.low %v9179_v31, %v9187_v30  ;;  %v18253_v6 = vld [vmem:[%s21677_s7 + $0xc0] sm:$0xff]  }
0x33e3   :  { %v9113_v29 = vpop.f32.mrb[116].mxu1 }
0x33e4   :  { %v9117_v35 = vadd.f32 %v9113_v29, %v8877_v19  ;;  %v17660_v36 = vpop.f32.mrb[117].mxu1  ;;  %v9174_v19 = vld [vmem:[%s21674_s29 + $0x90] sm:$0xff]  ;;  %v9160_v29 = vld [vmem:[%s21674_s29 + $0x20] sm:$0xff] }
0x33e5   :  { %v16089_v27 = vcombine.high %v9174_v19, %v9182_v20  ;;  %v9169_v36 = vld [vmem:[%s21674_s29 + $0x68] sm:$0xff] }
0x33e6   :  { %v9125_v3 = vadd.f32 %v16065_v32, %v9117_v35  ;;  %v9168_v32 = vld [vmem:[%s21674_s29 + $0x60] sm:$0xff]  ;;  %v9161_v35 = vld [vmem:[%s21674_s29 + $0x28] sm:$0xff] }
0x33e8   :  { %v9126_v37 = vadd.f32 %v9125_v3, %v20709_v21  ;;  %v16068_v21 = vcombine.low %v9156_v23, %v9164_v50  ;;  %v16088_v3 = vcombine.low %v9174_v19, %v9182_v20  ;;  %v16076_v23 = vcombine.low %v9160_v29, %v9168_v32  ;;  %v18262_v19 = vld [vmem:[%s21677_s7 + $0x10] sm:$0xff]  }
0x33e9   :  { %v16078_v50 = vcombine.low %v9161_v35, %v9169_v36  ;;  %v18263_v20 = vld [vmem:[%s21677_s7 + $0x90] sm:$0xff]  }
0x33ea   :  { %v9127_v46 = vsel %vm606_vm1, %v9126_v37, 0.0  ;;  %9437 = vmatpush1.bf16.msra.mxu0 %v16068_v21  ;;  %v9170_v21 = vld [vmem:[%s21674_s29 + $0x70] sm:$0xff] }
0x33eb   :  { %9128 = vadd.xlane.f32.xlu1 %v9127_v46  ;;  %9438 = vmatprep.subr.bf16.mxu0 %v16085_v54  ;;  %v16077_v46 = vcombine.high %v9160_v29, %v9168_v32  ;;  %v16081_v14 = vcombine.high %v9162_v11, %v9170_v21  ;;  %v16083_v54 = vcombine.high %v9163_v49, %v9171_v52  ;;  %v18269_v29 = vld [vmem:[%s21677_s7 + $0xe0] sm:$0xff]  }
0x33ec   :  { %v16080_v56 = vcombine.low %v9162_v11, %v9170_v21  ;;  %v18270_v32 = vld [vmem:[%s21677_s7 + $0x20] sm:$0xff]  }
0x33ed   :  { %v18285_v11 = vld [vmem:[%s21677_s7 + $0x1c0] sm:$0xff]  }
0x33ee   :  { %9439 = vmatpush1.bf16.msra.mxu0 %v16084_v55  ;;  %v9186_v55 = vld [vmem:[%s21674_s29 + $0xf0] sm:$0xff]  ;;  %v20904_v21 = vld [vmem:[%s21678_s0] sm:$0xff] }
0x33ef   :  { %9518 = vmatprep.subr.bf16.mxu0 %v16073_v59  ;;  %v16097_v61 = vcombine.high %v9178_v15, %v9186_v55  ;;  %v16096_v59 = vcombine.low %v9178_v15, %v9186_v55  ;;  %v9196_v49 = vrot.slane %v20904_v21, %v20037_v44  ;;  %v9204_v52 = vrot.slane %v20904_v21, %v20040_v45 }
0x3478   :  { %v9129_v38 = vpop.xlane.xlu1 %9128 }
0x3479   :  { %v9130_v4 = vmul.f32 0.03125, %v9129_v38  ;;  %v16079_v38 = vcombine.high %v9161_v35, %v9169_v36  ;;  %v18271_v35 = vld [vmem:[%s21677_s7 + $0xa0] sm:$0xff]   ;;  %v18272_v36 = vld [vmem:[%s21677_s7 + $0x68] sm:$0xff]  }
0x347b   :  { %v9131_v41 = vsub.f32 %v9126_v37, %v9130_v4  ;;  %v16090_v37 = vcombine.low %v9175_v17, %v9183_v25  ;;  %v9176_v4 = vld [vmem:[%s21674_s29 + $0xa0] sm:$0xff]  ;;  %v18264_v17 = vld [vmem:[%s21677_s7 + $0x58] sm:$0xff]  }
0x347c   :  { %v18265_v25 = vld [vmem:[%s21677_s7 + $0xd8] sm:$0xff]  }
0x347d   :  { %v9132_v13 = vmul.f32 %v9131_v41, %v9131_v41 }
0x347f   :  { %v9133_v22 = vsel %vm606_vm1, %v9132_v13, 0.0  ;;  %v9177_v13 = vld [vmem:[%s21674_s29 + $0xa8] sm:$0xff] }
0x3480   :  { %9134 = vadd.xlane.f32.xlu1 %v9133_v22  ;;  %v9185_v22 = vld [vmem:[%s21674_s29 + $0xe8] sm:$0xff] }
0x3481   :  { %v16095_v60 = vcombine.high %v9177_v13, %v9185_v22  ;;  %v16094_v53 = vcombine.low %v9177_v13, %v9185_v22  ;;  %v18279_v13 = vld [vmem:[%s21677_s7 + $0xb0] sm:$0xff]   ;;  %v18280_v22 = vld [vmem:[%s21677_s7 + $0x78] sm:$0xff]  }
0x350d   :  { %v9135_v33 = vpop.xlane.xlu1 %9134 }
0x350e   :  { %v9136_v8 = vmul.f32 0.03125, %v9135_v33  ;;  %v18254_v33 = vld [vmem:[%s21677_s7] sm:$0xff]  }
0x3510   :  { %v9137_v34 = vadd.f32 1e-05, %v9136_v8  ;;  %v18255_v8 = vld [vmem:[%s21677_s7 + $0x80] sm:$0xff]  }
0x3512   :  { %18584 = vrsqrt.f32 %v9137_v34  ;;  %v18256_v34 = vld [vmem:[%s21677_s7 + $0x48] sm:$0xff]  }
0x351c   :  { %v18585_v9 = vpop.eup %18584 }
0x351d   :  { %v9139_v16 = vmul.f32 %v18585_v9, %v9131_v41  ;;  %v9184_v41 = vld [vmem:[%s21674_s29 + $0xe0] sm:$0xff]  ;;  %v18257_v9 = vld [vmem:[%s21677_s7 + $0xc8] sm:$0xff]  }
0x351e   :  { %v16093_v42 = vcombine.high %v9176_v4, %v9184_v41  ;;  %v16092_v24 = vcombine.low %v9176_v4, %v9184_v41  ;;  %v18277_v4 = vld [vmem:[%s21677_s7 + $0xf0] sm:$0xff]  }
0x351f   :  { %v9147_v18 = vmul.f32 %v16066_v12, %v9139_v16  ;;  %v18258_v12 = vld [vmem:[%s21677_s7 + $0x8] sm:$0xff]   ;;  %v18278_v41 = vld [vmem:[%s21677_s7 + $0x30] sm:$0xff]  }
0x3520   :  { %v18259_v16 = vld [vmem:[%s21677_s7 + $0x88] sm:$0xff]  }
0x3521   :  { %v20825_v26 = vadd.f32 %v16067_v43, %v9147_v18  ;;  %v18260_v43 = vld [vmem:[%s21677_s7 + $0x50] sm:$0xff]  }
0x3522   :  { %v18261_v18 = vld [vmem:[%s21677_s7 + $0xd0] sm:$0xff]  }
0x3523   :  { %v20829_v51 = vpack.c.bf16 %v20825_v26, %v20825_v26 }
0x3525   :  { %16100 = vmatmul.mubr.msk.bf16.vlgmr.msra.gmra.mrb[120].mxu0 %vm606_vm1, %v20829_v51  ;;  %16101 = vmatmul.mubr.msk.bf16.vlgmr.msra.gmra.mrb[120].mxu1 %vm606_vm1, %v20829_v51 }
0x3526   :  { %9519 = vmatpush1.bf16.msra.mxu0 %v16072_v57  ;;  %9560 = vmatpush1.bf16.msra.mxu1 %v16074_v5  ;;  %v16099_v57 = vcombine.high %v9179_v31, %v9187_v30  ;;  %v18252_v5 = vld [vmem:[%s21677_s7 + $0x40] sm:$0xff]  }
0x3527   :  { %9520 = vmatprep.subr.bf16.mxu0 %v16089_v27  ;;  %9561 = vmatprep.subr.bf16.mxu1 %v16091_v28  ;;  %v18267_v27 = vld [vmem:[%s21677_s7 + $0x98] sm:$0xff]   ;;  %v18268_v28 = vld [vmem:[%s21677_s7 + $0x60] sm:$0xff]  }
0x3528   :  { %9550 = vmatprep.mubr.bf16.mxu0 %v19360_v10  ;;  %9591 = vmatprep.mubr.bf16.mxu1 %v19360_v10 }
0x352a   :  { %9521 = vmatpush1.bf16.msra.mxu0 %v16088_v3  ;;  %9562 = vmatpush1.bf16.msra.mxu1 %v16090_v37  ;;  %v18273_v3 = vld [vmem:[%s21677_s7 + $0xe8] sm:$0xff]  }
0x352b   :  { %9600 = vmatprep.subr.bf16.mxu0 %v16077_v46  ;;  %9641 = vmatprep.subr.bf16.mxu1 %v16079_v38  ;;  %v18274_v37 = vld [vmem:[%s21677_s7 + $0x28] sm:$0xff]   ;;  %v18276_v38 = vld [vmem:[%s21677_s7 + $0x70] sm:$0xff]  }
0x352c   :  { %v18275_v46 = vld [vmem:[%s21677_s7 + $0xa8] sm:$0xff]  }
0x352d   :  { %16102 = vmatmul.mubr.msk.bf16.vlgmr.msra.gmra.mrb[124].mxu0 %vm606_vm1, %v20829_v51  ;;  %16103 = vmatmul.mubr.msk.bf16.vlgmr.msra.gmra.mrb[124].mxu1 %vm606_vm1, %v20829_v51 }
0x352e   :  { %9601 = vmatpush1.bf16.msra.mxu0 %v16076_v23  ;;  %9642 = vmatpush1.bf16.msra.mxu1 %v16078_v50  ;;  %v18281_v23 = vld [vmem:[%s21677_s7 + $0xf8] sm:$0xff]  }
0x352f   :  { %9602 = vmatprep.subr.bf16.mxu0 %v16093_v42  ;;  %9643 = vmatprep.subr.bf16.mxu1 %v16095_v60  ;;  %v18282_v50 = vld [vmem:[%s21677_s7 + $0x38] sm:$0xff]   ;;  %v18284_v60 = vld [vmem:[%s21677_s7 + $0x140] sm:$0xff]  }
0x3530   :  { %9632 = vmatprep.mubr.bf16.mxu0 %v19360_v10  ;;  %9673 = vmatprep.mubr.bf16.mxu1 %v19360_v10  ;;  %v18283_v42 = vld [vmem:[%s21677_s7 + $0xb8] sm:$0xff]  }
0x3532   :  { %9603 = vmatpush1.bf16.msra.mxu0 %v16092_v24  ;;  %9644 = vmatpush1.bf16.msra.mxu1 %v16094_v53  ;;  %v9200_v24 = vrot.slane %v20904_v21, %v20046_v47  ;;  %v9208_v53 = vrot.slane %v20904_v21, %v20049_v48 }
0x3533   :  { %9682 = vmatprep.subr.bf16.mxu0 %v16081_v14  ;;  %9723 = vmatprep.subr.bf16.mxu1 %v16083_v54 }
0x3535   :  { %16104 = vmatmul.mubr.msk.bf16.vlgmr.msra.gmra.mrb[128].mxu0 %vm606_vm1, %v20829_v51  ;;  %16105 = vmatmul.mubr.msk.bf16.vlgmr.msra.gmra.mrb[128].mxu1 %vm606_vm1, %v20829_v51 }
0x3536   :  { %9683 = vmatpush1.bf16.msra.mxu0 %v16080_v56  ;;  %9724 = vmatpush1.bf16.msra.mxu1 %v16082_v39 }
0x3537   :  { %9684 = vmatprep.subr.bf16.mxu0 %v16097_v61  ;;  %9725 = vmatprep.subr.bf16.mxu1 %v16099_v57 }
0x3538   :  { %9714 = vmatprep.mubr.bf16.mxu0 %v19360_v10  ;;  %9755 = vmatprep.mubr.bf16.mxu1 %v19360_v10 }
0x353a   :  { %9685 = vmatpush1.bf16.msra.mxu0 %v16096_v59  ;;  %9726 = vmatpush1.bf16.msra.mxu1 %v16098_v62 }
0x353b   :  { %16935 = vmatprep.subr.bf16.mxu0 %v18252_v5  ;;  %16957 = vmatprep.subr.bf16.mxu1 %v18253_v6 }
0x353d   :  { %16106 = vmatmul.mubr.msk.bf16.vlgmr.msra.gmra.mrb[132].mxu0 %vm606_vm1, %v20829_v51  ;;  %16107 = vmatmul.mubr.msk.bf16.vlgmr.msra.gmra.mrb[132].mxu1 %vm606_vm1, %v20829_v51  ;;  %v18266_v51 = vld [vmem:[%s21677_s7 + $0x18] sm:$0xff]  }
0x353e   :  { %16936 = vmatpush3.bf16.msra.mxu0 %v18254_v33  ;;  %16958 = vmatpush3.bf16.msra.mxu1 %v18255_v8 }
0x353f   :  { %16937 = vmatprep.subr.bf16.mxu0 %v18256_v34  ;;  %16959 = vmatprep.subr.bf16.mxu1 %v18257_v9 }
0x3542   :  { %16938 = vmatpush3.bf16.msra.mxu0 %v18258_v12  ;;  %16960 = vmatpush3.bf16.msra.mxu1 %v18259_v16  ;;  %v9216_v12 = vrot.slane %v20904_v21, %v20060_v63  ;;  %v9224_v16 = vrot.slane %v20904_v21, %v20063_v2 }
0x3543   :  { %16939 = vmatprep.subr.bf16.mxu0 %v18260_v43  ;;  %16961 = vmatprep.subr.bf16.mxu1 %v18261_v18  ;;  %v18286_v43 = vld [vmem:[%s21677_s7 + $0x100] sm:$0xff]  }
0x3544   :  { %v18287_v18 = vld [vmem:[%s21677_s7 + $0x180] sm:$0xff]  }
0x3546   :  { %16940 = vmatpush3.bf16.msra.mxu0 %v18262_v19  ;;  %16962 = vmatpush3.bf16.msra.mxu1 %v18263_v20 }
0x3547   :  { %16941 = vmatprep.subr.bf16.mxu0 %v18264_v17  ;;  %16963 = vmatprep.subr.bf16.mxu1 %v18265_v25  ;;  %v18288_v17 = vld [vmem:[%s21677_s7 + $0x148] sm:$0xff]  }
0x3548   :  { %v18289_v25 = vld [vmem:[%s21677_s7 + $0x1c8] sm:$0xff]  }
0x354a   :  { %16942 = vmatpush3.bf16.msra.mxu0 %v18266_v51  ;;  %16964 = vmatpush3.bf16.msra.mxu1 %v18267_v27 }
0x354b   :  { %16943 = vmatprep.subr.bf16.mxu0 %v18268_v28  ;;  %16965 = vmatprep.subr.bf16.mxu1 %v18269_v29 }
0x354e   :  { %16944 = vmatpush3.bf16.msra.mxu0 %v18270_v32  ;;  %16966 = vmatpush3.bf16.msra.mxu1 %v18271_v35 }
0x354f   :  { %16945 = vmatprep.subr.bf16.mxu0 %v18272_v36  ;;  %16967 = vmatprep.subr.bf16.mxu1 %v18273_v3 }
0x3552   :  { %16946 = vmatpush3.bf16.msra.mxu0 %v18274_v37  ;;  %16968 = vmatpush3.bf16.msra.mxu1 %v18275_v46  ;;  %v18290_v37 = vld [vmem:[%s21677_s7 + $0x108] sm:$0xff]  }
0x3553   :  { %16947 = vmatprep.subr.bf16.mxu0 %v18276_v38  ;;  %16969 = vmatprep.subr.bf16.mxu1 %v18277_v4  ;;  %v18291_v46 = vld [vmem:[%s21677_s7 + $0x188] sm:$0xff]  }
0x3556   :  { %16948 = vmatpush3.bf16.msra.mxu0 %v18278_v41  ;;  %16970 = vmatpush3.bf16.msra.mxu1 %v18279_v13  ;;  %v18292_v41 = vld [vmem:[%s21677_s7 + $0x150] sm:$0xff]  }
0x3557   :  { %16949 = vmatprep.subr.bf16.mxu0 %v18280_v22  ;;  %16971 = vmatprep.subr.bf16.mxu1 %v18281_v23  ;;  %v18293_v13 = vld [vmem:[%s21677_s7 + $0x1d0] sm:$0xff]  }
0x355a   :  { %16950 = vmatpush3.bf16.msra.mxu0 %v18282_v50  ;;  %16972 = vmatpush3.bf16.msra.mxu1 %v18283_v42 }
0x355b   :  { %16979 = vmatprep.subr.bf16.mxu0 %v18284_v60  ;;  %17001 = vmatprep.subr.bf16.mxu1 %v18285_v11  ;;  %v18294_v60 = vld [vmem:[%s21677_s7 + $0x110] sm:$0xff]  }
0x355c   :  { %v18295_v11 = vld [vmem:[%s21677_s7 + $0x190] sm:$0xff]  }
0x35f8   :  { %v9470_v14 = vpop.f32.mrb[120].mxu0  ;;  %v9511_v54 = vpop.f32.mrb[120].mxu1 }
0x35f9   :  { %v9471_v15 = vadd.f32 %v9470_v14, %v9196_v49  ;;  %v9512_v55 = vadd.f32 %v9511_v54, %v9204_v52  ;;  %v9472_v31 = vpop.f32.mrb[121].mxu0  ;;  %v9513_v30 = vpop.f32.mrb[121].mxu1  ;;  %v18296_v49 = vld [vmem:[%s21677_s7 + $0x158] sm:$0xff]  }
0x35fa   :  { %v9473_v56 = vadd.f32 %v9472_v31, %v9200_v24  ;;  %v9514_v39 = vadd.f32 %v9513_v30, %v9208_v53  ;;  %v9474_v61 = vpop.f32.mrb[122].mxu0  ;;  %v9515_v57 = vpop.f32.mrb[122].mxu1  ;;  %v18297_v52 = vld [vmem:[%s21677_s7 + $0x1d8] sm:$0xff]  }
0x35fb   :  { %v9764_v59 = vmax.f32 %v9471_v15, 0.0  ;;  %v9766_v62 = vmax.f32 %v9512_v55, 0.0  ;;  %v9475_v5 = vpop.f32.mrb[123].mxu0  ;;  %v9516_v6 = vpop.f32.mrb[123].mxu1  ;;  %v18298_v31 = vld [vmem:[%s21677_s7 + $0x118] sm:$0xff]   ;;  %v18300_v61 = vld [vmem:[%s21677_s7 + $0x160] sm:$0xff]  }
0x35fc   :  { %v9765_v33 = vmax.f32 %v9473_v56, 0.0  ;;  %v9767_v8 = vmax.f32 %v9514_v39, 0.0  ;;  %v18299_v30 = vld [vmem:[%s21677_s7 + $0x198] sm:$0xff]   ;;  %v18301_v57 = vld [vmem:[%s21677_s7 + $0x1e0] sm:$0xff]  }
0x35fd   :  { %v10036_v19 = vpack.c.bf16 %v9764_v59, %v9764_v59  ;;  %v10038_v20 = vpack.c.bf16 %v9766_v62, %v9766_v62  ;;  %v20943_v59 = vld [vmem:[%s21678_s0 + $0x8] sm:$0xff]  ;;  %v18302_v5 = vld [vmem:[%s21677_s7 + $0x120] sm:$0xff]  }
0x35fe   :  { %v10037_v34 = vpack.c.bf16 %v9765_v33, %v9765_v33  ;;  %v10039_v9 = vpack.c.bf16 %v9767_v8, %v9767_v8  ;;  %v9252_v62 = vrot.slane %v20943_v59, %v20092_v58  ;;  %v18303_v6 = vld [vmem:[%s21677_s7 + $0x1a0] sm:$0xff]   ;;  %v18304_v33 = vld [vmem:[%s21677_s7 + $0x168] sm:$0xff]  }
0x35ff   :  { %v18305_v8 = vld [vmem:[%s21677_s7 + $0x1e8] sm:$0xff]  }
0x3600   :  { %v20922_v51 = vpop.f32.mrb[124].mxu0  ;;  %v20924_v27 = vpop.f32.mrb[124].mxu1  ;;  %10859 = vmatprep.mubr.bf16.mxu0 %v10037_v34  ;;  %10899 = vmatprep.mubr.bf16.mxu1 %v10039_v9 }
0x3601   :  { %v9554_v28 = vpop.f32.mrb[125].mxu0  ;;  %v9595_v29 = vpop.f32.mrb[125].mxu1  ;;  %10860 = vmatmul.mubr.bf16.vlgmr.msra.gmra.mrb[136].mxu0 %v10036_v19  ;;  %10900 = vmatmul.mubr.bf16.vlgmr.msra.gmra.mrb[136].mxu1 %v10038_v20  ;;  %v18306_v20 = vld [vmem:[%s21677_s7 + $0x128] sm:$0xff]  }
0x3602   :  { %v9555_v32 = vadd.f32 %v9554_v28, %v9216_v12  ;;  %v9596_v35 = vadd.f32 %v9595_v29, %v9224_v16  ;;  %16980 = vmatpush3.bf16.msra.mxu0 %v18286_v43  ;;  %17002 = vmatpush3.bf16.msra.mxu1 %v18287_v18  ;;  %v9556_v36 = vpop.f32.mrb[126].mxu0  ;;  %v9597_v3 = vpop.f32.mrb[126].mxu1  ;;  %v9220_v28 = vrot.slane %v20904_v21, %v20092_v58 }
0x3603   :  { %v9557_v38 = vpop.f32.mrb[127].mxu0  ;;  %v9598_v4 = vpop.f32.mrb[127].mxu1  ;;  %16981 = vmatprep.subr.bf16.mxu0 %v18288_v17  ;;  %17003 = vmatprep.subr.bf16.mxu1 %v18289_v25  ;;  %v18307_v17 = vld [vmem:[%s21677_s7 + $0x1a8] sm:$0xff]   ;;  %v9212_v25 = vrot.slane %v20904_v21, %v20104_v7  ;;  %v18309_v36 = vld [vmem:[%s21677_s7 + $0x1f0] sm:$0xff]   ;;  %v9232_v3 = vrot.slane %v20943_v59, %v20046_v47 }
0x3604   :  { %v9769_v22 = vmax.f32 %v9555_v32, 0.0  ;;  %v9771_v23 = vmax.f32 %v9596_v35, 0.0  ;;  %v18308_v35 = vld [vmem:[%s21677_s7 + $0x170] sm:$0xff]   ;;  %v9594_v4 = vadd.f32 %v20924_v27, %v9220_v28  ;;  %v18317_v27 = vld [vmem:[%s21677_s7 + $0x2c0] sm:$0xff]  }
0x3605   :  { %v18311_v21 = vld [vmem:[%s21677_s7 + $0x1b0] sm:$0xff]   ;;  %v9553_v38 = vadd.f32 %v20922_v51, %v9212_v25  ;;  %v18316_v51 = vld [vmem:[%s21677_s7 + $0x240] sm:$0xff]  }
0x3606   :  { %v10041_v50 = vpack.c.bf16 %v9769_v22, %v9769_v22  ;;  %v10043_v42 = vpack.c.bf16 %v9771_v23, %v9771_v23  ;;  %16982 = vmatpush3.bf16.msra.mxu0 %v18290_v37  ;;  %17004 = vmatpush3.bf16.msra.mxu1 %v18291_v46  ;;  %v9240_v37 = vrot.slane %v20943_v59, %v20049_v48  ;;  %v18310_v46 = vld [vmem:[%s21677_s7 + $0x130] sm:$0xff]   ;;  %v18334_v25 = vld [vmem:[%s21677_s7 + $0x220] sm:$0xff]  }
0x3607   :  { %16983 = vmatprep.subr.bf16.mxu0 %v18292_v41  ;;  %17005 = vmatprep.subr.bf16.mxu1 %v18293_v13  ;;  %v18312_v41 = vld [vmem:[%s21677_s7 + $0x178] sm:$0xff]   ;;  %v18335_v28 = vld [vmem:[%s21677_s7 + $0x2a0] sm:$0xff]  }
0x3608   :  { %v20934_v24 = vpop.f32.mrb[128].mxu0  ;;  %v20936_v53 = vpop.f32.mrb[128].mxu1  ;;  %10939 = vmatprep.mubr.bf16.mxu0 %v10041_v50  ;;  %10979 = vmatprep.mubr.bf16.mxu1 %v10043_v42  ;;  %v18313_v13 = vld [vmem:[%s21677_s7 + $0x1f8] sm:$0xff]  }
0x3609   :  { %v9636_v14 = vpop.f32.mrb[129].mxu0  ;;  %v9677_v54 = vpop.f32.mrb[129].mxu1  ;;  %v18314_v50 = vld [vmem:[%s21677_s7 + $0x138] sm:$0xff]  }
0x360a   :  { %16984 = vmatpush3.bf16.msra.mxu0 %v18294_v60  ;;  %17006 = vmatpush3.bf16.msra.mxu1 %v18295_v11  ;;  %v9638_v15 = vpop.f32.mrb[130].mxu0  ;;  %v9679_v55 = vpop.f32.mrb[130].mxu1  ;;  %v9637_v22 = vadd.f32 %v9636_v14, %v9232_v3  ;;  %v9678_v23 = vadd.f32 %v9677_v54, %v9240_v37  ;;  %v18315_v42 = vld [vmem:[%s21677_s7 + $0x1b8] sm:$0xff]   ;;  %v9768_v60 = vmax.f32 %v9553_v38, 0.0  ;;  %v9770_v11 = vmax.f32 %v9594_v4, 0.0  ;;  %v18318_v14 = vld [vmem:[%s21677_s7 + $0x200] sm:$0xff]  }
0x360b   :  { %v9639_v56 = vpop.f32.mrb[131].mxu0  ;;  %v9680_v39 = vpop.f32.mrb[131].mxu1  ;;  %16985 = vmatprep.subr.bf16.mxu0 %v18296_v49  ;;  %17007 = vmatprep.subr.bf16.mxu1 %v18297_v52  ;;  %v18319_v55 = vld [vmem:[%s21677_s7 + $0x280] sm:$0xff]   ;;  %v18339_v3 = vld [vmem:[%s21677_s7 + $0x2a8] sm:$0xff]   ;;  %v18340_v37 = vld [vmem:[%s21677_s7 + $0x270] sm:$0xff]   ;;  %v9248_v38 = vrot.slane %v20943_v59, %v20060_v63  ;;  %v9256_v4 = vrot.slane %v20943_v59, %v20063_v2 }
0x360c   :  { %v9773_v49 = vmax.f32 %v9637_v22, 0.0  ;;  %v9775_v52 = vmax.f32 %v9678_v23, 0.0  ;;  %v10040_v54 = vpack.c.bf16 %v9768_v60, %v9768_v60  ;;  %v10042_v15 = vpack.c.bf16 %v9770_v11, %v9770_v11  ;;  %v18321_v56 = vld [vmem:[%s21677_s7 + $0x2c8] sm:$0xff]   ;;  %v18343_v22 = vld [vmem:[%s21677_s7 + $0x2b0] sm:$0xff]   ;;  %v18344_v23 = vld [vmem:[%s21677_s7 + $0x278] sm:$0xff]  }
0x360e   :  { %16986 = vmatpush3.bf16.msra.mxu0 %v18298_v31  ;;  %17008 = vmatpush3.bf16.msra.mxu1 %v18299_v30  ;;  %v10045_v31 = vpack.c.bf16 %v9773_v49, %v9773_v49  ;;  %v18320_v30 = vld [vmem:[%s21677_s7 + $0x248] sm:$0xff]   ;;  %v10047_v39 = vpack.c.bf16 %v9775_v52, %v9775_v52  ;;  %v18348_v49 = vld [vmem:[%s21677_s7 + $0x340] sm:$0xff]  }
0x360f   :  { %16987 = vmatprep.subr.bf16.mxu0 %v18300_v61  ;;  %17009 = vmatprep.subr.bf16.mxu1 %v18301_v57  ;;  %v18322_v61 = vld [vmem:[%s21677_s7 + $0x208] sm:$0xff]  }
0x3610   :  { %v20951_v34 = vpop.f32.mrb[132].mxu0  ;;  %v9757_v9 = vpop.f32.mrb[132].mxu1  ;;  %v18323_v57 = vld [vmem:[%s21677_s7 + $0x288] sm:$0xff]  }
0x3611   :  { %v20953_v12 = vadd.f32 %v9757_v9, %v9252_v62  ;;  %v20955_v16 = vpop.f32.mrb[133].mxu0  ;;  %v20957_v43 = vpop.f32.mrb[133].mxu1  ;;  %v18324_v62 = vld [vmem:[%s21677_s7 + $0x250] sm:$0xff]   ;;  %v18329_v9 = vld [vmem:[%s21677_s7 + $0x2d8] sm:$0xff]  }
0x3612   :  { %16988 = vmatpush3.bf16.msra.mxu0 %v18302_v5  ;;  %17010 = vmatpush3.bf16.msra.mxu1 %v18303_v6  ;;  %v9720_v18 = vpop.f32.mrb[134].mxu0  ;;  %v9761_v19 = vpop.f32.mrb[134].mxu1  ;;  %v18325_v5 = vld [vmem:[%s21677_s7 + $0x2d0] sm:$0xff]   ;;  %v9719_v60 = vadd.f32 %v20955_v16, %v9248_v38  ;;  %v9760_v11 = vadd.f32 %v20957_v43, %v9256_v4  ;;  %v18350_v16 = vld [vmem:[%s21677_s7 + $0x300] sm:$0xff]  }
0x3613   :  { %v9721_v29 = vpop.f32.mrb[135].mxu0  ;;  %v9762_v32 = vpop.f32.mrb[135].mxu1  ;;  %16989 = vmatprep.subr.bf16.mxu0 %v18304_v33  ;;  %17011 = vmatprep.subr.bf16.mxu1 %v18305_v8  ;;  %v18326_v6 = vld [vmem:[%s21677_s7 + $0x210] sm:$0xff]   ;;  %v18328_v8 = vld [vmem:[%s21677_s7 + $0x258] sm:$0xff]   ;;  %v18351_v43 = vld [vmem:[%s21677_s7 + $0x380] sm:$0xff]  }
0x3614   :  { %v18327_v33 = vld [vmem:[%s21677_s7 + $0x290] sm:$0xff]   ;;  %v18330_v18 = vld [vmem:[%s21677_s7 + $0x218] sm:$0xff]   ;;  %v18336_v29 = vld [vmem:[%s21677_s7 + $0x268] sm:$0xff]  }
0x3615   :  { %v18331_v19 = vld [vmem:[%s21677_s7 + $0x298] sm:$0xff]   ;;  %v18337_v32 = vld [vmem:[%s21677_s7 + $0x2e8] sm:$0xff]   ;;  %v18375_v4 = vld [vmem:[%s21677_s7 + $0x3b0] sm:$0xff]  }
0x3616   :  { %16990 = vmatpush3.bf16.msra.mxu0 %v18306_v20  ;;  %17012 = vmatpush3.bf16.msra.mxu1 %v18307_v17  ;;  %v18332_v20 = vld [vmem:[%s21677_s7 + $0x260] sm:$0xff]  }
0x3617   :  { %16991 = vmatprep.subr.bf16.mxu0 %v18308_v35  ;;  %17013 = vmatprep.subr.bf16.mxu1 %v18309_v36  ;;  %v18333_v17 = vld [vmem:[%s21677_s7 + $0x2e0] sm:$0xff]   ;;  %v18338_v35 = vld [vmem:[%s21677_s7 + $0x228] sm:$0xff]   ;;  %v9228_v36 = vrot.slane %v20943_v59, %v20037_v44 }
0x361a   :  { %16992 = vmatpush3.bf16.msra.mxu0 %v18310_v46  ;;  %17014 = vmatpush3.bf16.msra.mxu1 %v18311_v21  ;;  %v9236_v46 = vrot.slane %v20943_v59, %v20040_v45  ;;  %v18341_v21 = vld [vmem:[%s21677_s7 + $0x2f0] sm:$0xff]  }
0x361b   :  { %16993 = vmatprep.subr.bf16.mxu0 %v18312_v41  ;;  %17015 = vmatprep.subr.bf16.mxu1 %v18313_v13  ;;  %v18342_v41 = vld [vmem:[%s21677_s7 + $0x230] sm:$0xff]   ;;  %v9635_v13 = vadd.f32 %v20934_v24, %v9228_v36  ;;  %v18347_v24 = vld [vmem:[%s21677_s7 + $0x2b8] sm:$0xff]   ;;  %v9244_v36 = vrot.slane %v20943_v59, %v20104_v7 }
0x361c   :  { %v18378_v59 = vld [vmem:[%s21677_s7 + $0x338] sm:$0xff]  }
0x361d   :  { %v9717_v38 = vadd.f32 %v20951_v34, %v9244_v36 }
0x361e   :  { %16994 = vmatpush3.bf16.msra.mxu0 %v18314_v50  ;;  %17016 = vmatpush3.bf16.msra.mxu1 %v18315_v42  ;;  %v9676_v50 = vadd.f32 %v20936_v53, %v9236_v46  ;;  %v18345_v42 = vld [vmem:[%s21677_s7 + $0x2f8] sm:$0xff]   ;;  %v18349_v53 = vld [vmem:[%s21677_s7 + $0x3c0] sm:$0xff]   ;;  %v18373_v46 = vld [vmem:[%s21677_s7 + $0x3f0] sm:$0xff]  }
0x361f   :  { %17023 = vmatprep.subr.bf16.mxu0 %v18316_v51  ;;  %17045 = vmatprep.subr.bf16.mxu1 %v18317_v27  ;;  %v18346_v51 = vld [vmem:[%s21677_s7 + $0x238] sm:$0xff]   ;;  %v9772_v27 = vmax.f32 %v9635_v13, 0.0 }
0x3620   :  { %v9774_v52 = vmax.f32 %v9676_v50, 0.0  ;;  %v18377_v13 = vld [vmem:[%s21677_s7 + $0x3f8] sm:$0xff]   ;;  %v9778_v50 = vmax.f32 %v20953_v12, 0.0  ;;  %v16108_v12 = vld [vmem:[%s21679_s10] ss:$0 sm:$0xff] }
0x3621   :  { %10940 = vmatmul.mubr.bf16.vlgmr.msra.gmra.mrb[140].mxu0 %v10040_v54  ;;  %10980 = vmatmul.mubr.bf16.vlgmr.msra.gmra.mrb[140].mxu1 %v10042_v15  ;;  %v9779_v54 = vmax.f32 %v9760_v11, 0.0  ;;  %v10044_v15 = vpack.c.bf16 %v9772_v27, %v9772_v27 }
0x3622   :  { %17024 = vmatpush3.bf16.msra.mxu0 %v18318_v14  ;;  %11019 = vmatprep.mubr.bf16.mxu0 %v10045_v31  ;;  %v9777_v14 = vmax.f32 %v9719_v60, 0.0  ;;  %v18352_v31 = vld [vmem:[%s21677_s7 + $0x348] sm:$0xff]   ;;  %v10050_v34 = vpack.c.bf16 %v9778_v50, %v9778_v50 }
0x3623   :  { %17046 = vmatpush3.bf16.msra.mxu1 %v18319_v55  ;;  %11059 = vmatprep.mubr.bf16.mxu1 %v10047_v39  ;;  %v10046_v55 = vpack.c.bf16 %v9774_v52, %v9774_v52  ;;  %v10051_v39 = vpack.c.bf16 %v9779_v54, %v9779_v54 }
0x3624   :  { %17025 = vmatprep.subr.bf16.mxu0 %v18320_v30  ;;  %17047 = vmatprep.subr.bf16.mxu1 %v18321_v56  ;;  %v10049_v30 = vpack.c.bf16 %v9777_v14, %v9777_v14  ;;  %v18353_v56 = vld [vmem:[%s21677_s7 + $0x3c8] sm:$0xff]  }
0x3626   :  { %17026 = vmatpush3.bf16.msra.mxu0 %v18322_v61  ;;  %v18354_v61 = vld [vmem:[%s21677_s7 + $0x308] sm:$0xff]  }
0x3627   :  { %17048 = vmatpush3.bf16.msra.mxu1 %v18323_v57  ;;  %17027 = vmatprep.subr.bf16.mxu0 %v18324_v62  ;;  %v18355_v57 = vld [vmem:[%s21677_s7 + $0x388] sm:$0xff]   ;;  %v18356_v62 = vld [vmem:[%s21677_s7 + $0x350] sm:$0xff]  }
0x3628   :  { %17049 = vmatprep.subr.bf16.mxu1 %v18325_v5  ;;  %v18357_v5 = vld [vmem:[%s21677_s7 + $0x3d0] sm:$0xff]  }
0x362a   :  { %17028 = vmatpush3.bf16.msra.mxu0 %v18326_v6  ;;  %v18358_v6 = vld [vmem:[%s21677_s7 + $0x310] sm:$0xff]  }
0x362b   :  { %17050 = vmatpush3.bf16.msra.mxu1 %v18327_v33  ;;  %17029 = vmatprep.subr.bf16.mxu0 %v18328_v8  ;;  %v18359_v33 = vld [vmem:[%s21677_s7 + $0x390] sm:$0xff]   ;;  %v18360_v8 = vld [vmem:[%s21677_s7 + $0x358] sm:$0xff]  }
0x362c   :  { %17051 = vmatprep.subr.bf16.mxu1 %v18329_v9  ;;  %v18361_v9 = vld [vmem:[%s21677_s7 + $0x3d8] sm:$0xff]  }
0x362e   :  { %17030 = vmatpush3.bf16.msra.mxu0 %v18330_v18  ;;  %v18362_v18 = vld [vmem:[%s21677_s7 + $0x318] sm:$0xff]  }
0x362f   :  { %17052 = vmatpush3.bf16.msra.mxu1 %v18331_v19  ;;  %17031 = vmatprep.subr.bf16.mxu0 %v18332_v20  ;;  %v18363_v19 = vld [vmem:[%s21677_s7 + $0x398] sm:$0xff]   ;;  %v18364_v20 = vld [vmem:[%s21677_s7 + $0x360] sm:$0xff]  }
0x3630   :  { %17053 = vmatprep.subr.bf16.mxu1 %v18333_v17  ;;  %v18365_v17 = vld [vmem:[%s21677_s7 + $0x3e0] sm:$0xff]  }
0x3632   :  { %17032 = vmatpush3.bf16.msra.mxu0 %v18334_v25  ;;  %v18366_v25 = vld [vmem:[%s21677_s7 + $0x320] sm:$0xff]  }
0x3633   :  { %17054 = vmatpush3.bf16.msra.mxu1 %v18335_v28  ;;  %17033 = vmatprep.subr.bf16.mxu0 %v18336_v29  ;;  %v18367_v28 = vld [vmem:[%s21677_s7 + $0x3a0] sm:$0xff]   ;;  %v18368_v29 = vld [vmem:[%s21677_s7 + $0x368] sm:$0xff]  }
0x3634   :  { %17055 = vmatprep.subr.bf16.mxu1 %v18337_v32  ;;  %v18369_v32 = vld [vmem:[%s21677_s7 + $0x3e8] sm:$0xff]  }
0x3636   :  { %17034 = vmatpush3.bf16.msra.mxu0 %v18338_v35  ;;  %v18370_v35 = vld [vmem:[%s21677_s7 + $0x328] sm:$0xff]  }
0x3637   :  { %17056 = vmatpush3.bf16.msra.mxu1 %v18339_v3  ;;  %17035 = vmatprep.subr.bf16.mxu0 %v18340_v37  ;;  %v18371_v3 = vld [vmem:[%s21677_s7 + $0x3a8] sm:$0xff]   ;;  %v18372_v37 = vld [vmem:[%s21677_s7 + $0x370] sm:$0xff]  }
0x3638   :  { %17057 = vmatprep.subr.bf16.mxu1 %v18341_v21  ;;  %v18374_v21 = vld [vmem:[%s21677_s7 + $0x330] sm:$0xff]  }
0x363a   :  { %17036 = vmatpush3.bf16.msra.mxu0 %v18342_v41  ;;  %v18376_v41 = vld [vmem:[%s21677_s7 + $0x378] sm:$0xff]  }
0x363b   :  { %17058 = vmatpush3.bf16.msra.mxu1 %v18343_v22  ;;  %17037 = vmatprep.subr.bf16.mxu0 %v18344_v23  ;;  %v9776_v22 = vmax.f32 %v9717_v38, 0.0  ;;  %v18379_v23 = vld [vmem:[%s21677_s7 + $0x3b8] sm:$0xff]  }
0x363c   :  { %17059 = vmatprep.subr.bf16.mxu1 %v18345_v42 }
0x363d   :  { %v10048_v42 = vpack.c.bf16 %v9776_v22, %v9776_v22 }
0x363e   :  { %17038 = vmatpush3.bf16.msra.mxu0 %v18346_v51 }
0x363f   :  { %17060 = vmatpush3.bf16.msra.mxu1 %v18347_v24  ;;  %17067 = vmatprep.subr.bf16.mxu0 %v18348_v49 }
0x3640   :  { %17089 = vmatprep.subr.bf16.mxu1 %v18349_v53 }
0x3641   :  { %11020 = vmatmul.mubr.bf16.vlgmr.msra.gmra.mrb[144].mxu0 %v10044_v15 }
0x3642   :  { %11060 = vmatmul.mubr.bf16.vlgmr.msra.gmra.mrb[144].mxu1 %v10046_v55  ;;  %17068 = vmatpush3.bf16.msra.mxu0 %v18350_v16 }
0x3643   :  { %11099 = vmatprep.mubr.bf16.mxu0 %v10049_v30  ;;  %17090 = vmatpush3.bf16.msra.mxu1 %v18351_v43 }
0x3644   :  { %11139 = vmatprep.mubr.bf16.mxu1 %v10051_v39  ;;  %17069 = vmatprep.subr.bf16.mxu0 %v18352_v31 }
0x3645   :  { %17091 = vmatprep.subr.bf16.mxu1 %v18353_v56 }
0x3646   :  { %17070 = vmatpush3.bf16.msra.mxu0 %v18354_v61 }
0x3647   :  { %17092 = vmatpush3.bf16.msra.mxu1 %v18355_v57  ;;  %17071 = vmatprep.subr.bf16.mxu0 %v18356_v62 }
0x3648   :  { %17093 = vmatprep.subr.bf16.mxu1 %v18357_v5 }
0x364a   :  { %17072 = vmatpush3.bf16.msra.mxu0 %v18358_v6 }
0x364b   :  { %17094 = vmatpush3.bf16.msra.mxu1 %v18359_v33  ;;  %17073 = vmatprep.subr.bf16.mxu0 %v18360_v8 }
0x364c   :  { %17095 = vmatprep.subr.bf16.mxu1 %v18361_v9 }
0x364e   :  { %17074 = vmatpush3.bf16.msra.mxu0 %v18362_v18 }
0x364f   :  { %17096 = vmatpush3.bf16.msra.mxu1 %v18363_v19  ;;  %17075 = vmatprep.subr.bf16.mxu0 %v18364_v20 }
0x3650   :  { %17097 = vmatprep.subr.bf16.mxu1 %v18365_v17 }
0x3652   :  { %17076 = vmatpush3.bf16.msra.mxu0 %v18366_v25 }
0x3653   :  { %17098 = vmatpush3.bf16.msra.mxu1 %v18367_v28  ;;  %17077 = vmatprep.subr.bf16.mxu0 %v18368_v29 }
0x3654   :  { %17099 = vmatprep.subr.bf16.mxu1 %v18369_v32 }
0x3656   :  { %17078 = vmatpush3.bf16.msra.mxu0 %v18370_v35 }
0x3657   :  { %17100 = vmatpush3.bf16.msra.mxu1 %v18371_v3  ;;  %17079 = vmatprep.subr.bf16.mxu0 %v18372_v37 }
0x3658   :  { %17101 = vmatprep.subr.bf16.mxu1 %v18373_v46 }
0x365a   :  { %17080 = vmatpush3.bf16.msra.mxu0 %v18374_v21 }
0x365b   :  { %17102 = vmatpush3.bf16.msra.mxu1 %v18375_v4  ;;  %17081 = vmatprep.subr.bf16.mxu0 %v18376_v41 }
0x365c   :  { %17103 = vmatprep.subr.bf16.mxu1 %v18377_v13 }
0x365e   :  { %17082 = vmatpush3.bf16.msra.mxu0 %v18378_v59 }
0x365f   :  { %17104 = vmatpush3.bf16.msra.mxu1 %v18379_v23  ;;  %17861 = vmatprep.subr.bf16.mxu0 %v19346_v0 }
0x3660   :  { %17672 = vmatprep.subr.mxu1 %v19348_v1 }
0x3661   :  { %11100 = vmatmul.mubr.bf16.vlgmr.msra.gmra.mrb[148].mxu0 %v10048_v42 }
0x3662   :  { %11140 = vmatmul.mubr.bf16.vlgmr.msra.gmra.mrb[148].mxu1 %v10050_v34  ;;  %17669 = vmatprep.mubr.msk.f32.mxu0 %vm19347_vm0, %v19348_v1 }
0x3663   :  { %17674 = vmatprep.mubr.msk.f32.mxu1 %vm19347_vm0, %v19348_v1 }
0x36d4   :  { %v16951_v60 = vpop.f32.mrb[136].mxu0  ;;  %v16973_v11 = vpop.f32.mrb[136].mxu1 }
0x36d5   :  { %v16952_v51 = vpop.f32.mrb[137].mxu0  ;;  %v16974_v27 = vpop.f32.mrb[137].mxu1 }
0x36d6   :  { %v16953_v24 = vadd.f32 %v16952_v51, %v16951_v60  ;;  %v16975_v49 = vadd.f32 %v16974_v27, %v16973_v11  ;;  %v16954_v52 = vpop.f32.mrb[138].mxu0  ;;  %v16976_v53 = vpop.f32.mrb[138].mxu1 }
0x36d7   :  { %v16955_v14 = vpop.f32.mrb[139].mxu0  ;;  %v16977_v54 = vpop.f32.mrb[139].mxu1  ;;  %v11179_v53 = vld [vmem:[%s21680_s19 + $0x10] sm:$0xff] }
0x36d8   :  { %v10862_v16 = vadd.f32 %v16953_v24, %v16108_v12  ;;  %v11177_v24 = vld [vmem:[%s21680_s19] sm:$0xff]  ;;  %v11180_v14 = vld [vmem:[%s21680_s19 + $0x18] sm:$0xff] }
0x36d9   :  { %v17865_v54 = vpack.c.bf16 %v11180_v14, %v11179_v53 }
0x36da   :  { %v10902_v15 = vadd.f32 %v16975_v49, %v10862_v16  ;;  %v11178_v49 = vld [vmem:[%s21680_s19 + $0x8] sm:$0xff] }
0x36db   :  { %v17862_v52 = vpack.c.bf16 %v11178_v49, %v11177_v24 }
0x36dd   :  { %17863 = vmatpush3.bf16.msra.mxu0 %v17862_v52 }
0x36de   :  { %17864 = vmatprep.subr.bf16.mxu0 %v19346_v0 }
0x36e1   :  { %17866 = vmatpush3.bf16.msra.mxu0 %v17865_v54 }
0x36e2   :  { %17677 = vmatprep.subr.mxu0 %v19348_v1 }
0x36f4   :  { %v16995_v43 = vpop.f32.mrb[140].mxu0  ;;  %v17017_v55 = vpop.f32.mrb[140].mxu1 }
0x36f5   :  { %v16996_v31 = vpop.f32.mrb[141].mxu0  ;;  %v17018_v30 = vpop.f32.mrb[141].mxu1 }
0x36f6   :  { %v16997_v56 = vadd.f32 %v16996_v31, %v16995_v43  ;;  %v17019_v39 = vadd.f32 %v17018_v30, %v17017_v55  ;;  %v16998_v61 = vpop.f32.mrb[142].mxu0  ;;  %v17020_v57 = vpop.f32.mrb[142].mxu1  ;;  %v16237_v55 = vld [vmem:[%s21681_s12] ss:$0 sm:$0xff] }
0x36f7   :  { %v16999_v62 = vpop.f32.mrb[143].mxu0  ;;  %v17021_v5 = vpop.f32.mrb[143].mxu1  ;;  %v16238_v30 = vld [vmem:[%s21682_s11] ss:$0 sm:$0xff]  ;;  %v16239_v61 = vld [vmem:[#allocation12] ss:$0 sm:$0xff] }
0x36f8   :  { %v10942_v6 = vadd.f32 %v16997_v56, %v10902_v15 }
0x36fa   :  { %v10982_v33 = vadd.f32 %v17019_v39, %v10942_v6 }
0x3714   :  { %v17039_v8 = vpop.f32.mrb[144].mxu0 }
0x3715   :  { %v17061_v9 = vpop.f32.mrb[144].mxu1  ;;  %v17040_v18 = vpop.f32.mrb[145].mxu0 }
0x3716   :  { %v17041_v19 = vadd.f32 %v17040_v18, %v17039_v8  ;;  %v17062_v20 = vpop.f32.mrb[145].mxu1  ;;  %v17042_v17 = vpop.f32.mrb[146].mxu0 }
0x3717   :  { %v17063_v25 = vadd.f32 %v17062_v20, %v17061_v9  ;;  %v17064_v28 = vpop.f32.mrb[146].mxu1  ;;  %v17043_v29 = vpop.f32.mrb[147].mxu0 }
0x3718   :  { %v11022_v32 = vadd.f32 %v17041_v19, %v10982_v33  ;;  %v17065_v35 = vpop.f32.mrb[147].mxu1 }
0x371a   :  { %v11062_v36 = vadd.f32 %v17063_v25, %v11022_v32 }
0x3734   :  { %v17083_v3 = vpop.f32.mrb[148].mxu0 }
0x3735   :  { %v17105_v37 = vpop.f32.mrb[148].mxu1  ;;  %v17084_v46 = vpop.f32.mrb[149].mxu0 }
0x3736   :  { %v17085_v21 = vadd.f32 %v17084_v46, %v17083_v3  ;;  %v17106_v38 = vpop.f32.mrb[149].mxu1  ;;  %v17086_v4 = vpop.f32.mrb[150].mxu0 }
0x3737   :  { %v17107_v41 = vadd.f32 %v17106_v38, %v17105_v37  ;;  %v17108_v13 = vpop.f32.mrb[150].mxu1  ;;  %v17087_v59 = vpop.f32.mrb[151].mxu0 }
0x3738   :  { %v11102_v22 = vadd.f32 %v17085_v21, %v11062_v36  ;;  %v17109_v23 = vpop.f32.mrb[151].mxu1  ;;  %v11262_v13 = vld [vmem:[%s21683_s4 + $0x8] sm:$0xff] }
0x373a   :  { %v11142_v50 = vadd.f32 %v17107_v41, %v11102_v22 }
0x373c   :  { %v11147_v42 = vadd.f32 %v11142_v50, %v20825_v26 }
0x373e   :  { %v11148_v34 = vsel %vm606_vm1, %v11147_v42, 0.0 }
0x373f   :  { %11149 = vadd.xlane.f32.xlu1 %v11148_v34 }
0x37cc   :  { %v11150_v60 = vpop.xlane.xlu1 %11149 }
0x37cd   :  { %v11151_v11 = vmul.f32 0.03125, %v11150_v60 }
0x37cf   :  { %v11152_v12 = vsub.f32 %v11147_v42, %v11151_v11 }
0x37d1   :  { %v11153_v51 = vmul.f32 %v11152_v12, %v11152_v12 }
0x37d3   :  { %v11154_v27 = vsel %vm606_vm1, %v11153_v51, 0.0 }
0x37d4   :  { %11155 = vadd.xlane.f32.xlu1 %v11154_v27 }
0x3861   :  { %v11156_v26 = vpop.xlane.xlu1 %11155 }
0x3862   :  { %v11157_v16 = vmul.f32 0.03125, %v11156_v26 }
0x3864   :  { %v11158_v15 = vadd.f32 1e-05, %v11157_v16 }
0x3866   :  { %18586 = vrsqrt.f32 %v11158_v15 }
0x3870   :  { %v18587_v43 = vpop.eup %18586 }
0x3871   :  { %v11160_v31 = vmul.f32 %v18587_v43, %v11152_v12  ;;  %v11261_v12 = vld [vmem:[%s21683_s4] sm:$0xff] }
0x3873   :  { %v11168_v56 = vmul.f32 %v16237_v55, %v11160_v31 }
0x3875   :  { %v21077_v39 = vadd.f32 %v16238_v30, %v11168_v56 }
0x3877   :  { %17670 = vmatmul.mubr.msk.f32.vlgmr.msra.gmra.mrb[118].mxu0 %vm606_vm1, %v21077_v39 }
0x3878   :  { %17679 = vmatprep.mubr.msk.f32.mxu0 %vm19347_vm0, %v19348_v1 }
0x394a   :  { %v11257_v57 = vpop.f32.mrb[118].mxu0 }
0x394b   :  { %v21083_v62 = vadd.f32 %v16239_v61, %v11257_v57  ;;  %v17671_v5 = vpop.f32.mrb[119].mxu0 }
0x394d   :  { %11432 = vrot.lane.b32.xlu1 %v21083_v62, %s19351_s22  ;;  %11266 = vrot.lane.b32.xlu0 %v21083_v62, %s19350_s3 }
0x3951   :  { %11430 = vrot.lane.b32.xlu0 %v21083_v62, %s19349_s5 }
0x39bf   :  { %v11267_v6 = vpop.permute.xlu0 %11266  ;;  %v11433_v33 = vpop.permute.xlu1 %11432 }
0x39c0   :  { %17673 = vmatpush3.xpose.msk.msra.mxu1 %vm771_vm2, %v11267_v6 }
0x39c1   :  { %17682 = vmatprep.subr.mxu1 %v19348_v1 }
0x39c3   :  { %17675 = vmatmul.mubr.msk.f32.vlgmr.msra.gmra.mrb[118].mxu1 %vm771_vm2, %v21083_v62  ;;  %v11431_v8 = vpop.permute.xlu0 %11430 }
0x39c4   :  { %17683 = vmatpush3.xpose.msk.msra.mxu1 %vm771_vm2, %v11433_v33  ;;  %17684 = vmatprep.mubr.msk.f32.mxu1 %vm19347_vm0, %v19348_v1 }
0x39c5   :  { %17692 = vmatprep.subr.mxu1 %v19348_v1 }
0x39c7   :  { %17685 = vmatmul.mubr.msk.f32.vlgmr.msra.gmra.mrb[152].mxu1 %vm771_vm2, %v11431_v8 }
0x39c8   :  { %17694 = vmatprep.mubr.msk.f32.mxu1 %vm19347_vm0, %v19348_v1  ;;  %17693 = vmatpush3.msra.mxu1 %v11262_v13 }
0x39c9   :  { %17702 = vmatprep.subr.mxu1 %v19348_v1 }
0x3a96   :  { %v11338_v9 = vpop.f32.mrb[118].mxu1 }
0x3a97   :  { %v11342_v18 = vmul.f32 0.35355338, %v11338_v9  ;;  %v17676_v19 = vpop.f32.mrb[119].mxu1 }
0x3a99   :  { %v11343_v20 = vsel %vm771_vm2, %v11342_v18, -inf }
0x3a9a   :  { %11344 = vmax.xlane.f32.xlu0 %v11343_v20  ;;  %v11504_v17 = vpop.f32.mrb[152].mxu1 }
0x3a9b   :  { %v11508_v25 = vmul.f32 0.35355338, %v11504_v17  ;;  %v17686_v28 = vpop.f32.mrb[153].mxu1  ;;  %v11263_v17 = vld [vmem:[%s21683_s4 + $0x10] sm:$0xff] }
0x3a9d   :  { %v11509_v29 = vsel %vm771_vm2, %v11508_v25, -inf }
0x3a9e   :  { %11510 = vmax.xlane.f32.xlu1 %v11509_v29 }
0x3aaf   :  { %11520 = vrot.lane.b32.xlu1 %v21083_v62, %s19352_s26 }
0x3b27   :  { %v11345_v32 = vpop.xlane.xlu0 %11344 }
0x3b28   :  { %v11346_v35 = vsub.f32 %v11342_v18, %v11345_v32 }
0x3b2a   :  { %v11347_v36 = vmul.f32 1.442695, %v11346_v35 }
0x3b2b   :  { %v11511_v3 = vpop.xlane.xlu1 %11510 }
0x3b2c   :  { %18588 = vpow2.f32 %v11347_v36  ;;  %v11512_v37 = vsub.f32 %v11508_v25, %v11511_v3 }
0x3b2e   :  { %v11513_v46 = vmul.f32 1.442695, %v11512_v37 }
0x3b2f   :  { %v11521_v34 = vpop.permute.xlu1 %11520 }
0x3b30   :  { %18590 = vpow2.f32 %v11513_v46 }
0x3b36   :  { %v18589_v21 = vpop.eup %18588 }
0x3b37   :  { %v11349_v38 = vsel %vm771_vm2, %v18589_v21, 0.0 }
0x3b38   :  { %11350 = vadd.xlane.f32.xlu0 %v11349_v38 }
0x3b3a   :  { %v18591_v4 = vpop.eup %18590 }
0x3b3b   :  { %v11515_v41 = vsel %vm771_vm2, %v18591_v4, 0.0 }
0x3b3c   :  { %11516 = vadd.xlane.f32.xlu0 %v11515_v41  ;;  %v11264_v41 = vld [vmem:[%s21683_s4 + $0x18] sm:$0xff] }
0x3b52   :  { %11354 = vrot.lane.b32.xlu0 %v21083_v62, %s19353_s28 }
0x3b56   :  { %11744 = vrot.lane.b32.xlu0 %v21083_v62, %s19354_s14 }
0x3b5a   :  { %11742 = vrot.lane.b32.xlu0 %v21083_v62, %s19355_s21 }
0x3bc5   :  { %v11351_v59 = vpop.xlane.xlu0 %11350 }
0x3bc6   :  { %18592 = vrcp.f32 %v11351_v59 }
0x3bc9   :  { %v11517_v22 = vpop.xlane.xlu0 %11516 }
0x3bca   :  { %18594 = vrcp.f32 %v11517_v22 }
0x3bcd   :  { %v11355_v23 = vpop.permute.xlu0 %11354 }
0x3bce   :  { %17678 = vmatpush3.msra.mxu0 %v11355_v23 }
0x3bcf   :  { %17687 = vmatprep.subr.mxu0 %v19348_v1 }
0x3bd0   :  { %v18593_v50 = vpop.eup %18592 }
0x3bd1   :  { %v11353_v42 = vmul.f32 %v18593_v50, %v18589_v21  ;;  %v11745_v24 = vpop.permute.xlu0 %11744 }
0x3bd3   :  { %17680 = vmatmul.mubr.msk.f32.vlgmr.msra.gmra.mrb[152].mxu0 %vm771_vm2, %v11353_v42  ;;  %v12260_v42 = vld [vmem:[%s21684_s20] sm:$0xff] }
0x3bd4   :  { %v18595_v60 = vpop.eup %18594  ;;  %17688 = vmatpush3.msra.mxu0 %v11521_v34  ;;  %17689 = vmatprep.mubr.msk.f32.mxu0 %vm19347_vm0, %v19348_v1  ;;  %v12261_v34 = vld [vmem:[%s21684_s20 + $0x8] sm:$0xff] }
0x3bd5   :  { %v11519_v11 = vmul.f32 %v18595_v60, %v18591_v4  ;;  %17697 = vmatprep.subr.mxu0 %v19348_v1  ;;  %v11743_v53 = vpop.permute.xlu0 %11742  ;;  %v17868_v60 = vpack.c.bf16 %v12261_v34, %v12260_v42 }
0x3bd7   :  { %17690 = vmatmul.mubr.msk.f32.vlgmr.msra.gmra.mrb[154].mxu0 %vm771_vm2, %v11519_v11  ;;  %v12262_v11 = vld [vmem:[%s21684_s20 + $0x10] sm:$0xff] }
0x3bd8   :  { %17699 = vmatprep.mubr.msk.f32.mxu0 %vm19347_vm0, %v19348_v1  ;;  %17698 = vmatpush3.msra.mxu0 %v11261_v12  ;;  %v12263_v12 = vld [vmem:[%s21684_s20 + $0x18] sm:$0xff] }
0x3bd9   :  { %17707 = vmatprep.subr.mxu0 %v19348_v1 }
0x3ca6   :  { %v11426_v51 = vpop.f32.mrb[152].mxu0 }
0x3ca7   :  { %v17681_v27 = vpop.f32.mrb[153].mxu0  ;;  %17700 = vmatmul.mubr.msk.f32.vlgmr.msra.gmra.mrb[156].mxu0 %vm771_vm2, %v11426_v51  ;;  %v17871_v51 = vpack.c.bf16 %v12263_v12, %v12262_v11 }
0x3ca8   :  { %17709 = vmatprep.mubr.msk.f32.mxu0 %vm19347_vm0, %v19348_v1 }
0x3caa   :  { %v11592_v49 = vpop.f32.mrb[154].mxu0 }
0x3cab   :  { %v17691_v52 = vpop.f32.mrb[155].mxu0  ;;  %17695 = vmatmul.mubr.msk.f32.vlgmr.msra.gmra.mrb[154].mxu1 %vm771_vm2, %v11592_v49 }
0x3cac   :  { %17703 = vmatpush3.xpose.msk.msra.mxu1 %vm771_vm2, %v11745_v24  ;;  %17704 = vmatprep.mubr.msk.f32.mxu1 %vm19347_vm0, %v19348_v1  ;;  %v16257_v52 = vld [vmem:[#allocation10] ss:$0 sm:$0xff] }
0x3cad   :  { %17712 = vmatprep.subr.mxu1 %v19348_v1 }
0x3caf   :  { %17705 = vmatmul.mubr.msk.f32.vlgmr.msra.gmra.mrb[156].mxu1 %vm771_vm2, %v11743_v53 }
0x3cb0   :  { %17714 = vmatprep.mubr.msk.f32.mxu1 %vm19347_vm0, %v19348_v1  ;;  %17713 = vmatpush3.msra.mxu1 %v11263_v17 }
0x3cb1   :  { %17722 = vmatprep.subr.mxu1 %v19348_v1 }
0x3d7a   :  { %v11738_v14 = vpop.f32.mrb[156].mxu0 }
0x3d7b   :  { %v17701_v54 = vpop.f32.mrb[157].mxu0 }
0x3d7e   :  { %v11665_v26 = vpop.f32.mrb[154].mxu1 }
0x3d7f   :  { %v11739_v16 = vadd.f32 %v11738_v14, %v11665_v26  ;;  %v17696_v15 = vpop.f32.mrb[155].mxu1 }
0x3d82   :  { %v11816_v43 = vpop.f32.mrb[156].mxu1 }
0x3d83   :  { %v11820_v55 = vmul.f32 0.35355338, %v11816_v43  ;;  %v17706_v31 = vpop.f32.mrb[157].mxu1 }
0x3d85   :  { %v11821_v30 = vsel %vm771_vm2, %v11820_v55, -inf }
0x3d86   :  { %11822 = vmax.xlane.f32.xlu1 %v11821_v30 }
0x3d97   :  { %11984 = vrot.lane.b32.xlu1 %v21083_v62, %s19356_s13 }
0x3d9b   :  { %11982 = vrot.lane.b32.xlu1 %v21083_v62, %s19357_s25 }
0x3e13   :  { %v11823_v56 = vpop.xlane.xlu1 %11822 }
0x3e14   :  { %v11824_v61 = vsub.f32 %v11820_v55, %v11823_v56 }
0x3e16   :  { %v11825_v57 = vmul.f32 1.442695, %v11824_v61 }
0x3e17   :  { %v11985_v18 = vpop.permute.xlu1 %11984 }
0x3e18   :  { %18596 = vpow2.f32 %v11825_v57 }
0x3e1b   :  { %v11983_v20 = vpop.permute.xlu1 %11982 }
0x3e22   :  { %v18597_v5 = vpop.eup %18596 }
0x3e23   :  { %v11827_v6 = vsel %vm771_vm2, %v18597_v5, 0.0 }
0x3e24   :  { %11828 = vadd.xlane.f32.xlu0 %v11827_v6 }
0x3e3a   :  { %11832 = vrot.lane.b32.xlu0 %v21083_v62, %s19358_s1 }
0x3eb1   :  { %v11829_v33 = vpop.xlane.xlu0 %11828 }
0x3eb2   :  { %18598 = vrcp.f32 %v11829_v33 }
0x3eb5   :  { %v11833_v8 = vpop.permute.xlu0 %11832 }
0x3eb6   :  { %17708 = vmatpush3.msra.mxu0 %v11833_v8  ;;  %v16258_v8 = vld [vmem:[#allocation2] ss:$0 sm:$0xff] }
0x3eb7   :  { %17717 = vmatprep.subr.mxu0 %v19348_v1 }
0x3ebc   :  { %v18599_v9 = vpop.eup %18598 }
0x3ebd   :  { %v11831_v19 = vmul.f32 %v18599_v9, %v18597_v5 }
0x3ebf   :  { %17710 = vmatmul.mubr.msk.f32.vlgmr.msra.gmra.mrb[158].mxu0 %vm771_vm2, %v11831_v19 }
0x3ec0   :  { %17718 = vmatpush3.xpose.msk.msra.mxu0 %vm771_vm2, %v11985_v18  ;;  %17719 = vmatprep.mubr.msk.f32.mxu0 %vm19347_vm0, %v19348_v1  ;;  %v16259_v18 = vld [vmem:[%s21686_s16] ss:$0 sm:$0xff] }
0x3ec1   :  { %17727 = vmatprep.subr.mxu0 %v19348_v1 }
0x3ec3   :  { %17720 = vmatmul.mubr.msk.f32.vlgmr.msra.gmra.mrb[160].mxu0 %vm771_vm2, %v11983_v20 }
0x3ec4   :  { %17729 = vmatprep.mubr.msk.f32.mxu0 %vm19347_vm0, %v19348_v1  ;;  %17728 = vmatpush3.msra.mxu0 %v11264_v41 }
0x3ec5   :  { %17873 = vmatprep.subr.bf16.mxu0 %v19346_v0 }
0x3f92   :  { %v11904_v25 = vpop.f32.mrb[158].mxu0 }
0x3f93   :  { %v17711_v28 = vpop.f32.mrb[159].mxu0  ;;  %17715 = vmatmul.mubr.msk.f32.vlgmr.msra.gmra.mrb[158].mxu1 %vm771_vm2, %v11904_v25 }
0x3f94   :  { %17724 = vmatprep.mubr.msk.f32.mxu1 %vm19347_vm0, %v19348_v1 }
0x3f96   :  { %v12056_v29 = vpop.f32.mrb[160].mxu0 }
0x3f97   :  { %v12060_v32 = vmul.f32 0.35355338, %v12056_v29  ;;  %v17721_v35 = vpop.f32.mrb[161].mxu0 }
0x3f99   :  { %v12061_v36 = vsel %vm771_vm2, %v12060_v32, -inf }
0x3f9a   :  { %12062 = vmax.xlane.f32.xlu0 %v12061_v36 }
0x3fb0   :  { %12072 = vrot.lane.b32.xlu0 %v21083_v62, %s19359_s9 }
0x4027   :  { %v12063_v3 = vpop.xlane.xlu0 %12062 }
0x4028   :  { %v12064_v37 = vsub.f32 %v12060_v32, %v12063_v3 }
0x402a   :  { %v12065_v46 = vmul.f32 1.442695, %v12064_v37 }
0x402b   :  { %v12073_v21 = vpop.permute.xlu0 %12072 }
0x402c   :  { %18600 = vpow2.f32 %v12065_v46  ;;  %17723 = vmatpush3.msra.mxu1 %v12073_v21 }
0x402d   :  { %17867 = vmatprep.subr.bf16.mxu1 %v19346_v0 }
0x4036   :  { %v18601_v38 = vpop.eup %18600 }
0x4037   :  { %v12067_v4 = vsel %vm771_vm2, %v18601_v38, 0.0 }
0x4038   :  { %12068 = vadd.xlane.f32.xlu1 %v12067_v4 }
0x4066   :  { %v11977_v62 = vpop.f32.mrb[158].mxu1 }
0x4067   :  { %v11981_v13 = vadd.f32 %v11977_v62, %v11739_v16  ;;  %v17716_v59 = vpop.f32.mrb[159].mxu1  ;;  %v16260_v16 = vld [vmem:[%s21685_s15] ss:$0 sm:$0xff] }
0x40c5   :  { %v12069_v22 = vpop.xlane.xlu1 %12068 }
0x40c6   :  { %18602 = vrcp.f32 %v12069_v22 }
0x40d0   :  { %v18603_v23 = vpop.eup %18602 }
0x40d1   :  { %v12071_v50 = vmul.f32 %v18603_v23, %v18601_v38 }
0x40d3   :  { %17725 = vmatmul.mubr.msk.f32.vlgmr.msra.gmra.mrb[160].mxu1 %vm771_vm2, %v12071_v50 }
0x40d4   :  { %17740 = vmatprep.mubr.msk.f32.mxu1 %vm19347_vm0, %v19348_v1  ;;  %17869 = vmatpush3.bf16.msra.mxu1 %v17868_v60 }
0x40d5   :  { %17870 = vmatprep.subr.bf16.mxu1 %v19346_v0 }
0x40d8   :  { %17872 = vmatpush3.bf16.msra.mxu1 %v17871_v51 }
0x40d9   :  { %17754 = vmatprep.subr.mxu1 %v19348_v1 }
0x41a6   :  { %v12144_v27 = vpop.f32.mrb[160].mxu1 }
0x41a7   :  { %v17726_v24 = vpop.f32.mrb[161].mxu1  ;;  %17730 = vmatmul.mubr.msk.f32.vlgmr.msra.gmra.mrb[162].mxu0 %vm771_vm2, %v12144_v27 }
0x41a8   :  { %17875 = vmatpush3.bf16.msra.mxu0 %v17868_v60  ;;  %17751 = vmatprep.mubr.msk.f32.mxu0 %vm19347_vm0, %v19348_v1 }
0x41a9   :  { %17876 = vmatprep.subr.bf16.mxu0 %v19346_v0 }
0x41ac   :  { %17878 = vmatpush3.bf16.msra.mxu0 %v17871_v51 }
0x41ad   :  { %17759 = vmatprep.subr.mxu0 %v19348_v1 }
0x41af   :  { %17752 = vmatmul.mubr.msk.f32.vlgmr.msra.gmra.mrb[164].mxu0 %vm606_vm1, %v20701_v40 }
0x41b0   :  { %17761 = vmatprep.mubr.msk.f32.mxu0 %vm19347_vm0, %v19348_v1 }
0x427a   :  { %v12217_v49 = vpop.f32.mrb[162].mxu0 }
0x427b   :  { %v12221_v53 = vadd.f32 %v12217_v49, %v11981_v13  ;;  %v17731_v14 = vpop.f32.mrb[163].mxu0 }
0x427d   :  { %v12229_v54 = vadd.f32 %v16257_v52, %v12221_v53 }
0x427f   :  { %v12230_v26 = vadd.f32 %v12229_v54, %v21077_v39 }
0x4281   :  { %v12231_v15 = vsel %vm606_vm1, %v12230_v26, 0.0 }
0x4282   :  { %v12410_v43 = vpop.f32.mrb[164].mxu0  ;;  %12232 = vadd.xlane.f32.xlu1 %v12231_v15 }
0x4283   :  { %v21187_v55 = vadd.f32 %v16260_v16, %v12410_v43  ;;  %v17753_v31 = vpop.f32.mrb[165].mxu0 }
0x4285   :  { %12586 = vrot.lane.b32.xlu0 %v21187_v55, %s19351_s22  ;;  %s21689_s22 = sld [smem:[#allocation82_spill]] }
0x42f7   :  { %v12587_v32 = vpop.permute.xlu0 %12586 }
0x430f   :  { %v12233_v40 = vpop.xlane.xlu1 %12232 }
0x4310   :  { %v12234_v30 = vmul.f32 0.03125, %v12233_v40 }
0x4312   :  { %v12235_v56 = vsub.f32 %v12230_v26, %v12234_v30 }
0x4314   :  { %v12236_v61 = vmul.f32 %v12235_v56, %v12235_v56 }
0x4316   :  { %v12237_v57 = vsel %vm606_vm1, %v12236_v61, 0.0 }
0x4317   :  { %12238 = vadd.xlane.f32.xlu1 %v12237_v57 }
0x4328   :  { %12419 = vrot.lane.b32.xlu1 %v21187_v55, %s19350_s3  ;;  %s21688_s3 = sld [smem:[#allocation76_spill]] }
0x43a4   :  { %v12239_v39 = vpop.xlane.xlu1 %12238 }
0x43a5   :  { %v12240_v5 = vmul.f32 0.03125, %v12239_v39 }
0x43a7   :  { %v12241_v6 = vadd.f32 1e-05, %v12240_v5 }
0x43a8   :  { %v12420_v17 = vpop.permute.xlu1 %12419 }
0x43a9   :  { %18604 = vrsqrt.f32 %v12241_v6 }
0x43b3   :  { %v18605_v33 = vpop.eup %18604 }
0x43b4   :  { %v12243_v9 = vmul.f32 %v18605_v33, %v12235_v56 }
0x43b6   :  { %v12251_v19 = vmul.f32 %v16258_v8, %v12243_v9 }
0x43b8   :  { %v21195_v20 = vadd.f32 %v16259_v18, %v12251_v19 }
0x43ba   :  { %17741 = vmatmul.mubr.msk.f32.vlgmr.msra.gmra.mrb[162].mxu1 %vm606_vm1, %v21195_v20 }
0x43bb   :  { %17755 = vmatpush3.xpose.msk.msra.mxu1 %vm771_vm2, %v12420_v17  ;;  %17756 = vmatprep.mubr.msk.f32.mxu1 %vm19347_vm0, %v19348_v1 }
0x43bc   :  { %17764 = vmatprep.subr.mxu1 %v19348_v1 }
0x448d   :  { %v12340_v25 = vpop.f32.mrb[162].mxu1 }
0x448e   :  { %v21203_v28 = vadd.f32 %v16260_v16, %v12340_v25  ;;  %v17742_v29 = vpop.f32.mrb[163].mxu1 }
0x4490   :  { %12584 = vrot.lane.b32.xlu0 %v21203_v28, %s19349_s5  ;;  %17757 = vmatmul.mubr.msk.f32.vlgmr.msra.gmra.mrb[164].mxu1 %vm771_vm2, %v21203_v28  ;;  %s21687_s5 = sld [smem:[#allocation78_spill]] }
0x4491   :  { %17765 = vmatpush3.xpose.msk.msra.mxu1 %vm771_vm2, %v12587_v32  ;;  %17766 = vmatprep.mubr.msk.f32.mxu1 %vm19347_vm0, %v19348_v1 }
0x4492   :  { %17774 = vmatprep.subr.mxu1 %v19348_v1 }
0x4496   :  { %v12415_v49 = vld [vmem:[%s21687_s5 + $0x8] sm:$0xff]  ;;  %v12414_v26 = vld [vmem:[%s21687_s5] sm:$0xff] }
0x4502   :  { %v12585_v35 = vpop.permute.xlu0 %12584 }
0x4503   :  { %17767 = vmatmul.mubr.msk.f32.vlgmr.msra.gmra.mrb[166].mxu1 %vm771_vm2, %v12585_v35 }
0x4504   :  { %17776 = vmatprep.mubr.msk.f32.mxu1 %vm19347_vm0, %v19348_v1  ;;  %17775 = vmatpush3.msra.mxu1 %v12415_v49  ;;  %v12417_v49 = vld [vmem:[%s21687_s5 + $0x18] sm:$0xff] }
0x4505   :  { %17784 = vmatprep.subr.mxu1 %v19348_v1 }
0x4563   :  { %v12492_v36 = vpop.f32.mrb[164].mxu1 }
0x4564   :  { %v12496_v3 = vmul.f32 0.35355338, %v12492_v36  ;;  %v17758_v37 = vpop.f32.mrb[165].mxu1 }
0x4566   :  { %v12497_v46 = vsel %vm771_vm2, %v12496_v3, -inf }
0x4567   :  { %12498 = vmax.xlane.f32.xlu0 %v12497_v46  ;;  %v12416_v46 = vld [vmem:[%s21687_s5 + $0x10] sm:$0xff] }
0x45d6   :  { %v12658_v21 = vpop.f32.mrb[166].mxu1 }
0x45d7   :  { %v12662_v38 = vmul.f32 0.35355338, %v12658_v21  ;;  %v17768_v4 = vpop.f32.mrb[167].mxu1 }
0x45d9   :  { %v12663_v41 = vsel %vm771_vm2, %v12662_v38, -inf }
0x45da   :  { %12664 = vmax.xlane.f32.xlu1 %v12663_v41 }
0x45eb   :  { %12508 = vrot.lane.b32.xlu1 %v21187_v55, %s19353_s28  ;;  %s21691_s28 = sld [smem:[#allocation80_spill]] }
0x45ef   :  { %12898 = vrot.lane.b32.xlu1 %v21187_v55, %s19354_s14  ;;  %s21692_s14 = sld [smem:[#allocation81_spill]] }
0x45f3   :  { %12896 = vrot.lane.b32.xlu1 %v21203_v28, %s19355_s21 }
0x45f4   :  { %v12499_v62 = vpop.xlane.xlu0 %12498 }
0x45f5   :  { %v12500_v13 = vsub.f32 %v12496_v3, %v12499_v62 }
0x45f7   :  { %v12501_v59 = vmul.f32 1.442695, %v12500_v13 }
0x45f9   :  { %18606 = vpow2.f32 %v12501_v59 }
0x4603   :  { %v18607_v22 = vpop.eup %18606 }
0x4604   :  { %v12503_v23 = vsel %vm771_vm2, %v18607_v22, 0.0 }
0x4605   :  { %12504 = vadd.xlane.f32.xlu0 %v12503_v23 }
0x4667   :  { %v12665_v50 = vpop.xlane.xlu1 %12664 }
0x4668   :  { %v12666_v42 = vsub.f32 %v12662_v38, %v12665_v50 }
0x466a   :  { %v12667_v34 = vmul.f32 1.442695, %v12666_v42 }
0x466b   :  { %v12509_v60 = vpop.permute.xlu1 %12508 }
0x466c   :  { %18608 = vpow2.f32 %v12667_v34  ;;  %17760 = vmatpush3.msra.mxu0 %v12509_v60 }
0x466d   :  { %17769 = vmatprep.subr.mxu0 %v19348_v1 }
0x466f   :  { %v12899_v43 = vpop.permute.xlu1 %12898 }
0x4673   :  { %v12897_v30 = vpop.permute.xlu1 %12896 }
0x4676   :  { %v18609_v11 = vpop.eup %18608 }
0x4677   :  { %v12669_v12 = vsel %vm771_vm2, %v18609_v11, 0.0 }
0x4678   :  { %12670 = vadd.xlane.f32.xlu0 %v12669_v12 }
0x468e   :  { %12674 = vrot.lane.b32.xlu0 %v21187_v55, %s19352_s26  ;;  %s21690_s26 = sld [smem:[#allocation83_spill]] }
0x4692   :  { %v12505_v51 = vpop.xlane.xlu0 %12504 }
0x4693   :  { %18610 = vrcp.f32 %v12505_v51 }
0x469d   :  { %v18611_v27 = vpop.eup %18610 }
0x469e   :  { %v12507_v24 = vmul.f32 %v18611_v27, %v18607_v22 }
0x46a0   :  { %17762 = vmatmul.mubr.msk.f32.vlgmr.msra.gmra.mrb[166].mxu0 %vm771_vm2, %v12507_v24 }
0x46a1   :  { %17771 = vmatprep.mubr.msk.f32.mxu0 %vm19347_vm0, %v19348_v1 }
0x4705   :  { %v12671_v52 = vpop.xlane.xlu0 %12670 }
0x4706   :  { %18612 = vrcp.f32 %v12671_v52 }
0x4709   :  { %v12675_v53 = vpop.permute.xlu0 %12674 }
0x470a   :  { %17770 = vmatpush3.msra.mxu0 %v12675_v53 }
0x470b   :  { %17779 = vmatprep.subr.mxu0 %v19348_v1 }
0x4710   :  { %v18613_v14 = vpop.eup %18612 }
0x4711   :  { %v12673_v54 = vmul.f32 %v18613_v14, %v18609_v11  ;;  %v16279_v14 = vld [vmem:[%s21688_s3] ss:$0 sm:$0xff] }
0x4713   :  { %17772 = vmatmul.mubr.msk.f32.vlgmr.msra.gmra.mrb[168].mxu0 %vm771_vm2, %v12673_v54 }
0x4714   :  { %17780 = vmatpush3.msra.mxu0 %v12414_v26  ;;  %17781 = vmatprep.mubr.msk.f32.mxu0 %vm19347_vm0, %v19348_v1 }
0x4715   :  { %17789 = vmatprep.subr.mxu0 %v19348_v1 }
0x4773   :  { %v12580_v16 = vpop.f32.mrb[166].mxu0 }
0x4774   :  { %v17763_v15 = vpop.f32.mrb[167].mxu0  ;;  %17782 = vmatmul.mubr.msk.f32.vlgmr.msra.gmra.mrb[170].mxu0 %vm771_vm2, %v12580_v16 }
0x4775   :  { %17791 = vmatprep.mubr.msk.f32.mxu0 %vm19347_vm0, %v19348_v1 }
0x47e6   :  { %v12746_v31 = vpop.f32.mrb[168].mxu0 }
0x47e7   :  { %v17773_v40 = vpop.f32.mrb[169].mxu0  ;;  %17777 = vmatmul.mubr.msk.f32.vlgmr.msra.gmra.mrb[168].mxu1 %vm771_vm2, %v12746_v31 }
0x47e8   :  { %17785 = vmatpush3.xpose.msk.msra.mxu1 %vm771_vm2, %v12899_v43  ;;  %17786 = vmatprep.mubr.msk.f32.mxu1 %vm19347_vm0, %v19348_v1 }
0x47e9   :  { %17794 = vmatprep.subr.mxu1 %v19348_v1 }
0x47eb   :  { %17787 = vmatmul.mubr.msk.f32.vlgmr.msra.gmra.mrb[170].mxu1 %vm771_vm2, %v12897_v30 }
0x47ec   :  { %17796 = vmatprep.mubr.msk.f32.mxu1 %vm19347_vm0, %v19348_v1  ;;  %17795 = vmatpush3.msra.mxu1 %v12416_v46 }
0x47ed   :  { %17804 = vmatprep.subr.mxu1 %v19348_v1 }
0x4847   :  { %v12892_v56 = vpop.f32.mrb[170].mxu0 }
0x4848   :  { %v17783_v61 = vpop.f32.mrb[171].mxu0 }
0x48ba   :  { %v12819_v57 = vpop.f32.mrb[168].mxu1 }
0x48bb   :  { %v12893_v39 = vadd.f32 %v12892_v56, %v12819_v57  ;;  %v17778_v5 = vpop.f32.mrb[169].mxu1  ;;  %v13414_v57 = vld [vmem:[%s21689_s22] sm:$0xff] }
0x48bc   :  { %v13415_v5 = vld [vmem:[%s21689_s22 + $0x8] sm:$0xff] }
0x48be   :  { %v12970_v6 = vpop.f32.mrb[170].mxu1 }
0x48bf   :  { %v12974_v33 = vmul.f32 0.35355338, %v12970_v6  ;;  %v17788_v8 = vpop.f32.mrb[171].mxu1 }
0x48c1   :  { %v12975_v9 = vsel %vm771_vm2, %v12974_v33, -inf }
0x48c2   :  { %12976 = vmax.xlane.f32.xlu0 %v12975_v9 }
0x48d8   :  { %12986 = vrot.lane.b32.xlu0 %v21187_v55, %s19358_s1 }
0x48dc   :  { %13136 = vrot.lane.b32.xlu0 %v21203_v28, %s19357_s25 }
0x494f   :  { %v12977_v18 = vpop.xlane.xlu0 %12976 }
0x4950   :  { %v12978_v19 = vsub.f32 %v12974_v33, %v12977_v18  ;;  %v13423_v33 = vld [vmem:[%s21689_s22 + $0x48] sm:$0xff]  ;;  %v13430_v18 = vld [vmem:[%s21689_s22 + $0x80] sm:$0xff] }
0x4951   :  { %v16284_v8 = vcombine.low %v13415_v5, %v13423_v33  ;;  %v16285_v9 = vcombine.high %v13415_v5, %v13423_v33  ;;  %v13428_v33 = vld [vmem:[%s21689_s22 + $0x70] sm:$0xff] }
0x4952   :  { %v12979_v17 = vmul.f32 1.442695, %v12978_v19  ;;  %v13438_v19 = vld [vmem:[%s21689_s22 + $0xc0] sm:$0xff] }
0x4953   :  { %v12987_v25 = vpop.permute.xlu0 %12986 }
0x4954   :  { %18614 = vpow2.f32 %v12979_v17  ;;  %17790 = vmatpush3.msra.mxu0 %v12987_v25  ;;  %v13431_v17 = vld [vmem:[%s21689_s22 + $0x88] sm:$0xff]  ;;  %v16299_v25 = vcombine.high %v13430_v18, %v13438_v19 }
0x4955   :  { %17799 = vmatprep.subr.mxu0 %v19348_v1 }
0x4957   :  { %v13137_v37 = vpop.permute.xlu0 %13136 }
0x495e   :  { %v18615_v29 = vpop.eup %18614 }
0x495f   :  { %v12981_v32 = vsel %vm771_vm2, %v18615_v29, 0.0 }
0x4960   :  { %12982 = vadd.xlane.f32.xlu1 %v12981_v32  ;;  %v16298_v32 = vcombine.low %v13430_v18, %v13438_v19 }
0x4971   :  { %13138 = vrot.lane.b32.xlu1 %v21187_v55, %s19356_s13 }
0x49ed   :  { %v12983_v35 = vpop.xlane.xlu1 %12982 }
0x49ee   :  { %18616 = vrcp.f32 %v12983_v35 }
0x49f1   :  { %v13139_v3 = vpop.permute.xlu1 %13138 }
0x49f8   :  { %v18617_v36 = vpop.eup %18616 }
0x49f9   :  { %v12985_v28 = vmul.f32 %v18617_v36, %v18615_v29  ;;  %v13439_v29 = vld [vmem:[%s21689_s22 + $0xc8] sm:$0xff] }
0x49fa   :  { %v16300_v35 = vcombine.low %v13431_v17, %v13439_v29  ;;  %v16301_v36 = vcombine.high %v13431_v17, %v13439_v29  ;;  %v13444_v29 = vld [vmem:[%s21689_s22 + $0xf0] sm:$0xff] }
0x49fb   :  { %17792 = vmatmul.mubr.msk.f32.vlgmr.msra.gmra.mrb[172].mxu0 %vm771_vm2, %v12985_v28  ;;  %v13416_v28 = vld [vmem:[%s21689_s22 + $0x10] sm:$0xff] }
0x49fc   :  { %17800 = vmatpush3.xpose.msk.msra.mxu0 %vm771_vm2, %v13139_v3  ;;  %17801 = vmatprep.mubr.msk.f32.mxu0 %vm19347_vm0, %v19348_v1  ;;  %v13424_v3 = vld [vmem:[%s21689_s22 + $0x50] sm:$0xff] }
0x49fd   :  { %17809 = vmatprep.subr.mxu0 %v19348_v1  ;;  %v16286_v46 = vcombine.low %v13416_v28, %v13424_v3 }
0x49ff   :  { %17802 = vmatmul.mubr.msk.f32.vlgmr.msra.gmra.mrb[174].mxu0 %vm771_vm2, %v13137_v37  ;;  %v13417_v37 = vld [vmem:[%s21689_s22 + $0x18] sm:$0xff] }
0x4a00   :  { %17811 = vmatprep.mubr.msk.f32.mxu0 %vm19347_vm0, %v19348_v1  ;;  %17810 = vmatpush3.msra.mxu0 %v12417_v49 }
0x4a01   :  { %13735 = vmatprep.subr.bf16.mxu0 %v16285_v9 }
0x4ace   :  { %v13058_v21 = vpop.f32.mrb[172].mxu0 }
0x4acf   :  { %v17793_v38 = vpop.f32.mrb[173].mxu0  ;;  %17797 = vmatmul.mubr.msk.f32.vlgmr.msra.gmra.mrb[172].mxu1 %vm771_vm2, %v13058_v21  ;;  %v16287_v21 = vcombine.high %v13416_v28, %v13424_v3 }
0x4ad0   :  { %17806 = vmatprep.mubr.msk.f32.mxu1 %vm19347_vm0, %v19348_v1  ;;  %v13425_v38 = vld [vmem:[%s21689_s22 + $0x58] sm:$0xff] }
0x4ad2   :  { %v13210_v4 = vpop.f32.mrb[174].mxu0 }
0x4ad3   :  { %v13214_v41 = vmul.f32 0.35355338, %v13210_v4  ;;  %v17803_v62 = vpop.f32.mrb[175].mxu0  ;;  %v16288_v4 = vcombine.low %v13417_v37, %v13425_v38 }
0x4ad5   :  { %v13215_v13 = vsel %vm771_vm2, %v13214_v41, -inf }
0x4ad6   :  { %13216 = vmax.xlane.f32.xlu1 %v13215_v13 }
0x4b63   :  { %v13217_v59 = vpop.xlane.xlu1 %13216 }
0x4b64   :  { %v13218_v22 = vsub.f32 %v13214_v41, %v13217_v59  ;;  %v16289_v41 = vcombine.high %v13417_v37, %v13425_v38  ;;  %v18380_v38 = vld [vmem:[%s21690_s26 + $0x40] sm:$0xff]  }
0x4b66   :  { %v13219_v23 = vmul.f32 1.442695, %v13218_v22 }
0x4b68   :  { %18618 = vpow2.f32 %v13219_v23  ;;  %v16280_v23 = vld [vmem:[#allocation6] ss:$0 sm:$0xff] }
0x4b72   :  { %v18619_v50 = vpop.eup %18618 }
0x4b73   :  { %v13221_v42 = vsel %vm771_vm2, %v18619_v50, 0.0 }
0x4b74   :  { %13222 = vadd.xlane.f32.xlu0 %v13221_v42  ;;  %v16281_v42 = vld [vmem:[#allocation4] ss:$0 sm:$0xff] }
0x4b8a   :  { %13226 = vrot.lane.b32.xlu0 %v21187_v55, %s19359_s9 }
0x4ba2   :  { %v13131_v34 = vpop.f32.mrb[172].mxu1 }
0x4ba3   :  { %v13135_v60 = vadd.f32 %v13131_v34, %v12893_v39  ;;  %v17798_v11 = vpop.f32.mrb[173].mxu1  ;;  %v13422_v39 = vld [vmem:[%s21689_s22 + $0x40] sm:$0xff] }
0x4ba4   :  { %v16283_v6 = vcombine.high %v13414_v57, %v13422_v39  ;;  %v13440_v11 = vld [vmem:[%s21689_s22 + $0xd0] sm:$0xff] }
0x4c01   :  { %v13223_v12 = vpop.xlane.xlu0 %13222 }
0x4c02   :  { %18620 = vrcp.f32 %v13223_v12  ;;  %v13433_v12 = vld [vmem:[%s21689_s22 + $0x98] sm:$0xff] }
0x4c05   :  { %v13227_v51 = vpop.permute.xlu0 %13226 }
0x4c06   :  { %17805 = vmatpush3.msra.mxu1 %v13227_v51  ;;  %v13441_v51 = vld [vmem:[%s21689_s22 + $0xd8] sm:$0xff] }
0x4c07   :  { %13694 = vmatprep.subr.bf16.mxu1 %v16283_v6  ;;  %v13420_v6 = vld [vmem:[%s21689_s22 + $0x30] sm:$0xff] }
0x4c08   :  { %v16295_v19 = vcombine.high %v13420_v6, %v13428_v33 }
0x4c0c   :  { %v18621_v27 = vpop.eup %18620 }
0x4c0d   :  { %v13225_v24 = vmul.f32 %v18621_v27, %v18619_v50 }
0x4c0f   :  { %17807 = vmatmul.mubr.msk.f32.vlgmr.msra.gmra.mrb[174].mxu1 %vm771_vm2, %v13225_v24 }
0x4c10   :  { %13726 = vmatprep.mubr.bf16.mxu1 %v19360_v10 }
0x4ce2   :  { %v13298_v52 = vpop.f32.mrb[174].mxu1 }
0x4ce3   :  { %v17808_v53 = vpop.f32.mrb[175].mxu1  ;;  %17812 = vmatmul.mubr.msk.f32.vlgmr.msra.gmra.mrb[176].mxu0 %vm771_vm2, %v13298_v52  ;;  %v16305_v52 = vcombine.high %v13433_v12, %v13441_v51 }
0x4ce4   :  { %13767 = vmatprep.mubr.bf16.mxu0 %v19360_v10  ;;  %13736 = vmatpush1.bf16.msra.mxu0 %v16284_v8  ;;  %v13418_v53 = vld [vmem:[%s21689_s22 + $0x20] sm:$0xff]  ;;  %v13429_v8 = vld [vmem:[%s21689_s22 + $0x78] sm:$0xff] }
0x4ce5   :  { %13737 = vmatprep.subr.bf16.mxu0 %v16301_v36  ;;  %v16294_v36 = vcombine.low %v13420_v6, %v13428_v33 }
0x4ce8   :  { %13738 = vmatpush1.bf16.msra.mxu0 %v16300_v35  ;;  %v13445_v35 = vld [vmem:[%s21689_s22 + $0xf8] sm:$0xff] }
0x4ce9   :  { %13817 = vmatprep.subr.bf16.mxu0 %v16289_v41  ;;  %v18382_v41 = vld [vmem:[%s21690_s26] sm:$0xff]  }
0x4db6   :  { %v13371_v55 = vpop.f32.mrb[176].mxu0 }
0x4db7   :  { %v13375_v54 = vadd.f32 %v13371_v55, %v13135_v60  ;;  %v17813_v26 = vpop.f32.mrb[177].mxu0  ;;  %v13432_v60 = vld [vmem:[%s21689_s22 + $0x90] sm:$0xff]  ;;  %v13426_v55 = vld [vmem:[%s21689_s22 + $0x60] sm:$0xff] }
0x4db8   :  { %v16303_v49 = vcombine.high %v13432_v60, %v13440_v11  ;;  %v16302_v26 = vcombine.low %v13432_v60, %v13440_v11  ;;  %v18392_v60 = vld [vmem:[%s21690_s26 + $0x58] sm:$0xff]  }
0x4db9   :  { %v13383_v16 = vadd.f32 %v16279_v14, %v13375_v54  ;;  %v13419_v14 = vld [vmem:[%s21689_s22 + $0x28] sm:$0xff]  ;;  %v18393_v11 = vld [vmem:[%s21690_s26 + $0xd8] sm:$0xff]  }
0x4dba   :  { %v13427_v54 = vld [vmem:[%s21689_s22 + $0x68] sm:$0xff] }
0x4dbb   :  { %v13384_v15 = vadd.f32 %v13383_v16, %v21195_v20  ;;  %v16282_v20 = vcombine.low %v13414_v57, %v13422_v39  ;;  %v16304_v16 = vcombine.low %v13433_v12, %v13441_v51  ;;  %v16292_v57 = vcombine.low %v13419_v14, %v13427_v54  ;;  %v18394_v12 = vld [vmem:[%s21690_s26 + $0x18] sm:$0xff]  }
0x4dbc   :  { %v18395_v51 = vld [vmem:[%s21690_s26 + $0x98] sm:$0xff]  }
0x4dbd   :  { %v13385_v43 = vsel %vm606_vm1, %v13384_v15, 0.0  ;;  %13695 = vmatpush1.bf16.msra.mxu1 %v16282_v20  ;;  %v13421_v20 = vld [vmem:[%s21689_s22 + $0x38] sm:$0xff] }
0x4dbe   :  { %13386 = vadd.xlane.f32.xlu1 %v13385_v43  ;;  %13696 = vmatprep.subr.bf16.mxu1 %v16299_v25  ;;  %v16293_v43 = vcombine.high %v13419_v14, %v13427_v54  ;;  %v16297_v17 = vcombine.high %v13421_v20, %v13429_v8  ;;  %v13436_v25 = vld [vmem:[%s21689_s22 + $0xb0] sm:$0xff]  ;;  %v16296_v28 = vcombine.low %v13421_v20, %v13429_v8  ;;  %v18401_v14 = vld [vmem:[%s21690_s26 + $0xe8] sm:$0xff]  }
0x4dbf   :  { %v16311_v3 = vcombine.high %v13436_v25, %v13444_v29  ;;  %v18402_v54 = vld [vmem:[%s21690_s26 + $0x28] sm:$0xff]  }
0x4dc1   :  { %13697 = vmatpush1.bf16.msra.mxu1 %v16298_v32  ;;  %v13437_v32 = vld [vmem:[%s21689_s22 + $0xb8] sm:$0xff] }
0x4dc2   :  { %13776 = vmatprep.subr.bf16.mxu1 %v16287_v21  ;;  %v16313_v37 = vcombine.high %v13437_v32, %v13445_v35  ;;  %v16312_v21 = vcombine.low %v13437_v32, %v13445_v35 }
0x4e4b   :  { %v13387_v31 = vpop.xlane.xlu1 %13386 }
0x4e4c   :  { %v13388_v40 = vmul.f32 0.03125, %v13387_v31  ;;  %v13434_v31 = vld [vmem:[%s21689_s22 + $0xa0] sm:$0xff] }
0x4e4e   :  { %v13389_v30 = vsub.f32 %v13384_v15, %v13388_v40  ;;  %v16291_v15 = vcombine.high %v13418_v53, %v13426_v55  ;;  %v13442_v40 = vld [vmem:[%s21689_s22 + $0xe0] sm:$0xff] }
0x4e4f   :  { %v16307_v39 = vcombine.high %v13434_v31, %v13442_v40  ;;  %v16306_v9 = vcombine.low %v13434_v31, %v13442_v40  ;;  %v18407_v31 = vld [vmem:[%s21690_s26 + $0xb0] sm:$0xff]   ;;  %v18408_v40 = vld [vmem:[%s21690_s26 + $0x78] sm:$0xff]  }
0x4e50   :  { %v13390_v56 = vmul.f32 %v13389_v30, %v13389_v30 }
0x4e52   :  { %v13391_v61 = vsel %vm606_vm1, %v13390_v56, 0.0  ;;  %v13443_v56 = vld [vmem:[%s21689_s22 + $0xe8] sm:$0xff] }
0x4e53   :  { %13392 = vadd.xlane.f32.xlu1 %v13391_v61  ;;  %v16290_v61 = vcombine.low %v13418_v53, %v13426_v55  ;;  %v18399_v53 = vld [vmem:[%s21690_s26 + $0xa0] sm:$0xff]   ;;  %v18400_v55 = vld [vmem:[%s21690_s26 + $0x68] sm:$0xff]  }
0x4ee0   :  { %v13393_v62 = vpop.xlane.xlu1 %13392 }
0x4ee1   :  { %v13394_v13 = vmul.f32 0.03125, %v13393_v62  ;;  %v18383_v62 = vld [vmem:[%s21690_s26 + $0x80] sm:$0xff]  }
0x4ee3   :  { %v13395_v59 = vadd.f32 1e-05, %v13394_v13  ;;  %v18384_v13 = vld [vmem:[%s21690_s26 + $0x48] sm:$0xff]  }
0x4ee5   :  { %18622 = vrsqrt.f32 %v13395_v59  ;;  %v18385_v59 = vld [vmem:[%s21690_s26 + $0xc8] sm:$0xff]  }
0x4eef   :  { %v18623_v22 = vpop.eup %18622 }
0x4ef0   :  { %v13397_v50 = vmul.f32 %v18623_v22, %v13389_v30  ;;  %v13435_v30 = vld [vmem:[%s21689_s22 + $0xa8] sm:$0xff] }
0x4ef1   :  { %v16309_v5 = vcombine.high %v13435_v30, %v13443_v56  ;;  %v16308_v18 = vcombine.low %v13435_v30, %v13443_v56  ;;  %v18387_v22 = vld [vmem:[%s21690_s26 + $0x88] sm:$0xff]   ;;  %v18409_v30 = vld [vmem:[%s21690_s26 + $0xf8] sm:$0xff]  }
0x4ef2   :  { %v13405_v34 = vmul.f32 %v16280_v23, %v13397_v50  ;;  %v18388_v23 = vld [vmem:[%s21690_s26 + $0x50] sm:$0xff]   ;;  %v18410_v56 = vld [vmem:[%s21690_s26 + $0x38] sm:$0xff]  }
0x4ef3   :  { %v18389_v50 = vld [vmem:[%s21690_s26 + $0xd0] sm:$0xff]  }
0x4ef4   :  { %v21302_v27 = vadd.f32 %v16281_v42, %v13405_v34  ;;  %v18390_v42 = vld [vmem:[%s21690_s26 + $0x10] sm:$0xff]  }
0x4ef5   :  { %v18391_v34 = vld [vmem:[%s21690_s26 + $0x90] sm:$0xff]  }
0x4ef6   :  { %v21306_v24 = vpack.c.bf16 %v21302_v27, %v21302_v27 }
0x4ef8   :  { %16314 = vmatmul.mubr.msk.bf16.vlgmr.msra.gmra.mrb[176].mxu1 %vm606_vm1, %v21306_v24  ;;  %16315 = vmatmul.mubr.msk.bf16.vlgmr.msra.gmra.mrb[180].mxu0 %vm606_vm1, %v21306_v24 }
0x4ef9   :  { %13777 = vmatpush1.bf16.msra.mxu1 %v16286_v46  ;;  %13818 = vmatpush1.bf16.msra.mxu0 %v16288_v4  ;;  %v16310_v46 = vcombine.low %v13436_v25, %v13444_v29  ;;  %v18381_v4 = vld [vmem:[%s21690_s26 + $0xc0] sm:$0xff]  }
0x4efa   :  { %13778 = vmatprep.subr.bf16.mxu1 %v16303_v49  ;;  %13819 = vmatprep.subr.bf16.mxu0 %v16305_v52  ;;  %v18397_v49 = vld [vmem:[%s21690_s26 + $0xe0] sm:$0xff]  }
0x4efb   :  { %13808 = vmatprep.mubr.bf16.mxu1 %v19360_v10  ;;  %13849 = vmatprep.mubr.bf16.mxu0 %v19360_v10  ;;  %v18398_v52 = vld [vmem:[%s21690_s26 + $0x20] sm:$0xff]  }
0x4efd   :  { %13779 = vmatpush1.bf16.msra.mxu1 %v16302_v26  ;;  %13820 = vmatpush1.bf16.msra.mxu0 %v16304_v16  ;;  %v18403_v26 = vld [vmem:[%s21690_s26 + $0xa8] sm:$0xff]   ;;  %v18404_v16 = vld [vmem:[%s21690_s26 + $0x70] sm:$0xff]  }
0x4efe   :  { %13858 = vmatprep.subr.bf16.mxu1 %v16291_v15  ;;  %13899 = vmatprep.subr.bf16.mxu0 %v16293_v43  ;;  %v18405_v15 = vld [vmem:[%s21690_s26 + $0xf0] sm:$0xff]  }
0x4eff   :  { %v18406_v43 = vld [vmem:[%s21690_s26 + $0x30] sm:$0xff]  }
0x4f00   :  { %16316 = vmatmul.mubr.msk.bf16.vlgmr.msra.gmra.mrb[180].mxu1 %vm606_vm1, %v21306_v24  ;;  %16317 = vmatmul.mubr.msk.bf16.vlgmr.msra.gmra.mrb[184].mxu0 %vm606_vm1, %v21306_v24 }
0x4f01   :  { %13859 = vmatpush1.bf16.msra.mxu1 %v16290_v61  ;;  %13900 = vmatpush1.bf16.msra.mxu0 %v16292_v57  ;;  %v18411_v61 = vld [vmem:[%s21690_s26 + $0xb8] sm:$0xff]   ;;  %v18412_v57 = vld [vmem:[%s21690_s26 + $0x140] sm:$0xff]  }
0x4f02   :  { %13860 = vmatprep.subr.bf16.mxu1 %v16307_v39  ;;  %13901 = vmatprep.subr.bf16.mxu0 %v16309_v5  ;;  %v18413_v39 = vld [vmem:[%s21690_s26 + $0x1c0] sm:$0xff]  }
0x4f03   :  { %13890 = vmatprep.mubr.bf16.mxu1 %v19360_v10  ;;  %13931 = vmatprep.mubr.bf16.mxu0 %v19360_v10  ;;  %v21381_v5 = vld [vmem:[%s21691_s28] sm:$0xff] }
0x4f04   :  { %v13454_v6 = vrot.slane %v21381_v5, %v20037_v44  ;;  %v13462_v33 = vrot.slane %v21381_v5, %v20040_v45  ;;  %v13458_v20 = vrot.slane %v21381_v5, %v20046_v47  ;;  %v13466_v8 = vrot.slane %v21381_v5, %v20049_v48 }
0x4f05   :  { %13861 = vmatpush1.bf16.msra.mxu1 %v16306_v9  ;;  %13902 = vmatpush1.bf16.msra.mxu0 %v16308_v18 }
0x4f06   :  { %13940 = vmatprep.subr.bf16.mxu1 %v16295_v19  ;;  %13981 = vmatprep.subr.bf16.mxu0 %v16297_v17 }
0x4f08   :  { %16318 = vmatmul.mubr.msk.bf16.vlgmr.msra.gmra.mrb[184].mxu1 %vm606_vm1, %v21306_v24  ;;  %16319 = vmatmul.mubr.msk.bf16.vlgmr.msra.gmra.mrb[188].mxu0 %vm606_vm1, %v21306_v24 }
0x4f09   :  { %13941 = vmatpush1.bf16.msra.mxu1 %v16294_v36  ;;  %13982 = vmatpush1.bf16.msra.mxu0 %v16296_v28 }
0x4f0a   :  { %13942 = vmatprep.subr.bf16.mxu1 %v16311_v3  ;;  %13983 = vmatprep.subr.bf16.mxu0 %v16313_v37 }
0x4f0b   :  { %13972 = vmatprep.mubr.bf16.mxu1 %v19360_v10  ;;  %14013 = vmatprep.mubr.bf16.mxu0 %v19360_v10  ;;  %v18386_v10 = vld [vmem:[%s21690_s26 + $0x8] sm:$0xff]  }
0x4f0d   :  { %13943 = vmatpush1.bf16.msra.mxu1 %v16310_v46  ;;  %13984 = vmatpush1.bf16.msra.mxu0 %v16312_v21 }
0x4f0e   :  { %17174 = vmatprep.subr.bf16.mxu1 %v18380_v38  ;;  %17196 = vmatprep.subr.bf16.mxu0 %v18381_v4 }
0x4f10   :  { %16320 = vmatmul.mubr.msk.bf16.vlgmr.msra.gmra.mrb[188].mxu1 %vm606_vm1, %v21306_v24  ;;  %16321 = vmatmul.mubr.msk.bf16.vlgmr.msra.gmra.mrb[192].mxu0 %vm606_vm1, %v21306_v24  ;;  %v18396_v24 = vld [vmem:[%s21690_s26 + $0x60] sm:$0xff]  }
0x4f11   :  { %17175 = vmatpush3.bf16.msra.mxu1 %v18382_v41  ;;  %17197 = vmatpush3.bf16.msra.mxu0 %v18383_v62 }
0x4f12   :  { %17176 = vmatprep.subr.bf16.mxu1 %v18384_v13  ;;  %17198 = vmatprep.subr.bf16.mxu0 %v18385_v59  ;;  %v13474_v13 = vrot.slane %v21381_v5, %v20060_v63  ;;  %v13482_v59 = vrot.slane %v21381_v5, %v20063_v2 }
0x4f15   :  { %17177 = vmatpush3.bf16.msra.mxu1 %v18386_v10  ;;  %17199 = vmatpush3.bf16.msra.mxu0 %v18387_v22  ;;  %v18414_v10 = vld [vmem:[%s21690_s26 + $0x100] sm:$0xff]  }
0x4f16   :  { %17178 = vmatprep.subr.bf16.mxu1 %v18388_v23  ;;  %17200 = vmatprep.subr.bf16.mxu0 %v18389_v50  ;;  %v18415_v22 = vld [vmem:[%s21690_s26 + $0x180] sm:$0xff]  }
0x4f19   :  { %17179 = vmatpush3.bf16.msra.mxu1 %v18390_v42  ;;  %17201 = vmatpush3.bf16.msra.mxu0 %v18391_v34  ;;  %v18416_v42 = vld [vmem:[%s21690_s26 + $0x148] sm:$0xff]  }
0x4f1a   :  { %17180 = vmatprep.subr.bf16.mxu1 %v18392_v60  ;;  %17202 = vmatprep.subr.bf16.mxu0 %v18393_v11  ;;  %v18417_v34 = vld [vmem:[%s21690_s26 + $0x1c8] sm:$0xff]  }
0x4f1d   :  { %17181 = vmatpush3.bf16.msra.mxu1 %v18394_v12  ;;  %17203 = vmatpush3.bf16.msra.mxu0 %v18395_v51 }
0x4f1e   :  { %17182 = vmatprep.subr.bf16.mxu1 %v18396_v24  ;;  %17204 = vmatprep.subr.bf16.mxu0 %v18397_v49 }
0x4f21   :  { %17183 = vmatpush3.bf16.msra.mxu1 %v18398_v52  ;;  %17205 = vmatpush3.bf16.msra.mxu0 %v18399_v53 }
0x4f22   :  { %17184 = vmatprep.subr.bf16.mxu1 %v18400_v55  ;;  %17206 = vmatprep.subr.bf16.mxu0 %v18401_v14  ;;  %v18418_v55 = vld [vmem:[%s21690_s26 + $0x108] sm:$0xff]  }
0x4f23   :  { %v18419_v14 = vld [vmem:[%s21690_s26 + $0x188] sm:$0xff]  }
0x4f25   :  { %17185 = vmatpush3.bf16.msra.mxu1 %v18402_v54  ;;  %17207 = vmatpush3.bf16.msra.mxu0 %v18403_v26 }
0x4f26   :  { %17186 = vmatprep.subr.bf16.mxu1 %v18404_v16  ;;  %17208 = vmatprep.subr.bf16.mxu0 %v18405_v15  ;;  %v18420_v16 = vld [vmem:[%s21690_s26 + $0x150] sm:$0xff]  }
0x4f27   :  { %v18421_v15 = vld [vmem:[%s21690_s26 + $0x1d0] sm:$0xff]  }
0x4f29   :  { %17187 = vmatpush3.bf16.msra.mxu1 %v18406_v43  ;;  %17209 = vmatpush3.bf16.msra.mxu0 %v18407_v31 }
0x4f2a   :  { %17188 = vmatprep.subr.bf16.mxu1 %v18408_v40  ;;  %17210 = vmatprep.subr.bf16.mxu0 %v18409_v30 }
0x4f2d   :  { %17189 = vmatpush3.bf16.msra.mxu1 %v18410_v56  ;;  %17211 = vmatpush3.bf16.msra.mxu0 %v18411_v61  ;;  %v18422_v56 = vld [vmem:[%s21690_s26 + $0x110] sm:$0xff]  }
0x4f2e   :  { %17218 = vmatprep.subr.bf16.mxu1 %v18412_v57  ;;  %17240 = vmatprep.subr.bf16.mxu0 %v18413_v39  ;;  %v18423_v61 = vld [vmem:[%s21690_s26 + $0x190] sm:$0xff]   ;;  %v18424_v57 = vld [vmem:[%s21690_s26 + $0x158] sm:$0xff]  }
0x4f2f   :  { %v18425_v39 = vld [vmem:[%s21690_s26 + $0x1d8] sm:$0xff]  }
0x4fcb   :  { %v13728_v9 = vpop.f32.mrb[176].mxu1  ;;  %v13769_v18 = vpop.f32.mrb[180].mxu0 }
0x4fcc   :  { %v13729_v19 = vadd.f32 %v13728_v9, %v13454_v6  ;;  %v13770_v17 = vadd.f32 %v13769_v18, %v13462_v33  ;;  %v13730_v25 = vpop.f32.mrb[177].mxu1  ;;  %v13771_v29 = vpop.f32.mrb[181].mxu0 }
0x4fcd   :  { %v13731_v32 = vadd.f32 %v13730_v25, %v13458_v20  ;;  %v13772_v35 = vadd.f32 %v13771_v29, %v13466_v8  ;;  %v13732_v36 = vpop.f32.mrb[178].mxu1  ;;  %v13773_v28 = vpop.f32.mrb[182].mxu0 }
0x4fce   :  { %v14022_v3 = vmax.f32 %v13729_v19, 0.0  ;;  %v14024_v37 = vmax.f32 %v13770_v17, 0.0  ;;  %v13733_v46 = vpop.f32.mrb[179].mxu1  ;;  %v13774_v21 = vpop.f32.mrb[183].mxu0  ;;  %v18426_v19 = vld [vmem:[%s21690_s26 + $0x118] sm:$0xff]   ;;  %v21420_v36 = vld [vmem:[%s21691_s28 + $0x8] sm:$0xff] }
0x4fcf   :  { %v14023_v38 = vmax.f32 %v13731_v32, 0.0  ;;  %v14025_v4 = vmax.f32 %v13772_v35, 0.0  ;;  %v18427_v17 = vld [vmem:[%s21690_s26 + $0x198] sm:$0xff]   ;;  %v18428_v32 = vld [vmem:[%s21690_s26 + $0x160] sm:$0xff]   ;;  %v13510_v28 = vrot.slane %v21420_v36, %v20092_v58  ;;  %v18432_v46 = vld [vmem:[%s21690_s26 + $0x168] sm:$0xff]  }
0x4fd0   :  { %v14294_v23 = vpack.c.bf16 %v14022_v3, %v14022_v3  ;;  %v14296_v50 = vpack.c.bf16 %v14024_v37, %v14024_v37  ;;  %v18429_v35 = vld [vmem:[%s21690_s26 + $0x1e0] sm:$0xff]   ;;  %v18433_v21 = vld [vmem:[%s21690_s26 + $0x1e8] sm:$0xff]  }
0x4fd1   :  { %v14295_v41 = vpack.c.bf16 %v14023_v38, %v14023_v38  ;;  %v14297_v62 = vpack.c.bf16 %v14025_v4, %v14025_v4  ;;  %v18430_v3 = vld [vmem:[%s21690_s26 + $0x120] sm:$0xff]  }
0x4fd2   :  { %v18431_v37 = vld [vmem:[%s21690_s26 + $0x1a0] sm:$0xff]  }
0x4fd3   :  { %v21399_v60 = vpop.f32.mrb[180].mxu1  ;;  %v21401_v11 = vpop.f32.mrb[184].mxu0  ;;  %15117 = vmatprep.mubr.bf16.mxu1 %v14295_v41  ;;  %15157 = vmatprep.mubr.bf16.mxu0 %v14297_v62 }
0x4fd4   :  { %v13812_v12 = vpop.f32.mrb[181].mxu1  ;;  %v13853_v51 = vpop.f32.mrb[185].mxu0  ;;  %15118 = vmatmul.mubr.bf16.vlgmr.msra.gmra.mrb[192].mxu1 %v14294_v23  ;;  %15158 = vmatmul.mubr.bf16.vlgmr.msra.gmra.mrb[196].mxu0 %v14296_v50  ;;  %v18435_v23 = vld [vmem:[%s21690_s26 + $0x1a8] sm:$0xff]   ;;  %v13470_v50 = vrot.slane %v21381_v5, %v20104_v7 }
0x4fd5   :  { %v13813_v24 = vadd.f32 %v13812_v12, %v13474_v13  ;;  %v13854_v49 = vadd.f32 %v13853_v51, %v13482_v59  ;;  %17219 = vmatpush3.bf16.msra.mxu1 %v18414_v10  ;;  %17241 = vmatpush3.bf16.msra.mxu0 %v18415_v22  ;;  %v13814_v52 = vpop.f32.mrb[182].mxu1  ;;  %v13855_v53 = vpop.f32.mrb[186].mxu0  ;;  %v18434_v22 = vld [vmem:[%s21690_s26 + $0x128] sm:$0xff]   ;;  %v18436_v51 = vld [vmem:[%s21690_s26 + $0x170] sm:$0xff]  }
0x4fd6   :  { %v13815_v54 = vpop.f32.mrb[183].mxu1  ;;  %v13856_v26 = vpop.f32.mrb[187].mxu0  ;;  %17220 = vmatprep.subr.bf16.mxu1 %v18416_v42  ;;  %17242 = vmatprep.subr.bf16.mxu0 %v18417_v34  ;;  %v13478_v42 = vrot.slane %v21381_v5, %v20092_v58  ;;  %v13498_v52 = vrot.slane %v21420_v36, %v20049_v48  ;;  %v18438_v53 = vld [vmem:[%s21690_s26 + $0x130] sm:$0xff]   ;;  %v13811_v5 = vadd.f32 %v21399_v60, %v13470_v50  ;;  %v18442_v48 = vld [vmem:[%s21690_s26 + $0x138] sm:$0xff]   ;;  %v18444_v60 = vld [vmem:[%s21690_s26 + $0x240] sm:$0xff]  }
0x4fd7   :  { %v14027_v43 = vmax.f32 %v13813_v24, 0.0  ;;  %v14029_v31 = vmax.f32 %v13854_v49, 0.0  ;;  %v18437_v24 = vld [vmem:[%s21690_s26 + $0x1f0] sm:$0xff]   ;;  %v13490_v49 = vrot.slane %v21420_v36, %v20046_v47  ;;  %v18441_v54 = vld [vmem:[%s21690_s26 + $0x1f8] sm:$0xff]   ;;  %v13486_v50 = vrot.slane %v21420_v36, %v20037_v44 }
0x4fd8   :  { %v18439_v58 = vld [vmem:[%s21690_s26 + $0x1b0] sm:$0xff]  }
0x4fd9   :  { %v14299_v40 = vpack.c.bf16 %v14027_v43, %v14027_v43  ;;  %v14301_v30 = vpack.c.bf16 %v14029_v31, %v14029_v31  ;;  %17221 = vmatpush3.bf16.msra.mxu1 %v18418_v55  ;;  %17243 = vmatpush3.bf16.msra.mxu0 %v18419_v14  ;;  %v13852_v55 = vadd.f32 %v21401_v11, %v13478_v42  ;;  %v18440_v14 = vld [vmem:[%s21690_s26 + $0x178] sm:$0xff]   ;;  %v18445_v11 = vld [vmem:[%s21690_s26 + $0x2c0] sm:$0xff]   ;;  %v18467_v42 = vld [vmem:[%s21690_s26 + $0x2a8] sm:$0xff]  }
0x4fda   :  { %17222 = vmatprep.subr.bf16.mxu1 %v18420_v16  ;;  %17244 = vmatprep.subr.bf16.mxu0 %v18421_v15  ;;  %v18443_v16 = vld [vmem:[%s21690_s26 + $0x1b8] sm:$0xff]   ;;  %v14026_v15 = vmax.f32 %v13811_v5, 0.0  ;;  %v18470_v44 = vld [vmem:[%s21690_s26 + $0x230] sm:$0xff]  }
0x4fdb   :  { %v21411_v6 = vpop.f32.mrb[184].mxu1  ;;  %v21413_v33 = vpop.f32.mrb[188].mxu0  ;;  %15197 = vmatprep.mubr.bf16.mxu1 %v14299_v40  ;;  %15237 = vmatprep.mubr.bf16.mxu0 %v14301_v30  ;;  %v14028_v43 = vmax.f32 %v13852_v55, 0.0  ;;  %v18446_v30 = vld [vmem:[%s21690_s26 + $0x200] sm:$0xff]   ;;  %v18473_v5 = vld [vmem:[%s21690_s26 + $0x2f8] sm:$0xff]  }
0x4fdc   :  { %v13894_v20 = vpop.f32.mrb[185].mxu1  ;;  %v13935_v8 = vpop.f32.mrb[189].mxu0  ;;  %v18474_v55 = vld [vmem:[%s21690_s26 + $0x238] sm:$0xff]  }
0x4fdd   :  { %17223 = vmatpush3.bf16.msra.mxu1 %v18422_v56  ;;  %17245 = vmatpush3.bf16.msra.mxu0 %v18423_v61  ;;  %v13896_v9 = vpop.f32.mrb[186].mxu1  ;;  %v13937_v18 = vpop.f32.mrb[190].mxu0  ;;  %v13895_v47 = vadd.f32 %v13894_v20, %v13490_v49  ;;  %v13936_v26 = vadd.f32 %v13935_v8, %v13498_v52  ;;  %v14298_v56 = vpack.c.bf16 %v14026_v15, %v14026_v15  ;;  %v18448_v20 = vld [vmem:[%s21690_s26 + $0x248] sm:$0xff]  }
0x4fde   :  { %v13897_v25 = vpop.f32.mrb[187].mxu1  ;;  %v13938_v29 = vpop.f32.mrb[191].mxu0  ;;  %17224 = vmatprep.subr.bf16.mxu1 %v18424_v57  ;;  %17246 = vmatprep.subr.bf16.mxu0 %v18425_v39  ;;  %v14300_v61 = vpack.c.bf16 %v14028_v43, %v14028_v43  ;;  %v18447_v57 = vld [vmem:[%s21690_s26 + $0x280] sm:$0xff]   ;;  %v18449_v8 = vld [vmem:[%s21690_s26 + $0x2c8] sm:$0xff]   ;;  %v13514_v49 = vrot.slane %v21420_v36, %v20063_v2  ;;  %v13893_v52 = vadd.f32 %v21411_v6, %v13486_v50  ;;  %v18475_v6 = vld [vmem:[%s21690_s26 + $0x2b8] sm:$0xff]  }
0x4fdf   :  { %v14031_v31 = vmax.f32 %v13895_v47, 0.0  ;;  %v14033_v40 = vmax.f32 %v13936_v26, 0.0  ;;  %v18450_v18 = vld [vmem:[%s21690_s26 + $0x208] sm:$0xff]   ;;  %v18453_v25 = vld [vmem:[%s21690_s26 + $0x2d0] sm:$0xff]   ;;  %v18507_v50 = vld [vmem:[%s21690_s26 + $0x3b8] sm:$0xff]  }
0x4fe0   :  { %v18454_v29 = vld [vmem:[%s21690_s26 + $0x210] sm:$0xff]   ;;  %v18480_v43 = vld [vmem:[%s21690_s26 + $0x348] sm:$0xff]  }
0x4fe1   :  { %17225 = vmatpush3.bf16.msra.mxu1 %v18426_v19  ;;  %17247 = vmatpush3.bf16.msra.mxu0 %v18427_v17  ;;  %v14303_v39 = vpack.c.bf16 %v14031_v31, %v14031_v31  ;;  %v14305_v9 = vpack.c.bf16 %v14033_v40, %v14033_v40  ;;  %v18451_v19 = vld [vmem:[%s21690_s26 + $0x288] sm:$0xff]   ;;  %v18452_v17 = vld [vmem:[%s21690_s26 + $0x250] sm:$0xff]  }
0x4fe2   :  { %17226 = vmatprep.subr.bf16.mxu1 %v18428_v32  ;;  %17248 = vmatprep.subr.bf16.mxu0 %v18429_v35  ;;  %v18455_v32 = vld [vmem:[%s21690_s26 + $0x290] sm:$0xff]   ;;  %v18456_v35 = vld [vmem:[%s21690_s26 + $0x258] sm:$0xff]   ;;  %v18482_v40 = vld [vmem:[%s21690_s26 + $0x308] sm:$0xff]  }
0x4fe3   :  { %v21428_v38 = vpop.f32.mrb[188].mxu1  ;;  %v14015_v4 = vpop.f32.mrb[192].mxu0 }
0x4fe4   :  { %v21430_v41 = vadd.f32 %v14015_v4, %v13510_v28  ;;  %v21432_v62 = vpop.f32.mrb[189].mxu1  ;;  %v21434_v13 = vpop.f32.mrb[193].mxu0  ;;  %v18457_v28 = vld [vmem:[%s21690_s26 + $0x2d8] sm:$0xff]   ;;  %v18462_v4 = vld [vmem:[%s21690_s26 + $0x220] sm:$0xff]  }
0x4fe5   :  { %17227 = vmatpush3.bf16.msra.mxu1 %v18430_v3  ;;  %17249 = vmatpush3.bf16.msra.mxu0 %v18431_v37  ;;  %v13978_v59 = vpop.f32.mrb[190].mxu1  ;;  %v14019_v10 = vpop.f32.mrb[194].mxu0  ;;  %v18458_v3 = vld [vmem:[%s21690_s26 + $0x218] sm:$0xff]   ;;  %v14018_v2 = vadd.f32 %v21434_v13, %v13514_v49  ;;  %v18479_v13 = vld [vmem:[%s21690_s26 + $0x380] sm:$0xff]  }
0x4fe6   :  { %v13979_v34 = vpop.f32.mrb[191].mxu1  ;;  %v14020_v12 = vpop.f32.mrb[195].mxu0  ;;  %17228 = vmatprep.subr.bf16.mxu1 %v18432_v46  ;;  %17250 = vmatprep.subr.bf16.mxu0 %v18433_v21  ;;  %v18459_v37 = vld [vmem:[%s21690_s26 + $0x298] sm:$0xff]   ;;  %v18460_v46 = vld [vmem:[%s21690_s26 + $0x260] sm:$0xff]   ;;  %v18464_v10 = vld [vmem:[%s21690_s26 + $0x268] sm:$0xff]  }
0x4fe7   :  { %v18461_v21 = vld [vmem:[%s21690_s26 + $0x2e0] sm:$0xff]   ;;  %v18468_v34 = vld [vmem:[%s21690_s26 + $0x270] sm:$0xff]   ;;  %v13494_v12 = vrot.slane %v21420_v36, %v20040_v45  ;;  %v18472_v45 = vld [vmem:[%s21690_s26 + $0x278] sm:$0xff]  }
0x4fe8   :  { %v18463_v59 = vld [vmem:[%s21690_s26 + $0x2a0] sm:$0xff]  }
0x4fe9   :  { %17229 = vmatpush3.bf16.msra.mxu1 %v18434_v22  ;;  %17251 = vmatpush3.bf16.msra.mxu0 %v18435_v23  ;;  %v18465_v22 = vld [vmem:[%s21690_s26 + $0x2e8] sm:$0xff]  }
0x4fea   :  { %17230 = vmatprep.subr.bf16.mxu1 %v18436_v51  ;;  %17252 = vmatprep.subr.bf16.mxu0 %v18437_v24  ;;  %v18466_v23 = vld [vmem:[%s21690_s26 + $0x228] sm:$0xff]   ;;  %v18469_v51 = vld [vmem:[%s21690_s26 + $0x2f0] sm:$0xff]   ;;  %v13506_v24 = vrot.slane %v21420_v36, %v20060_v63 }
0x4fec   :  { %v13977_v63 = vadd.f32 %v21432_v62, %v13506_v24  ;;  %v18478_v62 = vld [vmem:[%s21690_s26 + $0x300] sm:$0xff]  }
0x4fed   :  { %17231 = vmatpush3.bf16.msra.mxu1 %v18438_v53  ;;  %17253 = vmatpush3.bf16.msra.mxu0 %v18439_v58  ;;  %v18471_v53 = vld [vmem:[%s21690_s26 + $0x2b0] sm:$0xff]   ;;  %v13934_v58 = vadd.f32 %v21413_v33, %v13494_v12  ;;  %v18477_v33 = vld [vmem:[%s21690_s26 + $0x3c0] sm:$0xff]  }
0x4fee   :  { %17232 = vmatprep.subr.bf16.mxu1 %v18440_v14  ;;  %17254 = vmatprep.subr.bf16.mxu0 %v18441_v54  ;;  %v14030_v14 = vmax.f32 %v13893_v52, 0.0  ;;  %v18476_v54 = vld [vmem:[%s21690_s26 + $0x340] sm:$0xff]   ;;  %v14035_v26 = vmax.f32 %v13977_v63, 0.0 }
0x4fef   :  { %v14032_v47 = vmax.f32 %v13934_v58, 0.0  ;;  %v16322_v24 = vld [vmem:[%s21692_s14] ss:$0 sm:$0xff] }
0x4ff1   :  { %17233 = vmatpush3.bf16.msra.mxu1 %v18442_v48  ;;  %17255 = vmatpush3.bf16.msra.mxu0 %v18443_v16  ;;  %v14037_v48 = vmax.f32 %v14018_v2, 0.0  ;;  %v14302_v16 = vpack.c.bf16 %v14030_v14, %v14030_v14  ;;  %v14304_v15 = vpack.c.bf16 %v14032_v47, %v14032_v47 }
0x4ff2   :  { %17262 = vmatprep.subr.bf16.mxu1 %v18444_v60  ;;  %17284 = vmatprep.subr.bf16.mxu0 %v18445_v11  ;;  %v14307_v60 = vpack.c.bf16 %v14035_v26, %v14035_v26  ;;  %v18481_v11 = vld [vmem:[%s21690_s26 + $0x3c8] sm:$0xff]  }
0x4ff3   :  { %v14309_v31 = vpack.c.bf16 %v14037_v48, %v14037_v48 }
0x4ff4   :  { %15198 = vmatmul.mubr.bf16.vlgmr.msra.gmra.mrb[196].mxu1 %v14298_v56  ;;  %15238 = vmatmul.mubr.bf16.vlgmr.msra.gmra.mrb[200].mxu0 %v14300_v61  ;;  %v18484_v56 = vld [vmem:[%s21690_s26 + $0x350] sm:$0xff]  }
0x4ff5   :  { %17263 = vmatpush3.bf16.msra.mxu1 %v18446_v30  ;;  %15277 = vmatprep.mubr.bf16.mxu1 %v14303_v39  ;;  %v18483_v30 = vld [vmem:[%s21690_s26 + $0x388] sm:$0xff]   ;;  %v18485_v61 = vld [vmem:[%s21690_s26 + $0x3d0] sm:$0xff]  }
0x4ff6   :  { %17285 = vmatpush3.bf16.msra.mxu0 %v18447_v57  ;;  %15317 = vmatprep.mubr.bf16.mxu0 %v14305_v9  ;;  %v18486_v57 = vld [vmem:[%s21690_s26 + $0x310] sm:$0xff]   ;;  %v18490_v9 = vld [vmem:[%s21690_s26 + $0x318] sm:$0xff]  }
0x4ff7   :  { %17264 = vmatprep.subr.bf16.mxu1 %v18448_v20  ;;  %17286 = vmatprep.subr.bf16.mxu0 %v18449_v8  ;;  %v18487_v39 = vld [vmem:[%s21690_s26 + $0x390] sm:$0xff]   ;;  %v18488_v20 = vld [vmem:[%s21690_s26 + $0x358] sm:$0xff]  }
0x4ff8   :  { %v18489_v8 = vld [vmem:[%s21690_s26 + $0x3d8] sm:$0xff]  }
0x4ff9   :  { %17265 = vmatpush3.bf16.msra.mxu1 %v18450_v18  ;;  %v18491_v18 = vld [vmem:[%s21690_s26 + $0x398] sm:$0xff]  }
0x4ffa   :  { %17287 = vmatpush3.bf16.msra.mxu0 %v18451_v19  ;;  %17266 = vmatprep.subr.bf16.mxu1 %v18452_v17  ;;  %v18492_v19 = vld [vmem:[%s21690_s26 + $0x360] sm:$0xff]  }
0x4ffb   :  { %17288 = vmatprep.subr.bf16.mxu0 %v18453_v25  ;;  %v18493_v17 = vld [vmem:[%s21690_s26 + $0x3e0] sm:$0xff]  }
0x4ffc   :  { %v18494_v25 = vld [vmem:[%s21690_s26 + $0x320] sm:$0xff]  }
0x4ffd   :  { %17267 = vmatpush3.bf16.msra.mxu1 %v18454_v29  ;;  %v18495_v29 = vld [vmem:[%s21690_s26 + $0x3a0] sm:$0xff]  }
0x4ffe   :  { %17289 = vmatpush3.bf16.msra.mxu0 %v18455_v32  ;;  %17268 = vmatprep.subr.bf16.mxu1 %v18456_v35  ;;  %v18496_v32 = vld [vmem:[%s21690_s26 + $0x368] sm:$0xff]  }
0x4fff   :  { %17290 = vmatprep.subr.bf16.mxu0 %v18457_v28  ;;  %v18497_v35 = vld [vmem:[%s21690_s26 + $0x3e8] sm:$0xff]  }
0x5000   :  { %v18498_v28 = vld [vmem:[%s21690_s26 + $0x328] sm:$0xff]  }
0x5001   :  { %17269 = vmatpush3.bf16.msra.mxu1 %v18458_v3  ;;  %v13502_v3 = vrot.slane %v21420_v36, %v20104_v7  ;;  %v18506_v7 = vld [vmem:[%s21690_s26 + $0x338] sm:$0xff]  }
0x5002   :  { %17291 = vmatpush3.bf16.msra.mxu0 %v18459_v37  ;;  %17270 = vmatprep.subr.bf16.mxu1 %v18460_v46  ;;  %v18499_v37 = vld [vmem:[%s21690_s26 + $0x3a8] sm:$0xff]   ;;  %v18500_v46 = vld [vmem:[%s21690_s26 + $0x370] sm:$0xff]  }
0x5003   :  { %17292 = vmatprep.subr.bf16.mxu0 %v18461_v21  ;;  %v18501_v21 = vld [vmem:[%s21690_s26 + $0x3f0] sm:$0xff]  }
0x5005   :  { %17271 = vmatpush3.bf16.msra.mxu1 %v18462_v4  ;;  %v18502_v4 = vld [vmem:[%s21690_s26 + $0x330] sm:$0xff]  }
0x5006   :  { %17293 = vmatpush3.bf16.msra.mxu0 %v18463_v59  ;;  %17272 = vmatprep.subr.bf16.mxu1 %v18464_v10  ;;  %v13975_v59 = vadd.f32 %v21428_v38, %v13502_v3  ;;  %v18503_v10 = vld [vmem:[%s21690_s26 + $0x3b0] sm:$0xff]  }
0x5007   :  { %17294 = vmatprep.subr.bf16.mxu0 %v18465_v22  ;;  %v18504_v22 = vld [vmem:[%s21690_s26 + $0x378] sm:$0xff]  }
0x5008   :  { %v14034_v36 = vmax.f32 %v13975_v59, 0.0 }
0x5009   :  { %17273 = vmatpush3.bf16.msra.mxu1 %v18466_v23  ;;  %v18505_v23 = vld [vmem:[%s21690_s26 + $0x3f8] sm:$0xff]  }
0x500a   :  { %17295 = vmatpush3.bf16.msra.mxu0 %v18467_v42  ;;  %17274 = vmatprep.subr.bf16.mxu1 %v18468_v34  ;;  %v14036_v42 = vmax.f32 %v21430_v41, 0.0  ;;  %v14306_v34 = vpack.c.bf16 %v14034_v36, %v14034_v36 }
0x500b   :  { %17296 = vmatprep.subr.bf16.mxu0 %v18469_v51 }
0x500c   :  { %v14308_v38 = vpack.c.bf16 %v14036_v42, %v14036_v42 }
0x500d   :  { %17275 = vmatpush3.bf16.msra.mxu1 %v18470_v44 }
0x500e   :  { %17297 = vmatpush3.bf16.msra.mxu0 %v18471_v53  ;;  %17276 = vmatprep.subr.bf16.mxu1 %v18472_v45 }
0x500f   :  { %17298 = vmatprep.subr.bf16.mxu0 %v18473_v5 }
0x5011   :  { %17277 = vmatpush3.bf16.msra.mxu1 %v18474_v55 }
0x5012   :  { %17299 = vmatpush3.bf16.msra.mxu0 %v18475_v6  ;;  %17306 = vmatprep.subr.bf16.mxu1 %v18476_v54 }
0x5013   :  { %17328 = vmatprep.subr.bf16.mxu0 %v18477_v33 }
0x5014   :  { %15278 = vmatmul.mubr.bf16.vlgmr.msra.gmra.mrb[200].mxu1 %v14302_v16 }
0x5015   :  { %15318 = vmatmul.mubr.bf16.vlgmr.msra.gmra.mrb[204].mxu0 %v14304_v15  ;;  %17307 = vmatpush3.bf16.msra.mxu1 %v18478_v62 }
0x5016   :  { %15357 = vmatprep.mubr.bf16.mxu1 %v14307_v60  ;;  %17329 = vmatpush3.bf16.msra.mxu0 %v18479_v13 }
0x5017   :  { %15397 = vmatprep.mubr.bf16.mxu0 %v14309_v31  ;;  %17308 = vmatprep.subr.bf16.mxu1 %v18480_v43 }
0x5018   :  { %17330 = vmatprep.subr.bf16.mxu0 %v18481_v11 }
0x5019   :  { %17309 = vmatpush3.bf16.msra.mxu1 %v18482_v40 }
0x501a   :  { %17331 = vmatpush3.bf16.msra.mxu0 %v18483_v30  ;;  %17310 = vmatprep.subr.bf16.mxu1 %v18484_v56 }
0x501b   :  { %17332 = vmatprep.subr.bf16.mxu0 %v18485_v61 }
0x501d   :  { %17311 = vmatpush3.bf16.msra.mxu1 %v18486_v57 }
0x501e   :  { %17333 = vmatpush3.bf16.msra.mxu0 %v18487_v39  ;;  %17312 = vmatprep.subr.bf16.mxu1 %v18488_v20 }
0x501f   :  { %17334 = vmatprep.subr.bf16.mxu0 %v18489_v8 }
0x5021   :  { %17313 = vmatpush3.bf16.msra.mxu1 %v18490_v9 }
0x5022   :  { %17335 = vmatpush3.bf16.msra.mxu0 %v18491_v18  ;;  %17314 = vmatprep.subr.bf16.mxu1 %v18492_v19 }
0x5023   :  { %17336 = vmatprep.subr.bf16.mxu0 %v18493_v17 }
0x5025   :  { %17315 = vmatpush3.bf16.msra.mxu1 %v18494_v25 }
0x5026   :  { %17337 = vmatpush3.bf16.msra.mxu0 %v18495_v29  ;;  %17316 = vmatprep.subr.bf16.mxu1 %v18496_v32 }
0x5027   :  { %17338 = vmatprep.subr.bf16.mxu0 %v18497_v35 }
0x5029   :  { %17317 = vmatpush3.bf16.msra.mxu1 %v18498_v28 }
0x502a   :  { %17339 = vmatpush3.bf16.msra.mxu0 %v18499_v37  ;;  %17318 = vmatprep.subr.bf16.mxu1 %v18500_v46 }
0x502b   :  { %17340 = vmatprep.subr.bf16.mxu0 %v18501_v21 }
0x502d   :  { %17319 = vmatpush3.bf16.msra.mxu1 %v18502_v4 }
0x502e   :  { %17341 = vmatpush3.bf16.msra.mxu0 %v18503_v10  ;;  %17320 = vmatprep.subr.bf16.mxu1 %v18504_v22 }
0x502f   :  { %17342 = vmatprep.subr.bf16.mxu0 %v18505_v23 }
0x5031   :  { %17321 = vmatpush3.bf16.msra.mxu1 %v18506_v7 }
0x5032   :  { %17343 = vmatpush3.bf16.msra.mxu0 %v18507_v50  ;;  %17879 = vmatprep.subr.bf16.mxu1 %v19346_v0 }
0x5034   :  { %15358 = vmatmul.mubr.bf16.vlgmr.msra.gmra.mrb[204].mxu1 %v14306_v34  ;;  %v16451_v34 = vld [vmem:[#allocation9] ss:$0 sm:$0xff] }
0x5035   :  { %15398 = vmatmul.mubr.bf16.vlgmr.msra.gmra.mrb[208].mxu0 %v14308_v38  ;;  %17822 = vmatprep.mubr.msk.f32.mxu1 %vm19347_vm0, %v19348_v1 }
0x50a7   :  { %v17190_v12 = vpop.f32.mrb[192].mxu1  ;;  %v17212_v51 = vpop.f32.mrb[196].mxu0 }
0x50a8   :  { %v17191_v49 = vpop.f32.mrb[193].mxu1  ;;  %v17213_v44 = vpop.f32.mrb[197].mxu0 }
0x50a9   :  { %v17192_v52 = vadd.f32 %v17191_v49, %v17190_v12  ;;  %v17214_v53 = vadd.f32 %v17213_v44, %v17212_v51  ;;  %v17193_v41 = vpop.f32.mrb[194].mxu1  ;;  %v17215_v45 = vpop.f32.mrb[198].mxu0 }
0x50aa   :  { %v17194_v58 = vpop.f32.mrb[195].mxu1  ;;  %v17216_v5 = vpop.f32.mrb[199].mxu0  ;;  %v15464_v45 = vld [vmem:[%s19709_s27] sm:$0xff] }
0x50ab   :  { %v15120_v63 = vadd.f32 %v17192_v52, %v16322_v24  ;;  %v15465_v58 = vld [vmem:[%s19709_s27 + $0x8] sm:$0xff] }
0x50ac   :  { %v17880_v5 = vpack.c.bf16 %v15465_v58, %v15464_v45 }
0x50ad   :  { %v15160_v2 = vadd.f32 %v17214_v53, %v15120_v63  ;;  %v15466_v63 = vld [vmem:[%s19709_s27 + $0x10] sm:$0xff] }
0x50ae   :  { %17881 = vmatpush3.bf16.msra.mxu1 %v17880_v5 }
0x50af   :  { %17882 = vmatprep.subr.bf16.mxu1 %v19346_v0 }
0x50c7   :  { %v17234_v55 = vpop.f32.mrb[196].mxu1  ;;  %v17256_v14 = vpop.f32.mrb[200].mxu0 }
0x50c8   :  { %v17235_v6 = vpop.f32.mrb[197].mxu1  ;;  %v17257_v54 = vpop.f32.mrb[201].mxu0 }
0x50c9   :  { %v17236_v47 = vadd.f32 %v17235_v6, %v17234_v55  ;;  %v17258_v33 = vadd.f32 %v17257_v54, %v17256_v14  ;;  %v17237_v1 = vpop.f32.mrb[198].mxu1  ;;  %v17259_v26 = vpop.f32.mrb[202].mxu0 }
0x50ca   :  { %v17238_v48 = vpop.f32.mrb[199].mxu1  ;;  %v17260_v62 = vpop.f32.mrb[203].mxu0  ;;  %v16454_v26 = vld [vmem:[#allocation13] ss:$0 sm:$0xff] }
0x50cb   :  { %v15200_v16 = vadd.f32 %v17236_v47, %v15160_v2  ;;  %v15467_v2 = vld [vmem:[%s19709_s27 + $0x18] sm:$0xff] }
0x50cc   :  { %v17883_v55 = vpack.c.bf16 %v15467_v2, %v15466_v63 }
0x50cd   :  { %v15240_v13 = vadd.f32 %v17258_v33, %v15200_v16  ;;  %v16453_v33 = vld [vmem:[#allocation15] ss:$0 sm:$0xff]  ;;  %v16455_v16 = vld [vmem:[#allocation42] ss:$0 sm:$0xff] }
0x50ce   :  { %17884 = vmatpush3.bf16.msra.mxu1 %v17883_v55 }
0x50e7   :  { %v17278_v15 = vpop.f32.mrb[200].mxu1 }
0x50e8   :  { %v17300_v43 = vpop.f32.mrb[204].mxu0  ;;  %v17279_v60 = vpop.f32.mrb[201].mxu1 }
0x50e9   :  { %v17280_v11 = vadd.f32 %v17279_v60, %v17278_v15  ;;  %v17301_v31 = vpop.f32.mrb[205].mxu0  ;;  %v17281_v40 = vpop.f32.mrb[202].mxu1 }
0x50ea   :  { %v17302_v30 = vadd.f32 %v17301_v31, %v17300_v43  ;;  %v17303_v56 = vpop.f32.mrb[206].mxu0  ;;  %v17282_v61 = vpop.f32.mrb[203].mxu1 }
0x50eb   :  { %v15280_v57 = vadd.f32 %v17280_v11, %v15240_v13  ;;  %v17304_v39 = vpop.f32.mrb[207].mxu0 }
0x50ed   :  { %v15320_v20 = vadd.f32 %v17302_v30, %v15280_v57 }
0x5107   :  { %v17322_v8 = vpop.f32.mrb[204].mxu1 }
0x5108   :  { %v17344_v9 = vpop.f32.mrb[208].mxu0  ;;  %v17323_v18 = vpop.f32.mrb[205].mxu1 }
0x5109   :  { %v17324_v19 = vadd.f32 %v17323_v18, %v17322_v8  ;;  %v17345_v17 = vpop.f32.mrb[209].mxu0  ;;  %v17325_v25 = vpop.f32.mrb[206].mxu1 }
0x510a   :  { %v17346_v29 = vadd.f32 %v17345_v17, %v17344_v9  ;;  %v17347_v32 = vpop.f32.mrb[210].mxu0  ;;  %v17326_v35 = vpop.f32.mrb[207].mxu1 }
0x510b   :  { %v15360_v28 = vadd.f32 %v17324_v19, %v15320_v20  ;;  %v17348_v3 = vpop.f32.mrb[211].mxu0 }
0x510d   :  { %v15400_v37 = vadd.f32 %v17346_v29, %v15360_v28 }
0x510f   :  { %v15405_v46 = vadd.f32 %v15400_v37, %v21302_v27  ;;  %v16452_v27 = vld [vmem:[#allocation7] ss:$0 sm:$0xff] }
0x5111   :  { %v15406_v21 = vsel %vm606_vm1, %v15405_v46, 0.0 }
0x5112   :  { %15407 = vadd.xlane.f32.xlu1 %v15406_v21 }
0x519f   :  { %v15408_v4 = vpop.xlane.xlu1 %15407 }
0x51a0   :  { %v15409_v59 = vmul.f32 0.03125, %v15408_v4 }
0x51a2   :  { %v15410_v10 = vsub.f32 %v15405_v46, %v15409_v59 }
0x51a4   :  { %v15411_v22 = vmul.f32 %v15410_v10, %v15410_v10 }
0x51a6   :  { %v15412_v23 = vsel %vm606_vm1, %v15411_v22, 0.0 }
0x51a7   :  { %15413 = vadd.xlane.f32.xlu1 %v15412_v23 }
0x5234   :  { %v15414_v7 = vpop.xlane.xlu1 %15413 }
0x5235   :  { %v15415_v36 = vmul.f32 0.03125, %v15414_v7 }
0x5237   :  { %v15416_v50 = vadd.f32 1e-05, %v15415_v36 }
0x5239   :  { %18624 = vrsqrt.f32 %v15416_v50 }
0x5243   :  { %v18625_v42 = vpop.eup %18624 }
0x5244   :  { %v15418_v38 = vmul.f32 %v18625_v42, %v15410_v10 }
0x5246   :  { %v15426_v12 = vmul.f32 %v16451_v34, %v15418_v38 }
0x5248   :  { %v15434_v51 = vadd.f32 %v16452_v27, %v15426_v12 }
0x524a   :  { %v15435_v24 = vsel %vm606_vm1, %v15434_v51, 0.0 }
0x524b   :  { %15436 = vadd.xlane.f32.xlu1 %v15435_v24 }
0x52d8   :  { %v15437_v49 = vpop.xlane.xlu1 %15436 }
0x52d9   :  { %v15438_v44 = vmul.f32 0.03125, %v15437_v49 }
0x52db   :  { %v15439_v52 = vsub.f32 %v15434_v51, %v15438_v44 }
0x52dd   :  { %v15440_v53 = vmul.f32 %v15439_v52, %v15439_v52 }
0x52df   :  { %v15441_v41 = vsel %vm606_vm1, %v15440_v53, 0.0 }
0x52e0   :  { %15442 = vadd.xlane.f32.xlu1 %v15441_v41 }
0x536d   :  { %v15443_v14 = vpop.xlane.xlu1 %15442 }
0x536e   :  { %v15444_v6 = vmul.f32 0.03125, %v15443_v14 }
0x5370   :  { %v15445_v54 = vadd.f32 1e-05, %v15444_v6 }
0x5372   :  { %18626 = vrsqrt.f32 %v15445_v54 }
0x537c   :  { %v18627_v47 = vpop.eup %18626 }
0x537d   :  { %v15447_v1 = vmul.f32 %v18627_v47, %v15439_v52 }
0x537f   :  { %v15455_v48 = vmul.f32 %v16453_v33, %v15447_v1 }
0x5381   :  { %v15463_v62 = vadd.f32 %v16454_v26, %v15455_v48 }
0x5383   :  { %17823 = vmatmul.mubr.msk.f32.vlgmr.msra.gmra.mrb[208].mxu1 %vm606_vm1, %v15463_v62 }
0x5456   :  { %v15544_v13 = vpop.f32.mrb[208].mxu1 }
0x5457   :  { %v15545_v0 = vadd.f32 %v16455_v16, %v15544_v13  ;;  %v17824_v15 = vpop.f32.mrb[209].mxu1 }
0x5459   :  { %15549 = vst.msk [vmem:[%s19714_s8] sm:$0xff] %vm15548_vm3, %v15545_v0 }
0x545a   :  { %15554 = vsyncpa [#allocation3], 1 }
0x545b   :  { %15555 = vsyncpa [#allocation5], 1 }
0x545c   :  { %15556 = vsyncpa [#allocation8], 1 }
0x545d   :  { %15557 = vsyncpa [#allocation11], 1 }
0x545e   :  { %15558 = vsyncpa [#allocation14], 1 }
0x545f   :  { %15559 = vsyncpa [#allocation17], 1 }
0x5460   :  { %15560 = vsyncpa [#allocation20], 1 }
0x5461   :  { %15561 = vsyncpa [#allocation23], 1 }
0x5462   :  { %15562 = vsyncpa [#allocation26], 1 }
0x5463   :  { %15563 = vsyncpa [#allocation29], 1 }
0x5464   :  { %15564 = vsyncpa [#allocation32], 1 }
0x5465   :  { %15565 = vsyncpa [#allocation35], 1 }
0x5466   :  { %15566 = vsyncpa [#allocation38], 1 }
0x5467   :  { %15567 = vsyncpa [#allocation41], 1 }

</bundles_post_ra>
